<compile_context>
chip_gen: v7x
topology: tpu7x:2x2x1
jax: 0.10.0
libtpu: 0.0.40
codegen_flags: <defaults>
</compile_context>

<pallas_src>
import numpy as np
import jax
import jax.numpy as jnp
from jax.experimental import pallas as pl
from jax.experimental.pallas import tpu as pltpu


_LANE = 128
_SUBLANE = 8
# Below this much input traffic a standalone pallas_call is dominated by launch /
# pipeline-setup / per-step overhead; fall back to fusible jnp ops instead.
_PALLAS_MIN_BYTES = 1 << 20


def _noise_norm_act_kernel(noise_ref, x_ref, p_ref, o_ref):
    # noise_ref: SMEM (1,) f32 ; x_ref/o_ref: (TN, D) ; p_ref: (D, D) bf16 0/1
    # "same irrep instance" block-diagonal matrix.
    x = x_ref[...]
    gain = 1.0 + noise_ref[0]          # f32 scalar; f(n)/n == 1 + noise for any n > 0

    # "Does this component's irrep instance have any nonzero component?" as ONE bf16
    # MXU pass: cnt[r, c] = #nonzero components in instance(c) of row r.
    # (x != 0) is exact 0/1 in bf16 (exact OR), immune to subnormal flush.
    nz = (x != 0).astype(jnp.bfloat16)
    cnt = jnp.dot(nz, p_ref[...], preferred_element_type=jnp.float32)

    if x.dtype == jnp.bfloat16:
        # bf16 VPU path (v6e/v7x): half the vregs / VPU ops / store bundles per tile.
        scaled = gain.astype(jnp.bfloat16) * x
    else:
        # v5e has no bf16 VPU/EUP; keep the elementwise path in f32.
        scaled = gain * x.astype(jnp.float32)

    # e3nn gives 0/0 = NaN on zero-norm instances; keep the NaN confined to exactly
    # that instance's components (the NaN never flows through the matmul).
    o_ref[...] = jnp.where(cnt > 0.0, scaled, jnp.nan).astype(o_ref.dtype)


def build_same_instance_matrix(irreps):
    """irreps: list of (mul, l). Returns (D, D) 0/1 f32 matrix: 1 iff two flat
    components belong to the same irrep instance (block-diagonal of ones)."""
    dims = []
    for mul, l in irreps:
        dims.extend([2 * l + 1] * mul)
    D = sum(dims)
    P = np.zeros((D, D), dtype=np.float32)
    off = 0
    for d in dims:
        P[off:off + d, off:off + d] = 1.0
        off += d
    return P


def _round_up(a, b):
    return (a + b - 1) // b * b


def _row_tile_cap():
    """Generation-aware row-tile cap.  Real VMEM cost per (tn, D) block is
    tn * 128 * itemsize bytes (last dim lane-padded to 128); with in + out blocks
    double-buffered the buffers cost 4 * tn * 128 * itemsize.
      tn=16384 (f32) -> 32 MiB of buffers: fine under v5e/v6e 128 MiB physical VMEM.
      v7x only has 64 MiB per TC, so cap at 8192 -> 16 MiB with headroom."""
    try:
        vmem_cap = int(pltpu.get_tpu_info().vmem_capacity_bytes)
    except Exception:
        vmem_cap = 64 << 20      # conservative default if the query is unavailable
    return 16384 if vmem_cap >= (100 << 20) else 8192


def noise_layer_forward(x, noise, same_instance, *, tile_n=None, use_pallas=None):
    """NoiseLayer forward.  x: (N, D), noise: (1,) f32, same_instance: (D, D) 0/1 f32.

    use_pallas: True / False / None (auto).  Auto routes small inputs (< ~1 MiB)
    to plain jnp ops so XLA can fuse them into adjacent encoder/decoder ops."""
    N, D = x.shape

    if use_pallas is None:
        use_pallas = x.size * x.dtype.itemsize >= _PALLAS_MIN_BYTES
    if not use_pallas:
        gain = 1.0 + noise[0]
        cnt = jnp.dot((x != 0).astype(jnp.float32), same_instance.astype(jnp.float32))
        scaled = gain * x.astype(jnp.float32)
        return jnp.where(cnt > 0.0, scaled, jnp.nan).astype(x.dtype)

    cap = _row_tile_cap() if tile_n is None else tile_n
    tn = max(_SUBLANE, min(_round_up(N, _SUBLANE), _round_up(cap, _SUBLANE)))
    n_blocks = pl.cdiv(N, tn)
    # Give megacore (v7x, 2 TCs) a second program only when each half still carries
    # meaningful HBM traffic (> ~1 MiB per half, i.e. well over 1 us of DMA per step
    # so the extra ~0.35 us/step overhead is amortized).  Harmless on v5e/v6e.
    if n_blocks < 2:
        half_bytes = N * D * x.dtype.itemsize        # (read + write) / 2
        if half_bytes > (1 << 20):
            tn = max(_SUBLANE, _round_up(pl.cdiv(N, 2), _SUBLANE))
            n_blocks = pl.cdiv(N, tn)
    grid = (n_blocks,)

    # Real (lane-padded) VMEM footprint: in + out blocks, double-buffered, plus the
    # tiny (D, D) constant and headroom for internal scratch.
    itemsize = max(x.dtype.itemsize, 4)
    padded_block = tn * _round_up(D, _LANE) * itemsize
    vmem_need = 4 * padded_block + (4 << 20)

    return pl.pallas_call(
        _noise_norm_act_kernel,
        out_shape=jax.ShapeDtypeStruct((N, D), x.dtype),
        grid=grid,
        in_specs=[
            pl.BlockSpec(memory_space=pltpu.MemorySpace.SMEM),   # noise scalar
            pl.BlockSpec((tn, D), lambda i: (i, 0)),             # x row tile
            pl.BlockSpec((D, D), lambda i: (0, 0)),              # same-instance matrix
        ],
        out_specs=pl.BlockSpec((tn, D), lambda i: (i, 0)),
        compiler_params=pltpu.CompilerParams(
            dimension_semantics=("parallel",),
            vmem_limit_bytes=int(vmem_need),
        ),
    )(noise, x, same_instance.astype(jnp.bfloat16))


def reference(x, noise, irreps):
    """Pure-JAX reference of e3nn NormActivation with f(n) = (1 + noise)*n."""
    out = []
    off = 0
    N = x.shape[0]
    for mul, l in irreps:
        d = 2 * l + 1
        blk = x[:, off:off + mul * d].reshape(N, mul, d)
        n = jnp.sqrt(jnp.maximum((blk ** 2).sum(-1, keepdims=True), 0.0))
        s = ((1.0 + noise[0]) * n) / n          # e3nn: f(n)/n, 0/0 -> NaN per instance
        out.append((blk * s).reshape(N, mul * d))
        off += mul * d
    return jnp.concatenate(out, axis=-1)


if __name__ == "__main__":
    # Representative e3nn irreps layout: "8x0e + 4x1o + 2x2e"
    #   D = 8*1 + 4*3 + 2*5 = 30 flat components, 14 irrep instances.
    irreps = [(8, 0), (4, 1), (2, 2)]
    std_dev = 1.0           # EncoderDecoder uses NoiseLayer(latent_irreps, 1.0)

    same_inst = jnp.asarray(build_same_instance_matrix(irreps))
    D = same_inst.shape[0]

    key = jax.random.PRNGKey(0)
    kx, kn = jax.random.split(key)
    # torch.normal(0, std_dev, (1,)) equivalent, drawn deterministically in JAX.
    noise = std_dev * jax.random.normal(kn, (1,), dtype=jnp.float32)

    # --- Pallas path (force Pallas; auto dispatch would route small latents to jnp) ---
    N = 4096
    x = jax.random.normal(kx, (N, D), dtype=jnp.float32)
    # Exercise the zero-norm (0/0 -> NaN) path on exactly one irrep instance
    # (second 1o instance: components 11..13 of row 5).
    x = x.at[5, 11:14].set(0.0)

    out = jax.block_until_ready(noise_layer_forward(x, noise, same_inst, use_pallas=True))
    ref = jax.block_until_ready(reference(x, noise, irreps))
    out_np, ref_np = np.asarray(out), np.asarray(ref)

    assert out.shape == x.shape and out.dtype == x.dtype
    # NaNs must be confined to exactly the zero-norm instance's components.
    assert np.array_equal(np.isnan(out_np), np.isnan(ref_np))
    np.testing.assert_allclose(out_np, ref_np, rtol=1e-5, atol=1e-6)

    # Multi-program grid (smaller row tile) must also match.
    out2 = jax.block_until_ready(
        noise_layer_forward(x, noise, same_inst, tile_n=1024, use_pallas=True))
    np.testing.assert_allclose(np.asarray(out2), ref_np, rtol=1e-5, atol=1e-6)

    # Small-N latent (the EncoderDecoder case, N=256): auto-dispatch fuses as plain jnp.
    xs = jax.random.normal(kx, (256, D), dtype=jnp.float32)
    outs = jax.block_until_ready(noise_layer_forward(xs, noise, same_inst))
    refs = jax.block_until_ready(reference(xs, noise, irreps))
    np.testing.assert_allclose(np.asarray(outs), np.asarray(refs), rtol=1e-5, atol=1e-6)

    print("KERNEL_OK")
</pallas_src>

<mosaic_0001>
module attributes {stable_mosaic.version = 11 : i64} {
  func.func @_noise_norm_act_kernel(%arg0: i32, %arg1: memref<1xf32, #tpu.memory_space<smem>>, %arg2: memref<4096x30xf32, #tpu.memory_space<vmem>>, %arg3: memref<30x30xbf16, #tpu.memory_space<vmem>>, %arg4: memref<4096x30xf32, #tpu.memory_space<vmem>>) attributes {dimension_semantics = [#tpu.dimension_semantics<parallel>], iteration_bounds = array<i64: 1>, scalar_prefetch = 0 : i64, scratch_operands = 0 : i64, tpu.core_type = #tpu.core_type<tc>, window_params = [{transform_indices = @transform_0, window_bounds = array<i64: 1>}, {transform_indices = @transform_1, window_bounds = array<i64: 4096, 30>}, {pipeline_mode = #tpu.pipeline_mode<synchronous>, transform_indices = @transform_2, window_bounds = array<i64: 30, 30>}, {transform_indices = @transform_3, window_bounds = array<i64: 4096, 30>}]} {
    %c0 = arith.constant 0 : index
    %c0_0 = arith.constant 0 : index
    %0 = vector.load %arg2[%c0, %c0_0] : memref<4096x30xf32, #tpu.memory_space<vmem>>, vector<4096x30xf32>
    %c0_1 = arith.constant 0 : index
    %1 = memref.load %arg1[%c0_1] : memref<1xf32, #tpu.memory_space<smem>>
    %cst = arith.constant 1.000000e+00 : f32
    %2 = arith.addf %cst, %1 : f32
    %cst_2 = arith.constant 0.000000e+00 : f32
    %3 = vector.broadcast %cst_2 : f32 to vector<4096x30xf32>
    %4 = arith.cmpf one, %0, %3 : vector<4096x30xf32>
    %5 = arith.extui %4 : vector<4096x30xi1> to vector<4096x30xi32>
    %6 = arith.sitofp %5 : vector<4096x30xi32> to vector<4096x30xf32>
    %7 = arith.truncf %6 : vector<4096x30xf32> to vector<4096x30xbf16>
    %c0_3 = arith.constant 0 : index
    %c0_4 = arith.constant 0 : index
    %8 = vector.load %arg3[%c0_3, %c0_4] : memref<30x30xbf16, #tpu.memory_space<vmem>>, vector<30x30xbf16>
    %cst_5 = arith.constant dense<0.000000e+00> : vector<4096x30xf32>
    %9 = tpu.matmul %7, %8, %cst_5 {dimension_numbers = #tpu.dot_dimension_numbers<[1], [0], [0], [1], [0, 0, 1, 1], [], []>} : vector<4096x30xbf16>, vector<30x30xbf16>, vector<4096x30xf32> -> vector<4096x30xf32>
    %10 = vector.broadcast %2 : f32 to vector<4096x30xf32>
    %11 = arith.mulf %10, %0 : vector<4096x30xf32>
    %cst_6 = arith.constant 0.000000e+00 : f32
    %12 = vector.broadcast %cst_6 : f32 to vector<4096x30xf32>
    %13 = arith.cmpf ogt, %9, %12 : vector<4096x30xf32>
    %cst_7 = arith.constant 0x7FC00000 : f32
    %14 = vector.broadcast %cst_7 : f32 to vector<4096x30xf32>
    %15 = arith.select %13, %11, %14 : vector<4096x30xi1>, vector<4096x30xf32>
    %c0_8 = arith.constant 0 : index
    %c0_9 = arith.constant 0 : index
    %16 = vector.load %arg4[%c0_8, %c0_9] : memref<4096x30xf32, #tpu.memory_space<vmem>>, vector<4096x30xf32>
    tpu.vector_store %arg4[%c0_8, %c0_9], %15 {strides = array<i32>} : memref<4096x30xf32, #tpu.memory_space<vmem>>, vector<4096x30xf32>,
    return
  }
  func.func @transform_0(%arg0: i32) -> i32 {
    %c0_i32 = arith.constant 0 : i32
    %c0_i32_0 = arith.constant 0 : i32
    return %c0_i32 : i32
  }
  func.func @transform_1(%arg0: i32) -> (i32, i32) {
    %c0_i32 = arith.constant 0 : i32
    %c0_i32_0 = arith.constant 0 : i32
    return %arg0, %c0_i32 : i32, i32
  }
  func.func @transform_2(%arg0: i32) -> (i32, i32) {
    %c0_i32 = arith.constant 0 : i32
    %c0_i32_0 = arith.constant 0 : i32
    %c0_i32_1 = arith.constant 0 : i32
    return %c0_i32, %c0_i32_0 : i32, i32
  }
  func.func @transform_3(%arg0: i32) -> (i32, i32) {
    %c0_i32 = arith.constant 0 : i32
    %c0_i32_0 = arith.constant 0 : i32
    return %arg0, %c0_i32 : i32, i32
  }
}

</mosaic_0001>

<bundles_post_ra>
// kernel: tpu_custom_call.1
= control target key start
LH: loop header
LB: loop body
LE: loop exit
PB: predicated region body
PF: predicated region fallthrough
CT: control target
= control target key end

     0   :  { %vm3106_vm0 = vcmask 1046528   ;;  %vm2337_vm1 = vcmask 244736   ;;  %v18640_v8 = vmov 0.0   ;;  %s18607_s2 = inlined_call_operand.vmem [shape: bf16[30,30], index: 2, kind: input, shape index: {}]   ;;  %s18608_s1 = inlined_call_operand.vmem [shape: f32[4096,30], index: 1, kind: input, shape index: {}]   ;;  %s18609_s0 = inlined_call_operand.<no memory space> [shape: f32[1], index: 0, kind: input, shape index: {}]   ;;  %s18610_s3 = inlined_call_operand.vmem [shape: f32[4096,30], index: 3, kind: output, shape index: {}]  }
   0x1   :  { %v8795_v0 = vld [vmem:[%s18607_s2] sm:$0xff]   ;;  %v8796_v1 = vld [vmem:[%s18607_s2 + $0x8] sm:$0x7f]   ;;  %v18_v7 = vld [vmem:[%s18608_s1 + $0x10] sm:$0xff]  ;;  %s529_s27 = sadd.f32 1.0, %s18609_s0 }
   0x2   :  { %8272 = vmatprep.subr.bf16.mxu0 %v8795_v0  ;;  %8788 = vmatprep.subr.bf16.mxu1 %v8795_v0  ;;  %v16_v2 = vld [vmem:[%s18608_s1] sm:$0xff]  ;;  %v17_v3 = vld [vmem:[%s18608_s1 + $0x8] sm:$0xff]  ;;  %v3108_v5 = vsel %vm3106_vm0, %v8796_v1, 0  ;;  %v19_v12 = vld [vmem:[%s18608_s1 + $0x18] sm:$0xff]  ;;  %vm532_vm6 = vcmp.ne.f32.partialorder %v18_v7, 0.0 }
   0x3   :  { %v272_v4 = vld [vmem:[%s18608_s1 + $0x800] sm:$0xff]  ;;  %8273 = vmatpush3.bf16.msra.mxu0 %v8795_v0  ;;  %8790 = vmatpush3.bf16.msra.mxu1 %v8795_v0  ;;  %vm530_vm2 = vcmp.ne.f32.partialorder %v16_v2, 0.0  ;;  %vm531_vm3 = vcmp.ne.f32.partialorder %v17_v3, 0.0  ;;  %v273_v6 = vld [vmem:[%s18608_s1 + $0x808] sm:$0xff]  ;;  %v274_v13 = vld [vmem:[%s18608_s1 + $0x810] sm:$0xff]  ;;  %vm533_vm7 = vcmp.ne.f32.partialorder %v19_v12, 0.0 }
   0x4   :  { %vm786_vm4 = vcmp.ne.f32.partialorder %v272_v4, 0.0  ;;  %8792 = vmatprep.subr.msk.bf16.mxu0 %vm3106_vm0, %v8796_v1  ;;  %8793 = vmatprep.subr.msk.bf16.mxu1 %vm3106_vm0, %v8796_v1  ;;  %v7244_v9 = vsel %vm530_vm2, 1.0, %v18640_v8  ;;  %v7245_v10 = vsel %vm531_vm3, 1.0, %v18640_v8  ;;  %vm787_vm5 = vcmp.ne.f32.partialorder %v273_v6, 0.0  ;;  %v275_v16 = vld [vmem:[%s18608_s1 + $0x818] sm:$0xff]  ;;  %v20_v17 = vld [vmem:[%s18608_s1 + $0x20] sm:$0xff] }
   0x5   :  { %v7500_v11 = vsel %vm786_vm4, 1.0, %v18640_v8  ;;  %v2066_v14 = vpack.c.bf16 %v7245_v10, %v7244_v9  ;;  %v7501_v15 = vsel %vm787_vm5, 1.0, %v18640_v8  ;;  %v21_v18 = vld [vmem:[%s18608_s1 + $0x28] sm:$0xff]  ;;  %v7246_v20 = vsel %vm532_vm6, 1.0, %v18640_v8  ;;  %v276_v22 = vld [vmem:[%s18608_s1 + $0x820] sm:$0xff]  ;;  %v22_v26 = vld [vmem:[%s18608_s1 + $0x30] sm:$0xff] }
   0x6   :  { %v2194_v19 = vpack.c.bf16 %v7501_v15, %v7500_v11  ;;  %v7247_v21 = vsel %vm533_vm7, 1.0, %v18640_v8  ;;  %vm788_vm8 = vcmp.ne.f32.partialorder %v274_v13, 0.0  ;;  %v277_v23 = vld [vmem:[%s18608_s1 + $0x828] sm:$0xff]  ;;  %vm789_vm9 = vcmp.ne.f32.partialorder %v275_v16, 0.0  ;;  %v23_v27 = vld [vmem:[%s18608_s1 + $0x38] sm:$0xff]  ;;  %v278_v30 = vld [vmem:[%s18608_s1 + $0x830] sm:$0xff] }
   0x7   :  { %8275 = vmatpush3.bf16.msra.mxu0 %v3108_v5  ;;  %8791 = vmatpush3.bf16.msra.mxu1 %v3108_v5  ;;  %v2067_v24 = vpack.c.bf16 %v7247_v21, %v7246_v20  ;;  %v7502_v25 = vsel %vm788_vm8, 1.0, %v18640_v8  ;;  %vm534_vm10 = vcmp.ne.f32.partialorder %v20_v17, 0.0  ;;  %v7503_v28 = vsel %vm789_vm9, 1.0, %v18640_v8  ;;  %v279_v34 = vld [vmem:[%s18608_s1 + $0x838] sm:$0xff]  ;;  %v24_v35 = vld [vmem:[%s18608_s1 + $0x40] sm:$0xff]  ;;  %v25_v38 = vld [vmem:[%s18608_s1 + $0x48] sm:$0xff] }
   0x8   :  { %8276 = vmatprep.mubr.msk.bf16.mxu0 %vm2337_vm1, %v2066_v14  ;;  %8532 = vmatprep.mubr.msk.bf16.mxu1 %vm2337_vm1, %v2194_v19  ;;  %vm535_vm11 = vcmp.ne.f32.partialorder %v21_v18, 0.0  ;;  %v7248_v29 = vsel %vm534_vm10, 1.0, %v18640_v8  ;;  %vm790_vm12 = vcmp.ne.f32.partialorder %v276_v22, 0.0  ;;  %v2195_v31 = vpack.c.bf16 %v7503_v28, %v7502_v25  ;;  %v280_v39 = vld [vmem:[%s18608_s1 + $0x840] sm:$0xff]  ;;  %v281_v43 = vld [vmem:[%s18608_s1 + $0x848] sm:$0xff]  ;;  %v26_v46 = vld [vmem:[%s18608_s1 + $0x50] sm:$0xff] }
   0x9   :  { %v7249_v32 = vsel %vm535_vm11, 1.0, %v18640_v8  ;;  %vm791_vm13 = vcmp.ne.f32.partialorder %v277_v23, 0.0  ;;  %v7504_v33 = vsel %vm790_vm12, 1.0, %v18640_v8  ;;  %vm536_vm14 = vcmp.ne.f32.partialorder %v22_v26, 0.0  ;;  %v27_v47 = vld [vmem:[%s18608_s1 + $0x58] sm:$0xff]  ;;  %v282_v50 = vld [vmem:[%s18608_s1 + $0x850] sm:$0xff] }
   0xa   :  { %8277 = vmatmul.mubr.msk.bf16.vlgmr.msra.gmra.mrb[0].mxu0 %vm2337_vm1, %v2067_v24  ;;  %v2068_v36 = vpack.c.bf16 %v7249_v32, %v7248_v29  ;;  %v7505_v37 = vsel %vm791_vm13, 1.0, %v18640_v8  ;;  %vm537_vm15 = vcmp.ne.f32.partialorder %v23_v27, 0.0  ;;  %8533 = vmatmul.mubr.msk.bf16.vlgmr.msra.gmra.mrb[0].mxu1 %vm2337_vm1, %v2195_v31  ;;  %v7250_v41 = vsel %vm536_vm14, 1.0, %v18640_v8  ;;  %v283_v54 = vld [vmem:[%s18608_s1 + $0x858] sm:$0xff]  ;;  %v28_v55 = vld [vmem:[%s18608_s1 + $0x60] sm:$0xff]  ;;  %v29_v58 = vld [vmem:[%s18608_s1 + $0x68] sm:$0xff] }
   0xb   :  { %v2196_v40 = vpack.c.bf16 %v7505_v37, %v7504_v33  ;;  %v7251_v42 = vsel %vm537_vm15, 1.0, %v18640_v8  ;;  %vm792_vm0 = vcmp.ne.f32.partialorder %v278_v30, 0.0  ;;  %vm793_vm2 = vcmp.ne.f32.partialorder %v279_v34, 0.0  ;;  %v284_v59 = vld [vmem:[%s18608_s1 + $0x860] sm:$0xff]  ;;  %v285_v63 = vld [vmem:[%s18608_s1 + $0x868] sm:$0xff]  ;;  %v30_v2 = vld [vmem:[%s18608_s1 + $0x70] sm:$0xff] }
   0xc   :  { %8280 = vmatprep.mubr.msk.bf16.mxu0 %vm2337_vm1, %v2068_v36  ;;  %v2069_v44 = vpack.c.bf16 %v7251_v42, %v7250_v41  ;;  %v7506_v45 = vsel %vm792_vm0, 1.0, %v18640_v8  ;;  %vm538_vm3 = vcmp.ne.f32.partialorder %v24_v35, 0.0  ;;  %v7507_v48 = vsel %vm793_vm2, 1.0, %v18640_v8  ;;  %v31_v3 = vld [vmem:[%s18608_s1 + $0x78] sm:$0xff]  ;;  %v286_v6 = vld [vmem:[%s18608_s1 + $0x870] sm:$0xff]  ;;  %v32_v12 = vld [vmem:[%s18608_s1 + $0x80] sm:$0xff] }
   0xd   :  { %8536 = vmatprep.mubr.msk.bf16.mxu1 %vm2337_vm1, %v2196_v40  ;;  %vm539_vm4 = vcmp.ne.f32.partialorder %v25_v38, 0.0  ;;  %v7252_v49 = vsel %vm538_vm3, 1.0, %v18640_v8  ;;  %vm794_vm5 = vcmp.ne.f32.partialorder %v280_v39, 0.0  ;;  %v2197_v51 = vpack.c.bf16 %v7507_v48, %v7506_v45  ;;  %v287_v11 = vld [vmem:[%s18608_s1 + $0x878] sm:$0xff]  ;;  %v33_v15 = vld [vmem:[%s18608_s1 + $0x88] sm:$0xff]  ;;  %v288_v16 = vld [vmem:[%s18608_s1 + $0x880] sm:$0xff] }
   0xe   :  { %v7253_v52 = vsel %vm539_vm4, 1.0, %v18640_v8  ;;  %vm795_vm6 = vcmp.ne.f32.partialorder %v281_v43, 0.0  ;;  %v7508_v53 = vsel %vm794_vm5, 1.0, %v18640_v8  ;;  %vm540_vm7 = vcmp.ne.f32.partialorder %v26_v46, 0.0  ;;  %v289_v20 = vld [vmem:[%s18608_s1 + $0x888] sm:$0xff]  ;;  %v34_v23 = vld [vmem:[%s18608_s1 + $0x90] sm:$0xff] }
   0xf   :  { %v2070_v56 = vpack.c.bf16 %v7253_v52, %v7252_v49  ;;  %v7509_v57 = vsel %vm795_vm6, 1.0, %v18640_v8  ;;  %vm541_vm8 = vcmp.ne.f32.partialorder %v27_v47, 0.0  ;;  %v7254_v61 = vsel %vm540_vm7, 1.0, %v18640_v8  ;;  %v35_v24 = vld [vmem:[%s18608_s1 + $0x98] sm:$0xff]  ;;  %v290_v27 = vld [vmem:[%s18608_s1 + $0x890] sm:$0xff]  ;;  %v36_v32 = vld [vmem:[%s18608_s1 + $0xa0] sm:$0xff] }
  0x10   :  { %v2198_v60 = vpack.c.bf16 %v7509_v57, %v7508_v53  ;;  %v7255_v62 = vsel %vm541_vm8, 1.0, %v18640_v8  ;;  %vm796_vm9 = vcmp.ne.f32.partialorder %v282_v50, 0.0  ;;  %vm797_vm10 = vcmp.ne.f32.partialorder %v283_v54, 0.0  ;;  %v291_v31 = vld [vmem:[%s18608_s1 + $0x898] sm:$0xff]  ;;  %v37_v35 = vld [vmem:[%s18608_s1 + $0xa8] sm:$0xff]  ;;  %v292_v36 = vld [vmem:[%s18608_s1 + $0x8a0] sm:$0xff] }
  0x11   :  { %v2071_v0 = vpack.c.bf16 %v7255_v62, %v7254_v61  ;;  %v7510_v1 = vsel %vm796_vm9, 1.0, %v18640_v8  ;;  %vm542_vm11 = vcmp.ne.f32.partialorder %v28_v55, 0.0  ;;  %v7511_v4 = vsel %vm797_vm10, 1.0, %v18640_v8  ;;  %v293_v40 = vld [vmem:[%s18608_s1 + $0x8a8] sm:$0xff]  ;;  %v38_v43 = vld [vmem:[%s18608_s1 + $0xb0] sm:$0xff]  ;;  %v40_v52 = vld [vmem:[%s18608_s1 + $0xc0] sm:$0xff] }
  0x12   :  { %8281 = vmatmul.mubr.msk.bf16.gmra.mrb[4].mxu0 %vm2337_vm1, %v2069_v44  ;;  %vm543_vm12 = vcmp.ne.f32.partialorder %v29_v58, 0.0  ;;  %v7256_v5 = vsel %vm542_vm11, 1.0, %v18640_v8  ;;  %vm798_vm13 = vcmp.ne.f32.partialorder %v284_v59, 0.0  ;;  %8537 = vmatmul.mubr.msk.bf16.gmra.mrb[4].mxu1 %vm2337_vm1, %v2197_v51  ;;  %v2199_v7 = vpack.c.bf16 %v7511_v4, %v7510_v1  ;;  %v39_v44 = vld [vmem:[%s18608_s1 + $0xb8] sm:$0xff]  ;;  %v294_v47 = vld [vmem:[%s18608_s1 + $0x8b0] sm:$0xff]  ;;  %v41_v55 = vld [vmem:[%s18608_s1 + $0xc8] sm:$0xff] }
  0x13   :  { %8284 = vmatprep.mubr.msk.bf16.mxu0 %vm2337_vm1, %v2070_v56  ;;  %v7257_v9 = vsel %vm543_vm12, 1.0, %v18640_v8  ;;  %vm799_vm14 = vcmp.ne.f32.partialorder %v285_v63, 0.0  ;;  %v7512_v10 = vsel %vm798_vm13, 1.0, %v18640_v8  ;;  %8540 = vmatprep.mubr.msk.bf16.mxu1 %vm2337_vm1, %v2198_v60  ;;  %vm544_vm15 = vcmp.ne.f32.partialorder %v30_v2, 0.0  ;;  %v295_v51 = vld [vmem:[%s18608_s1 + $0x8b8] sm:$0xff]  ;;  %v296_v56 = vld [vmem:[%s18608_s1 + $0x8c0] sm:$0xff] }
  0x14   :  { %v2072_v13 = vpack.c.bf16 %v7257_v9, %v7256_v5  ;;  %v7513_v14 = vsel %vm799_vm14, 1.0, %v18640_v8  ;;  %vm545_vm0 = vcmp.ne.f32.partialorder %v31_v3, 0.0  ;;  %v9483_v18 = vsel %vm544_vm15, 1.0, %v18640_v8  ;;  %v297_v60 = vld [vmem:[%s18608_s1 + $0x8c8] sm:$0xff]  ;;  %v42_v63 = vld [vmem:[%s18608_s1 + $0xd0] sm:$0xff]  ;;  %v44_v9 = vld [vmem:[%s18608_s1 + $0xe0] sm:$0xff] }
  0x15   :  { %v2200_v17 = vpack.c.bf16 %v7513_v14, %v7512_v10  ;;  %v9486_v19 = vsel %vm545_vm0, 1.0, %v18640_v8  ;;  %vm800_vm2 = vcmp.ne.f32.partialorder %v286_v6, 0.0  ;;  %vm801_vm3 = vcmp.ne.f32.partialorder %v287_v11, 0.0  ;;  %v298_v3 = vld [vmem:[%s18608_s1 + $0x8d0] sm:$0xff] }
  0x16   :  { %v2073_v21 = vpack.c.bf16 %v9486_v19, %v9483_v18  ;;  %v9494_v22 = vsel %vm800_vm2, 1.0, %v18640_v8  ;;  %vm546_vm4 = vcmp.ne.f32.partialorder %v32_v12, 0.0  ;;  %v9503_v25 = vsel %vm801_vm3, 1.0, %v18640_v8  ;;  %v45_v12 = vld [vmem:[%s18608_s1 + $0xe8] sm:$0xff] }
  0x17   :  { %vm547_vm5 = vcmp.ne.f32.partialorder %v33_v15, 0.0  ;;  %v9506_v26 = vsel %vm546_vm4, 1.0, %v18640_v8  ;;  %vm802_vm6 = vcmp.ne.f32.partialorder %v288_v16, 0.0  ;;  %v2201_v28 = vpack.c.bf16 %v9503_v25, %v9494_v22 }
  0x18   :  { %v9514_v29 = vsel %vm547_vm5, 1.0, %v18640_v8  ;;  %vm803_vm7 = vcmp.ne.f32.partialorder %v289_v20, 0.0  ;;  %v9517_v30 = vsel %vm802_vm6, 1.0, %v18640_v8  ;;  %vm548_vm8 = vcmp.ne.f32.partialorder %v34_v23, 0.0  ;;  %v46_v20 = vld [vmem:[%s18608_s1 + $0xf0] sm:$0xff] }
  0x19   :  { %v2074_v33 = vpack.c.bf16 %v9514_v29, %v9506_v26  ;;  %v9528_v34 = vsel %vm803_vm7, 1.0, %v18640_v8  ;;  %vm549_vm9 = vcmp.ne.f32.partialorder %v35_v24, 0.0  ;;  %v9540_v38 = vsel %vm548_vm8, 1.0, %v18640_v8  ;;  %v302_v24 = vld [vmem:[%s18608_s1 + $0x8f0] sm:$0xff]  ;;  %v48_v29 = vld [vmem:[%s18608_s1 + $0x100] sm:$0xff] }
  0x1a   :  { %8285 = vmatmul.mubr.msk.bf16.gmra.mrb[8].mxu0 %vm2337_vm1, %v2071_v0  ;;  %v2202_v37 = vpack.c.bf16 %v9528_v34, %v9517_v30  ;;  %v9543_v39 = vsel %vm549_vm9, 1.0, %v18640_v8  ;;  %vm804_vm10 = vcmp.ne.f32.partialorder %v290_v27, 0.0  ;;  %8541 = vmatmul.mubr.msk.bf16.gmra.mrb[8].mxu1 %vm2337_vm1, %v2199_v7  ;;  %vm805_vm11 = vcmp.ne.f32.partialorder %v291_v31, 0.0  ;;  %v43_v0 = vld [vmem:[%s18608_s1 + $0xd8] sm:$0xff] }
  0x1b   :  { %8288 = vmatprep.mubr.msk.bf16.mxu0 %vm2337_vm1, %v2072_v13  ;;  %v2075_v41 = vpack.c.bf16 %v9543_v39, %v9540_v38  ;;  %v9553_v42 = vsel %vm804_vm10, 1.0, %v18640_v8  ;;  %vm550_vm12 = vcmp.ne.f32.partialorder %v36_v32, 0.0  ;;  %8544 = vmatprep.mubr.msk.bf16.mxu1 %vm2337_vm1, %v2200_v17  ;;  %v9563_v45 = vsel %vm805_vm11, 1.0, %v18640_v8  ;;  %v299_v7 = vld [vmem:[%s18608_s1 + $0x8d8] sm:$0xff]  ;;  %v300_v13 = vld [vmem:[%s18608_s1 + $0x8e0] sm:$0xff]  ;;  %v301_v17 = vld [vmem:[%s18608_s1 + $0x8e8] sm:$0xff] }
  0x1c   :  { %vm551_vm13 = vcmp.ne.f32.partialorder %v37_v35, 0.0  ;;  %v9566_v46 = vsel %vm550_vm12, 1.0, %v18640_v8  ;;  %vm806_vm14 = vcmp.ne.f32.partialorder %v292_v36, 0.0  ;;  %v2203_v48 = vpack.c.bf16 %v9563_v45, %v9553_v42  ;;  %v49_v32 = vld [vmem:[%s18608_s1 + $0x108] sm:$0xff] }
  0x1d   :  { %v9574_v49 = vsel %vm551_vm13, 1.0, %v18640_v8  ;;  %vm807_vm15 = vcmp.ne.f32.partialorder %v293_v40, 0.0  ;;  %v9577_v50 = vsel %vm806_vm14, 1.0, %v18640_v8  ;;  %vm552_vm0 = vcmp.ne.f32.partialorder %v38_v43, 0.0 }
  0x1e   :  { %v2076_v53 = vpack.c.bf16 %v9574_v49, %v9566_v46  ;;  %v9588_v54 = vsel %vm807_vm15, 1.0, %v18640_v8  ;;  %vm553_vm2 = vcmp.ne.f32.partialorder %v39_v44, 0.0  ;;  %v9599_v58 = vsel %vm552_vm0, 1.0, %v18640_v8  ;;  %v50_v44 = vld [vmem:[%s18608_s1 + $0x110] sm:$0xff]  ;;  %v52_v49 = vld [vmem:[%s18608_s1 + $0x120] sm:$0xff] }
  0x1f   :  { %v2204_v57 = vpack.c.bf16 %v9588_v54, %v9577_v50  ;;  %v9602_v59 = vsel %vm553_vm2, 1.0, %v18640_v8  ;;  %vm808_vm3 = vcmp.ne.f32.partialorder %v294_v47, 0.0  ;;  %vm809_vm4 = vcmp.ne.f32.partialorder %v295_v51, 0.0  ;;  %v51_v47 = vld [vmem:[%s18608_s1 + $0x118] sm:$0xff] }
  0x20   :  { %v2077_v61 = vpack.c.bf16 %v9602_v59, %v9599_v58  ;;  %v9610_v62 = vsel %vm808_vm3, 1.0, %v18640_v8  ;;  %vm554_vm5 = vcmp.ne.f32.partialorder %v40_v52, 0.0  ;;  %v9619_v1 = vsel %vm809_vm4, 1.0, %v18640_v8  ;;  %v53_v52 = vld [vmem:[%s18608_s1 + $0x128] sm:$0xff] }
  0x21   :  { %vm555_vm6 = vcmp.ne.f32.partialorder %v41_v55, 0.0  ;;  %v9622_v2 = vsel %vm554_vm5, 1.0, %v18640_v8  ;;  %vm810_vm7 = vcmp.ne.f32.partialorder %v296_v56, 0.0  ;;  %v2205_v4 = vpack.c.bf16 %v9619_v1, %v9610_v62  ;;  %v313_v62 = vld [vmem:[%s18608_s1 + $0x948] sm:$0xff] }
  0x22   :  { %8289 = vmatmul.mubr.msk.bf16.gmra.mrb[12].mxu0 %vm2337_vm1, %v2073_v21  ;;  %v9634_v5 = vsel %vm555_vm6, 1.0, %v18640_v8  ;;  %vm811_vm8 = vcmp.ne.f32.partialorder %v297_v60, 0.0  ;;  %v9637_v6 = vsel %vm810_vm7, 1.0, %v18640_v8  ;;  %8545 = vmatmul.mubr.msk.bf16.gmra.mrb[12].mxu1 %vm2337_vm1, %v2201_v28  ;;  %vm556_vm9 = vcmp.ne.f32.partialorder %v42_v63, 0.0  ;;  %v47_v21 = vld [vmem:[%s18608_s1 + $0xf8] sm:$0xff] }
  0x23   :  { %8292 = vmatprep.mubr.msk.bf16.mxu0 %vm2337_vm1, %v2074_v33  ;;  %v2078_v10 = vpack.c.bf16 %v9634_v5, %v9622_v2  ;;  %v9653_v11 = vsel %vm811_vm8, 1.0, %v18640_v8  ;;  %vm557_vm10 = vcmp.ne.f32.partialorder %v43_v0, 0.0  ;;  %8548 = vmatprep.mubr.msk.bf16.mxu1 %vm2337_vm1, %v2202_v37  ;;  %v9665_v15 = vsel %vm556_vm9, 1.0, %v18640_v8  ;;  %v303_v28 = vld [vmem:[%s18608_s1 + $0x8f8] sm:$0xff]  ;;  %v304_v33 = vld [vmem:[%s18608_s1 + $0x900] sm:$0xff]  ;;  %v305_v37 = vld [vmem:[%s18608_s1 + $0x908] sm:$0xff] }
  0x24   :  { %v2206_v14 = vpack.c.bf16 %v9653_v11, %v9637_v6  ;;  %v9668_v16 = vsel %vm557_vm10, 1.0, %v18640_v8  ;;  %vm812_vm11 = vcmp.ne.f32.partialorder %v298_v3, 0.0  ;;  %vm813_vm12 = vcmp.ne.f32.partialorder %v299_v7, 0.0  ;;  %v54_v0 = vld [vmem:[%s18608_s1 + $0x130] sm:$0xff]  ;;  %v55_v3 = vld [vmem:[%s18608_s1 + $0x138] sm:$0xff] }
  0x25   :  { %v2079_v18 = vpack.c.bf16 %v9668_v16, %v9665_v15  ;;  %v9676_v19 = vsel %vm812_vm11, 1.0, %v18640_v8  ;;  %vm558_vm13 = vcmp.ne.f32.partialorder %v44_v9, 0.0  ;;  %v9685_v22 = vsel %vm813_vm12, 1.0, %v18640_v8  ;;  %v59_v5 = vld [vmem:[%s18608_s1 + $0x158] sm:$0xff]  ;;  %v314_v11 = vld [vmem:[%s18608_s1 + $0x950] sm:$0xff] }
  0x26   :  { %vm559_vm14 = vcmp.ne.f32.partialorder %v45_v12, 0.0  ;;  %v9688_v23 = vsel %vm558_vm13, 1.0, %v18640_v8  ;;  %vm814_vm15 = vcmp.ne.f32.partialorder %v300_v13, 0.0  ;;  %v2207_v25 = vpack.c.bf16 %v9685_v22, %v9676_v19  ;;  %v310_v12 = vld [vmem:[%s18608_s1 + $0x930] sm:$0xff]  ;;  %v319_v19 = vld [vmem:[%s18608_s1 + $0x978] sm:$0xff]  ;;  %v64_v22 = vld [vmem:[%s18608_s1 + $0x180] sm:$0xff] }
  0x27   :  { %v9696_v26 = vsel %vm559_vm14, 1.0, %v18640_v8  ;;  %vm815_vm0 = vcmp.ne.f32.partialorder %v301_v17, 0.0  ;;  %v9699_v27 = vsel %vm814_vm15, 1.0, %v18640_v8  ;;  %vm560_vm2 = vcmp.ne.f32.partialorder %v46_v20, 0.0 }
  0x28   :  { %v2080_v30 = vpack.c.bf16 %v9696_v26, %v9688_v23  ;;  %v9710_v31 = vsel %vm815_vm0, 1.0, %v18640_v8  ;;  %vm561_vm3 = vcmp.ne.f32.partialorder %v47_v21, 0.0  ;;  %v9721_v35 = vsel %vm560_vm2, 1.0, %v18640_v8  ;;  %v311_v21 = vld [vmem:[%s18608_s1 + $0x938] sm:$0xff]  ;;  %v65_v26 = vld [vmem:[%s18608_s1 + $0x188] sm:$0xff] }
  0x29   :  { %v2208_v34 = vpack.c.bf16 %v9710_v31, %v9699_v27  ;;  %v9724_v36 = vsel %vm561_vm3, 1.0, %v18640_v8  ;;  %vm816_vm4 = vcmp.ne.f32.partialorder %v302_v24, 0.0  ;;  %vm817_vm5 = vcmp.ne.f32.partialorder %v303_v28, 0.0  ;;  %v56_v24 = vld [vmem:[%s18608_s1 + $0x140] sm:$0xff] }
  0x2a   :  { %8293 = vmatmul.mubr.msk.bf16.gmra.mrb[16].mxu0 %vm2337_vm1, %v2075_v41  ;;  %v2081_v40 = vpack.c.bf16 %v9724_v36, %v9721_v35  ;;  %v9736_v43 = vsel %vm816_vm4, 1.0, %v18640_v8  ;;  %vm562_vm6 = vcmp.ne.f32.partialorder %v48_v29, 0.0  ;;  %8549 = vmatmul.mubr.msk.bf16.gmra.mrb[16].mxu1 %vm2337_vm1, %v2203_v48  ;;  %v9753_v38 = vsel %vm817_vm5, 1.0, %v18640_v8  ;;  %v306_v41 = vld [vmem:[%s18608_s1 + $0x910] sm:$0xff]  ;;  %v307_v48 = vld [vmem:[%s18608_s1 + $0x918] sm:$0xff]  ;;  %v324_v27 = vld [vmem:[%s18608_s1 + $0x9a0] sm:$0xff] }
  0x2b   :  { %8296 = vmatprep.mubr.msk.bf16.mxu0 %vm2337_vm1, %v2076_v53  ;;  %vm563_vm7 = vcmp.ne.f32.partialorder %v49_v32, 0.0  ;;  %v9756_v39 = vsel %vm562_vm6, 1.0, %v18640_v8  ;;  %vm818_vm8 = vcmp.ne.f32.partialorder %v304_v33, 0.0  ;;  %8552 = vmatprep.mubr.msk.bf16.mxu1 %vm2337_vm1, %v2204_v57  ;;  %v2209_v42 = vpack.c.bf16 %v9753_v38, %v9736_v43  ;;  %v308_v53 = vld [vmem:[%s18608_s1 + $0x920] sm:$0xff]  ;;  %v309_v57 = vld [vmem:[%s18608_s1 + $0x928] sm:$0xff]  ;;  %v71_v43 = vld [vmem:[%s18608_s1 + $0x1b8] sm:$0xff] }
  0x2c   :  { %v9768_v45 = vsel %vm563_vm7, 1.0, %v18640_v8  ;;  %vm819_vm9 = vcmp.ne.f32.partialorder %v305_v37, 0.0  ;;  %v9771_v46 = vsel %vm818_vm8, 1.0, %v18640_v8  ;;  %vm564_vm10 = vcmp.ne.f32.partialorder %v50_v44, 0.0  ;;  %v57_v32 = vld [vmem:[%s18608_s1 + $0x148] sm:$0xff]  ;;  %v312_v33 = vld [vmem:[%s18608_s1 + $0x940] sm:$0xff] }
  0x2d   :  { %v2082_v50 = vpack.c.bf16 %v9768_v45, %v9756_v39  ;;  %v9782_v51 = vsel %vm819_vm9, 1.0, %v18640_v8  ;;  %vm565_vm11 = vcmp.ne.f32.partialorder %v51_v47, 0.0  ;;  %v9793_v55 = vsel %vm564_vm10, 1.0, %v18640_v8  ;;  %v315_v47 = vld [vmem:[%s18608_s1 + $0x958] sm:$0xff] }
  0x2e   :  { %v2210_v54 = vpack.c.bf16 %v9782_v51, %v9771_v46  ;;  %v9796_v56 = vsel %vm565_vm11, 1.0, %v18640_v8  ;;  %vm820_vm12 = vcmp.ne.f32.partialorder %v306_v41, 0.0  ;;  %vm821_vm13 = vcmp.ne.f32.partialorder %v307_v48, 0.0  ;;  %v60_v41 = vld [vmem:[%s18608_s1 + $0x160] sm:$0xff]  ;;  %v327_v51 = vld [vmem:[%s18608_s1 + $0x9b8] sm:$0xff] }
  0x2f   :  { %v2083_v60 = vpack.c.bf16 %v9796_v56, %v9793_v55  ;;  %v9804_v63 = vsel %vm820_vm12, 1.0, %v18640_v8  ;;  %vm566_vm14 = vcmp.ne.f32.partialorder %v52_v49, 0.0  ;;  %v9813_v7 = vsel %vm821_vm13, 1.0, %v18640_v8  ;;  %v76_v55 = vld [vmem:[%s18608_s1 + $0x1e0] sm:$0xff] }
  0x30   :  { %vm567_vm15 = vcmp.ne.f32.partialorder %v53_v52, 0.0  ;;  %v9816_v9 = vsel %vm566_vm14, 1.0, %v18640_v8  ;;  %vm822_vm0 = vcmp.ne.f32.partialorder %v308_v53, 0.0  ;;  %v2211_v13 = vpack.c.bf16 %v9813_v7, %v9804_v63  ;;  %v61_v52 = vld [vmem:[%s18608_s1 + $0x168] sm:$0xff]  ;;  %v316_v53 = vld [vmem:[%s18608_s1 + $0x960] sm:$0xff] }
  0x31   :  { %v9824_v17 = vsel %vm567_vm15, 1.0, %v18640_v8  ;;  %vm823_vm2 = vcmp.ne.f32.partialorder %v309_v57, 0.0  ;;  %v9827_v20 = vsel %vm822_vm0, 1.0, %v18640_v8  ;;  %vm568_vm3 = vcmp.ne.f32.partialorder %v54_v0, 0.0  ;;  %v332_v63 = vld [vmem:[%s18608_s1 + $0x9e0] sm:$0xff] }
  0x32   :  { %8297 = vmatmul.mubr.msk.bf16.gmra.mrb[20].mxu0 %vm2337_vm1, %v2077_v61  ;;  %v2084_v28 = vpack.c.bf16 %v9824_v17, %v9816_v9  ;;  %v9842_v29 = vsel %vm823_vm2, 1.0, %v18640_v8  ;;  %vm569_vm4 = vcmp.ne.f32.partialorder %v55_v3, 0.0  ;;  %8553 = vmatmul.mubr.msk.bf16.gmra.mrb[20].mxu1 %vm2337_vm1, %v2205_v4  ;;  %v9861_v59 = vsel %vm568_vm3, 1.0, %v18640_v8  ;;  %v58_v4 = vld [vmem:[%s18608_s1 + $0x150] sm:$0xff]  ;;  %v333_v17 = vld [vmem:[%s18608_s1 + $0x9e8] sm:$0xff]  ;;  %v336_v56 = vld [vmem:[%s18608_s1 + $0xa00] sm:$0xff] }
  0x33   :  { %8300 = vmatprep.mubr.msk.bf16.mxu0 %vm2337_vm1, %v2078_v10  ;;  %v2212_v58 = vpack.c.bf16 %v9842_v29, %v9827_v20  ;;  %v9864_v61 = vsel %vm569_vm4, 1.0, %v18640_v8  ;;  %vm824_vm5 = vcmp.ne.f32.partialorder %v310_v12, 0.0  ;;  %8556 = vmatprep.mubr.msk.bf16.mxu1 %vm2337_vm1, %v2206_v14  ;;  %vm825_vm6 = vcmp.ne.f32.partialorder %v311_v21, 0.0  ;;  %v317_v12 = vld [vmem:[%s18608_s1 + $0x968] sm:$0xff]  ;;  %v78_v29 = vld [vmem:[%s18608_s1 + $0x1f0] sm:$0xff]  ;;  %v83_v21 = vld [vmem:[%s18608_s1 + $0x218] sm:$0xff] }
  0x34   :  { %v2085_v1 = vpack.c.bf16 %v9864_v61, %v9861_v59  ;;  %v9876_v2 = vsel %vm824_vm5, 1.0, %v18640_v8  ;;  %vm570_vm7 = vcmp.ne.f32.partialorder %v56_v24, 0.0  ;;  %v9885_v6 = vsel %vm825_vm6, 1.0, %v18640_v8 }
  0x35   :  { %vm571_vm8 = vcmp.ne.f32.partialorder %v57_v32, 0.0  ;;  %v9888_v10 = vsel %vm570_vm7, 1.0, %v18640_v8  ;;  %vm826_vm9 = vcmp.ne.f32.partialorder %v312_v33, 0.0  ;;  %v2213_v14 = vpack.c.bf16 %v9885_v6, %v9876_v2  ;;  %v62_v32 = vld [vmem:[%s18608_s1 + $0x170] sm:$0xff]  ;;  %v63_v33 = vld [vmem:[%s18608_s1 + $0x178] sm:$0xff] }
  0x36   :  { %v9896_v37 = vsel %vm571_vm8, 1.0, %v18640_v8  ;;  %vm827_vm10 = vcmp.ne.f32.partialorder %v313_v62, 0.0  ;;  %v9899_v44 = vsel %vm826_vm9, 1.0, %v18640_v8  ;;  %vm572_vm11 = vcmp.ne.f32.partialorder %v58_v4, 0.0 }
  0x37   :  { %v2086_v48 = vpack.c.bf16 %v9896_v37, %v9888_v10  ;;  %v9910_v49 = vsel %vm827_vm10, 1.0, %v18640_v8  ;;  %vm573_vm12 = vcmp.ne.f32.partialorder %v59_v5, 0.0  ;;  %v9921_v0 = vsel %vm572_vm11, 1.0, %v18640_v8  ;;  %v318_v5 = vld [vmem:[%s18608_s1 + $0x970] sm:$0xff]  ;;  %v84_v37 = vld [vmem:[%s18608_s1 + $0x220] sm:$0xff] }
  0x38   :  { %v2214_v57 = vpack.c.bf16 %v9910_v49, %v9899_v44  ;;  %v9924_v3 = vsel %vm573_vm12, 1.0, %v18640_v8  ;;  %vm828_vm13 = vcmp.ne.f32.partialorder %v314_v11, 0.0  ;;  %vm829_vm14 = vcmp.ne.f32.partialorder %v315_v47, 0.0  ;;  %v321_v11 = vld [vmem:[%s18608_s1 + $0x988] sm:$0xff] }
  0x39   :  { %v9932_v24 = vsel %vm828_vm13, 1.0, %v18640_v8  ;;  %vm574_vm15 = vcmp.ne.f32.partialorder %v60_v41, 0.0  ;;  %v9945_v62 = vsel %vm829_vm14, 1.0, %v18640_v8  ;;  %vm575_vm0 = vcmp.ne.f32.partialorder %v61_v52, 0.0  ;;  %v66_v52 = vld [vmem:[%s18608_s1 + $0x190] sm:$0xff]  ;;  %v85_v49 = vld [vmem:[%s18608_s1 + $0x228] sm:$0xff] }
  0x3a   :  { %8301 = vmatmul.mubr.msk.bf16.gmra.mrb[24].mxu0 %vm2337_vm1, %v2079_v18  ;;  %v9948_v4 = vsel %vm574_vm15, 1.0, %v18640_v8  ;;  %vm830_vm2 = vcmp.ne.f32.partialorder %v316_v53, 0.0  ;;  %8557 = vmatmul.mubr.msk.bf16.gmra.mrb[24].mxu1 %vm2337_vm1, %v2207_v25  ;;  %v9964_v16 = vsel %vm575_vm0, 1.0, %v18640_v8  ;;  %vm831_vm3 = vcmp.ne.f32.partialorder %v317_v12, 0.0  ;;  %v67_v53 = vld [vmem:[%s18608_s1 + $0x198] sm:$0xff] }
  0x3b   :  { %8304 = vmatprep.mubr.msk.bf16.mxu0 %vm2337_vm1, %v2080_v30  ;;  %v9967_v18 = vsel %vm830_vm2, 1.0, %v18640_v8  ;;  %8560 = vmatprep.mubr.msk.bf16.mxu1 %vm2337_vm1, %v2208_v34  ;;  %v9982_v25 = vsel %vm831_vm3, 1.0, %v18640_v8  ;;  %vm576_vm4 = vcmp.ne.f32.partialorder %v62_v32, 0.0  ;;  %vm577_vm5 = vcmp.ne.f32.partialorder %v63_v33, 0.0  ;;  %v320_v30 = vld [vmem:[%s18608_s1 + $0x980] sm:$0xff]  ;;  %v322_v33 = vld [vmem:[%s18608_s1 + $0x990] sm:$0xff] }
  0x3c   :  { %v9993_v31 = vsel %vm576_vm4, 1.0, %v18640_v8  ;;  %v9996_v34 = vsel %vm577_vm5, 1.0, %v18640_v8  ;;  %vm832_vm6 = vcmp.ne.f32.partialorder %v318_v5, 0.0  ;;  %vm833_vm7 = vcmp.ne.f32.partialorder %v319_v19, 0.0 }
  0x3d   :  { %v10004_v41 = vsel %vm832_vm6, 1.0, %v18640_v8  ;;  %vm578_vm8 = vcmp.ne.f32.partialorder %v64_v22, 0.0  ;;  %v10013_v12 = vsel %vm833_vm7, 1.0, %v18640_v8  ;;  %vm579_vm9 = vcmp.ne.f32.partialorder %v65_v26, 0.0  ;;  %v323_v26 = vld [vmem:[%s18608_s1 + $0x998] sm:$0xff] }
  0x3e   :  { %v10016_v32 = vsel %vm578_vm8, 1.0, %v18640_v8  ;;  %vm834_vm10 = vcmp.ne.f32.partialorder %v320_v30, 0.0  ;;  %v10024_v19 = vsel %vm579_vm9, 1.0, %v18640_v8  ;;  %vm835_vm11 = vcmp.ne.f32.partialorder %v321_v11, 0.0  ;;  %v68_v30 = vld [vmem:[%s18608_s1 + $0x1a0] sm:$0xff]  ;;  %v69_v11 = vld [vmem:[%s18608_s1 + $0x1a8] sm:$0xff] }
  0x3f   :  { %v10027_v22 = vsel %vm834_vm10, 1.0, %v18640_v8  ;;  %v10038_v5 = vsel %vm835_vm11, 1.0, %v18640_v8  ;;  %vm580_vm12 = vcmp.ne.f32.partialorder %v66_v52, 0.0  ;;  %vm581_vm13 = vcmp.ne.f32.partialorder %v67_v53, 0.0  ;;  %v325_v53 = vld [vmem:[%s18608_s1 + $0x9a8] sm:$0xff] }
  0x40   :  { %v10053_v23 = vsel %vm580_vm12, 1.0, %v18640_v8  ;;  %v10056_v52 = vsel %vm581_vm13, 1.0, %v18640_v8  ;;  %vm836_vm14 = vcmp.ne.f32.partialorder %v322_v33, 0.0  ;;  %vm837_vm15 = vcmp.ne.f32.partialorder %v323_v26, 0.0  ;;  %v73_v26 = vld [vmem:[%s18608_s1 + $0x1c8] sm:$0xff] }
  0x41   :  { %v10072_v36 = vsel %vm836_vm14, 1.0, %v18640_v8  ;;  %vm582_vm0 = vcmp.ne.f32.partialorder %v68_v30, 0.0  ;;  %v10085_v38 = vsel %vm837_vm15, 1.0, %v18640_v8  ;;  %vm583_vm2 = vcmp.ne.f32.partialorder %v69_v11, 0.0  ;;  %v328_v30 = vld [vmem:[%s18608_s1 + $0x9c0] sm:$0xff]  ;;  %v74_v11 = vld [vmem:[%s18608_s1 + $0x1d0] sm:$0xff] }
  0x42   :  { %8305 = vmatmul.mubr.msk.bf16.gmra.mrb[28].mxu0 %vm2337_vm1, %v2081_v40  ;;  %8561 = vmatmul.mubr.msk.bf16.gmra.mrb[28].mxu1 %vm2337_vm1, %v2209_v42  ;;  %v70_v40 = vld [vmem:[%s18608_s1 + $0x1b0] sm:$0xff]  ;;  %v10088_v39 = vsel %vm582_vm0, 1.0, %v18640_v8  ;;  %vm838_vm3 = vcmp.ne.f32.partialorder %v324_v27, 0.0  ;;  %vm839_vm4 = vcmp.ne.f32.partialorder %v325_v53, 0.0  ;;  %vm585_vm6 = vcmp.ne.f32.partialorder %v71_v43, 0.0 }
  0x43   :  { %8308 = vmatprep.mubr.msk.bf16.mxu0 %vm2337_vm1, %v2082_v50  ;;  %8564 = vmatprep.mubr.msk.bf16.mxu1 %vm2337_vm1, %v2210_v54  ;;  %v326_v42 = vld [vmem:[%s18608_s1 + $0x9b0] sm:$0xff]  ;;  %v10096_v50 = vsel %vm583_vm2, 1.0, %v18640_v8  ;;  %v10099_v46 = vsel %vm838_vm3, 1.0, %v18640_v8  ;;  %v72_v54 = vld [vmem:[%s18608_s1 + $0x1c0] sm:$0xff]  ;;  %v10110_v33 = vsel %vm839_vm4, 1.0, %v18640_v8  ;;  %vm584_vm5 = vcmp.ne.f32.partialorder %v70_v40, 0.0 }
  0x44   :  { %v10121_v53 = vsel %vm584_vm5, 1.0, %v18640_v8  ;;  %v10124_v27 = vsel %vm585_vm6, 1.0, %v18640_v8  ;;  %vm840_vm7 = vcmp.ne.f32.partialorder %v326_v42, 0.0  ;;  %v329_v40 = vld [vmem:[%s18608_s1 + $0x9c8] sm:$0xff]  ;;  %vm841_vm8 = vcmp.ne.f32.partialorder %v327_v51, 0.0  ;;  %v75_v42 = vld [vmem:[%s18608_s1 + $0x1d8] sm:$0xff] }
  0x45   :  { %v10132_v45 = vsel %vm840_vm7, 1.0, %v18640_v8  ;;  %vm586_vm9 = vcmp.ne.f32.partialorder %v72_v54, 0.0  ;;  %v10141_v35 = vsel %vm841_vm8, 1.0, %v18640_v8  ;;  %vm587_vm10 = vcmp.ne.f32.partialorder %v73_v26, 0.0  ;;  %v330_v51 = vld [vmem:[%s18608_s1 + $0x9d0] sm:$0xff] }
  0x46   :  { %v10144_v47 = vsel %vm586_vm9, 1.0, %v18640_v8  ;;  %vm842_vm11 = vcmp.ne.f32.partialorder %v328_v30, 0.0  ;;  %v10156_v43 = vsel %vm587_vm10, 1.0, %v18640_v8  ;;  %vm843_vm12 = vcmp.ne.f32.partialorder %v329_v40, 0.0  ;;  %v331_v30 = vld [vmem:[%s18608_s1 + $0x9d8] sm:$0xff]  ;;  %v77_v40 = vld [vmem:[%s18608_s1 + $0x1e8] sm:$0xff] }
  0x47   :  { %v10159_v26 = vsel %vm842_vm11, 1.0, %v18640_v8  ;;  %vm588_vm13 = vcmp.ne.f32.partialorder %v74_v11, 0.0  ;;  %vm589_vm14 = vcmp.ne.f32.partialorder %v75_v42, 0.0  ;;  %vm844_vm15 = vcmp.ne.f32.partialorder %v330_v51, 0.0  ;;  %v334_v51 = vld [vmem:[%s18608_s1 + $0x9f0] sm:$0xff] }
  0x48   :  { %v10193_v9 = vsel %vm588_vm13, 1.0, %v18640_v8  ;;  %vm845_vm0 = vcmp.ne.f32.partialorder %v331_v30, 0.0  ;;  %v10204_v20 = vsel %vm844_vm15, 1.0, %v18640_v8  ;;  %vm590_vm2 = vcmp.ne.f32.partialorder %v76_v55, 0.0 }
  0x49   :  { %v10213_v11 = vsel %vm845_vm0, 1.0, %v18640_v8  ;;  %vm591_vm3 = vcmp.ne.f32.partialorder %v77_v40, 0.0  ;;  %v10216_v42 = vsel %vm590_vm2, 1.0, %v18640_v8  ;;  %vm846_vm4 = vcmp.ne.f32.partialorder %v332_v63, 0.0  ;;  %v335_v40 = vld [vmem:[%s18608_s1 + $0x9f8] sm:$0xff]  ;;  %v80_v63 = vld [vmem:[%s18608_s1 + $0x200] sm:$0xff] }
  0x4a   :  { %8309 = vmatmul.mubr.msk.bf16.gmra.mrb[32].mxu0 %vm2337_vm1, %v2083_v60  ;;  %8565 = vmatmul.mubr.msk.bf16.gmra.mrb[32].mxu1 %vm2337_vm1, %v2211_v13  ;;  %v10178_v60 = vsel %vm843_vm12, 1.0, %v18640_v8  ;;  %v10196_v13 = vsel %vm589_vm14, 1.0, %v18640_v8  ;;  %v10224_v55 = vsel %vm591_vm3, 1.0, %v18640_v8  ;;  %vm847_vm5 = vcmp.ne.f32.partialorder %v333_v17, 0.0  ;;  %v81_v17 = vld [vmem:[%s18608_s1 + $0x208] sm:$0xff] }
  0x4b   :  { %8312 = vmatprep.mubr.msk.bf16.mxu0 %vm2337_vm1, %v2084_v28  ;;  %8568 = vmatprep.mubr.msk.bf16.mxu1 %vm2337_vm1, %v2212_v58  ;;  %v79_v58 = vld [vmem:[%s18608_s1 + $0x1f8] sm:$0xff]  ;;  %v10227_v28 = vsel %vm846_vm4, 1.0, %v18640_v8  ;;  %v10238_v30 = vsel %vm847_vm5, 1.0, %v18640_v8  ;;  %vm592_vm6 = vcmp.ne.f32.partialorder %v78_v29, 0.0  ;;  %vm848_vm8 = vcmp.ne.f32.partialorder %v334_v51, 0.0  ;;  %v337_v29 = vld [vmem:[%s18608_s1 + $0xa08] sm:$0xff] }
  0x4c   :  { %vm593_vm7 = vcmp.ne.f32.partialorder %v79_v58, 0.0  ;;  %v10249_v15 = vsel %vm592_vm6, 1.0, %v18640_v8  ;;  %vm849_vm9 = vcmp.ne.f32.partialorder %v335_v40, 0.0  ;;  %v10264_v54 = vsel %vm848_vm8, 1.0, %v18640_v8  ;;  %v82_v51 = vld [vmem:[%s18608_s1 + $0x210] sm:$0xff] }
  0x4d   :  { %v10252_v7 = vsel %vm593_vm7, 1.0, %v18640_v8  ;;  %vm594_vm10 = vcmp.ne.f32.partialorder %v80_v63, 0.0  ;;  %v10281_v59 = vsel %vm849_vm9, 1.0, %v18640_v8  ;;  %vm595_vm11 = vcmp.ne.f32.partialorder %v81_v17, 0.0 }
  0x4e   :  { %v10284_v61 = vsel %vm594_vm10, 1.0, %v18640_v8  ;;  %vm850_vm12 = vcmp.ne.f32.partialorder %v336_v56, 0.0  ;;  %v10296_v6 = vsel %vm595_vm11, 1.0, %v18640_v8  ;;  %vm851_vm13 = vcmp.ne.f32.partialorder %v337_v29, 0.0 }
  0x4f   :  { %v10299_v10 = vsel %vm850_vm12, 1.0, %v18640_v8  ;;  %vm596_vm14 = vcmp.ne.f32.partialorder %v82_v51, 0.0  ;;  %vm597_vm15 = vcmp.ne.f32.partialorder %v83_v21, 0.0  ;;  %v341_v21 = vld [vmem:[%s18608_s1 + $0xa28] sm:$0xff]  ;;  %vm598_vm3 = vcmp.ne.f32.partialorder %v84_v37, 0.0  ;;  %v86_v51 = vld [vmem:[%s18608_s1 + $0x230] sm:$0xff] }
  0x50   :  { %v10321_v40 = vsel %vm596_vm14, 1.0, %v18640_v8  ;;  %v10324_v63 = vsel %vm597_vm15, 1.0, %v18640_v8  ;;  %vm599_vm4 = vcmp.ne.f32.partialorder %v85_v49, 0.0  ;;  %v10344_v44 = vsel %vm598_vm3, 1.0, %v18640_v8  ;;  %v343_v49 = vld [vmem:[%s18608_s1 + $0xa38] sm:$0xff]  ;;  %v94_v37 = vld [vmem:[%s18608_s1 + $0x270] sm:$0xff] }
  0x51   :  { %v10352_v17 = vsel %vm599_vm4, 1.0, %v18640_v8  ;;  %vm855_vm6 = vcmp.ne.f32.partialorder %v341_v21, 0.0  ;;  %v18695_v58 = vpack.c.bf16 %v9924_v3, %v9921_v0  ;;  %vm600_vm7 = vcmp.ne.f32.partialorder %v86_v51, 0.0 }
  0x52   :  { %8313 = vmatmul.mubr.msk.bf16.gmra.mrb[36].mxu0 %vm2337_vm1, %v2085_v1  ;;  %8569 = vmatmul.mubr.msk.bf16.gmra.mrb[36].mxu1 %vm2337_vm1, %v2213_v14  ;;  %v338_v1 = vld [vmem:[%s18608_s1 + $0xa10] sm:$0xff]  ;;  %v339_v14 = vld [vmem:[%s18608_s1 + $0xa18] sm:$0xff]  ;;  %v10370_v21 = vsel %vm855_vm6, 1.0, %v18640_v8  ;;  %v18696_v0 = vpack.c.bf16 %v9945_v62, %v9932_v24  ;;  %v18697_v3 = vpack.c.bf16 %v9964_v16, %v9948_v4  ;;  %v10389_v51 = vsel %vm600_vm7, 1.0, %v18640_v8  ;;  %v345_v24 = vld [vmem:[%s18608_s1 + $0xa48] sm:$0xff] }
  0x53   :  { %8316 = vmatprep.mubr.msk.bf16.mxu0 %vm2337_vm1, %v2086_v48  ;;  %8572 = vmatprep.mubr.msk.bf16.mxu1 %vm2337_vm1, %v2214_v57  ;;  %v10310_v48 = vsel %vm851_vm13, 1.0, %v18640_v8  ;;  %v340_v57 = vld [vmem:[%s18608_s1 + $0xa20] sm:$0xff]  ;;  %vm852_vm0 = vcmp.ne.f32.partialorder %v338_v1, 0.0  ;;  %vm853_vm2 = vcmp.ne.f32.partialorder %v339_v14, 0.0  ;;  %v87_v1 = vld [vmem:[%s18608_s1 + $0x238] sm:$0xff]  ;;  %v342_v14 = vld [vmem:[%s18608_s1 + $0xa30] sm:$0xff]  ;;  %v18698_v62 = vpack.c.bf16 %v9982_v25, %v9967_v18 }
  0x54   :  { %v10332_v29 = vsel %vm852_vm0, 1.0, %v18640_v8  ;;  %v10341_v56 = vsel %vm853_vm2, 1.0, %v18640_v8  ;;  %vm854_vm5 = vcmp.ne.f32.partialorder %v340_v57, 0.0  ;;  %v88_v57 = vld [vmem:[%s18608_s1 + $0x240] sm:$0xff]  ;;  %vm601_vm8 = vcmp.ne.f32.partialorder %v87_v1, 0.0 }
  0x55   :  { %18693 = vst [vmem:[#allocation3_spill] sm:$0xff] %v10332_v29  ;;  %18694 = vst [vmem:[#allocation4_spill] sm:$0xff] %v10341_v56  ;;  %v10355_v2 = vsel %vm854_vm5, 1.0, %v18640_v8  ;;  %v89_v29 = vld [vmem:[%s18608_s1 + $0x248] sm:$0xff]  ;;  %v344_v56 = vld [vmem:[%s18608_s1 + $0xa40] sm:$0xff]  ;;  %v10392_v1 = vsel %vm601_vm8, 1.0, %v18640_v8 }
  0x56   :  { %vm856_vm9 = vcmp.ne.f32.partialorder %v342_v14, 0.0  ;;  %vm857_vm10 = vcmp.ne.f32.partialorder %v343_v49, 0.0  ;;  %vm602_vm11 = vcmp.ne.f32.partialorder %v88_v57, 0.0  ;;  %v90_v14 = vld [vmem:[%s18608_s1 + $0x250] sm:$0xff]  ;;  %vm603_vm12 = vcmp.ne.f32.partialorder %v89_v29, 0.0  ;;  %v347_v29 = vld [vmem:[%s18608_s1 + $0xa58] sm:$0xff] }
  0x57   :  { %v10404_v16 = vsel %vm856_vm9, 1.0, %v18640_v8  ;;  %v10413_v18 = vsel %vm857_vm10, 1.0, %v18640_v8  ;;  %v10416_v25 = vsel %vm602_vm11, 1.0, %v18640_v8  ;;  %vm858_vm13 = vcmp.ne.f32.partialorder %v344_v56, 0.0  ;;  %v346_v49 = vld [vmem:[%s18608_s1 + $0xa50] sm:$0xff]  ;;  %v92_v56 = vld [vmem:[%s18608_s1 + $0x260] sm:$0xff] }
  0x58   :  { %18699 = vst [vmem:[#allocation5_spill] sm:$0xff] %v10404_v16  ;;  %18700 = vst [vmem:[#allocation6_spill] sm:$0xff] %v10416_v25  ;;  %vm859_vm14 = vcmp.ne.f32.partialorder %v345_v24, 0.0  ;;  %vm604_vm15 = vcmp.ne.f32.partialorder %v90_v14, 0.0  ;;  %v93_v24 = vld [vmem:[%s18608_s1 + $0x268] sm:$0xff]  ;;  %vm860_vm2 = vcmp.ne.f32.partialorder %v346_v49, 0.0 }
  0x59   :  { %v10438_v57 = vsel %vm859_vm14, 1.0, %v18640_v8  ;;  %v10449_v16 = vsel %vm604_vm15, 1.0, %v18640_v8  ;;  %v349_v14 = vld [vmem:[%s18608_s1 + $0xa68] sm:$0xff]  ;;  %vm861_vm3 = vcmp.ne.f32.partialorder %v347_v29, 0.0  ;;  %v10460_v25 = vsel %vm860_vm2, 1.0, %v18640_v8  ;;  %v95_v49 = vld [vmem:[%s18608_s1 + $0x278] sm:$0xff] }
  0x5a   :  { %8317 = vmatmul.mubr.msk.bf16.gmra.mrb[40].mxu0 %vm2337_vm1, %v18695_v58  ;;  %8573 = vmatmul.mubr.msk.bf16.gmra.mrb[40].mxu1 %vm2337_vm1, %v18696_v0  ;;  %v91_v0 = vld [vmem:[%s18608_s1 + $0x258] sm:$0xff]  ;;  %v348_v58 = vld [vmem:[%s18608_s1 + $0xa60] sm:$0xff]  ;;  %18702 = vst [vmem:[#allocation8_spill] sm:$0xff] %v10449_v16  ;;  %vm606_vm4 = vcmp.ne.f32.partialorder %v92_v56, 0.0  ;;  %vm607_vm5 = vcmp.ne.f32.partialorder %v93_v24, 0.0  ;;  %v350_v56 = vld [vmem:[%s18608_s1 + $0xa70] sm:$0xff]  ;;  %v18704_v16 = vpack.c.bf16 %v10013_v12, %v10004_v41 }
  0x5b   :  { %8320 = vmatprep.mubr.msk.bf16.mxu0 %vm2337_vm1, %v18697_v3  ;;  %8576 = vmatprep.mubr.msk.bf16.mxu1 %vm2337_vm1, %v18698_v62  ;;  %v10424_v3 = vsel %vm603_vm12, 1.0, %v18640_v8  ;;  %v10427_v62 = vsel %vm858_vm13, 1.0, %v18640_v8  ;;  %vm605_vm0 = vcmp.ne.f32.partialorder %v91_v0, 0.0  ;;  %v10473_v0 = vsel %vm861_vm3, 1.0, %v18640_v8  ;;  %v351_v41 = vld [vmem:[%s18608_s1 + $0xa78] sm:$0xff]  ;;  %v96_v12 = vld [vmem:[%s18608_s1 + $0x280] sm:$0xff] }
  0x5c   :  { %18701 = vst [vmem:[#allocation7_spill] sm:$0xff] %v10427_v62  ;;  %v10452_v4 = vsel %vm605_vm0, 1.0, %v18640_v8  ;;  %v18703_v62 = vpack.c.bf16 %v9996_v34, %v9993_v31  ;;  %v10476_v29 = vsel %vm606_vm4, 1.0, %v18640_v8  ;;  %vm862_vm6 = vcmp.ne.f32.partialorder %v348_v58, 0.0  ;;  %v97_v24 = vld [vmem:[%s18608_s1 + $0x288] sm:$0xff] }
  0x5d   :  { %v18705_v31 = vpack.c.bf16 %v10024_v19, %v10016_v32  ;;  %vm863_vm7 = vcmp.ne.f32.partialorder %v349_v14, 0.0  ;;  %v10495_v58 = vsel %vm862_vm6, 1.0, %v18640_v8  ;;  %v18706_v32 = vpack.c.bf16 %v10038_v5, %v10027_v22  ;;  %v352_v14 = vld [vmem:[%s18608_s1 + $0xa80] sm:$0xff]  ;;  %v98_v5 = vld [vmem:[%s18608_s1 + $0x290] sm:$0xff] }
  0x5e   :  { %vm608_vm8 = vcmp.ne.f32.partialorder %v94_v37, 0.0  ;;  %vm609_vm9 = vcmp.ne.f32.partialorder %v95_v49, 0.0  ;;  %vm864_vm10 = vcmp.ne.f32.partialorder %v350_v56, 0.0  ;;  %v353_v37 = vld [vmem:[%s18608_s1 + $0xa88] sm:$0xff]  ;;  %vm865_vm11 = vcmp.ne.f32.partialorder %v351_v41, 0.0  ;;  %v99_v56 = vld [vmem:[%s18608_s1 + $0x298] sm:$0xff] }
  0x5f   :  { %v10521_v22 = vsel %vm608_vm8, 1.0, %v18640_v8  ;;  %vm610_vm12 = vcmp.ne.f32.partialorder %v96_v12, 0.0  ;;  %v10541_v19 = vsel %vm865_vm11, 1.0, %v18640_v8  ;;  %vm611_vm13 = vcmp.ne.f32.partialorder %v97_v24, 0.0  ;;  %v354_v41 = vld [vmem:[%s18608_s1 + $0xa90] sm:$0xff]  ;;  %v355_v24 = vld [vmem:[%s18608_s1 + $0xa98] sm:$0xff] }
  0x60   :  { %18707 = vst [vmem:[#allocation9_spill] sm:$0xff] %v10521_v22  ;;  %18710 = vst [vmem:[#allocation12_spill] sm:$0xff] %v10541_v19  ;;  %v10544_v34 = vsel %vm610_vm12, 1.0, %v18640_v8  ;;  %vm866_vm14 = vcmp.ne.f32.partialorder %v352_v14, 0.0  ;;  %v10552_v49 = vsel %vm611_vm13, 1.0, %v18640_v8  ;;  %vm867_vm15 = vcmp.ne.f32.partialorder %v353_v37, 0.0 }
  0x61   :  { %18711 = vst [vmem:[#allocation13_spill] sm:$0xff] %v10544_v34  ;;  %18712 = vst [vmem:[#allocation14_spill] sm:$0xff] %v10552_v49  ;;  %v10555_v22 = vsel %vm866_vm14, 1.0, %v18640_v8  ;;  %v100_v14 = vld [vmem:[%s18608_s1 + $0x2a0] sm:$0xff]  ;;  %v10566_v12 = vsel %vm867_vm15, 1.0, %v18640_v8  ;;  %vm612_vm0 = vcmp.ne.f32.partialorder %v98_v5, 0.0  ;;  %v18713_v19 = vpack.c.bf16 %v10056_v52, %v10053_v23 }
  0x62   :  { %8321 = vmatmul.mubr.msk.bf16.gmra.mrb[44].mxu0 %vm2337_vm1, %v18703_v62  ;;  %8577 = vmatmul.mubr.msk.bf16.gmra.mrb[44].mxu1 %vm2337_vm1, %v18704_v16  ;;  %v10492_v62 = vsel %vm607_vm5, 1.0, %v18640_v8  ;;  %v10510_v16 = vsel %vm863_vm7, 1.0, %v18640_v8  ;;  %vm613_vm2 = vcmp.ne.f32.partialorder %v99_v56, 0.0  ;;  %v101_v37 = vld [vmem:[%s18608_s1 + $0x2a8] sm:$0xff]  ;;  %v10581_v34 = vsel %vm612_vm0, 1.0, %v18640_v8 }
  0x63   :  { %8324 = vmatprep.mubr.msk.bf16.mxu0 %vm2337_vm1, %v18705_v31  ;;  %8580 = vmatprep.mubr.msk.bf16.mxu1 %vm2337_vm1, %v18706_v32  ;;  %v10524_v31 = vsel %vm609_vm9, 1.0, %v18640_v8  ;;  %v10532_v32 = vsel %vm864_vm10, 1.0, %v18640_v8  ;;  %v10584_v5 = vsel %vm613_vm2, 1.0, %v18640_v8  ;;  %vm868_vm3 = vcmp.ne.f32.partialorder %v354_v41, 0.0  ;;  %v357_v56 = vld [vmem:[%s18608_s1 + $0xaa8] sm:$0xff]  ;;  %v102_v41 = vld [vmem:[%s18608_s1 + $0x2b0] sm:$0xff] }
  0x64   :  { %18708 = vst [vmem:[#allocation10_spill] sm:$0xff] %v10524_v31  ;;  %18709 = vst [vmem:[#allocation11_spill] sm:$0xff] %v10532_v32  ;;  %v356_v32 = vld [vmem:[%s18608_s1 + $0xaa0] sm:$0xff]  ;;  %v18714_v49 = vpack.c.bf16 %v10085_v38, %v10072_v36  ;;  %v18715_v23 = vpack.c.bf16 %v10096_v50, %v10088_v39  ;;  %vm869_vm4 = vcmp.ne.f32.partialorder %v355_v24, 0.0  ;;  %vm614_vm5 = vcmp.ne.f32.partialorder %v100_v14, 0.0  ;;  %v103_v36 = vld [vmem:[%s18608_s1 + $0x2b8] sm:$0xff] }
  0x65   :  { %v18716_v38 = vpack.c.bf16 %v10110_v33, %v10099_v46  ;;  %v10613_v39 = vsel %vm869_vm4, 1.0, %v18640_v8  ;;  %vm615_vm6 = vcmp.ne.f32.partialorder %v101_v37, 0.0  ;;  %v10616_v50 = vsel %vm614_vm5, 1.0, %v18640_v8  ;;  %v359_v33 = vld [vmem:[%s18608_s1 + $0xab8] sm:$0xff]  ;;  %v106_v24 = vld [vmem:[%s18608_s1 + $0x2d0] sm:$0xff] }
  0x66   :  { %vm870_vm7 = vcmp.ne.f32.partialorder %v356_v32, 0.0  ;;  %v10624_v14 = vsel %vm615_vm6, 1.0, %v18640_v8  ;;  %vm871_vm8 = vcmp.ne.f32.partialorder %v357_v56, 0.0  ;;  %v104_v32 = vld [vmem:[%s18608_s1 + $0x2c0] sm:$0xff]  ;;  %vm616_vm9 = vcmp.ne.f32.partialorder %v102_v41, 0.0  ;;  %v105_v56 = vld [vmem:[%s18608_s1 + $0x2c8] sm:$0xff] }
  0x67   :  { %v10627_v46 = vsel %vm870_vm7, 1.0, %v18640_v8  ;;  %vm617_vm10 = vcmp.ne.f32.partialorder %v103_v36, 0.0  ;;  %v10649_v52 = vsel %vm616_vm9, 1.0, %v18640_v8  ;;  %v361_v41 = vld [vmem:[%s18608_s1 + $0xac8] sm:$0xff]  ;;  %vm873_vm12 = vcmp.ne.f32.partialorder %v359_v33, 0.0  ;;  %v362_v33 = vld [vmem:[%s18608_s1 + $0xad0] sm:$0xff] }
  0x68   :  { %18717 = vst [vmem:[#allocation15_spill] sm:$0xff] %v10627_v46  ;;  %18719 = vst [vmem:[#allocation17_spill] sm:$0xff] %v10649_v52  ;;  %v10652_v37 = vsel %vm617_vm10, 1.0, %v18640_v8  ;;  %vm618_vm13 = vcmp.ne.f32.partialorder %v104_v32, 0.0  ;;  %v10669_v46 = vsel %vm873_vm12, 1.0, %v18640_v8  ;;  %vm619_vm14 = vcmp.ne.f32.partialorder %v105_v56, 0.0 }
  0x69   :  { %v18721_v32 = vpack.c.bf16 %v10124_v27, %v10121_v53  ;;  %v10684_v52 = vsel %vm619_vm14, 1.0, %v18640_v8  ;;  %vm875_vm0 = vcmp.ne.f32.partialorder %v361_v41, 0.0  ;;  %v108_v27 = vld [vmem:[%s18608_s1 + $0x2e0] sm:$0xff]  ;;  %v18722_v53 = vpack.c.bf16 %v10141_v35, %v10132_v45 }
  0x6a   :  { %8325 = vmatmul.mubr.msk.bf16.gmra.mrb[48].mxu0 %vm2337_vm1, %v18713_v19  ;;  %8581 = vmatmul.mubr.msk.bf16.gmra.mrb[48].mxu1 %vm2337_vm1, %v18714_v49  ;;  %v10600_v19 = vsel %vm868_vm3, 1.0, %v18640_v8  ;;  %v358_v49 = vld [vmem:[%s18608_s1 + $0xab0] sm:$0xff]  ;;  %v10706_v36 = vsel %vm875_vm0, 1.0, %v18640_v8  ;;  %vm620_vm2 = vcmp.ne.f32.partialorder %v106_v24, 0.0  ;;  %v364_v35 = vld [vmem:[%s18608_s1 + $0xae0] sm:$0xff]  ;;  %vm876_vm4 = vcmp.ne.f32.partialorder %v362_v33, 0.0 }
  0x6b   :  { %8328 = vmatprep.mubr.msk.bf16.mxu0 %vm2337_vm1, %v18715_v23  ;;  %8584 = vmatprep.mubr.msk.bf16.mxu1 %vm2337_vm1, %v18716_v38  ;;  %v10638_v23 = vsel %vm871_vm8, 1.0, %v18640_v8  ;;  %v360_v38 = vld [vmem:[%s18608_s1 + $0xac0] sm:$0xff]  ;;  %vm872_vm11 = vcmp.ne.f32.partialorder %v358_v49, 0.0  ;;  %v107_v49 = vld [vmem:[%s18608_s1 + $0x2d8] sm:$0xff]  ;;  %vm622_vm6 = vcmp.ne.f32.partialorder %v108_v27, 0.0  ;;  %vm878_vm8 = vcmp.ne.f32.partialorder %v364_v35, 0.0 }
  0x6c   :  { %18718 = vst [vmem:[#allocation16_spill] sm:$0xff] %v10638_v23  ;;  %v10660_v31 = vsel %vm872_vm11, 1.0, %v18640_v8  ;;  %v10672_v23 = vsel %vm618_vm13, 1.0, %v18640_v8  ;;  %vm874_vm15 = vcmp.ne.f32.partialorder %v360_v38, 0.0  ;;  %v363_v38 = vld [vmem:[%s18608_s1 + $0xad8] sm:$0xff]  ;;  %vm621_vm3 = vcmp.ne.f32.partialorder %v107_v49, 0.0 }
  0x6d   :  { %18720 = vst [vmem:[#allocation18_spill] sm:$0xff] %v10660_v31  ;;  %v10687_v56 = vsel %vm874_vm15, 1.0, %v18640_v8  ;;  %v109_v31 = vld [vmem:[%s18608_s1 + $0x2e8] sm:$0xff]  ;;  %v10724_v24 = vsel %vm621_vm3, 1.0, %v18640_v8  ;;  %vm877_vm5 = vcmp.ne.f32.partialorder %v363_v38, 0.0  ;;  %v111_v33 = vld [vmem:[%s18608_s1 + $0x2f8] sm:$0xff] }
  0x6e   :  { %v365_v49 = vld [vmem:[%s18608_s1 + $0xae8] sm:$0xff]  ;;  %vm623_vm7 = vcmp.ne.f32.partialorder %v109_v31, 0.0  ;;  %v366_v38 = vld [vmem:[%s18608_s1 + $0xaf0] sm:$0xff]  ;;  %v10755_v45 = vsel %vm878_vm8, 1.0, %v18640_v8  ;;  %v367_v31 = vld [vmem:[%s18608_s1 + $0xaf8] sm:$0xff]  ;;  %vm625_vm11 = vcmp.ne.f32.partialorder %v111_v33, 0.0  ;;  %v18730_v33 = vpack.c.bf16 %v10196_v13, %v10193_v9 }
  0x6f   :  { %vm879_vm9 = vcmp.ne.f32.partialorder %v365_v49, 0.0  ;;  %18729 = vst [vmem:[#allocation23_spill] sm:$0xff] %v10755_v45  ;;  %v112_v35 = vld [vmem:[%s18608_s1 + $0x300] sm:$0xff]  ;;  %v113_v49 = vld [vmem:[%s18608_s1 + $0x308] sm:$0xff]  ;;  %v10780_v41 = vsel %vm625_vm11, 1.0, %v18640_v8  ;;  %vm880_vm12 = vcmp.ne.f32.partialorder %v366_v38, 0.0  ;;  %v18731_v9 = vpack.c.bf16 %v10213_v11, %v10204_v20 }
  0x70   :  { %v10766_v27 = vsel %vm879_vm9, 1.0, %v18640_v8  ;;  %vm881_vm13 = vcmp.ne.f32.partialorder %v367_v31, 0.0  ;;  %vm626_vm14 = vcmp.ne.f32.partialorder %v112_v35, 0.0  ;;  %v114_v38 = vld [vmem:[%s18608_s1 + $0x310] sm:$0xff]  ;;  %v115_v45 = vld [vmem:[%s18608_s1 + $0x318] sm:$0xff]  ;;  %v18732_v13 = vpack.c.bf16 %v10224_v55, %v10216_v42 }
  0x71   :  { %v10809_v31 = vsel %vm881_vm13, 1.0, %v18640_v8  ;;  %vm627_vm15 = vcmp.ne.f32.partialorder %v113_v49, 0.0  ;;  %v10812_v35 = vsel %vm626_vm14, 1.0, %v18640_v8  ;;  %v18733_v20 = vpack.c.bf16 %v10238_v30, %v10227_v28  ;;  %v116_v28 = vld [vmem:[%s18608_s1 + $0x320] sm:$0xff] }
  0x72   :  { %8329 = vmatmul.mubr.msk.bf16.gmra.mrb[52].mxu0 %vm2337_vm1, %v18721_v32  ;;  %8585 = vmatmul.mubr.msk.bf16.gmra.mrb[52].mxu1 %vm2337_vm1, %v18722_v53  ;;  %v18723_v32 = vpack.c.bf16 %v10156_v43, %v10144_v47  ;;  %v18724_v47 = vpack.c.bf16 %v10178_v60, %v10159_v26  ;;  %v10721_v43 = vsel %vm620_vm2, 1.0, %v18640_v8  ;;  %v10732_v26 = vsel %vm876_vm4, 1.0, %v18640_v8  ;;  %v110_v60 = vld [vmem:[%s18608_s1 + $0x2f0] sm:$0xff] }
  0x73   :  { %18725 = vst [vmem:[#allocation19_spill] sm:$0xff] %v10721_v43  ;;  %18726 = vst [vmem:[#allocation20_spill] sm:$0xff] %v10732_v26  ;;  %v10752_v53 = vsel %vm623_vm7, 1.0, %v18640_v8  ;;  %vm624_vm10 = vcmp.ne.f32.partialorder %v110_v60, 0.0  ;;  %v368_v26 = vld [vmem:[%s18608_s1 + $0xb00] sm:$0xff]  ;;  %v369_v60 = vld [vmem:[%s18608_s1 + $0xb08] sm:$0xff] }
  0x74   :  { %8332 = vmatprep.mubr.msk.bf16.mxu0 %vm2337_vm1, %v18723_v32  ;;  %8588 = vmatprep.mubr.msk.bf16.mxu1 %vm2337_vm1, %v18724_v47  ;;  %v10741_v32 = vsel %vm877_vm5, 1.0, %v18640_v8  ;;  %v10744_v47 = vsel %vm622_vm6, 1.0, %v18640_v8  ;;  %v10777_v43 = vsel %vm624_vm10, 1.0, %v18640_v8  ;;  %vm882_vm0 = vcmp.ne.f32.partialorder %v368_v26, 0.0  ;;  %v371_v26 = vld [vmem:[%s18608_s1 + $0xb18] sm:$0xff] }
  0x75   :  { %18727 = vst [vmem:[#allocation21_spill] sm:$0xff] %v10741_v32  ;;  %18728 = vst [vmem:[#allocation22_spill] sm:$0xff] %v10744_v47  ;;  %v10792_v32 = vsel %vm880_vm12, 1.0, %v18640_v8  ;;  %v10824_v42 = vsel %vm627_vm15, 1.0, %v18640_v8  ;;  %vm883_vm2 = vcmp.ne.f32.partialorder %v369_v60, 0.0  ;;  %v10827_v55 = vsel %vm882_vm0, 1.0, %v18640_v8 }
  0x76   :  { %18734 = vst [vmem:[#allocation24_spill] sm:$0xff] %v10827_v55  ;;  %v10838_v49 = vsel %vm883_vm2, 1.0, %v18640_v8  ;;  %vm628_vm3 = vcmp.ne.f32.partialorder %v114_v38, 0.0  ;;  %vm629_vm4 = vcmp.ne.f32.partialorder %v115_v45, 0.0  ;;  %v117_v60 = vld [vmem:[%s18608_s1 + $0x328] sm:$0xff]  ;;  %vm885_vm6 = vcmp.ne.f32.partialorder %v371_v26, 0.0 }
  0x77   :  { %v10852_v30 = vsel %vm629_vm4, 1.0, %v18640_v8  ;;  %v373_v45 = vld [vmem:[%s18608_s1 + $0xb28] sm:$0xff]  ;;  %vm630_vm7 = vcmp.ne.f32.partialorder %v116_v28, 0.0  ;;  %v10869_v47 = vsel %vm885_vm6, 1.0, %v18640_v8  ;;  %vm631_vm8 = vcmp.ne.f32.partialorder %v117_v60, 0.0  ;;  %v374_v26 = vld [vmem:[%s18608_s1 + $0xb30] sm:$0xff] }
  0x78   :  { %18736 = vst [vmem:[#allocation26_spill] sm:$0xff] %v10852_v30  ;;  %18738 = vst [vmem:[#allocation28_spill] sm:$0xff] %v10869_v47  ;;  %v10872_v55 = vsel %vm630_vm7, 1.0, %v18640_v8  ;;  %v10880_v38 = vsel %vm631_vm8, 1.0, %v18640_v8  ;;  %vm887_vm10 = vcmp.ne.f32.partialorder %v373_v45, 0.0  ;;  %v375_v60 = vld [vmem:[%s18608_s1 + $0xb38] sm:$0xff]  ;;  %v18739_v30 = vpack.c.bf16 %v10252_v7, %v10249_v15 }
  0x79   :  { %v10898_v45 = vsel %vm887_vm10, 1.0, %v18640_v8  ;;  %v376_v47 = vld [vmem:[%s18608_s1 + $0xb40] sm:$0xff]  ;;  %v18740_v15 = vpack.c.bf16 %v10281_v59, %v10264_v54  ;;  %v18741_v7 = vpack.c.bf16 %v10296_v6, %v10284_v61  ;;  %vm888_vm13 = vcmp.ne.f32.partialorder %v374_v26, 0.0  ;;  %v377_v54 = vld [vmem:[%s18608_s1 + $0xb48] sm:$0xff]  ;;  %v122_v26 = vld [vmem:[%s18608_s1 + $0x350] sm:$0xff] }
  0x7a   :  { %8333 = vmatmul.mubr.msk.bf16.gmra.mrb[56].mxu0 %vm2337_vm1, %v18730_v33  ;;  %8589 = vmatmul.mubr.msk.bf16.gmra.mrb[56].mxu1 %vm2337_vm1, %v18731_v9  ;;  %v370_v33 = vld [vmem:[%s18608_s1 + $0xb10] sm:$0xff]  ;;  %v372_v9 = vld [vmem:[%s18608_s1 + $0xb20] sm:$0xff]  ;;  %v18742_v59 = vpack.c.bf16 %v10310_v48, %v10299_v10  ;;  %vm889_vm14 = vcmp.ne.f32.partialorder %v375_v60, 0.0  ;;  %v10932_v6 = vsel %vm888_vm13, 1.0, %v18640_v8  ;;  %vm890_vm2 = vcmp.ne.f32.partialorder %v376_v47, 0.0  ;;  %v379_v47 = vld [vmem:[%s18608_s1 + $0xb58] sm:$0xff] }
  0x7b   :  { %8336 = vmatprep.mubr.msk.bf16.mxu0 %vm2337_vm1, %v18732_v13  ;;  %8592 = vmatprep.mubr.msk.bf16.mxu1 %vm2337_vm1, %v18733_v20  ;;  %v10849_v20 = vsel %vm628_vm3, 1.0, %v18640_v8  ;;  %vm884_vm5 = vcmp.ne.f32.partialorder %v370_v33, 0.0  ;;  %v118_v13 = vld [vmem:[%s18608_s1 + $0x330] sm:$0xff]  ;;  %v119_v33 = vld [vmem:[%s18608_s1 + $0x338] sm:$0xff]  ;;  %vm886_vm9 = vcmp.ne.f32.partialorder %v372_v9, 0.0  ;;  %v120_v9 = vld [vmem:[%s18608_s1 + $0x340] sm:$0xff] }
  0x7c   :  { %18735 = vst [vmem:[#allocation25_spill] sm:$0xff] %v10849_v20  ;;  %v10860_v11 = vsel %vm884_vm5, 1.0, %v18640_v8  ;;  %v10883_v20 = vsel %vm886_vm9, 1.0, %v18640_v8  ;;  %vm632_vm11 = vcmp.ne.f32.partialorder %v118_v13, 0.0  ;;  %vm633_vm12 = vcmp.ne.f32.partialorder %v119_v33, 0.0  ;;  %v378_v60 = vld [vmem:[%s18608_s1 + $0xb50] sm:$0xff] }
  0x7d   :  { %18737 = vst [vmem:[#allocation27_spill] sm:$0xff] %v10860_v11  ;;  %v121_v11 = vld [vmem:[%s18608_s1 + $0x348] sm:$0xff]  ;;  %v10917_v13 = vsel %vm632_vm11, 1.0, %v18640_v8  ;;  %v10920_v33 = vsel %vm633_vm12, 1.0, %v18640_v8  ;;  %vm634_vm15 = vcmp.ne.f32.partialorder %v120_v9, 0.0  ;;  %v10941_v10 = vsel %vm889_vm14, 1.0, %v18640_v8 }
  0x7e   :  { %vm635_vm0 = vcmp.ne.f32.partialorder %v121_v11, 0.0  ;;  %v10944_v48 = vsel %vm634_vm15, 1.0, %v18640_v8  ;;  %vm891_vm3 = vcmp.ne.f32.partialorder %v377_v54, 0.0  ;;  %v10958_v11 = vsel %vm890_vm2, 1.0, %v18640_v8  ;;  %v124_v28 = vld [vmem:[%s18608_s1 + $0x360] sm:$0xff]  ;;  %v125_v9 = vld [vmem:[%s18608_s1 + $0x368] sm:$0xff] }
  0x7f   :  { %18743 = vst [vmem:[#allocation29_spill] sm:$0xff] %v10958_v11  ;;  %v10966_v61 = vsel %vm891_vm3, 1.0, %v18640_v8  ;;  %vm636_vm4 = vcmp.ne.f32.partialorder %v122_v26, 0.0  ;;  %vm892_vm6 = vcmp.ne.f32.partialorder %v378_v60, 0.0  ;;  %vm893_vm7 = vcmp.ne.f32.partialorder %v379_v47, 0.0  ;;  %v8797_v47 = vld [vmem:[%s18608_s1 + $0x10] sm:$0xff] }
  0x80   :  { %18744 = vst [vmem:[#allocation30_spill] sm:$0xff] %v10966_v61  ;;  %v10971_v54 = vsel %vm636_vm4, 1.0, %v18640_v8  ;;  %v10982_v26 = vsel %vm892_vm6, 1.0, %v18640_v8  ;;  %v18747_v60 = vpack.c.bf16 %v10324_v63, %v10321_v40  ;;  %v10994_v11 = vsel %vm893_vm7, 1.0, %v18640_v8  ;;  %v8799_v40 = vld [vmem:[%s18608_s1] sm:$0xff] }
  0x81   :  { %18745 = vst [vmem:[#allocation31_spill] sm:$0xff] %v10971_v54  ;;  %v8798_v54 = vld [vmem:[%s18608_s1 + $0x810] sm:$0xff]  ;;  %vm638_vm8 = vcmp.ne.f32.partialorder %v124_v28, 0.0  ;;  %v8803_v28 = vld [vmem:[%s18608_s1 + $0x8] sm:$0xff]  ;;  %vm639_vm9 = vcmp.ne.f32.partialorder %v125_v9, 0.0  ;;  %v383_v9 = vld [vmem:[%s18608_s1 + $0xb78] sm:$0xff] }
  0x82   :  { %8337 = vmatmul.mubr.msk.bf16.gmra.mrb[60].mxu0 %vm2337_vm1, %v18739_v30  ;;  %8593 = vmatmul.mubr.msk.bf16.gmra.mrb[60].mxu1 %vm2337_vm1, %v18740_v15  ;;  %v123_v15 = vld [vmem:[%s18608_s1 + $0x358] sm:$0xff]  ;;  %vm897_vm15 = vcmp.ne.f32.partialorder %v383_v9, 0.0  ;;  %v384_v9 = vld [vmem:[%s18608_s1 + $0xb80] sm:$0xff] }
  0x83   :  { %8340 = vmatprep.mubr.msk.bf16.mxu0 %vm2337_vm1, %v18741_v7  ;;  %8596 = vmatprep.mubr.msk.bf16.mxu1 %vm2337_vm1, %v18742_v59  ;;  %v10955_v7 = vsel %vm635_vm0, 1.0, %v18640_v8  ;;  %vm637_vm5 = vcmp.ne.f32.partialorder %v123_v15, 0.0  ;;  %v10984_v15 = vstv %s529_s27  ;;  %vm898_vm3 = vcmp.ne.f32.partialorder %v384_v9, 0.0 }
  0x84   :  { %v10974_v30 = vsel %vm637_vm5, 1.0, %v18640_v8  ;;  %v11000_v59 = vmul.f32 %v8797_v47, %v10984_v15  ;;  %v11012_v63 = vmul.f32 %v8799_v40, %v10984_v15  ;;  %v381_v47 = vld [vmem:[%s18608_s1 + $0xb68] sm:$0xff] }
  0x85   :  { %18746 = vst [vmem:[#allocation32_spill] sm:$0xff] %v10974_v30  ;;  %v11006_v30 = vmul.f32 %v8798_v54, %v10984_v15  ;;  %v18751_v8 = vld [vmem:[#allocation4_spill] sm:$0xff]  ;;  %v18754_v54 = vpack.c.bf16 %v10352_v17, %v10344_v44  ;;  %v126_v44 = vld [vmem:[%s18608_s1 + $0x370] sm:$0xff]  ;;  %v18757_v17 = vpack.c.bf16 %v10370_v21, %v10355_v2  ;;  %vm895_vm11 = vcmp.ne.f32.partialorder %v381_v47, 0.0 }
  0x86   :  { %18748 = vst [vmem:[#allocation33_spill] sm:$0xff] %v11000_v59  ;;  %18750 = vst [vmem:[#allocation35_spill] sm:$0xff] %v11012_v63  ;;  %v18752_v59 = vld [vmem:[#allocation3_spill] sm:$0xff]  ;;  %v8804_v2 = vld [vmem:[%s18608_s1 + $0x808] sm:$0xff]  ;;  %vm640_vm12 = vcmp.ne.f32.partialorder %v126_v44, 0.0 }
  0x87   :  { %18749 = vst [vmem:[#allocation34_spill] sm:$0xff] %v11006_v30  ;;  %v18753_v61 = vpack.c.bf16 %v18751_v8, %v18752_v59  ;;  %v8800_v63 = vld [vmem:[%s18608_s1 + $0x800] sm:$0xff]  ;;  %v8801_v8 = vld [vmem:[%s18608_s1 + $0x18] sm:$0xff]  ;;  %v11065_v21 = vmul.f32 %v8804_v2, %v10984_v15 }
  0x88   :  { %v11034_v30 = vmul.f32 %v8800_v63, %v10984_v15  ;;  %v8802_v59 = vld [vmem:[%s18608_s1 + $0x818] sm:$0xff] }
  0x89   :  { %v11053_v63 = vmul.f32 %v8802_v59, %v10984_v15  ;;  %18760 = vst [vmem:[#allocation38_spill] sm:$0xff] %v11065_v21  ;;  %v18761_v59 = vmov 0.0  }
  0x8a   :  { %8341 = vmatmul.mubr.msk.bf16.gmra.mrb[64].mxu0 %vm2337_vm1, %v18747_v60  ;;  %v380_v60 = vld [vmem:[%s18608_s1 + $0xb60] sm:$0xff]  ;;  %8597 = vmatmul.mubr.msk.bf16.gmra.mrb[64].mxu1 %vm2337_vm1, %v18753_v61  ;;  %18755 = vst [vmem:[#allocation4_spill] sm:$0xff] %v11034_v30  ;;  %v11040_v61 = vmul.f32 %v8801_v8, %v10984_v15  ;;  %v127_v8 = vld [vmem:[%s18608_s1 + $0x378] sm:$0xff]  ;;  %v11074_v40 = vsel %vm638_vm8, 1.0, %v18761_v59  ;;  %v8806_v30 = vld [vmem:[%s18608_s1 + $0x830] sm:$0xff] }
  0x8b   :  { %8344 = vmatprep.mubr.msk.bf16.mxu0 %vm2337_vm1, %v18754_v54  ;;  %8600 = vmatprep.mubr.msk.bf16.mxu1 %vm2337_vm1, %v18757_v17  ;;  %18758 = vst [vmem:[#allocation36_spill] sm:$0xff] %v11053_v63  ;;  %v11059_v54 = vmul.f32 %v8803_v28, %v10984_v15  ;;  %v382_v17 = vld [vmem:[%s18608_s1 + $0xb70] sm:$0xff]  ;;  %v11077_v28 = vsel %vm639_vm9, 1.0, %v18761_v59  ;;  %vm894_vm10 = vcmp.ne.f32.partialorder %v380_v60, 0.0  ;;  %vm641_vm13 = vcmp.ne.f32.partialorder %v127_v8, 0.0  ;;  %v128_v8 = vld [vmem:[%s18608_s1 + $0x380] sm:$0xff] }
  0x8c   :  { %18756 = vst [vmem:[#allocation3_spill] sm:$0xff] %v11040_v61  ;;  %v11085_v21 = vsel %vm894_vm10, 1.0, %v18761_v59  ;;  %v11093_v60 = vsel %vm640_vm12, 1.0, %v18761_v59  ;;  %vm896_vm14 = vcmp.ne.f32.partialorder %v382_v17, 0.0  ;;  %v11096_v47 = vsel %vm641_vm13, 1.0, %v18761_v59  ;;  %v8805_v61 = vld [vmem:[%s18608_s1 + $0x30] sm:$0xff] }
  0x8d   :  { %18759 = vst [vmem:[#allocation37_spill] sm:$0xff] %v11059_v54  ;;  %18762 = vst [vmem:[#allocation39_spill] sm:$0xff] %v11085_v21  ;;  %v11088_v54 = vsel %vm895_vm11, 1.0, %v18761_v59  ;;  %v11099_v2 = vsel %vm896_vm14, 1.0, %v18761_v59  ;;  %v11105_v44 = vmul.f32 %v8805_v61, %v10984_v15  ;;  %v129_v17 = vld [vmem:[%s18608_s1 + $0x388] sm:$0xff]  ;;  %v11116_v63 = vsel %vm897_vm15, 1.0, %v18761_v59 }
  0x8e   :  { %18763 = vst [vmem:[#allocation40_spill] sm:$0xff] %v11088_v54  ;;  %18764 = vst [vmem:[#allocation41_spill] sm:$0xff] %v11093_v60  ;;  %v11122_v61 = vmul.f32 %v8806_v30, %v10984_v15  ;;  %v385_v60 = vld [vmem:[%s18608_s1 + $0xb88] sm:$0xff]  ;;  %vm642_vm0 = vcmp.ne.f32.partialorder %v128_v8, 0.0  ;;  %vm643_vm2 = vcmp.ne.f32.partialorder %v129_v17, 0.0  ;;  %v387_v8 = vld [vmem:[%s18608_s1 + $0xb98] sm:$0xff] }
  0x8f   :  { %18765 = vst [vmem:[#allocation42_spill] sm:$0xff] %v11096_v47  ;;  %18766 = vst [vmem:[#allocation43_spill] sm:$0xff] %v11105_v44  ;;  %v8807_v44 = vld [vmem:[%s18608_s1 + $0x20] sm:$0xff]  ;;  %v18769_v47 = vpack.c.bf16 %v10392_v1, %v10389_v51  ;;  %v8810_v51 = vld [vmem:[%s18608_s1 + $0x838] sm:$0xff]  ;;  %vm899_vm4 = vcmp.ne.f32.partialorder %v385_v60, 0.0  ;;  %vm901_vm8 = vcmp.ne.f32.partialorder %v387_v8, 0.0 }
  0x90   :  { %18767 = vst [vmem:[#allocation44_spill] sm:$0xff] %v11122_v61  ;;  %v11128_v21 = vmul.f32 %v8807_v44, %v10984_v15  ;;  %v8808_v44 = vld [vmem:[%s18608_s1 + $0x820] sm:$0xff]  ;;  %v8809_v61 = vld [vmem:[%s18608_s1 + $0x38] sm:$0xff]  ;;  %v11158_v1 = vmul.f32 %v8810_v51, %v10984_v15  ;;  %v8813_v17 = vld [vmem:[%s18608_s1 + $0x50] sm:$0xff] }
  0x91   :  { %v11152_v54 = vmul.f32 %v8809_v61, %v10984_v15  ;;  %v388_v8 = vld [vmem:[%s18608_s1 + $0xba0] sm:$0xff] }
  0x92   :  { %18768 = vst [vmem:[#allocation45_spill] sm:$0xff] %v11128_v21  ;;  %8345 = vmatmul.mubr.msk.bf16.gmra.mrb[68].mxu0 %vm2337_vm1, %v18769_v47  ;;  %v11146_v21 = vmul.f32 %v8808_v44, %v10984_v15  ;;  %18772 = vst [vmem:[#allocation48_spill] sm:$0xff] %v11158_v1  ;;  %v130_v47 = vld [vmem:[%s18608_s1 + $0x390] sm:$0xff]  ;;  %v8812_v1 = vld [vmem:[%s18608_s1 + $0x828] sm:$0xff]  ;;  %vm902_vm11 = vcmp.ne.f32.partialorder %v388_v8, 0.0 }
  0x93   :  { %18771 = vst [vmem:[#allocation47_spill] sm:$0xff] %v11152_v54  ;;  %v18773_v44 = vld [vmem:[#allocation5_spill] sm:$0xff]  ;;  %v8811_v54 = vld [vmem:[%s18608_s1 + $0x28] sm:$0xff]  ;;  %vm644_vm5 = vcmp.ne.f32.partialorder %v130_v47, 0.0  ;;  %v11225_v47 = vmul.f32 %v8813_v17, %v10984_v15 }
  0x94   :  { %18770 = vst [vmem:[#allocation46_spill] sm:$0xff] %v11146_v21  ;;  %v18774_v30 = vpack.c.bf16 %v10413_v18, %v18773_v44  ;;  %v18775_v21 = vld [vmem:[#allocation6_spill] sm:$0xff]  ;;  %v11175_v51 = vmul.f32 %v8811_v54, %v10984_v15  ;;  %v11181_v18 = vmul.f32 %v8812_v1, %v10984_v15  ;;  %v18779_v54 = vld [vmem:[#allocation7_spill] sm:$0xff]  ;;  %v11194_v44 = vsel %vm642_vm0, 1.0, %v18761_v59 }
  0x95   :  { %v18776_v61 = vpack.c.bf16 %v10424_v3, %v18775_v21  ;;  %v131_v3 = vld [vmem:[%s18608_s1 + $0x398] sm:$0xff]  ;;  %v386_v21 = vld [vmem:[%s18608_s1 + $0xb90] sm:$0xff]  ;;  %v11197_v1 = vsel %vm643_vm2, 1.0, %v18761_v59  ;;  %v11213_v60 = vsel %vm644_vm5, 1.0, %v18761_v59  ;;  %18785 = vst [vmem:[#allocation52_spill] sm:$0xff] %v11225_v47  ;;  %v8815_v47 = vld [vmem:[%s18608_s1 + $0x40] sm:$0xff] }
  0x96   :  { %8601 = vmatmul.mubr.msk.bf16.gmra.mrb[68].mxu1 %vm2337_vm1, %v18774_v30  ;;  %18777 = vst [vmem:[#allocation5_spill] sm:$0xff] %v11175_v51  ;;  %18778 = vst [vmem:[#allocation6_spill] sm:$0xff] %v11181_v18  ;;  %v18780_v30 = vpack.c.bf16 %v10438_v57, %v18779_v54  ;;  %v11208_v57 = vsel %vm899_vm4, 1.0, %v18761_v59  ;;  %vm645_vm6 = vcmp.ne.f32.partialorder %v131_v3, 0.0  ;;  %vm900_vm7 = vcmp.ne.f32.partialorder %v386_v21, 0.0  ;;  %v132_v3 = vld [vmem:[%s18608_s1 + $0x3a0] sm:$0xff] }
  0x97   :  { %8348 = vmatprep.mubr.msk.bf16.mxu0 %vm2337_vm1, %v18776_v61  ;;  %v11205_v61 = vsel %vm898_vm3, 1.0, %v18761_v59  ;;  %18782 = vst [vmem:[#allocation49_spill] sm:$0xff] %v11213_v60  ;;  %v11216_v9 = vsel %vm645_vm6, 1.0, %v18761_v59  ;;  %v133_v21 = vld [vmem:[%s18608_s1 + $0x3a8] sm:$0xff]  ;;  %v11236_v54 = vsel %vm901_vm8, 1.0, %v18761_v59  ;;  %v8814_v18 = vld [vmem:[%s18608_s1 + $0x850] sm:$0xff]  ;;  %v11248_v51 = vmul.f32 %v8815_v47, %v10984_v15 }
  0x98   :  { %8604 = vmatprep.mubr.msk.bf16.mxu1 %vm2337_vm1, %v18780_v30  ;;  %18781 = vst [vmem:[#allocation7_spill] sm:$0xff] %v11205_v61  ;;  %18783 = vst [vmem:[#allocation50_spill] sm:$0xff] %v11216_v9  ;;  %v11219_v30 = vsel %vm900_vm7, 1.0, %v18761_v59  ;;  %v11242_v17 = vmul.f32 %v8814_v18, %v10984_v15  ;;  %v389_v60 = vld [vmem:[%s18608_s1 + $0xba8] sm:$0xff]  ;;  %v8816_v18 = vld [vmem:[%s18608_s1 + $0x840] sm:$0xff]  ;;  %vm646_vm9 = vcmp.ne.f32.partialorder %v132_v3, 0.0 }
  0x99   :  { %18784 = vst [vmem:[#allocation51_spill] sm:$0xff] %v11219_v30  ;;  %18787 = vst [vmem:[#allocation54_spill] sm:$0xff] %v11248_v51  ;;  %v8817_v47 = vld [vmem:[%s18608_s1 + $0x58] sm:$0xff]  ;;  %v134_v30 = vld [vmem:[%s18608_s1 + $0x3b0] sm:$0xff]  ;;  %vm647_vm10 = vcmp.ne.f32.partialorder %v133_v21, 0.0  ;;  %v11310_v3 = vsel %vm646_vm9, 1.0, %v18761_v59 }
  0x9a   :  { %18786 = vst [vmem:[#allocation53_spill] sm:$0xff] %v11242_v17  ;;  %v11262_v17 = vmul.f32 %v8816_v18, %v10984_v15  ;;  %v11268_v51 = vmul.f32 %v8817_v47, %v10984_v15  ;;  %v8818_v61 = vld [vmem:[%s18608_s1 + $0x858] sm:$0xff]  ;;  %v18791_v18 = vld [vmem:[#allocation8_spill] sm:$0xff]  ;;  %v11313_v21 = vsel %vm647_vm10, 1.0, %v18761_v59  ;;  %vm903_vm12 = vcmp.ne.f32.partialorder %v389_v60, 0.0  ;;  %v8823_v60 = vld [vmem:[%s18608_s1 + $0x60] sm:$0xff] }
  0x9b   :  { %v11274_v9 = vmul.f32 %v8818_v61, %v10984_v15  ;;  %v8819_v47 = vld [vmem:[%s18608_s1 + $0x48] sm:$0xff]  ;;  %vm648_vm13 = vcmp.ne.f32.partialorder %v134_v30, 0.0 }
  0x9c   :  { %18788 = vst [vmem:[#allocation55_spill] sm:$0xff] %v11262_v17  ;;  %18789 = vst [vmem:[#allocation56_spill] sm:$0xff] %v11268_v51  ;;  %v18792_v17 = vpack.c.bf16 %v10452_v4, %v18791_v18  ;;  %v11287_v51 = vmul.f32 %v8819_v47, %v10984_v15  ;;  %v8820_v61 = vld [vmem:[%s18608_s1 + $0x848] sm:$0xff]  ;;  %v135_v4 = vld [vmem:[%s18608_s1 + $0x3b8] sm:$0xff]  ;;  %v18795_v18 = vpack.c.bf16 %v10473_v0, %v10460_v25  ;;  %v11333_v8 = vsel %vm648_vm13, 1.0, %v18761_v59 }
  0x9d   :  { %18790 = vst [vmem:[#allocation57_spill] sm:$0xff] %v11274_v9  ;;  %v11293_v9 = vmul.f32 %v8820_v61, %v10984_v15  ;;  %v18796_v47 = vpack.c.bf16 %v10492_v62, %v10476_v29  ;;  %v391_v61 = vld [vmem:[%s18608_s1 + $0xbb8] sm:$0xff]  ;;  %v18797_v25 = vpack.c.bf16 %v10510_v16, %v10495_v58  ;;  %v11325_v29 = vsel %vm902_vm11, 1.0, %v18761_v59  ;;  %18799 = vst [vmem:[#allocation60_spill] sm:$0xff] %v11333_v8 }
  0x9e   :  { %8349 = vmatmul.mubr.msk.bf16.gmra.mrb[72].mxu0 %vm2337_vm1, %v18792_v17  ;;  %18793 = vst [vmem:[#allocation8_spill] sm:$0xff] %v11287_v51  ;;  %v390_v17 = vld [vmem:[%s18608_s1 + $0xbb0] sm:$0xff]  ;;  %8605 = vmatmul.mubr.msk.bf16.gmra.mrb[72].mxu1 %vm2337_vm1, %v18795_v18  ;;  %18798 = vst [vmem:[#allocation59_spill] sm:$0xff] %v11325_v29  ;;  %v11328_v62 = vsel %vm903_vm12, 1.0, %v18761_v59  ;;  %vm649_vm14 = vcmp.ne.f32.partialorder %v135_v4, 0.0  ;;  %vm905_vm0 = vcmp.ne.f32.partialorder %v391_v61, 0.0  ;;  %v11368_v0 = vmul.f32 %v8823_v60, %v10984_v15 }
  0x9f   :  { %18794 = vst [vmem:[#allocation58_spill] sm:$0xff] %v11293_v9  ;;  %8352 = vmatprep.mubr.msk.bf16.mxu0 %vm2337_vm1, %v18796_v47  ;;  %8608 = vmatprep.mubr.msk.bf16.mxu1 %vm2337_vm1, %v18797_v25  ;;  %vm904_vm15 = vcmp.ne.f32.partialorder %v390_v17, 0.0  ;;  %v11336_v58 = vsel %vm649_vm14, 1.0, %v18761_v59  ;;  %v8821_v18 = vld [vmem:[%s18608_s1 + $0x70] sm:$0xff]  ;;  %v136_v4 = vld [vmem:[%s18608_s1 + $0x3c0] sm:$0xff]  ;;  %v137_v17 = vld [vmem:[%s18608_s1 + $0x3c8] sm:$0xff] }
  0xa0   :  { %18800 = vst [vmem:[#allocation61_spill] sm:$0xff] %v11336_v58  ;;  %v11339_v16 = vsel %vm904_vm15, 1.0, %v18761_v59  ;;  %v11345_v30 = vmul.f32 %v8821_v18, %v10984_v15  ;;  %v11356_v61 = vsel %vm905_vm0, 1.0, %v18761_v59  ;;  %v8822_v25 = vld [vmem:[%s18608_s1 + $0x870] sm:$0xff]  ;;  %18805 = vst [vmem:[#allocation66_spill] sm:$0xff] %v11368_v0  ;;  %v392_v47 = vld [vmem:[%s18608_s1 + $0xbc0] sm:$0xff] }
  0xa1   :  { %18801 = vst [vmem:[#allocation62_spill] sm:$0xff] %v11339_v16  ;;  %18803 = vst [vmem:[#allocation64_spill] sm:$0xff] %v11356_v61  ;;  %v11362_v18 = vmul.f32 %v8822_v25, %v10984_v15  ;;  %v8824_v25 = vld [vmem:[%s18608_s1 + $0x860] sm:$0xff]  ;;  %v8825_v60 = vld [vmem:[%s18608_s1 + $0x78] sm:$0xff]  ;;  %vm650_vm2 = vcmp.ne.f32.partialorder %v136_v4, 0.0  ;;  %vm651_vm3 = vcmp.ne.f32.partialorder %v137_v17, 0.0 }
  0xa2   :  { %18802 = vst [vmem:[#allocation63_spill] sm:$0xff] %v11345_v30  ;;  %v393_v30 = vld [vmem:[%s18608_s1 + $0xbc8] sm:$0xff]  ;;  %v11388_v0 = vmul.f32 %v8825_v60, %v10984_v15  ;;  %v8826_v8 = vld [vmem:[%s18608_s1 + $0x878] sm:$0xff]  ;;  %v138_v16 = vld [vmem:[%s18608_s1 + $0x3d0] sm:$0xff]  ;;  %v11422_v58 = vsel %vm650_vm2, 1.0, %v18761_v59  ;;  %vm906_vm4 = vcmp.ne.f32.partialorder %v392_v47, 0.0 }
  0xa3   :  { %18804 = vst [vmem:[#allocation65_spill] sm:$0xff] %v11362_v18  ;;  %v11382_v18 = vmul.f32 %v8824_v25, %v10984_v15  ;;  %v11394_v9 = vmul.f32 %v8826_v8, %v10984_v15  ;;  %v8827_v25 = vld [vmem:[%s18608_s1 + $0x68] sm:$0xff]  ;;  %v139_v8 = vld [vmem:[%s18608_s1 + $0x3d8] sm:$0xff]  ;;  %vm907_vm5 = vcmp.ne.f32.partialorder %v393_v30, 0.0  ;;  %v11441_v47 = vsel %vm906_vm4, 1.0, %v18761_v59 }
  0xa4   :  { %18807 = vst [vmem:[#allocation68_spill] sm:$0xff] %v11388_v0  ;;  %v8828_v60 = vld [vmem:[%s18608_s1 + $0x868] sm:$0xff]  ;;  %v18811_v61 = vld [vmem:[#allocation10_spill] sm:$0xff]  ;;  %v11444_v30 = vsel %vm907_vm5, 1.0, %v18761_v59  ;;  %vm652_vm6 = vcmp.ne.f32.partialorder %v138_v16, 0.0  ;;  %vm653_vm7 = vcmp.ne.f32.partialorder %v139_v8, 0.0 }
  0xa5   :  { %18806 = vst [vmem:[#allocation67_spill] sm:$0xff] %v11382_v18  ;;  %18808 = vst [vmem:[#allocation69_spill] sm:$0xff] %v11394_v9  ;;  %v11403_v18 = vmul.f32 %v8827_v25, %v10984_v15  ;;  %v11409_v0 = vmul.f32 %v8828_v60, %v10984_v15  ;;  %v394_v9 = vld [vmem:[%s18608_s1 + $0xbd0] sm:$0xff]  ;;  %v11425_v60 = vsel %vm651_vm3, 1.0, %v18761_v59  ;;  %v395_v4 = vld [vmem:[%s18608_s1 + $0xbd8] sm:$0xff] }
  0xa6   :  { %v18812_v25 = vld [vmem:[#allocation9_spill] sm:$0xff]  ;;  %v18814_v17 = vld [vmem:[#allocation12_spill] sm:$0xff]  ;;  %vm908_vm8 = vcmp.ne.f32.partialorder %v394_v9, 0.0  ;;  %vm909_vm9 = vcmp.ne.f32.partialorder %v395_v4, 0.0  ;;  %v140_v16 = vld [vmem:[%s18608_s1 + $0x3e0] sm:$0xff] }
  0xa7   :  { %18809 = vst [vmem:[#allocation70_spill] sm:$0xff] %v11403_v18  ;;  %18810 = vst [vmem:[#allocation71_spill] sm:$0xff] %v11409_v0  ;;  %v18813_v18 = vpack.c.bf16 %v18811_v61, %v18812_v25  ;;  %v18815_v0 = vld [vmem:[#allocation11_spill] sm:$0xff]  ;;  %v18817_v61 = vld [vmem:[#allocation14_spill] sm:$0xff]  ;;  %v11476_v4 = vsel %vm909_vm9, 1.0, %v18761_v59  ;;  %vm654_vm10 = vcmp.ne.f32.partialorder %v140_v16, 0.0 }
  0xa8   :  { %v18816_v51 = vpack.c.bf16 %v18814_v17, %v18815_v0  ;;  %v18818_v25 = vld [vmem:[#allocation13_spill] sm:$0xff]  ;;  %v18820_v0 = vpack.c.bf16 %v10566_v12, %v10555_v22  ;;  %v11453_v17 = vsel %vm652_vm6, 1.0, %v18761_v59  ;;  %v141_v9 = vld [vmem:[%s18608_s1 + $0x3e8] sm:$0xff]  ;;  %18824 = vst [vmem:[#allocation11_spill] sm:$0xff] %v11476_v4  ;;  %v396_v8 = vld [vmem:[%s18608_s1 + $0xbe0] sm:$0xff] }
  0xa9   :  { %8353 = vmatmul.mubr.msk.bf16.gmra.mrb[76].mxu0 %vm2337_vm1, %v18813_v18  ;;  %v18819_v18 = vpack.c.bf16 %v18817_v61, %v18818_v25  ;;  %18821 = vst [vmem:[#allocation10_spill] sm:$0xff] %v11453_v17  ;;  %v11456_v61 = vsel %vm653_vm7, 1.0, %v18761_v59  ;;  %v11459_v25 = vsel %vm908_vm8, 1.0, %v18761_v59  ;;  %v8829_v22 = vld [vmem:[%s18608_s1 + $0x90] sm:$0xff]  ;;  %v397_v29 = vld [vmem:[%s18608_s1 + $0xbe8] sm:$0xff]  ;;  %v8834_v17 = vld [vmem:[%s18608_s1 + $0x898] sm:$0xff] }
  0xaa   :  { %8609 = vmatmul.mubr.msk.bf16.gmra.mrb[76].mxu1 %vm2337_vm1, %v18816_v51  ;;  %18822 = vst [vmem:[#allocation9_spill] sm:$0xff] %v11459_v25  ;;  %v11465_v12 = vmul.f32 %v8829_v22, %v10984_v15  ;;  %v8831_v22 = vld [vmem:[%s18608_s1 + $0x80] sm:$0xff]  ;;  %v142_v25 = vld [vmem:[%s18608_s1 + $0x3f0] sm:$0xff]  ;;  %vm655_vm11 = vcmp.ne.f32.partialorder %v141_v9, 0.0  ;;  %vm910_vm12 = vcmp.ne.f32.partialorder %v396_v8, 0.0  ;;  %vm911_vm13 = vcmp.ne.f32.partialorder %v397_v29, 0.0 }
  0xab   :  { %8356 = vmatprep.mubr.msk.bf16.mxu0 %vm2337_vm1, %v18819_v18  ;;  %8612 = vmatprep.mubr.msk.bf16.mxu1 %vm2337_vm1, %v18820_v0  ;;  %v8830_v18 = vld [vmem:[%s18608_s1 + $0x890] sm:$0xff]  ;;  %v11488_v51 = vmul.f32 %v8831_v22, %v10984_v15  ;;  %v8833_v22 = vld [vmem:[%s18608_s1 + $0x98] sm:$0xff]  ;;  %v18832_v9 = vpack.c.bf16 %v10584_v5, %v10581_v34  ;;  %v11556_v4 = vsel %vm911_vm13, 1.0, %v18761_v59  ;;  %vm656_vm14 = vcmp.ne.f32.partialorder %v142_v25, 0.0  ;;  %v18837_v25 = vld [vmem:[#allocation15_spill] sm:$0xff] }
  0xac   :  { %18823 = vst [vmem:[#allocation12_spill] sm:$0xff] %v11465_v12  ;;  %v11482_v0 = vmul.f32 %v8830_v18, %v10984_v15  ;;  %v8832_v18 = vld [vmem:[%s18608_s1 + $0x880] sm:$0xff]  ;;  %v11514_v12 = vmul.f32 %v8834_v17, %v10984_v15  ;;  %v143_v17 = vld [vmem:[%s18608_s1 + $0x3f8] sm:$0xff]  ;;  %v18833_v29 = vpack.c.bf16 %v10613_v39, %v10600_v19  ;;  %v18834_v34 = vpack.c.bf16 %v10624_v14, %v10616_v50  ;;  %v8837_v50 = vld [vmem:[%s18608_s1 + $0xb0] sm:$0xff] }
  0xad   :  { %18826 = vst [vmem:[#allocation13_spill] sm:$0xff] %v11488_v51  ;;  %v11508_v51 = vmul.f32 %v8833_v22, %v10984_v15  ;;  %v8836_v22 = vld [vmem:[%s18608_s1 + $0x888] sm:$0xff]  ;;  %v399_v16 = vld [vmem:[%s18608_s1 + $0xbf8] sm:$0xff]  ;;  %vm657_vm15 = vcmp.ne.f32.partialorder %v143_v17, 0.0  ;;  %v11569_v8 = vsel %vm656_vm14, 1.0, %v18761_v59  ;;  %v11585_v14 = vmul.f32 %v8837_v50, %v10984_v15  ;;  %v400_v50 = vld [vmem:[%s18608_s1 + $0xc00] sm:$0xff] }
  0xae   :  { %18825 = vst [vmem:[#allocation14_spill] sm:$0xff] %v11482_v0  ;;  %v11502_v0 = vmul.f32 %v8832_v18, %v10984_v15  ;;  %18829 = vst [vmem:[#allocation74_spill] sm:$0xff] %v11514_v12  ;;  %v8835_v18 = vld [vmem:[%s18608_s1 + $0x88] sm:$0xff]  ;;  %v398_v12 = vld [vmem:[%s18608_s1 + $0xbf0] sm:$0xff]  ;;  %v11576_v19 = vsel %vm657_vm15, 1.0, %v18761_v59  ;;  %vm913_vm2 = vcmp.ne.f32.partialorder %v399_v16, 0.0 }
  0xaf   :  { %18828 = vst [vmem:[#allocation73_spill] sm:$0xff] %v11508_v51  ;;  %v11529_v51 = vmul.f32 %v8836_v22, %v10984_v15  ;;  %18835 = vst [vmem:[#allocation77_spill] sm:$0xff] %v11569_v8  ;;  %vm912_vm0 = vcmp.ne.f32.partialorder %v398_v12, 0.0  ;;  %v144_v12 = vld [vmem:[%s18608_s1 + $0x400] sm:$0xff]  ;;  %v145_v17 = vld [vmem:[%s18608_s1 + $0x408] sm:$0xff]  ;;  %vm914_vm5 = vcmp.ne.f32.partialorder %v400_v50, 0.0 }
  0xb0   :  { %18827 = vst [vmem:[#allocation72_spill] sm:$0xff] %v11502_v0  ;;  %v11523_v0 = vmul.f32 %v8835_v18, %v10984_v15  ;;  %v11538_v18 = vsel %vm654_vm10, 1.0, %v18761_v59  ;;  %v11579_v39 = vsel %vm912_vm0, 1.0, %v18761_v59  ;;  %18840 = vst [vmem:[#allocation15_spill] sm:$0xff] %v11585_v14  ;;  %v401_v16 = vld [vmem:[%s18608_s1 + $0xc08] sm:$0xff]  ;;  %v8842_v14 = vld [vmem:[%s18608_s1 + $0x8b8] sm:$0xff] }
  0xb1   :  { %18831 = vst [vmem:[#allocation76_spill] sm:$0xff] %v11529_v51  ;;  %8357 = vmatmul.mubr.msk.bf16.gmra.mrb[80].mxu0 %vm2337_vm1, %v18832_v9  ;;  %v11553_v51 = vsel %vm910_vm12, 1.0, %v18761_v59  ;;  %v18836_v9 = vld [vmem:[#allocation16_spill] sm:$0xff]  ;;  %v11634_v5 = vmul.f32 %v8842_v14, %v10984_v15  ;;  %vm658_vm3 = vcmp.ne.f32.partialorder %v144_v12, 0.0  ;;  %vm659_vm4 = vcmp.ne.f32.partialorder %v145_v17, 0.0  ;;  %v147_v14 = vld [vmem:[%s18608_s1 + $0x418] sm:$0xff] }
  0xb2   :  { %18830 = vst [vmem:[#allocation75_spill] sm:$0xff] %v11523_v0  ;;  %v11541_v0 = vsel %vm655_vm11, 1.0, %v18761_v59  ;;  %8613 = vmatmul.mubr.msk.bf16.gmra.mrb[80].mxu1 %vm2337_vm1, %v18833_v29  ;;  %8360 = vmatprep.mubr.msk.bf16.mxu0 %vm2337_vm1, %v18834_v34  ;;  %v18838_v22 = vpack.c.bf16 %v18836_v9, %v18837_v25  ;;  %18839 = vst [vmem:[#allocation16_spill] sm:$0xff] %v11579_v39  ;;  %v8838_v29 = vld [vmem:[%s18608_s1 + $0x8b0] sm:$0xff]  ;;  %v8839_v9 = vld [vmem:[%s18608_s1 + $0xa0] sm:$0xff]  ;;  %vm915_vm6 = vcmp.ne.f32.partialorder %v401_v16, 0.0 }
  0xb3   :  { %v11602_v34 = vmul.f32 %v8838_v29, %v10984_v15  ;;  %v11608_v25 = vmul.f32 %v8839_v9, %v10984_v15  ;;  %v8840_v29 = vld [vmem:[%s18608_s1 + $0x8a0] sm:$0xff]  ;;  %v8841_v9 = vld [vmem:[%s18608_s1 + $0xb8] sm:$0xff]  ;;  %18846 = vst [vmem:[#allocation83_spill] sm:$0xff] %v11634_v5  ;;  %v146_v39 = vld [vmem:[%s18608_s1 + $0x410] sm:$0xff]  ;;  %vm661_vm8 = vcmp.ne.f32.partialorder %v147_v14, 0.0 }
  0xb4   :  { %8616 = vmatprep.mubr.msk.bf16.mxu1 %vm2337_vm1, %v18838_v22  ;;  %v11596_v22 = vsel %vm913_vm2, 1.0, %v18761_v59  ;;  %v402_v5 = vld [vmem:[%s18608_s1 + $0xc10] sm:$0xff]  ;;  %v403_v12 = vld [vmem:[%s18608_s1 + $0xc18] sm:$0xff]  ;;  %vm660_vm7 = vcmp.ne.f32.partialorder %v146_v39, 0.0  ;;  %v18854_v39 = vpack.c.bf16 %v10684_v52, %v10672_v23  ;;  %v148_v52 = vld [vmem:[%s18608_s1 + $0x420] sm:$0xff] }
  0xb5   :  { %18841 = vst [vmem:[#allocation78_spill] sm:$0xff] %v11596_v22  ;;  %18842 = vst [vmem:[#allocation79_spill] sm:$0xff] %v11602_v34  ;;  %v11622_v34 = vmul.f32 %v8840_v29, %v10984_v15  ;;  %v8843_v29 = vld [vmem:[%s18608_s1 + $0xa8] sm:$0xff]  ;;  %v18850_v22 = vld [vmem:[#allocation17_spill] sm:$0xff]  ;;  %v11681_v50 = vsel %vm660_vm7, 1.0, %v18761_v59  ;;  %vm916_vm9 = vcmp.ne.f32.partialorder %v402_v5, 0.0 }
  0xb6   :  { %18843 = vst [vmem:[#allocation80_spill] sm:$0xff] %v11608_v25  ;;  %v11628_v25 = vmul.f32 %v8841_v9, %v10984_v15  ;;  %v8844_v9 = vld [vmem:[%s18608_s1 + $0x8a8] sm:$0xff]  ;;  %v18851_v8 = vpack.c.bf16 %v10652_v37, %v18850_v22  ;;  %v18852_v17 = vld [vmem:[#allocation18_spill] sm:$0xff]  ;;  %v11692_v37 = vsel %vm661_vm8, 1.0, %v18761_v59  ;;  %vm917_vm10 = vcmp.ne.f32.partialorder %v403_v12, 0.0  ;;  %v8845_v5 = vld [vmem:[%s18608_s1 + $0xd0] sm:$0xff] }
  0xb7   :  { %18844 = vst [vmem:[#allocation81_spill] sm:$0xff] %v11622_v34  ;;  %v11643_v34 = vmul.f32 %v8843_v29, %v10984_v15  ;;  %v11658_v29 = vsel %vm658_vm3, 1.0, %v18761_v59  ;;  %v149_v23 = vld [vmem:[%s18608_s1 + $0x428] sm:$0xff]  ;;  %v18857_v22 = vpack.c.bf16 %v10706_v36, %v10687_v56  ;;  %v8846_v12 = vld [vmem:[%s18608_s1 + $0x8d0] sm:$0xff]  ;;  %v404_v56 = vld [vmem:[%s18608_s1 + $0xc20] sm:$0xff]  ;;  %vm662_vm11 = vcmp.ne.f32.partialorder %v148_v52, 0.0 }
  0xb8   :  { %18845 = vst [vmem:[#allocation82_spill] sm:$0xff] %v11628_v25  ;;  %v11649_v25 = vmul.f32 %v8844_v9, %v10984_v15  ;;  %18849 = vst [vmem:[#allocation86_spill] sm:$0xff] %v11658_v29  ;;  %v11669_v9 = vsel %vm914_vm5, 1.0, %v18761_v59  ;;  %v18853_v29 = vpack.c.bf16 %v10669_v46, %v18852_v17  ;;  %v11701_v46 = vmul.f32 %v8845_v5, %v10984_v15  ;;  %v405_v5 = vld [vmem:[%s18608_s1 + $0xc28] sm:$0xff]  ;;  %v407_v52 = vld [vmem:[%s18608_s1 + $0xc38] sm:$0xff] }
  0xb9   :  { %18847 = vst [vmem:[#allocation84_spill] sm:$0xff] %v11643_v34  ;;  %v11661_v34 = vsel %vm659_vm4, 1.0, %v18761_v59  ;;  %8361 = vmatmul.mubr.msk.bf16.gmra.mrb[84].mxu0 %vm2337_vm1, %v18851_v8  ;;  %v11695_v8 = vsel %vm916_vm9, 1.0, %v18761_v59  ;;  %v11722_v17 = vmul.f32 %v8846_v12, %v10984_v15  ;;  %v8848_v12 = vld [vmem:[%s18608_s1 + $0x8c0] sm:$0xff]  ;;  %vm663_vm12 = vcmp.ne.f32.partialorder %v149_v23, 0.0 }
  0xba   :  { %18848 = vst [vmem:[#allocation85_spill] sm:$0xff] %v11649_v25  ;;  %v11672_v25 = vsel %vm915_vm6, 1.0, %v18761_v59  ;;  %8617 = vmatmul.mubr.msk.bf16.gmra.mrb[84].mxu1 %vm2337_vm1, %v18853_v29  ;;  %8364 = vmatprep.mubr.msk.bf16.mxu0 %vm2337_vm1, %v18854_v39  ;;  %18855 = vst [vmem:[#allocation17_spill] sm:$0xff] %v11695_v8  ;;  %v11716_v29 = vsel %vm917_vm10, 1.0, %v18761_v59  ;;  %v8847_v39 = vld [vmem:[%s18608_s1 + $0xc0] sm:$0xff]  ;;  %v11742_v14 = vmul.f32 %v8848_v12, %v10984_v15  ;;  %v8851_v12 = vld [vmem:[%s18608_s1 + $0xc8] sm:$0xff] }
  0xbb   :  { %18856 = vst [vmem:[#allocation18_spill] sm:$0xff] %v11701_v46  ;;  %8620 = vmatprep.mubr.msk.bf16.mxu1 %vm2337_vm1, %v18857_v22  ;;  %18858 = vst [vmem:[#allocation87_spill] sm:$0xff] %v11722_v17  ;;  %v11728_v36 = vmul.f32 %v8847_v39, %v10984_v15  ;;  %v8849_v39 = vld [vmem:[%s18608_s1 + $0xd8] sm:$0xff]  ;;  %v150_v17 = vld [vmem:[%s18608_s1 + $0x430] sm:$0xff]  ;;  %vm918_vm13 = vcmp.ne.f32.partialorder %v404_v56, 0.0  ;;  %vm919_vm14 = vcmp.ne.f32.partialorder %v405_v5, 0.0 }
  0xbc   :  { %18860 = vst [vmem:[#allocation89_spill] sm:$0xff] %v11742_v14  ;;  %v11748_v16 = vmul.f32 %v8849_v39, %v10984_v15  ;;  %v11763_v14 = vmul.f32 %v8851_v12, %v10984_v15  ;;  %v8852_v39 = vld [vmem:[%s18608_s1 + $0x8c8] sm:$0xff]  ;;  %v11778_v12 = vsel %vm662_vm11, 1.0, %v18761_v59  ;;  %vm664_vm15 = vcmp.ne.f32.partialorder %v150_v17, 0.0  ;;  %v18869_v5 = vld [vmem:[#allocation19_spill] sm:$0xff]  ;;  %v8853_v17 = vld [vmem:[%s18608_s1 + $0xf0] sm:$0xff] }
  0xbd   :  { %18859 = vst [vmem:[#allocation88_spill] sm:$0xff] %v11728_v36  ;;  %v8850_v36 = vld [vmem:[%s18608_s1 + $0x8d8] sm:$0xff]  ;;  %18865 = vst [vmem:[#allocation94_spill] sm:$0xff] %v11778_v12  ;;  %v11797_v56 = vsel %vm664_vm15, 1.0, %v18761_v59  ;;  %v18870_v8 = vpack.c.bf16 %v10724_v24, %v18869_v5  ;;  %vm921_vm3 = vcmp.ne.f32.partialorder %v407_v52, 0.0  ;;  %v152_v24 = vld [vmem:[%s18608_s1 + $0x440] sm:$0xff] }
  0xbe   :  { %18861 = vst [vmem:[#allocation90_spill] sm:$0xff] %v11748_v16  ;;  %v11754_v22 = vmul.f32 %v8850_v36, %v10984_v15  ;;  %18863 = vst [vmem:[#allocation92_spill] sm:$0xff] %v11763_v14  ;;  %v11769_v16 = vmul.f32 %v8852_v39, %v10984_v15  ;;  %v151_v36 = vld [vmem:[%s18608_s1 + $0x438] sm:$0xff]  ;;  %v11781_v14 = vsel %vm663_vm12, 1.0, %v18761_v59  ;;  %v11789_v39 = vsel %vm918_vm13, 1.0, %v18761_v59  ;;  %v18873_v52 = vld [vmem:[#allocation20_spill] sm:$0xff] }
  0xbf   :  { %18866 = vst [vmem:[#allocation95_spill] sm:$0xff] %v11781_v14  ;;  %18867 = vst [vmem:[#allocation96_spill] sm:$0xff] %v11789_v39  ;;  %vm665_vm0 = vcmp.ne.f32.partialorder %v151_v36, 0.0  ;;  %v11813_v36 = vmul.f32 %v8853_v17, %v10984_v15  ;;  %v18875_v46 = vld [vmem:[#allocation22_spill] sm:$0xff]  ;;  %vm666_vm4 = vcmp.ne.f32.partialorder %v152_v24, 0.0 }
  0xc0   :  { %18862 = vst [vmem:[#allocation91_spill] sm:$0xff] %v11754_v22  ;;  %18864 = vst [vmem:[#allocation93_spill] sm:$0xff] %v11769_v16  ;;  %v406_v22 = vld [vmem:[%s18608_s1 + $0xc30] sm:$0xff]  ;;  %v11792_v16 = vsel %vm919_vm14, 1.0, %v18761_v59  ;;  %v11804_v23 = vsel %vm665_vm0, 1.0, %v18761_v59  ;;  %v18876_v39 = vpack.c.bf16 %v10752_v53, %v18875_v46  ;;  %v408_v46 = vld [vmem:[%s18608_s1 + $0xc40] sm:$0xff] }
  0xc1   :  { %18868 = vst [vmem:[#allocation97_spill] sm:$0xff] %v11792_v16  ;;  %vm920_vm2 = vcmp.ne.f32.partialorder %v406_v22, 0.0  ;;  %8365 = vmatmul.mubr.msk.bf16.gmra.mrb[88].mxu0 %vm2337_vm1, %v18870_v8  ;;  %18871 = vst [vmem:[#allocation19_spill] sm:$0xff] %v11813_v36  ;;  %v153_v8 = vld [vmem:[%s18608_s1 + $0x448] sm:$0xff]  ;;  %v18872_v22 = vld [vmem:[#allocation21_spill] sm:$0xff]  ;;  %v11832_v36 = vsel %vm921_vm3, 1.0, %v18761_v59 }
  0xc2   :  { %v11807_v12 = vsel %vm920_vm2, 1.0, %v18761_v59  ;;  %v18874_v5 = vpack.c.bf16 %v18872_v22, %v18873_v52  ;;  %8368 = vmatprep.mubr.msk.bf16.mxu0 %vm2337_vm1, %v18876_v39  ;;  %v8854_v16 = vld [vmem:[%s18608_s1 + $0x8f0] sm:$0xff]  ;;  %v8855_v22 = vld [vmem:[%s18608_s1 + $0xe0] sm:$0xff]  ;;  %v409_v39 = vld [vmem:[%s18608_s1 + $0xc48] sm:$0xff]  ;;  %vm667_vm5 = vcmp.ne.f32.partialorder %v153_v8, 0.0  ;;  %vm922_vm6 = vcmp.ne.f32.partialorder %v408_v46, 0.0 }
  0xc3   :  { %v11838_v14 = vmul.f32 %v8854_v16, %v10984_v15  ;;  %v11844_v53 = vmul.f32 %v8855_v22, %v10984_v15  ;;  %v18879_v52 = vld [vmem:[#allocation23_spill] sm:$0xff]  ;;  %vm923_vm7 = vcmp.ne.f32.partialorder %v409_v39, 0.0  ;;  %v411_v24 = vld [vmem:[%s18608_s1 + $0xc58] sm:$0xff] }
  0xc4   :  { %8621 = vmatmul.mubr.msk.bf16.gmra.mrb[88].mxu1 %vm2337_vm1, %v18874_v5  ;;  %v18880_v5 = vpack.c.bf16 %v10766_v27, %v18879_v52  ;;  %v8856_v22 = vld [vmem:[%s18608_s1 + $0x8e0] sm:$0xff]  ;;  %v8858_v27 = vld [vmem:[%s18608_s1 + $0x8f8] sm:$0xff]  ;;  %vm925_vm11 = vcmp.ne.f32.partialorder %v411_v24, 0.0  ;;  %v18893_v24 = vpack.c.bf16 %v10809_v31, %v10792_v32 }
  0xc5   :  { %18877 = vst [vmem:[#allocation21_spill] sm:$0xff] %v11838_v14  ;;  %18878 = vst [vmem:[#allocation20_spill] sm:$0xff] %v11844_v53  ;;  %v11862_v17 = vmul.f32 %v8856_v22, %v10984_v15  ;;  %v8857_v53 = vld [vmem:[%s18608_s1 + $0xf8] sm:$0xff]  ;;  %v11874_v52 = vmul.f32 %v8858_v27, %v10984_v15  ;;  %v8859_v22 = vld [vmem:[%s18608_s1 + $0xe8] sm:$0xff] }
  0xc6   :  { %8624 = vmatprep.mubr.msk.bf16.mxu1 %vm2337_vm1, %v18880_v5  ;;  %v11868_v14 = vmul.f32 %v8857_v53, %v10984_v15  ;;  %v154_v5 = vld [vmem:[%s18608_s1 + $0x450] sm:$0xff]  ;;  %v11883_v16 = vmul.f32 %v8859_v22, %v10984_v15  ;;  %v8860_v53 = vld [vmem:[%s18608_s1 + $0x8e8] sm:$0xff]  ;;  %v155_v27 = vld [vmem:[%s18608_s1 + $0x458] sm:$0xff]  ;;  %v11898_v22 = vsel %vm666_vm4, 1.0, %v18761_v59 }
  0xc7   :  { %18881 = vst [vmem:[#allocation22_spill] sm:$0xff] %v11862_v17  ;;  %18883 = vst [vmem:[#allocation98_spill] sm:$0xff] %v11874_v52  ;;  %v410_v52 = vld [vmem:[%s18608_s1 + $0xc50] sm:$0xff]  ;;  %vm668_vm8 = vcmp.ne.f32.partialorder %v154_v5, 0.0  ;;  %vm669_vm9 = vcmp.ne.f32.partialorder %v155_v27, 0.0  ;;  %v156_v39 = vld [vmem:[%s18608_s1 + $0x460] sm:$0xff]  ;;  %v18890_v17 = vpack.c.bf16 %v10780_v41, %v10777_v43 }
  0xc8   :  { %18882 = vst [vmem:[#allocation23_spill] sm:$0xff] %v11868_v14  ;;  %18884 = vst [vmem:[#allocation99_spill] sm:$0xff] %v11883_v16  ;;  %v11889_v14 = vmul.f32 %v8860_v53, %v10984_v15  ;;  %v11901_v16 = vsel %vm667_vm5, 1.0, %v18761_v59  ;;  %v11909_v53 = vsel %vm922_vm6, 1.0, %v18761_v59  ;;  %v11917_v46 = vsel %vm668_vm8, 1.0, %v18761_v59  ;;  %v8861_v5 = vld [vmem:[%s18608_s1 + $0x110] sm:$0xff] }
  0xc9   :  { %18886 = vst [vmem:[#allocation101_spill] sm:$0xff] %v11898_v22  ;;  %18887 = vst [vmem:[#allocation102_spill] sm:$0xff] %v11909_v53  ;;  %vm924_vm10 = vcmp.ne.f32.partialorder %v410_v52, 0.0  ;;  %v11923_v8 = vsel %vm669_vm9, 1.0, %v18761_v59  ;;  %v11932_v27 = vmul.f32 %v8861_v5, %v10984_v15  ;;  %v157_v52 = vld [vmem:[%s18608_s1 + $0x468] sm:$0xff]  ;;  %8369 = vmatmul.mubr.msk.bf16.gmra.mrb[92].mxu0 %vm2337_vm1, %v18890_v17  ;;  %v11944_v53 = vsel %vm925_vm11, 1.0, %v18761_v59 }
  0xca   :  { %18885 = vst [vmem:[#allocation100_spill] sm:$0xff] %v11889_v14  ;;  %v11912_v14 = vsel %vm923_vm7, 1.0, %v18761_v59  ;;  %v11926_v22 = vsel %vm924_vm10, 1.0, %v18761_v59  ;;  %v8862_v5 = vld [vmem:[%s18608_s1 + $0x910] sm:$0xff]  ;;  %v412_v43 = vld [vmem:[%s18608_s1 + $0xc60] sm:$0xff]  ;;  %v413_v17 = vld [vmem:[%s18608_s1 + $0xc68] sm:$0xff] }
  0xcb   :  { %18888 = vst [vmem:[#allocation103_spill] sm:$0xff] %v11912_v14  ;;  %18889 = vst [vmem:[#allocation104_spill] sm:$0xff] %v11932_v27  ;;  %v11950_v27 = vmul.f32 %v8862_v5, %v10984_v15  ;;  %v8863_v14 = vld [vmem:[%s18608_s1 + $0x100] sm:$0xff]  ;;  %v18894_v5 = vpack.c.bf16 %v10824_v42, %v10812_v35  ;;  %v8865_v32 = vld [vmem:[%s18608_s1 + $0x118] sm:$0xff]  ;;  %vm670_vm12 = vcmp.ne.f32.partialorder %v156_v39, 0.0  ;;  %vm671_vm13 = vcmp.ne.f32.partialorder %v157_v52, 0.0 }
  0xcc   :  { %v11956_v41 = vmul.f32 %v8863_v14, %v10984_v15  ;;  %8625 = vmatmul.mubr.msk.bf16.gmra.mrb[92].mxu1 %vm2337_vm1, %v18893_v24  ;;  %v11984_v31 = vmul.f32 %v8865_v32, %v10984_v15  ;;  %v158_v35 = vld [vmem:[%s18608_s1 + $0x470] sm:$0xff]  ;;  %v18897_v42 = vld [vmem:[#allocation24_spill] sm:$0xff]  ;;  %v12018_v14 = vsel %vm670_vm12, 1.0, %v18761_v59  ;;  %vm926_vm14 = vcmp.ne.f32.partialorder %v412_v43, 0.0  ;;  %v415_v52 = vld [vmem:[%s18608_s1 + $0xc78] sm:$0xff] }
  0xcd   :  { %18891 = vst [vmem:[#allocation105_spill] sm:$0xff] %v11950_v27  ;;  %8372 = vmatprep.mubr.msk.bf16.mxu0 %vm2337_vm1, %v18894_v5  ;;  %v18898_v24 = vpack.c.bf16 %v10838_v49, %v18897_v42  ;;  %v8867_v39 = vld [vmem:[%s18608_s1 + $0x108] sm:$0xff]  ;;  %18902 = vst [vmem:[#allocation111_spill] sm:$0xff] %v12018_v14  ;;  %vm927_vm15 = vcmp.ne.f32.partialorder %v413_v17, 0.0  ;;  %vm672_vm0 = vcmp.ne.f32.partialorder %v158_v35, 0.0  ;;  %vm929_vm4 = vcmp.ne.f32.partialorder %v415_v52, 0.0 }
  0xce   :  { %18892 = vst [vmem:[#allocation106_spill] sm:$0xff] %v11956_v41  ;;  %v8864_v41 = vld [vmem:[%s18608_s1 + $0x900] sm:$0xff]  ;;  %18896 = vst [vmem:[#allocation108_spill] sm:$0xff] %v11984_v31  ;;  %v12003_v32 = vmul.f32 %v8867_v39, %v10984_v15  ;;  %v8868_v49 = vld [vmem:[%s18608_s1 + $0x908] sm:$0xff]  ;;  %v12021_v39 = vsel %vm671_vm13, 1.0, %v18761_v59  ;;  %v12037_v43 = vsel %vm672_vm0, 1.0, %v18761_v59 }
  0xcf   :  { %v11978_v27 = vmul.f32 %v8864_v41, %v10984_v15  ;;  %8628 = vmatprep.mubr.msk.bf16.mxu1 %vm2337_vm1, %v18898_v24  ;;  %v8866_v41 = vld [vmem:[%s18608_s1 + $0x918] sm:$0xff]  ;;  %v12009_v42 = vmul.f32 %v8868_v49, %v10984_v15  ;;  %18903 = vst [vmem:[#allocation112_spill] sm:$0xff] %v12021_v39  ;;  %18906 = vst [vmem:[#allocation115_spill] sm:$0xff] %v12037_v43  ;;  %v8869_v31 = vld [vmem:[%s18608_s1 + $0x130] sm:$0xff] }
  0xd0   :  { %v11997_v5 = vmul.f32 %v8866_v41, %v10984_v15  ;;  %18900 = vst [vmem:[#allocation109_spill] sm:$0xff] %v12003_v32  ;;  %v159_v24 = vld [vmem:[%s18608_s1 + $0x478] sm:$0xff]  ;;  %v414_v41 = vld [vmem:[%s18608_s1 + $0xc70] sm:$0xff]  ;;  %v12032_v32 = vsel %vm927_vm15, 1.0, %v18761_v59  ;;  %v12049_v35 = vmul.f32 %v8869_v31, %v10984_v15  ;;  %v416_v52 = vld [vmem:[%s18608_s1 + $0xc80] sm:$0xff] }
  0xd1   :  { %18895 = vst [vmem:[#allocation107_spill] sm:$0xff] %v11978_v27  ;;  %18901 = vst [vmem:[#allocation110_spill] sm:$0xff] %v12009_v42  ;;  %v12029_v42 = vsel %vm926_vm14, 1.0, %v18761_v59  ;;  %vm673_vm2 = vcmp.ne.f32.partialorder %v159_v24, 0.0  ;;  %vm928_vm3 = vcmp.ne.f32.partialorder %v414_v41, 0.0  ;;  %v160_v24 = vld [vmem:[%s18608_s1 + $0x480] sm:$0xff] }
  0xd2   :  { %18899 = vst [vmem:[#allocation24_spill] sm:$0xff] %v11997_v5  ;;  %18904 = vst [vmem:[#allocation113_spill] sm:$0xff] %v12029_v42  ;;  %v12040_v17 = vsel %vm673_vm2, 1.0, %v18761_v59  ;;  %v12043_v49 = vsel %vm928_vm3, 1.0, %v18761_v59  ;;  %v161_v41 = vld [vmem:[%s18608_s1 + $0x488] sm:$0xff]  ;;  %v12060_v5 = vsel %vm929_vm4, 1.0, %v18761_v59 }
  0xd3   :  { %18905 = vst [vmem:[#allocation114_spill] sm:$0xff] %v12032_v32  ;;  %18907 = vst [vmem:[#allocation116_spill] sm:$0xff] %v12040_v17  ;;  %v8870_v27 = vld [vmem:[%s18608_s1 + $0x930] sm:$0xff]  ;;  %v417_v43 = vld [vmem:[%s18608_s1 + $0xc88] sm:$0xff]  ;;  %vm674_vm5 = vcmp.ne.f32.partialorder %v160_v24, 0.0  ;;  %vm675_vm6 = vcmp.ne.f32.partialorder %v161_v41, 0.0 }
  0xd4   :  { %18908 = vst [vmem:[#allocation117_spill] sm:$0xff] %v12049_v35  ;;  %v12066_v31 = vmul.f32 %v8870_v27, %v10984_v15  ;;  %v8871_v35 = vld [vmem:[%s18608_s1 + $0x120] sm:$0xff]  ;;  %v18911_v17 = vld [vmem:[#allocation26_spill] sm:$0xff]  ;;  %v18912_v32 = vld [vmem:[#allocation25_spill] sm:$0xff]  ;;  %vm930_vm7 = vcmp.ne.f32.partialorder %v416_v52, 0.0  ;;  %vm931_vm8 = vcmp.ne.f32.partialorder %v417_v43, 0.0 }
  0xd5   :  { %v12072_v42 = vmul.f32 %v8871_v35, %v10984_v15  ;;  %v18913_v14 = vpack.c.bf16 %v18911_v17, %v18912_v32  ;;  %v8872_v35 = vld [vmem:[%s18608_s1 + $0x920] sm:$0xff]  ;;  %v162_v17 = vld [vmem:[%s18608_s1 + $0x490] sm:$0xff]  ;;  %v419_v24 = vld [vmem:[%s18608_s1 + $0xc98] sm:$0xff] }
  0xd6   :  { %18909 = vst [vmem:[#allocation118_spill] sm:$0xff] %v12066_v31  ;;  %v8873_v31 = vld [vmem:[%s18608_s1 + $0x138] sm:$0xff]  ;;  %v18918_v27 = vld [vmem:[#allocation27_spill] sm:$0xff]  ;;  %vm676_vm9 = vcmp.ne.f32.partialorder %v162_v17, 0.0  ;;  %vm933_vm12 = vcmp.ne.f32.partialorder %v419_v24, 0.0  ;;  %v8878_v41 = vld [vmem:[%s18608_s1 + $0x950] sm:$0xff] }
  0xd7   :  { %18910 = vst [vmem:[#allocation119_spill] sm:$0xff] %v12072_v42  ;;  %8373 = vmatmul.mubr.msk.bf16.gmra.mrb[96].mxu0 %vm2337_vm1, %v18913_v14  ;;  %v12090_v42 = vmul.f32 %v8872_v35, %v10984_v15  ;;  %v12096_v39 = vmul.f32 %v8873_v31, %v10984_v15  ;;  %v8874_v14 = vld [vmem:[%s18608_s1 + $0x938] sm:$0xff]  ;;  %v18917_v35 = vld [vmem:[#allocation28_spill] sm:$0xff]  ;;  %v18920_v31 = vpack.c.bf16 %v10880_v38, %v10872_v55  ;;  %v418_v38 = vld [vmem:[%s18608_s1 + $0xc90] sm:$0xff]  ;;  %v12157_v43 = vsel %vm676_vm9, 1.0, %v18761_v59 }
  0xd8   :  { %v12102_v32 = vmul.f32 %v8874_v14, %v10984_v15  ;;  %v163_v55 = vld [vmem:[%s18608_s1 + $0x498] sm:$0xff]  ;;  %18924 = vst [vmem:[#allocation121_spill] sm:$0xff] %v12157_v43  ;;  %vm932_vm11 = vcmp.ne.f32.partialorder %v418_v38, 0.0  ;;  %v165_v38 = vld [vmem:[%s18608_s1 + $0x4a8] sm:$0xff]  ;;  %v420_v24 = vld [vmem:[%s18608_s1 + $0xca0] sm:$0xff] }
  0xd9   :  { %18914 = vst [vmem:[#allocation26_spill] sm:$0xff] %v12090_v42  ;;  %18915 = vst [vmem:[#allocation25_spill] sm:$0xff] %v12096_v39  ;;  %v18919_v42 = vpack.c.bf16 %v18917_v35, %v18918_v27  ;;  %8376 = vmatprep.mubr.msk.bf16.mxu0 %vm2337_vm1, %v18920_v31  ;;  %v8875_v39 = vld [vmem:[%s18608_s1 + $0x128] sm:$0xff]  ;;  %v12149_v35 = vsel %vm930_vm7, 1.0, %v18761_v59  ;;  %vm677_vm10 = vcmp.ne.f32.partialorder %v163_v55, 0.0  ;;  %v12163_v31 = vsel %vm932_vm11, 1.0, %v18761_v59 }
  0xda   :  { %18916 = vst [vmem:[#allocation120_spill] sm:$0xff] %v12102_v32  ;;  %v12119_v14 = vmul.f32 %v8875_v39, %v10984_v15  ;;  %v8876_v32 = vld [vmem:[%s18608_s1 + $0x928] sm:$0xff]  ;;  %v12138_v39 = vsel %vm674_vm5, 1.0, %v18761_v59  ;;  %v12160_v52 = vsel %vm677_vm10, 1.0, %v18761_v59  ;;  %18926 = vst [vmem:[#allocation123_spill] sm:$0xff] %v12163_v31  ;;  %v164_v55 = vld [vmem:[%s18608_s1 + $0x4a0] sm:$0xff] }
  0xdb   :  { %8629 = vmatmul.mubr.msk.bf16.gmra.mrb[96].mxu1 %vm2337_vm1, %v18919_v42  ;;  %v12125_v27 = vmul.f32 %v8876_v32, %v10984_v15  ;;  %v18923_v42 = vpack.c.bf16 %v10898_v45, %v10883_v20  ;;  %v12141_v32 = vsel %vm675_vm6, 1.0, %v18761_v59  ;;  %v12152_v20 = vsel %vm931_vm8, 1.0, %v18761_v59  ;;  %18925 = vst [vmem:[#allocation122_spill] sm:$0xff] %v12160_v52  ;;  %v421_v43 = vld [vmem:[%s18608_s1 + $0xca8] sm:$0xff]  ;;  %v166_v31 = vld [vmem:[%s18608_s1 + $0x4b0] sm:$0xff] }
  0xdc   :  { %18921 = vst [vmem:[#allocation28_spill] sm:$0xff] %v12119_v14  ;;  %v12180_v45 = vsel %vm933_vm12, 1.0, %v18761_v59  ;;  %v8882_v14 = vld [vmem:[%s18608_s1 + $0x958] sm:$0xff]  ;;  %vm678_vm13 = vcmp.ne.f32.partialorder %v164_v55, 0.0  ;;  %vm679_vm14 = vcmp.ne.f32.partialorder %v165_v38, 0.0  ;;  %vm934_vm15 = vcmp.ne.f32.partialorder %v420_v24, 0.0 }
  0xdd   :  { %18922 = vst [vmem:[#allocation27_spill] sm:$0xff] %v12125_v27  ;;  %8632 = vmatprep.mubr.msk.bf16.mxu1 %vm2337_vm1, %v18923_v42  ;;  %v8877_v42 = vld [vmem:[%s18608_s1 + $0x150] sm:$0xff]  ;;  %v12218_v52 = vmul.f32 %v8882_v14, %v10984_v15  ;;  %v8884_v14 = vld [vmem:[%s18608_s1 + $0x948] sm:$0xff]  ;;  %v12254_v55 = vsel %vm678_vm13, 1.0, %v18761_v59  ;;  %v12257_v38 = vsel %vm679_vm14, 1.0, %v18761_v59  ;;  %vm935_vm0 = vcmp.ne.f32.partialorder %v421_v43, 0.0 }
  0xde   :  { %v12169_v17 = vmul.f32 %v8877_v42, %v10984_v15  ;;  %v12186_v42 = vmul.f32 %v8878_v41, %v10984_v15  ;;  %v8880_v41 = vld [vmem:[%s18608_s1 + $0x940] sm:$0xff]  ;;  %vm680_vm2 = vcmp.ne.f32.partialorder %v166_v31, 0.0 }
  0xdf   :  { %18932 = vst [vmem:[#allocation129_spill] sm:$0xff] %v12218_v52  ;;  %v12237_v52 = vmul.f32 %v8884_v14, %v10984_v15  ;;  %v423_v14 = vld [vmem:[%s18608_s1 + $0xcb8] sm:$0xff]  ;;  %v12277_v24 = vsel %vm680_vm2, 1.0, %v18761_v59 }
  0xe0   :  { %18927 = vst [vmem:[#allocation124_spill] sm:$0xff] %v12169_v17  ;;  %18928 = vst [vmem:[#allocation125_spill] sm:$0xff] %v12186_v42  ;;  %v8879_v17 = vld [vmem:[%s18608_s1 + $0x140] sm:$0xff]  ;;  %v12206_v42 = vmul.f32 %v8880_v41, %v10984_v15  ;;  %v18933_v41 = vpack.c.bf16 %v10920_v33, %v10917_v13  ;;  %v167_v13 = vld [vmem:[%s18608_s1 + $0x4b8] sm:$0xff]  ;;  %vm937_vm5 = vcmp.ne.f32.partialorder %v423_v14, 0.0 }
  0xe1   :  { %v12192_v27 = vmul.f32 %v8879_v17, %v10984_v15  ;;  %v8881_v17 = vld [vmem:[%s18608_s1 + $0x158] sm:$0xff]  ;;  %18935 = vst [vmem:[#allocation131_spill] sm:$0xff] %v12237_v52  ;;  %v422_v33 = vld [vmem:[%s18608_s1 + $0xcb0] sm:$0xff]  ;;  %vm681_vm3 = vcmp.ne.f32.partialorder %v167_v13, 0.0  ;;  %v168_v13 = vld [vmem:[%s18608_s1 + $0x4c0] sm:$0xff]  ;;  %v12300_v43 = vsel %vm937_vm5, 1.0, %v18761_v59 }
  0xe2   :  { %18930 = vst [vmem:[#allocation127_spill] sm:$0xff] %v12206_v42  ;;  %8377 = vmatmul.mubr.msk.bf16.gmra.mrb[100].mxu0 %vm2337_vm1, %v18933_v41  ;;  %v18936_v41 = vpack.c.bf16 %v10941_v10, %v10932_v6  ;;  %v18938_v6 = vld [vmem:[#allocation30_spill] sm:$0xff]  ;;  %v18939_v10 = vld [vmem:[#allocation29_spill] sm:$0xff]  ;;  %vm936_vm4 = vcmp.ne.f32.partialorder %v422_v33, 0.0  ;;  %v169_v33 = vld [vmem:[%s18608_s1 + $0x4c8] sm:$0xff]  ;;  %vm682_vm6 = vcmp.ne.f32.partialorder %v168_v13, 0.0 }
  0xe3   :  { %18929 = vst [vmem:[#allocation126_spill] sm:$0xff] %v12192_v27  ;;  %v12212_v27 = vmul.f32 %v8881_v17, %v10984_v15  ;;  %v8883_v17 = vld [vmem:[%s18608_s1 + $0x148] sm:$0xff]  ;;  %18941 = vst [vmem:[#allocation30_spill] sm:$0xff] %v12277_v24  ;;  %v424_v14 = vld [vmem:[%s18608_s1 + $0xcc0] sm:$0xff]  ;;  %vm683_vm7 = vcmp.ne.f32.partialorder %v169_v33, 0.0  ;;  %v12366_v42 = vsel %vm682_vm6, 1.0, %v18761_v59  ;;  %v18956_v33 = vpack.c.bf16 %v10994_v11, %v10982_v26 }
  0xe4   :  { %8633 = vmatmul.mubr.msk.bf16.gmra.mrb[100].mxu1 %vm2337_vm1, %v18936_v41  ;;  %v18940_v41 = vpack.c.bf16 %v18938_v6, %v18939_v10  ;;  %v12280_v6 = vsel %vm681_vm3, 1.0, %v18761_v59  ;;  %v12283_v10 = vsel %vm936_vm4, 1.0, %v18761_v59  ;;  %18945 = vst [vmem:[#allocation134_spill] sm:$0xff] %v12300_v43  ;;  %v425_v24 = vld [vmem:[%s18608_s1 + $0xcc8] sm:$0xff]  ;;  %vm938_vm8 = vcmp.ne.f32.partialorder %v424_v14, 0.0  ;;  %v427_v13 = vld [vmem:[%s18608_s1 + $0xcd8] sm:$0xff] }
  0xe5   :  { %18931 = vst [vmem:[#allocation128_spill] sm:$0xff] %v12212_v27  ;;  %v12231_v27 = vmul.f32 %v8883_v17, %v10984_v15  ;;  %v18937_v17 = vpack.c.bf16 %v10955_v7, %v10944_v48  ;;  %v12269_v7 = vsel %vm934_vm15, 1.0, %v18761_v59  ;;  %18942 = vst [vmem:[#allocation29_spill] sm:$0xff] %v12280_v6  ;;  %v8886_v48 = vld [vmem:[%s18608_s1 + $0x970] sm:$0xff]  ;;  %v18953_v43 = vld [vmem:[#allocation32_spill] sm:$0xff]  ;;  %vm939_vm9 = vcmp.ne.f32.partialorder %v425_v24, 0.0 }
  0xe6   :  { %8636 = vmatprep.mubr.msk.bf16.mxu1 %vm2337_vm1, %v18940_v41  ;;  %18943 = vst [vmem:[#allocation132_spill] sm:$0xff] %v12283_v10  ;;  %v8885_v41 = vld [vmem:[%s18608_s1 + $0x170] sm:$0xff]  ;;  %v12385_v14 = vsel %vm938_vm8, 1.0, %v18761_v59  ;;  %v12388_v24 = vsel %vm939_vm9, 1.0, %v18761_v59  ;;  %vm941_vm13 = vcmp.ne.f32.partialorder %v427_v13, 0.0 }
  0xe7   :  { %18934 = vst [vmem:[#allocation130_spill] sm:$0xff] %v12231_v27  ;;  %8380 = vmatprep.mubr.msk.bf16.mxu0 %vm2337_vm1, %v18937_v17  ;;  %v12272_v17 = vsel %vm935_vm0, 1.0, %v18761_v59  ;;  %v12289_v31 = vmul.f32 %v8885_v41, %v10984_v15  ;;  %v12306_v41 = vmul.f32 %v8886_v48, %v10984_v15  ;;  %v8888_v48 = vld [vmem:[%s18608_s1 + $0x960] sm:$0xff]  ;;  %v8890_v27 = vld [vmem:[%s18608_s1 + $0x978] sm:$0xff]  ;;  %v170_v10 = vld [vmem:[%s18608_s1 + $0x4d0] sm:$0xff] }
  0xe8   :  { %v12338_v6 = vmul.f32 %v8890_v27, %v10984_v15  ;;  %v171_v27 = vld [vmem:[%s18608_s1 + $0x4d8] sm:$0xff]  ;;  %18958 = vst [vmem:[#allocation32_spill] sm:$0xff] %v12385_v14  ;;  %vm684_vm10 = vcmp.ne.f32.partialorder %v170_v10, 0.0  ;;  %v8894_v13 = vld [vmem:[%s18608_s1 + $0x990] sm:$0xff] }
  0xe9   :  { %18944 = vst [vmem:[#allocation133_spill] sm:$0xff] %v12289_v31  ;;  %18946 = vst [vmem:[#allocation135_spill] sm:$0xff] %v12306_v41  ;;  %v8887_v31 = vld [vmem:[%s18608_s1 + $0x160] sm:$0xff]  ;;  %v12326_v41 = vmul.f32 %v8888_v48, %v10984_v15  ;;  %v8891_v48 = vld [vmem:[%s18608_s1 + $0x168] sm:$0xff]  ;;  %vm685_vm11 = vcmp.ne.f32.partialorder %v171_v27, 0.0  ;;  %v8534_v27 = vpop.f32.mrb[0].mxu1  ;;  %v12420_v26 = vmul.f32 %v8894_v13, %v10984_v15 }
  0xea   :  { %v12312_v52 = vmul.f32 %v8887_v31, %v10984_v15  ;;  %v8889_v31 = vld [vmem:[%s18608_s1 + $0x178] sm:$0xff]  ;;  %18950 = vst [vmem:[#allocation139_spill] sm:$0xff] %v12338_v6  ;;  %v426_v6 = vld [vmem:[%s18608_s1 + $0xcd0] sm:$0xff]  ;;  %vm5962_vm15 = vcmp.gt.f32.partialorder %v8534_v27, 0.0 }
  0xeb   :  { %18948 = vst [vmem:[#allocation137_spill] sm:$0xff] %v12326_v41  ;;  %v12347_v41 = vmul.f32 %v8891_v48, %v10984_v15  ;;  %v18954_v48 = vld [vmem:[#allocation31_spill] sm:$0xff]  ;;  %vm940_vm12 = vcmp.ne.f32.partialorder %v426_v6, 0.0  ;;  %18966 = vst [vmem:[#allocation143_spill] sm:$0xff] %v12420_v26  ;;  %v18968_v13 = vld [vmem:[#allocation34_spill] sm:$0xff] }
  0xec   :  { %18947 = vst [vmem:[#allocation136_spill] sm:$0xff] %v12312_v52  ;;  %v12332_v52 = vmul.f32 %v8889_v31, %v10984_v15  ;;  %v8892_v31 = vld [vmem:[%s18608_s1 + $0x968] sm:$0xff]  ;;  %8637 = vmatmul.mubr.msk.bf16.gmra.mrb[104].mxu1 %vm2337_vm1, %v18956_v33  ;;  %v12400_v33 = vsel %vm685_vm11, 1.0, %v18761_v59  ;;  %v12403_v10 = vsel %vm940_vm12, 1.0, %v18761_v59  ;;  %v172_v6 = vld [vmem:[%s18608_s1 + $0x4e0] sm:$0xff]  ;;  %v6474_v26 = vsel %vm5962_vm15, %v18968_v13, nan }
  0xed   :  { %18951 = vst [vmem:[#allocation140_spill] sm:$0xff] %v12347_v41  ;;  %v18955_v41 = vpack.c.bf16 %v18953_v43, %v18954_v48  ;;  %v18957_v43 = vpack.c.bf16 %v11077_v28, %v11074_v40  ;;  %v18959_v48 = vld [vmem:[#allocation40_spill] sm:$0xff]  ;;  %v12397_v40 = vsel %vm684_vm10, 1.0, %v18761_v59  ;;  %v8278_v28 = vpop.f32.mrb[0].mxu0  ;;  %6986 = vst.msk [vmem:[%s18610_s3 + $0x810] sm:$0xff] %vm2337_vm1, %v6474_v26 }
  0xee   :  { %18949 = vst [vmem:[#allocation138_spill] sm:$0xff] %v12332_v52  ;;  %v12353_v52 = vmul.f32 %v8892_v31, %v10984_v15  ;;  %v12369_v31 = vsel %vm683_vm7, 1.0, %v18761_v59  ;;  %18962 = vst [vmem:[#allocation31_spill] sm:$0xff] %v12397_v40  ;;  %vm5706_vm14 = vcmp.gt.f32.partialorder %v8278_v28, 0.0  ;;  %v4168_v28 = vpop.f32.mrb[1].mxu1  ;;  %v18969_v40 = vld [vmem:[#allocation35_spill] sm:$0xff] }
  0xef   :  { %8381 = vmatmul.mubr.msk.bf16.gmra.mrb[104].mxu0 %vm2337_vm1, %v18955_v41  ;;  %18963 = vst [vmem:[#allocation40_spill] sm:$0xff] %v12403_v10  ;;  %v18967_v41 = vld [vmem:[#allocation33_spill] sm:$0xff]  ;;  %vm5960_vm2 = vcmp.gt.f32.partialorder %v4168_v28, 0.0  ;;  %v8535_v27 = vpop.f32.mrb[2].mxu1  ;;  %v18971_v10 = vld [vmem:[#allocation3_spill] sm:$0xff]  ;;  %v173_v28 = vld [vmem:[%s18608_s1 + $0x4e8] sm:$0xff] }
  0xf0   :  { %18952 = vst [vmem:[#allocation141_spill] sm:$0xff] %v12353_v52  ;;  %8384 = vmatprep.mubr.msk.bf16.mxu0 %vm2337_vm1, %v18957_v43  ;;  %v18960_v52 = vld [vmem:[#allocation39_spill] sm:$0xff]  ;;  %v6218_v14 = vsel %vm5706_vm14, %v18967_v41, nan  ;;  %vm5963_vm4 = vcmp.gt.f32.partialorder %v8535_v27, 0.0  ;;  %v18972_v26 = vld [vmem:[#allocation36_spill] sm:$0xff]  ;;  %v18975_v27 = vld [vmem:[#allocation41_spill] sm:$0xff] }
  0xf1   :  { %v18961_v11 = vpack.c.bf16 %v18959_v48, %v18960_v52  ;;  %v8893_v52 = vld [vmem:[%s18608_s1 + $0x190] sm:$0xff]  ;;  %v3144_v48 = vpop.f32.mrb[1].mxu0  ;;  %6730 = vst.msk [vmem:[%s18610_s3 + $0x10] sm:$0xff] %vm2337_vm1, %v6218_v14  ;;  %vm686_vm7 = vcmp.ne.f32.partialorder %v172_v6, 0.0  ;;  %vm687_vm8 = vcmp.ne.f32.partialorder %v173_v28, 0.0 }
  0xf2   :  { %v12409_v43 = vmul.f32 %v8893_v52, %v10984_v15  ;;  %vm5704_vm0 = vcmp.gt.f32.partialorder %v3144_v48, 0.0  ;;  %v8279_v52 = vpop.f32.mrb[2].mxu0  ;;  %v430_v6 = vld [vmem:[%s18608_s1 + $0xcf0] sm:$0xff] }
  0xf3   :  { %8640 = vmatprep.mubr.msk.bf16.mxu1 %vm2337_vm1, %v18961_v11  ;;  %v12414_v11 = vsel %vm941_vm13, 1.0, %v18761_v59  ;;  %v6216_v41 = vsel %vm5704_vm0, %v18969_v40, nan  ;;  %vm5707_vm3 = vcmp.gt.f32.partialorder %v8279_v52, 0.0  ;;  %v3147_v48 = vpop.f32.mrb[3].mxu0  ;;  %v4171_v40 = vpop.f32.mrb[3].mxu1 }
  0xf4   :  { %18964 = vst [vmem:[#allocation39_spill] sm:$0xff] %v12409_v43  ;;  %18965 = vst [vmem:[#allocation142_spill] sm:$0xff] %v12414_v11  ;;  %v18970_v43 = vld [vmem:[#allocation4_spill] sm:$0xff]  ;;  %v6219_v13 = vsel %vm5707_vm3, %v18971_v10, nan  ;;  %vm5705_vm5 = vcmp.gt.f32.partialorder %v3147_v48, 0.0  ;;  %v18973_v10 = vld [vmem:[#allocation37_spill] sm:$0xff] }
  0xf5   :  { %6728 = vst.msk [vmem:[%s18610_s3] sm:$0xff] %vm2337_vm1, %v6216_v41  ;;  %v6472_v14 = vsel %vm5960_vm2, %v18970_v43, nan  ;;  %6731 = vst.msk [vmem:[%s18610_s3 + $0x18] sm:$0xff] %vm2337_vm1, %v6219_v13  ;;  %v6475_v43 = vsel %vm5963_vm4, %v18972_v26, nan  ;;  %v6217_v52 = vsel %vm5705_vm5, %v18973_v10, nan  ;;  %vm5961_vm6 = vcmp.gt.f32.partialorder %v4171_v40, 0.0 }
  0xf6   :  { %6984 = vst.msk [vmem:[%s18610_s3 + $0x800] sm:$0xff] %vm2337_vm1, %v6472_v14  ;;  %v18974_v41 = vld [vmem:[#allocation42_spill] sm:$0xff]  ;;  %v8895_v11 = vld [vmem:[%s18608_s1 + $0x180] sm:$0xff]  ;;  %v429_v40 = vld [vmem:[%s18608_s1 + $0xce8] sm:$0xff]  ;;  %v18979_v10 = vpack.c.bf16 %v11116_v63, %v11099_v2 }
  0xf7   :  { %v18976_v48 = vpack.c.bf16 %v18974_v41, %v18975_v27  ;;  %v12465_v14 = vmul.f32 %v8895_v11, %v10984_v15  ;;  %v428_v13 = vld [vmem:[%s18608_s1 + $0xce0] sm:$0xff]  ;;  %6987 = vst.msk [vmem:[%s18610_s3 + $0x818] sm:$0xff] %vm2337_vm1, %v6475_v43  ;;  %6729 = vst.msk [vmem:[%s18610_s3 + $0x8] sm:$0xff] %vm2337_vm1, %v6217_v52  ;;  %v18978_v11 = vld [vmem:[#allocation38_spill] sm:$0xff]  ;;  %v18980_v41 = vpack.c.bf16 %v11197_v1, %v11194_v44  ;;  %vm943_vm10 = vcmp.ne.f32.partialorder %v429_v40, 0.0 }
  0xf8   :  { %v6473_v26 = vsel %vm5961_vm6, %v18978_v11, nan  ;;  %8641 = vmatmul.mubr.msk.bf16.gmra.mrb[108].mxu1 %vm2337_vm1, %v18979_v10  ;;  %v8896_v43 = vld [vmem:[%s18608_s1 + $0x980] sm:$0xff]  ;;  %v8897_v52 = vld [vmem:[%s18608_s1 + $0x198] sm:$0xff]  ;;  %v8899_v11 = vld [vmem:[%s18608_s1 + $0x188] sm:$0xff]  ;;  %vm942_vm9 = vcmp.ne.f32.partialorder %v428_v13, 0.0  ;;  %vm944_vm6 = vcmp.ne.f32.partialorder %v430_v6, 0.0 }
  0xf9   :  { %8385 = vmatmul.mubr.msk.bf16.gmra.mrb[108].mxu0 %vm2337_vm1, %v18976_v48  ;;  %18977 = vst [vmem:[#allocation33_spill] sm:$0xff] %v12465_v14  ;;  %v12494_v27 = vmul.f32 %v8896_v43, %v10984_v15  ;;  %v12500_v63 = vmul.f32 %v8897_v52, %v10984_v15  ;;  %v8898_v2 = vld [vmem:[%s18608_s1 + $0x998] sm:$0xff]  ;;  %6985 = vst.msk [vmem:[%s18610_s3 + $0x808] sm:$0xff] %vm2337_vm1, %v6473_v26  ;;  %v18984_v1 = vld [vmem:[#allocation7_spill] sm:$0xff]  ;;  %v12520_v10 = vmul.f32 %v8899_v11, %v10984_v15  ;;  %v8282_v26 = vpop.f32.mrb[4].mxu0 }
  0xfa   :  { %8388 = vmatprep.mubr.msk.bf16.mxu0 %vm2337_vm1, %v18980_v41  ;;  %v12506_v44 = vmul.f32 %v8898_v2, %v10984_v15  ;;  %v18985_v48 = vpack.c.bf16 %v11208_v57, %v18984_v1  ;;  %v8900_v41 = vld [vmem:[%s18608_s1 + $0x988] sm:$0xff]  ;;  %v12529_v57 = vsel %vm686_vm7, 1.0, %v18761_v59  ;;  %v12532_v52 = vsel %vm687_vm8, 1.0, %v18761_v59  ;;  %v174_v2 = vld [vmem:[%s18608_s1 + $0x4f0] sm:$0xff]  ;;  %v8538_v1 = vpop.f32.mrb[4].mxu1  ;;  %v175_v13 = vld [vmem:[%s18608_s1 + $0x4f8] sm:$0xff] }
  0xfb   :  { %18981 = vst [vmem:[#allocation34_spill] sm:$0xff] %v12494_v27  ;;  %18982 = vst [vmem:[#allocation35_spill] sm:$0xff] %v12500_v63  ;;  %v12526_v43 = vmul.f32 %v8900_v41, %v10984_v15  ;;  %vm5710_vm11 = vcmp.gt.f32.partialorder %v8282_v26, 0.0  ;;  %v12540_v28 = vsel %vm942_vm9, 1.0, %v18761_v59  ;;  %v12543_v11 = vsel %vm943_vm10, 1.0, %v18761_v59  ;;  %v18988_v40 = vld [vmem:[#allocation43_spill] sm:$0xff] }
  0xfc   :  { %18983 = vst [vmem:[#allocation4_spill] sm:$0xff] %v12506_v44  ;;  %8644 = vmatprep.mubr.msk.bf16.mxu1 %vm2337_vm1, %v18985_v48  ;;  %18986 = vst [vmem:[#allocation3_spill] sm:$0xff] %v12520_v10  ;;  %v3160_v48 = vpop.f32.mrb[5].mxu0  ;;  %v6222_v41 = vsel %vm5710_vm11, %v18988_v40, nan  ;;  %vm5966_vm12 = vcmp.gt.f32.partialorder %v8538_v1, 0.0  ;;  %v4184_v26 = vpop.f32.mrb[5].mxu1 }
  0xfd   :  { %18987 = vst [vmem:[#allocation36_spill] sm:$0xff] %v12526_v43  ;;  %vm5708_vm13 = vcmp.gt.f32.partialorder %v3160_v48, 0.0  ;;  %v8283_v43 = vpop.f32.mrb[6].mxu0  ;;  %6734 = vst.msk [vmem:[%s18610_s3 + $0x30] sm:$0xff] %vm2337_vm1, %v6222_v41  ;;  %v18989_v44 = vld [vmem:[#allocation44_spill] sm:$0xff]  ;;  %v18990_v27 = vld [vmem:[#allocation45_spill] sm:$0xff] }
  0xfe   :  { %v6478_v63 = vsel %vm5966_vm12, %v18989_v44, nan  ;;  %v6220_v40 = vsel %vm5708_vm13, %v18990_v27, nan  ;;  %vm5964_vm14 = vcmp.gt.f32.partialorder %v4184_v26, 0.0  ;;  %vm5711_vm15 = vcmp.gt.f32.partialorder %v8283_v43, 0.0  ;;  %v8539_v1 = vpop.f32.mrb[6].mxu1  ;;  %v3163_v48 = vpop.f32.mrb[7].mxu0 }
  0xff   :  { %6990 = vst.msk [vmem:[%s18610_s3 + $0x830] sm:$0xff] %vm2337_vm1, %v6478_v63  ;;  %6732 = vst.msk [vmem:[%s18610_s3 + $0x20] sm:$0xff] %vm2337_vm1, %v6220_v40  ;;  %v18991_v10 = vld [vmem:[#allocation46_spill] sm:$0xff]  ;;  %v18992_v14 = vld [vmem:[#allocation47_spill] sm:$0xff]  ;;  %vm5967_vm0 = vcmp.gt.f32.partialorder %v8539_v1, 0.0  ;;  %vm5709_vm2 = vcmp.gt.f32.partialorder %v3163_v48, 0.0 }
 0x100   :  { %v6476_v41 = vsel %vm5964_vm14, %v18991_v10, nan  ;;  %v6223_v44 = vsel %vm5711_vm15, %v18992_v14, nan  ;;  %v4187_v27 = vpop.f32.mrb[7].mxu1  ;;  %v431_v43 = vld [vmem:[%s18608_s1 + $0xcf8] sm:$0xff]  ;;  %v18993_v63 = vld [vmem:[#allocation48_spill] sm:$0xff]  ;;  %v18994_v14 = vld [vmem:[#allocation5_spill] sm:$0xff] }
 0x101   :  { %6988 = vst.msk [vmem:[%s18610_s3 + $0x820] sm:$0xff] %vm2337_vm1, %v6476_v41  ;;  %6735 = vst.msk [vmem:[%s18610_s3 + $0x38] sm:$0xff] %vm2337_vm1, %v6223_v44  ;;  %v6479_v10 = vsel %vm5967_vm0, %v18993_v63, nan  ;;  %v6221_v26 = vsel %vm5709_vm2, %v18994_v14, nan  ;;  %vm5965_vm3 = vcmp.gt.f32.partialorder %v4187_v27, 0.0  ;;  %v18995_v40 = vld [vmem:[#allocation50_spill] sm:$0xff] }
 0x102   :  { %v18996_v1 = vld [vmem:[#allocation49_spill] sm:$0xff]  ;;  %vm688_vm4 = vcmp.ne.f32.partialorder %v174_v2, 0.0  ;;  %6991 = vst.msk [vmem:[%s18610_s3 + $0x838] sm:$0xff] %vm2337_vm1, %v6479_v10  ;;  %6733 = vst.msk [vmem:[%s18610_s3 + $0x28] sm:$0xff] %vm2337_vm1, %v6221_v26  ;;  %v18998_v41 = vld [vmem:[#allocation6_spill] sm:$0xff]  ;;  %v19001_v2 = vpack.c.bf16 %v11313_v21, %v11310_v3  ;;  %vm689_vm5 = vcmp.ne.f32.partialorder %v175_v13, 0.0 }
 0x103   :  { %v18997_v48 = vpack.c.bf16 %v18995_v40, %v18996_v1  ;;  %v6477_v44 = vsel %vm5965_vm3, %v18998_v41, nan  ;;  %v18999_v27 = vld [vmem:[#allocation51_spill] sm:$0xff]  ;;  %v12605_v10 = vsel %vm688_vm4, 1.0, %v18761_v59  ;;  %v12616_v26 = vsel %vm689_vm5, 1.0, %v18761_v59  ;;  %v8901_v21 = vld [vmem:[%s18608_s1 + $0x1b0] sm:$0xff]  ;;  %v8286_v13 = vpop.f32.mrb[8].mxu0 }
 0x104   :  { %v19000_v63 = vpack.c.bf16 %v11236_v54, %v18999_v27  ;;  %6989 = vst.msk [vmem:[%s18610_s3 + $0x828] sm:$0xff] %vm2337_vm1, %v6477_v44  ;;  %v19002_v14 = vld [vmem:[#allocation59_spill] sm:$0xff]  ;;  %vm945_vm7 = vcmp.ne.f32.partialorder %v431_v43, 0.0  ;;  %v12619_v3 = vsel %vm944_vm6, 1.0, %v18761_v59  ;;  %v12625_v6 = vmul.f32 %v8901_v21, %v10984_v15  ;;  %v8902_v43 = vld [vmem:[%s18608_s1 + $0x9b0] sm:$0xff]  ;;  %v8542_v44 = vpop.f32.mrb[8].mxu1 }
 0x105   :  { %8389 = vmatmul.mubr.msk.bf16.gmra.mrb[112].mxu0 %vm2337_vm1, %v18997_v48  ;;  %v19003_v54 = vpack.c.bf16 %v11328_v62, %v19002_v14  ;;  %19004 = vst [vmem:[#allocation37_spill] sm:$0xff] %v12619_v3  ;;  %v12630_v40 = vsel %vm945_vm7, 1.0, %v18761_v59  ;;  %v12636_v1 = vmul.f32 %v8902_v43, %v10984_v15  ;;  %v8903_v48 = vld [vmem:[%s18608_s1 + $0x1a0] sm:$0xff]  ;;  %vm5714_vm8 = vcmp.gt.f32.partialorder %v8286_v13, 0.0  ;;  %v3176_v27 = vpop.f32.mrb[9].mxu0  ;;  %v177_v43 = vld [vmem:[%s18608_s1 + $0x508] sm:$0xff] }
 0x106   :  { %8645 = vmatmul.mubr.msk.bf16.gmra.mrb[112].mxu1 %vm2337_vm1, %v19000_v63  ;;  %8392 = vmatprep.mubr.msk.bf16.mxu0 %vm2337_vm1, %v19001_v2  ;;  %19005 = vst [vmem:[#allocation42_spill] sm:$0xff] %v12625_v6  ;;  %v12642_v41 = vmul.f32 %v8903_v48, %v10984_v15  ;;  %v8904_v2 = vld [vmem:[%s18608_s1 + $0x9a0] sm:$0xff]  ;;  %v19010_v48 = vld [vmem:[#allocation52_spill] sm:$0xff]  ;;  %vm5970_vm9 = vcmp.gt.f32.partialorder %v8542_v44, 0.0  ;;  %vm5712_vm10 = vcmp.gt.f32.partialorder %v3176_v27, 0.0  ;;  %v8287_v62 = vpop.f32.mrb[10].mxu0 }
 0x107   :  { %8648 = vmatprep.mubr.msk.bf16.mxu1 %vm2337_vm1, %v19003_v54  ;;  %19006 = vst [vmem:[#allocation41_spill] sm:$0xff] %v12636_v1  ;;  %v12650_v14 = vmul.f32 %v8904_v2, %v10984_v15  ;;  %v8905_v54 = vld [vmem:[%s18608_s1 + $0x1b8] sm:$0xff]  ;;  %v176_v13 = vld [vmem:[%s18608_s1 + $0x500] sm:$0xff]  ;;  %v6226_v63 = vsel %vm5714_vm8, %v19010_v48, nan  ;;  %v4200_v2 = vpop.f32.mrb[9].mxu1  ;;  %v19012_v44 = vld [vmem:[#allocation53_spill] sm:$0xff] }
 0x108   :  { %19007 = vst [vmem:[#allocation38_spill] sm:$0xff] %v12642_v41  ;;  %v12656_v21 = vmul.f32 %v8905_v54, %v10984_v15  ;;  %6738 = vst.msk [vmem:[%s18610_s3 + $0x50] sm:$0xff] %vm2337_vm1, %v6226_v63  ;;  %v6482_v27 = vsel %vm5970_vm9, %v19012_v44, nan  ;;  %v19013_v48 = vld [vmem:[#allocation54_spill] sm:$0xff]  ;;  %vm5968_vm11 = vcmp.gt.f32.partialorder %v4200_v2, 0.0  ;;  %vm5715_vm12 = vcmp.gt.f32.partialorder %v8287_v62, 0.0 }
 0x109   :  { %19008 = vst [vmem:[#allocation7_spill] sm:$0xff] %v12650_v14  ;;  %v8906_v14 = vld [vmem:[%s18608_s1 + $0x9b8] sm:$0xff]  ;;  %v6224_v41 = vsel %vm5712_vm10, %v19013_v48, nan  ;;  %v8543_v1 = vpop.f32.mrb[10].mxu1  ;;  %v3179_v6 = vpop.f32.mrb[11].mxu0  ;;  %6994 = vst.msk [vmem:[%s18610_s3 + $0x850] sm:$0xff] %vm2337_vm1, %v6482_v27 }
 0x10a   :  { %19009 = vst [vmem:[#allocation43_spill] sm:$0xff] %v12656_v21  ;;  %v12669_v54 = vmul.f32 %v8906_v14, %v10984_v15  ;;  %v432_v21 = vld [vmem:[%s18608_s1 + $0xd00] sm:$0xff]  ;;  %6736 = vst.msk [vmem:[%s18610_s3 + $0x40] sm:$0xff] %vm2337_vm1, %v6224_v41  ;;  %vm5971_vm13 = vcmp.gt.f32.partialorder %v8543_v1, 0.0  ;;  %vm5713_vm14 = vcmp.gt.f32.partialorder %v3179_v6, 0.0  ;;  %v4203_v2 = vpop.f32.mrb[11].mxu1 }
 0x10b   :  { %v19014_v14 = vld [vmem:[#allocation55_spill] sm:$0xff]  ;;  %v433_v62 = vld [vmem:[%s18608_s1 + $0xd08] sm:$0xff]  ;;  %v19016_v41 = vld [vmem:[#allocation57_spill] sm:$0xff]  ;;  %vm5969_vm15 = vcmp.gt.f32.partialorder %v4203_v2, 0.0  ;;  %vm690_vm0 = vcmp.ne.f32.partialorder %v176_v13, 0.0  ;;  %vm691_vm2 = vcmp.ne.f32.partialorder %v177_v43, 0.0 }
 0x10c   :  { %19011 = vst [vmem:[#allocation44_spill] sm:$0xff] %v12669_v54  ;;  %v6480_v63 = vsel %vm5968_vm11, %v19014_v14, nan  ;;  %v19015_v54 = vld [vmem:[#allocation56_spill] sm:$0xff]  ;;  %v6483_v27 = vsel %vm5971_vm13, %v19016_v41, nan  ;;  %v19018_v6 = vld [vmem:[#allocation61_spill] sm:$0xff]  ;;  %v19022_v2 = vld [vmem:[#allocation58_spill] sm:$0xff] }
 0x10d   :  { %v6227_v44 = vsel %vm5715_vm12, %v19015_v54, nan  ;;  %6992 = vst.msk [vmem:[%s18610_s3 + $0x840] sm:$0xff] %vm2337_vm1, %v6480_v63  ;;  %v19017_v54 = vld [vmem:[#allocation8_spill] sm:$0xff]  ;;  %6995 = vst.msk [vmem:[%s18610_s3 + $0x858] sm:$0xff] %vm2337_vm1, %v6483_v27  ;;  %v6481_v41 = vsel %vm5969_vm15, %v19022_v2, nan  ;;  %v12754_v13 = vsel %vm691_vm2, 1.0, %v18761_v59 }
 0x10e   :  { %6739 = vst.msk [vmem:[%s18610_s3 + $0x58] sm:$0xff] %vm2337_vm1, %v6227_v44  ;;  %v6225_v1 = vsel %vm5713_vm14, %v19017_v54, nan  ;;  %v19019_v48 = vld [vmem:[#allocation60_spill] sm:$0xff]  ;;  %v178_v44 = vld [vmem:[%s18608_s1 + $0x510] sm:$0xff]  ;;  %6993 = vst.msk [vmem:[%s18610_s3 + $0x848] sm:$0xff] %vm2337_vm1, %v6481_v41  ;;  %vm946_vm3 = vcmp.ne.f32.partialorder %v432_v21, 0.0 }
 0x10f   :  { %v19020_v14 = vpack.c.bf16 %v19018_v6, %v19019_v48  ;;  %v8907_v3 = vld [vmem:[%s18608_s1 + $0x1a8] sm:$0xff]  ;;  %6737 = vst.msk [vmem:[%s18610_s3 + $0x48] sm:$0xff] %vm2337_vm1, %v6225_v1  ;;  %v19024_v6 = vld [vmem:[#allocation62_spill] sm:$0xff]  ;;  %v19026_v48 = vpack.c.bf16 %v11425_v60, %v11422_v58  ;;  %v19028_v58 = vpack.c.bf16 %v11444_v30, %v11441_v47  ;;  %v12751_v60 = vsel %vm690_vm0, 1.0, %v18761_v59  ;;  %v8290_v43 = vpop.f32.mrb[12].mxu0  ;;  %v8546_v47 = vpop.f32.mrb[12].mxu1 }
 0x110   :  { %v12711_v63 = vmul.f32 %v8907_v3, %v10984_v15  ;;  %v19023_v54 = vld [vmem:[#allocation64_spill] sm:$0xff]  ;;  %v179_v1 = vld [vmem:[%s18608_s1 + $0x518] sm:$0xff]  ;;  %vm947_vm4 = vcmp.ne.f32.partialorder %v433_v62, 0.0  ;;  %vm692_vm5 = vcmp.ne.f32.partialorder %v178_v44, 0.0  ;;  %vm5718_vm6 = vcmp.gt.f32.partialorder %v8290_v43, 0.0  ;;  %v3192_v30 = vpop.f32.mrb[13].mxu0 }
 0x111   :  { %8393 = vmatmul.mubr.msk.bf16.gmra.mrb[116].mxu0 %vm2337_vm1, %v19020_v14  ;;  %v19025_v3 = vpack.c.bf16 %v19023_v54, %v19024_v6  ;;  %v8908_v27 = vld [vmem:[%s18608_s1 + $0x9a8] sm:$0xff]  ;;  %v12759_v54 = vsel %vm946_vm3, 1.0, %v18761_v59  ;;  %v12762_v41 = vsel %vm947_vm4, 1.0, %v18761_v59  ;;  %vm693_vm7 = vcmp.ne.f32.partialorder %v179_v1, 0.0  ;;  %v434_v62 = vld [vmem:[%s18608_s1 + $0xd10] sm:$0xff]  ;;  %v19031_v2 = vld [vmem:[#allocation66_spill] sm:$0xff] }
 0x112   :  { %19021 = vst [vmem:[#allocation45_spill] sm:$0xff] %v12711_v63  ;;  %8396 = vmatprep.mubr.msk.bf16.mxu0 %vm2337_vm1, %v19026_v48  ;;  %v12737_v14 = vmul.f32 %v8908_v27, %v10984_v15  ;;  %v12767_v21 = vsel %vm692_vm5, 1.0, %v18761_v59  ;;  %v19029_v48 = vld [vmem:[#allocation63_spill] sm:$0xff]  ;;  %vm5974_vm8 = vcmp.gt.f32.partialorder %v8546_v47, 0.0  ;;  %vm5716_vm9 = vcmp.gt.f32.partialorder %v3192_v30, 0.0  ;;  %v4216_v27 = vpop.f32.mrb[13].mxu1 }
 0x113   :  { %8649 = vmatmul.mubr.msk.bf16.gmra.mrb[116].mxu1 %vm2337_vm1, %v19025_v3  ;;  %v435_v3 = vld [vmem:[%s18608_s1 + $0xd18] sm:$0xff]  ;;  %v6230_v44 = vsel %vm5718_vm6, %v19029_v48, nan  ;;  %v12777_v43 = vsel %vm693_vm7, 1.0, %v18761_v59  ;;  %v19030_v1 = vld [vmem:[#allocation65_spill] sm:$0xff]  ;;  %vm5972_vm10 = vcmp.gt.f32.partialorder %v4216_v27, 0.0  ;;  %v8547_v63 = vpop.f32.mrb[14].mxu1 }
 0x114   :  { %19027 = vst [vmem:[#allocation46_spill] sm:$0xff] %v12737_v14  ;;  %8652 = vmatprep.mubr.msk.bf16.mxu1 %vm2337_vm1, %v19028_v58  ;;  %v8291_v58 = vpop.f32.mrb[14].mxu0  ;;  %6742 = vst.msk [vmem:[%s18610_s3 + $0x70] sm:$0xff] %vm2337_vm1, %v6230_v44  ;;  %v6486_v6 = vsel %vm5974_vm8, %v19030_v1, nan  ;;  %v6228_v14 = vsel %vm5716_vm9, %v19031_v2, nan  ;;  %v19032_v47 = vld [vmem:[#allocation67_spill] sm:$0xff] }
 0x115   :  { %vm5719_vm11 = vcmp.gt.f32.partialorder %v8291_v58, 0.0  ;;  %v3195_v48 = vpop.f32.mrb[15].mxu0  ;;  %6998 = vst.msk [vmem:[%s18610_s3 + $0x870] sm:$0xff] %vm2337_vm1, %v6486_v6  ;;  %6740 = vst.msk [vmem:[%s18610_s3 + $0x60] sm:$0xff] %vm2337_vm1, %v6228_v14  ;;  %v6484_v30 = vsel %vm5972_vm10, %v19032_v47, nan  ;;  %v19033_v44 = vld [vmem:[#allocation68_spill] sm:$0xff] }
 0x116   :  { %v6231_v1 = vsel %vm5719_vm11, %v19033_v44, nan  ;;  %vm5975_vm12 = vcmp.gt.f32.partialorder %v8547_v63, 0.0  ;;  %vm5717_vm13 = vcmp.gt.f32.partialorder %v3195_v48, 0.0  ;;  %v4219_v2 = vpop.f32.mrb[15].mxu1  ;;  %6996 = vst.msk [vmem:[%s18610_s3 + $0x860] sm:$0xff] %vm2337_vm1, %v6484_v30  ;;  %v19034_v6 = vld [vmem:[#allocation69_spill] sm:$0xff] }
 0x117   :  { %6743 = vst.msk [vmem:[%s18610_s3 + $0x78] sm:$0xff] %vm2337_vm1, %v6231_v1  ;;  %v6487_v27 = vsel %vm5975_vm12, %v19034_v6, nan  ;;  %v19035_v14 = vld [vmem:[#allocation70_spill] sm:$0xff]  ;;  %vm5973_vm14 = vcmp.gt.f32.partialorder %v4219_v2, 0.0  ;;  %v19038_v30 = vld [vmem:[#allocation71_spill] sm:$0xff]  ;;  %v19040_v2 = vld [vmem:[#allocation9_spill] sm:$0xff]  ;;  %v19042_v6 = vpack.c.bf16 %v11541_v0, %v11538_v18  ;;  %v19044_v0 = vpack.c.bf16 %v11556_v4, %v11553_v51 }
 0x118   :  { %v6229_v58 = vsel %vm5717_vm13, %v19035_v14, nan  ;;  %v19036_v47 = vld [vmem:[#allocation10_spill] sm:$0xff]  ;;  %6999 = vst.msk [vmem:[%s18610_s3 + $0x878] sm:$0xff] %vm2337_vm1, %v6487_v27  ;;  %v6485_v44 = vsel %vm5973_vm14, %v19038_v30, nan  ;;  %v19039_v1 = vld [vmem:[#allocation11_spill] sm:$0xff]  ;;  %vm948_vm15 = vcmp.ne.f32.partialorder %v434_v62, 0.0 }
 0x119   :  { %v19037_v63 = vpack.c.bf16 %v11456_v61, %v19036_v47  ;;  %6741 = vst.msk [vmem:[%s18610_s3 + $0x68] sm:$0xff] %vm2337_vm1, %v6229_v58  ;;  %v19041_v61 = vpack.c.bf16 %v19039_v1, %v19040_v2  ;;  %vm949_vm0 = vcmp.ne.f32.partialorder %v435_v3, 0.0  ;;  %v8909_v27 = vld [vmem:[%s18608_s1 + $0x1d0] sm:$0xff]  ;;  %v180_v58 = vld [vmem:[%s18608_s1 + $0x520] sm:$0xff]  ;;  %6997 = vst.msk [vmem:[%s18610_s3 + $0x868] sm:$0xff] %vm2337_vm1, %v6485_v44  ;;  %v12846_v18 = vsel %vm948_vm15, 1.0, %v18761_v59 }
 0x11a   :  { %v12832_v14 = vmul.f32 %v8909_v27, %v10984_v15  ;;  %v12849_v62 = vsel %vm949_vm0, 1.0, %v18761_v59  ;;  %v8910_v3 = vld [vmem:[%s18608_s1 + $0x9d0] sm:$0xff]  ;;  %v181_v4 = vld [vmem:[%s18608_s1 + $0x528] sm:$0xff]  ;;  %v8294_v30 = vpop.f32.mrb[16].mxu0  ;;  %v8912_v1 = vld [vmem:[%s18608_s1 + $0x9c0] sm:$0xff]  ;;  %vm694_vm3 = vcmp.ne.f32.partialorder %v180_v58, 0.0 }
 0x11b   :  { %8397 = vmatmul.mubr.msk.bf16.gmra.mrb[120].mxu0 %vm2337_vm1, %v19037_v63  ;;  %8653 = vmatmul.mubr.msk.bf16.gmra.mrb[120].mxu1 %vm2337_vm1, %v19041_v61  ;;  %v12855_v47 = vmul.f32 %v8910_v3, %v10984_v15  ;;  %v8911_v63 = vld [vmem:[%s18608_s1 + $0x1c0] sm:$0xff]  ;;  %v12872_v2 = vmul.f32 %v8912_v1, %v10984_v15  ;;  %v8913_v61 = vld [vmem:[%s18608_s1 + $0x1d8] sm:$0xff]  ;;  %vm5722_vm2 = vcmp.gt.f32.partialorder %v8294_v30, 0.0  ;;  %v8550_v3 = vpop.f32.mrb[16].mxu1  ;;  %v8915_v1 = vld [vmem:[%s18608_s1 + $0x1c8] sm:$0xff]  ;;  %vm695_vm6 = vcmp.ne.f32.partialorder %v181_v4, 0.0 }
 0x11c   :  { %8400 = vmatprep.mubr.msk.bf16.mxu0 %vm2337_vm1, %v19042_v6  ;;  %19043 = vst [vmem:[#allocation47_spill] sm:$0xff] %v12832_v14  ;;  %8656 = vmatprep.mubr.msk.bf16.mxu1 %vm2337_vm1, %v19044_v0  ;;  %v12861_v51 = vmul.f32 %v8911_v63, %v10984_v15  ;;  %v12878_v6 = vmul.f32 %v8913_v61, %v10984_v15  ;;  %v8914_v27 = vld [vmem:[%s18608_s1 + $0x9d8] sm:$0xff]  ;;  %v3208_v63 = vpop.f32.mrb[17].mxu0  ;;  %v8916_v61 = vld [vmem:[%s18608_s1 + $0x9c8] sm:$0xff]  ;;  %v436_v30 = vld [vmem:[%s18608_s1 + $0xd20] sm:$0xff]  ;;  %vm5978_vm4 = vcmp.gt.f32.partialorder %v8550_v3, 0.0 }
 0x11d   :  { %19045 = vst [vmem:[#allocation48_spill] sm:$0xff] %v12855_v47  ;;  %19047 = vst [vmem:[#allocation50_spill] sm:$0xff] %v12872_v2  ;;  %v12884_v0 = vmul.f32 %v8914_v27, %v10984_v15  ;;  %v12890_v44 = vmul.f32 %v8915_v1, %v10984_v15  ;;  %v12896_v48 = vmul.f32 %v8916_v61, %v10984_v15  ;;  %v437_v27 = vld [vmem:[%s18608_s1 + $0xd28] sm:$0xff]  ;;  %vm5720_vm5 = vcmp.gt.f32.partialorder %v3208_v63, 0.0  ;;  %v4232_v1 = vpop.f32.mrb[17].mxu1  ;;  %v19053_v61 = vld [vmem:[#allocation14_spill] sm:$0xff] }
 0x11e   :  { %19046 = vst [vmem:[#allocation5_spill] sm:$0xff] %v12861_v51  ;;  %19048 = vst [vmem:[#allocation49_spill] sm:$0xff] %v12878_v6  ;;  %v19054_v2 = vld [vmem:[#allocation13_spill] sm:$0xff]  ;;  %vm5976_vm7 = vcmp.gt.f32.partialorder %v4232_v1, 0.0  ;;  %v8551_v47 = vpop.f32.mrb[18].mxu1  ;;  %v19058_v1 = vld [vmem:[#allocation75_spill] sm:$0xff] }
 0x11f   :  { %19049 = vst [vmem:[#allocation6_spill] sm:$0xff] %v12884_v0  ;;  %19050 = vst [vmem:[#allocation51_spill] sm:$0xff] %v12890_v44  ;;  %v19052_v0 = vld [vmem:[#allocation12_spill] sm:$0xff]  ;;  %v8295_v44 = vpop.f32.mrb[18].mxu0  ;;  %v6232_v51 = vsel %vm5720_vm5, %v19054_v2, nan  ;;  %v19056_v3 = vld [vmem:[#allocation73_spill] sm:$0xff] }
 0x120   :  { %19051 = vst [vmem:[#allocation59_spill] sm:$0xff] %v12896_v48  ;;  %v6234_v6 = vsel %vm5722_vm2, %v19052_v0, nan  ;;  %v6490_v48 = vsel %vm5978_vm4, %v19053_v61, nan  ;;  %vm5723_vm8 = vcmp.gt.f32.partialorder %v8295_v44, 0.0  ;;  %v3211_v14 = vpop.f32.mrb[19].mxu0  ;;  %6744 = vst.msk [vmem:[%s18610_s3 + $0x80] sm:$0xff] %vm2337_vm1, %v6232_v51 }
 0x121   :  { %6746 = vst.msk [vmem:[%s18610_s3 + $0x90] sm:$0xff] %vm2337_vm1, %v6234_v6  ;;  %7002 = vst.msk [vmem:[%s18610_s3 + $0x890] sm:$0xff] %vm2337_vm1, %v6490_v48  ;;  %v19055_v0 = vld [vmem:[#allocation72_spill] sm:$0xff]  ;;  %v6235_v63 = vsel %vm5723_vm8, %v19056_v3, nan  ;;  %vm5979_vm9 = vcmp.gt.f32.partialorder %v8551_v47, 0.0  ;;  %vm5721_vm10 = vcmp.gt.f32.partialorder %v3211_v14, 0.0 }
 0x122   :  { %v6488_v6 = vsel %vm5976_vm7, %v19055_v0, nan  ;;  %v4235_v2 = vpop.f32.mrb[19].mxu1  ;;  %v182_v44 = vld [vmem:[%s18608_s1 + $0x530] sm:$0xff]  ;;  %6747 = vst.msk [vmem:[%s18610_s3 + $0x98] sm:$0xff] %vm2337_vm1, %v6235_v63  ;;  %v19057_v48 = vld [vmem:[#allocation74_spill] sm:$0xff]  ;;  %v6233_v47 = vsel %vm5721_vm10, %v19058_v1, nan }
 0x123   :  { %7000 = vst.msk [vmem:[%s18610_s3 + $0x880] sm:$0xff] %vm2337_vm1, %v6488_v6  ;;  %v6491_v51 = vsel %vm5979_vm9, %v19057_v48, nan  ;;  %vm5977_vm11 = vcmp.gt.f32.partialorder %v4235_v2, 0.0  ;;  %v19059_v14 = vld [vmem:[#allocation77_spill] sm:$0xff]  ;;  %v12940_v0 = vsel %vm694_vm3, 1.0, %v18761_v59  ;;  %v183_v6 = vld [vmem:[%s18608_s1 + $0x538] sm:$0xff] }
 0x124   :  { %v19060_v61 = vpack.c.bf16 %v11576_v19, %v19059_v14  ;;  %v438_v3 = vld [vmem:[%s18608_s1 + $0xd30] sm:$0xff]  ;;  %7003 = vst.msk [vmem:[%s18610_s3 + $0x898] sm:$0xff] %vm2337_vm1, %v6491_v51  ;;  %6745 = vst.msk [vmem:[%s18610_s3 + $0x88] sm:$0xff] %vm2337_vm1, %v6233_v47  ;;  %v19061_v19 = vld [vmem:[#allocation76_spill] sm:$0xff]  ;;  %v12967_v51 = vsel %vm695_vm6, 1.0, %v18761_v59  ;;  %vm950_vm12 = vcmp.ne.f32.partialorder %v436_v30, 0.0 }
 0x125   :  { %v6489_v58 = vsel %vm5977_vm11, %v19061_v19, nan  ;;  %v19062_v63 = vld [vmem:[#allocation78_spill] sm:$0xff]  ;;  %v19063_v2 = vld [vmem:[#allocation16_spill] sm:$0xff]  ;;  %vm951_vm13 = vcmp.ne.f32.partialorder %v437_v27, 0.0  ;;  %v12983_v30 = vsel %vm950_vm12, 1.0, %v18761_v59  ;;  %vm696_vm14 = vcmp.ne.f32.partialorder %v182_v44, 0.0 }
 0x126   :  { %8401 = vmatmul.mubr.msk.bf16.gmra.mrb[124].mxu0 %vm2337_vm1, %v19060_v61  ;;  %v19064_v48 = vpack.c.bf16 %v19062_v63, %v19063_v2  ;;  %v19065_v1 = vld [vmem:[#allocation86_spill] sm:$0xff]  ;;  %7001 = vst.msk [vmem:[%s18610_s3 + $0x888] sm:$0xff] %vm2337_vm1, %v6489_v58  ;;  %v12986_v27 = vsel %vm951_vm13, 1.0, %v18761_v59  ;;  %v8298_v61 = vpop.f32.mrb[20].mxu0  ;;  %vm697_vm15 = vcmp.ne.f32.partialorder %v183_v6, 0.0  ;;  %v12991_v58 = vsel %vm696_vm14, 1.0, %v18761_v59 }
 0x127   :  { %v19066_v14 = vpack.c.bf16 %v11661_v34, %v19065_v1  ;;  %v439_v47 = vld [vmem:[%s18608_s1 + $0xd38] sm:$0xff]  ;;  %v19067_v34 = vpack.c.bf16 %v11672_v25, %v11669_v9  ;;  %vm952_vm0 = vcmp.ne.f32.partialorder %v438_v3, 0.0  ;;  %vm5726_vm2 = vcmp.gt.f32.partialorder %v8298_v61, 0.0  ;;  %v8554_v25 = vpop.f32.mrb[20].mxu1  ;;  %v3224_v9 = vpop.f32.mrb[21].mxu0  ;;  %v19069_v44 = vld [vmem:[#allocation15_spill] sm:$0xff] }
 0x128   :  { %8657 = vmatmul.mubr.msk.bf16.gmra.mrb[124].mxu1 %vm2337_vm1, %v19064_v48  ;;  %v12994_v63 = vsel %vm697_vm15, 1.0, %v18761_v59  ;;  %vm953_vm3 = vcmp.ne.f32.partialorder %v439_v47, 0.0  ;;  %v12997_v2 = vsel %vm952_vm0, 1.0, %v18761_v59  ;;  %v6238_v48 = vsel %vm5726_vm2, %v19069_v44, nan  ;;  %v4248_v1 = vpop.f32.mrb[21].mxu1  ;;  %v8299_v6 = vpop.f32.mrb[22].mxu0 }
 0x129   :  { %8404 = vmatprep.mubr.msk.bf16.mxu0 %vm2337_vm1, %v19066_v14  ;;  %8660 = vmatprep.mubr.msk.bf16.mxu1 %vm2337_vm1, %v19067_v34  ;;  %19068 = vst [vmem:[#allocation52_spill] sm:$0xff] %v12997_v2  ;;  %vm5982_vm4 = vcmp.gt.f32.partialorder %v8554_v25, 0.0  ;;  %vm5724_vm5 = vcmp.gt.f32.partialorder %v3224_v9, 0.0  ;;  %6750 = vst.msk [vmem:[%s18610_s3 + $0xb0] sm:$0xff] %vm2337_vm1, %v6238_v48  ;;  %v19070_v3 = vld [vmem:[#allocation79_spill] sm:$0xff]  ;;  %v19071_v61 = vld [vmem:[#allocation80_spill] sm:$0xff] }
 0x12a   :  { %v6494_v34 = vsel %vm5982_vm4, %v19070_v3, nan  ;;  %v6236_v19 = vsel %vm5724_vm5, %v19071_v61, nan  ;;  %vm5980_vm6 = vcmp.gt.f32.partialorder %v4248_v1, 0.0  ;;  %vm5727_vm7 = vcmp.gt.f32.partialorder %v8299_v6, 0.0  ;;  %v8555_v4 = vpop.f32.mrb[22].mxu1  ;;  %v3227_v44 = vpop.f32.mrb[23].mxu0 }
 0x12b   :  { %7006 = vst.msk [vmem:[%s18610_s3 + $0x8b0] sm:$0xff] %vm2337_vm1, %v6494_v34  ;;  %6748 = vst.msk [vmem:[%s18610_s3 + $0xa0] sm:$0xff] %vm2337_vm1, %v6236_v19  ;;  %v19072_v25 = vld [vmem:[#allocation81_spill] sm:$0xff]  ;;  %v19073_v48 = vld [vmem:[#allocation82_spill] sm:$0xff]  ;;  %vm5983_vm8 = vcmp.gt.f32.partialorder %v8555_v4, 0.0  ;;  %vm5725_vm9 = vcmp.gt.f32.partialorder %v3227_v44, 0.0  ;;  %v19076_v4 = vpack.c.bf16 %v11692_v37, %v11681_v50 }
 0x12c   :  { %v6492_v9 = vsel %vm5980_vm6, %v19072_v25, nan  ;;  %v6239_v3 = vsel %vm5727_vm7, %v19073_v48, nan  ;;  %v4251_v1 = vpop.f32.mrb[23].mxu1  ;;  %v19074_v6 = vld [vmem:[#allocation83_spill] sm:$0xff]  ;;  %v19075_v19 = vld [vmem:[#allocation84_spill] sm:$0xff]  ;;  %v13034_v44 = vsel %vm953_vm3, 1.0, %v18761_v59 }
 0x12d   :  { %7004 = vst.msk [vmem:[%s18610_s3 + $0x8a0] sm:$0xff] %vm2337_vm1, %v6492_v9  ;;  %6751 = vst.msk [vmem:[%s18610_s3 + $0xb8] sm:$0xff] %vm2337_vm1, %v6239_v3  ;;  %v6495_v34 = vsel %vm5983_vm8, %v19074_v6, nan  ;;  %v6237_v61 = vsel %vm5725_vm9, %v19075_v19, nan  ;;  %vm5981_vm10 = vcmp.gt.f32.partialorder %v4251_v1, 0.0  ;;  %v184_v25 = vld [vmem:[%s18608_s1 + $0x540] sm:$0xff] }
 0x12e   :  { %8405 = vmatmul.mubr.msk.bf16.gmra.mrb[128].mxu0 %vm2337_vm1, %v19076_v4  ;;  %v185_v9 = vld [vmem:[%s18608_s1 + $0x548] sm:$0xff]  ;;  %7007 = vst.msk [vmem:[%s18610_s3 + $0x8b8] sm:$0xff] %vm2337_vm1, %v6495_v34  ;;  %6749 = vst.msk [vmem:[%s18610_s3 + $0xa8] sm:$0xff] %vm2337_vm1, %v6237_v61  ;;  %v19077_v50 = vld [vmem:[#allocation85_spill] sm:$0xff]  ;;  %vm698_vm11 = vcmp.ne.f32.partialorder %v184_v25, 0.0 }
 0x12f   :  { %v6493_v37 = vsel %vm5981_vm10, %v19077_v50, nan  ;;  %v19078_v47 = vld [vmem:[#allocation17_spill] sm:$0xff]  ;;  %v19080_v3 = vld [vmem:[#allocation95_spill] sm:$0xff]  ;;  %v19081_v1 = vld [vmem:[#allocation94_spill] sm:$0xff]  ;;  %vm699_vm12 = vcmp.ne.f32.partialorder %v185_v9, 0.0 }
 0x130   :  { %v19079_v48 = vpack.c.bf16 %v11716_v29, %v19078_v47  ;;  %v19082_v6 = vpack.c.bf16 %v19080_v3, %v19081_v1  ;;  %v8917_v19 = vld [vmem:[%s18608_s1 + $0x1f0] sm:$0xff]  ;;  %v440_v50 = vld [vmem:[%s18608_s1 + $0xd40] sm:$0xff]  ;;  %7005 = vst.msk [vmem:[%s18610_s3 + $0x8a8] sm:$0xff] %vm2337_vm1, %v6493_v37  ;;  %v8921_v37 = vld [vmem:[%s18608_s1 + $0x1f8] sm:$0xff] }
 0x131   :  { %v13065_v61 = vmul.f32 %v8917_v19, %v10984_v15  ;;  %v8918_v29 = vld [vmem:[%s18608_s1 + $0x9f0] sm:$0xff]  ;;  %v8919_v1 = vld [vmem:[%s18608_s1 + $0x1e0] sm:$0xff]  ;;  %vm954_vm14 = vcmp.ne.f32.partialorder %v440_v50, 0.0  ;;  %v19095_v25 = vld [vmem:[#allocation18_spill] sm:$0xff] }
 0x132   :  { %8661 = vmatmul.mubr.msk.bf16.gmra.mrb[128].mxu1 %vm2337_vm1, %v19079_v48  ;;  %8408 = vmatprep.mubr.msk.bf16.mxu0 %vm2337_vm1, %v19082_v6  ;;  %v13071_v4 = vmul.f32 %v8918_v29, %v10984_v15  ;;  %v19085_v47 = vld [vmem:[#allocation97_spill] sm:$0xff]  ;;  %v19086_v48 = vld [vmem:[#allocation96_spill] sm:$0xff]  ;;  %v13088_v6 = vmul.f32 %v8919_v1, %v10984_v15  ;;  %v8920_v19 = vld [vmem:[%s18608_s1 + $0x9e0] sm:$0xff]  ;;  %v8302_v1 = vpop.f32.mrb[24].mxu0 }
 0x133   :  { %19083 = vst [vmem:[#allocation53_spill] sm:$0xff] %v13065_v61  ;;  %v19087_v3 = vpack.c.bf16 %v19085_v47, %v19086_v48  ;;  %v13094_v29 = vmul.f32 %v8920_v19, %v10984_v15  ;;  %v13100_v47 = vmul.f32 %v8921_v37, %v10984_v15  ;;  %v8922_v48 = vld [vmem:[%s18608_s1 + $0x9f8] sm:$0xff]  ;;  %v8923_v19 = vld [vmem:[%s18608_s1 + $0x1e8] sm:$0xff]  ;;  %vm5730_vm13 = vcmp.gt.f32.partialorder %v8302_v1, 0.0  ;;  %v19098_v1 = vld [vmem:[#allocation89_spill] sm:$0xff] }
 0x134   :  { %19084 = vst [vmem:[#allocation54_spill] sm:$0xff] %v13071_v4  ;;  %19088 = vst [vmem:[#allocation55_spill] sm:$0xff] %v13088_v6  ;;  %v13112_v34 = vmul.f32 %v8923_v19, %v10984_v15  ;;  %v8924_v37 = vld [vmem:[%s18608_s1 + $0x9e8] sm:$0xff]  ;;  %v13127_v19 = vsel %vm699_vm12, 1.0, %v18761_v59  ;;  %v6242_v9 = vsel %vm5730_vm13, %v19095_v25, nan  ;;  %v187_v6 = vld [vmem:[%s18608_s1 + $0x558] sm:$0xff] }
 0x135   :  { %8664 = vmatprep.mubr.msk.bf16.mxu1 %vm2337_vm1, %v19087_v3  ;;  %19089 = vst [vmem:[#allocation56_spill] sm:$0xff] %v13094_v29  ;;  %19090 = vst [vmem:[#allocation57_spill] sm:$0xff] %v13100_v47  ;;  %v13106_v3 = vmul.f32 %v8922_v48, %v10984_v15  ;;  %v13118_v14 = vmul.f32 %v8924_v37, %v10984_v15  ;;  %v441_v48 = vld [vmem:[%s18608_s1 + $0xd48] sm:$0xff]  ;;  %v3240_v47 = vpop.f32.mrb[25].mxu0  ;;  %v13124_v29 = vsel %vm698_vm11, 1.0, %v18761_v59  ;;  %v186_v37 = vld [vmem:[%s18608_s1 + $0x550] sm:$0xff] }
 0x136   :  { %19092 = vst [vmem:[#allocation61_spill] sm:$0xff] %v13112_v34  ;;  %19094 = vst [vmem:[#allocation58_spill] sm:$0xff] %v13124_v29  ;;  %vm5728_vm0 = vcmp.gt.f32.partialorder %v3240_v47, 0.0  ;;  %v8303_v34 = vpop.f32.mrb[26].mxu0  ;;  %v19096_v4 = vld [vmem:[#allocation87_spill] sm:$0xff]  ;;  %v19097_v2 = vld [vmem:[#allocation88_spill] sm:$0xff] }
 0x137   :  { %19091 = vst [vmem:[#allocation8_spill] sm:$0xff] %v13106_v3  ;;  %19093 = vst [vmem:[#allocation60_spill] sm:$0xff] %v13118_v14  ;;  %v8558_v3 = vpop.f32.mrb[24].mxu1  ;;  %v6240_v25 = vsel %vm5728_vm0, %v19097_v2, nan  ;;  %vm5731_vm3 = vcmp.gt.f32.partialorder %v8303_v34, 0.0  ;;  %v19099_v29 = vld [vmem:[#allocation90_spill] sm:$0xff] }
 0x138   :  { %vm5986_vm15 = vcmp.gt.f32.partialorder %v8558_v3, 0.0  ;;  %v4264_v14 = vpop.f32.mrb[25].mxu1  ;;  %6754 = vst.msk [vmem:[%s18610_s3 + $0xd0] sm:$0xff] %vm2337_vm1, %v6242_v9  ;;  %v3243_v3 = vpop.f32.mrb[27].mxu0  ;;  %6752 = vst.msk [vmem:[%s18610_s3 + $0xc0] sm:$0xff] %vm2337_vm1, %v6240_v25  ;;  %v19100_v34 = vld [vmem:[#allocation91_spill] sm:$0xff]  ;;  %v19102_v25 = vpack.c.bf16 %v11804_v23, %v11797_v56  ;;  %v19104_v23 = vpack.c.bf16 %v11832_v36, %v11807_v12 }
 0x139   :  { %v6498_v61 = vsel %vm5986_vm15, %v19096_v4, nan  ;;  %vm5984_vm2 = vcmp.gt.f32.partialorder %v4264_v14, 0.0  ;;  %v8559_v47 = vpop.f32.mrb[26].mxu1  ;;  %v6243_v4 = vsel %vm5731_vm3, %v19099_v29, nan  ;;  %vm5729_vm5 = vcmp.gt.f32.partialorder %v3243_v3, 0.0  ;;  %v442_v14 = vld [vmem:[%s18608_s1 + $0xd50] sm:$0xff] }
 0x13a   :  { %7010 = vst.msk [vmem:[%s18610_s3 + $0x8d0] sm:$0xff] %vm2337_vm1, %v6498_v61  ;;  %v6496_v9 = vsel %vm5984_vm2, %v19098_v1, nan  ;;  %vm5987_vm4 = vcmp.gt.f32.partialorder %v8559_v47, 0.0  ;;  %v4267_v2 = vpop.f32.mrb[27].mxu1  ;;  %6755 = vst.msk [vmem:[%s18610_s3 + $0xd8] sm:$0xff] %vm2337_vm1, %v6243_v4  ;;  %v19101_v29 = vld [vmem:[#allocation92_spill] sm:$0xff]  ;;  %8409 = vmatmul.mubr.msk.bf16.gmra.mrb[132].mxu0 %vm2337_vm1, %v19102_v25  ;;  %8665 = vmatmul.mubr.msk.bf16.gmra.mrb[132].mxu1 %vm2337_vm1, %v19104_v23 }
 0x13b   :  { %7008 = vst.msk [vmem:[%s18610_s3 + $0x8c0] sm:$0xff] %vm2337_vm1, %v6496_v9  ;;  %v6499_v61 = vsel %vm5987_vm4, %v19100_v34, nan  ;;  %v6241_v1 = vsel %vm5729_vm5, %v19101_v29, nan  ;;  %vm5985_vm6 = vcmp.gt.f32.partialorder %v4267_v2, 0.0  ;;  %vm955_vm7 = vcmp.ne.f32.partialorder %v441_v48, 0.0  ;;  %v443_v47 = vld [vmem:[%s18608_s1 + $0xd58] sm:$0xff] }
 0x13c   :  { %7011 = vst.msk [vmem:[%s18610_s3 + $0x8d8] sm:$0xff] %vm2337_vm1, %v6499_v61  ;;  %6753 = vst.msk [vmem:[%s18610_s3 + $0xc8] sm:$0xff] %vm2337_vm1, %v6241_v1  ;;  %v19103_v3 = vld [vmem:[#allocation93_spill] sm:$0xff]  ;;  %v13193_v4 = vsel %vm954_vm14, 1.0, %v18761_v59  ;;  %v13196_v2 = vsel %vm955_vm7, 1.0, %v18761_v59  ;;  %vm700_vm8 = vcmp.ne.f32.partialorder %v186_v37, 0.0 }
 0x13d   :  { %v6497_v9 = vsel %vm5985_vm6, %v19103_v3, nan  ;;  %v19105_v56 = vld [vmem:[#allocation101_spill] sm:$0xff]  ;;  %v19107_v12 = vld [vmem:[#allocation103_spill] sm:$0xff]  ;;  %v19108_v36 = vld [vmem:[#allocation102_spill] sm:$0xff]  ;;  %vm701_vm9 = vcmp.ne.f32.partialorder %v187_v6, 0.0  ;;  %v13209_v50 = vsel %vm700_vm8, 1.0, %v18761_v59 }
 0x13e   :  { %v19106_v48 = vpack.c.bf16 %v11901_v16, %v19105_v56  ;;  %7009 = vst.msk [vmem:[%s18610_s3 + $0x8c8] sm:$0xff] %vm2337_vm1, %v6497_v9  ;;  %v19109_v34 = vpack.c.bf16 %v19107_v12, %v19108_v36  ;;  %vm956_vm10 = vcmp.ne.f32.partialorder %v442_v14, 0.0  ;;  %v8306_v61 = vpop.f32.mrb[28].mxu0  ;;  %v13212_v37 = vsel %vm701_vm9, 1.0, %v18761_v59  ;;  %v8925_v1 = vld [vmem:[%s18608_s1 + $0x210] sm:$0xff]  ;;  %v8562_v6 = vpop.f32.mrb[28].mxu1 }
 0x13f   :  { %vm957_vm11 = vcmp.ne.f32.partialorder %v443_v47, 0.0  ;;  %v13215_v29 = vsel %vm956_vm10, 1.0, %v18761_v59  ;;  %v13221_v25 = vmul.f32 %v8925_v1, %v10984_v15  ;;  %vm5734_vm12 = vcmp.gt.f32.partialorder %v8306_v61, 0.0  ;;  %v3256_v3 = vpop.f32.mrb[29].mxu0  ;;  %v8926_v47 = vld [vmem:[%s18608_s1 + $0xa10] sm:$0xff]  ;;  %v19112_v56 = vld [vmem:[#allocation19_spill] sm:$0xff] }
 0x140   :  { %8412 = vmatprep.mubr.msk.bf16.mxu0 %vm2337_vm1, %v19106_v48  ;;  %8668 = vmatprep.mubr.msk.bf16.mxu1 %vm2337_vm1, %v19109_v34  ;;  %v13226_v9 = vsel %vm957_vm11, 1.0, %v18761_v59  ;;  %v13232_v23 = vmul.f32 %v8926_v47, %v10984_v15  ;;  %v6246_v48 = vsel %vm5734_vm12, %v19112_v56, nan  ;;  %vm5990_vm13 = vcmp.gt.f32.partialorder %v8562_v6, 0.0  ;;  %v4280_v12 = vpop.f32.mrb[29].mxu1  ;;  %v8307_v36 = vpop.f32.mrb[30].mxu0  ;;  %v188_v61 = vld [vmem:[%s18608_s1 + $0x560] sm:$0xff] }
 0x141   :  { %19110 = vst [vmem:[#allocation64_spill] sm:$0xff] %v13221_v25  ;;  %vm5732_vm14 = vcmp.gt.f32.partialorder %v3256_v3, 0.0  ;;  %6758 = vst.msk [vmem:[%s18610_s3 + $0xf0] sm:$0xff] %vm2337_vm1, %v6246_v48  ;;  %v19113_v1 = vld [vmem:[#allocation21_spill] sm:$0xff]  ;;  %v19114_v14 = vld [vmem:[#allocation20_spill] sm:$0xff]  ;;  %vm5988_vm15 = vcmp.gt.f32.partialorder %v4280_v12, 0.0 }
 0x142   :  { %19111 = vst [vmem:[#allocation62_spill] sm:$0xff] %v13232_v23  ;;  %v6502_v47 = vsel %vm5990_vm13, %v19113_v1, nan  ;;  %v6244_v56 = vsel %vm5732_vm14, %v19114_v14, nan  ;;  %vm5735_vm0 = vcmp.gt.f32.partialorder %v8307_v36, 0.0  ;;  %v8563_v6 = vpop.f32.mrb[30].mxu1  ;;  %v3259_v3 = vpop.f32.mrb[31].mxu0 }
 0x143   :  { %7014 = vst.msk [vmem:[%s18610_s3 + $0x8f0] sm:$0xff] %vm2337_vm1, %v6502_v47  ;;  %6756 = vst.msk [vmem:[%s18610_s3 + $0xe0] sm:$0xff] %vm2337_vm1, %v6244_v56  ;;  %v19115_v34 = vld [vmem:[#allocation22_spill] sm:$0xff]  ;;  %v19116_v16 = vld [vmem:[#allocation23_spill] sm:$0xff]  ;;  %vm5991_vm2 = vcmp.gt.f32.partialorder %v8563_v6, 0.0  ;;  %vm5733_vm3 = vcmp.gt.f32.partialorder %v3259_v3, 0.0  ;;  %v19119_v56 = vpack.c.bf16 %v11923_v8, %v11917_v46 }
 0x144   :  { %v6500_v48 = vsel %vm5988_vm15, %v19115_v34, nan  ;;  %v6247_v1 = vsel %vm5735_vm0, %v19116_v16, nan  ;;  %v4283_v14 = vpop.f32.mrb[31].mxu1  ;;  %v189_v12 = vld [vmem:[%s18608_s1 + $0x568] sm:$0xff]  ;;  %v19117_v36 = vld [vmem:[#allocation98_spill] sm:$0xff]  ;;  %v19118_v16 = vld [vmem:[#allocation99_spill] sm:$0xff] }
 0x145   :  { %7012 = vst.msk [vmem:[%s18610_s3 + $0x8e0] sm:$0xff] %vm2337_vm1, %v6500_v48  ;;  %6759 = vst.msk [vmem:[%s18610_s3 + $0xf8] sm:$0xff] %vm2337_vm1, %v6247_v1  ;;  %v6503_v34 = vsel %vm5991_vm2, %v19117_v36, nan  ;;  %v6245_v47 = vsel %vm5733_vm3, %v19118_v16, nan  ;;  %vm5989_vm4 = vcmp.gt.f32.partialorder %v4283_v14, 0.0  ;;  %8413 = vmatmul.mubr.msk.bf16.gmra.mrb[136].mxu0 %vm2337_vm1, %v19119_v56  ;;  %v8927_v6 = vld [vmem:[%s18608_s1 + $0x200] sm:$0xff]  ;;  %v19122_v14 = vpack.c.bf16 %v11944_v53, %v11926_v22 }
 0x146   :  { %v13277_v3 = vmul.f32 %v8927_v6, %v10984_v15  ;;  %v444_v48 = vld [vmem:[%s18608_s1 + $0xd60] sm:$0xff]  ;;  %v445_v1 = vld [vmem:[%s18608_s1 + $0xd68] sm:$0xff]  ;;  %7015 = vst.msk [vmem:[%s18610_s3 + $0x8f8] sm:$0xff] %vm2337_vm1, %v6503_v34  ;;  %6757 = vst.msk [vmem:[%s18610_s3 + $0xe8] sm:$0xff] %vm2337_vm1, %v6245_v47  ;;  %vm702_vm5 = vcmp.ne.f32.partialorder %v188_v61, 0.0  ;;  %vm703_vm6 = vcmp.ne.f32.partialorder %v189_v12, 0.0 }
 0x147   :  { %v19121_v8 = vld [vmem:[#allocation100_spill] sm:$0xff]  ;;  %8669 = vmatmul.mubr.msk.bf16.gmra.mrb[136].mxu1 %vm2337_vm1, %v19122_v14  ;;  %v19124_v16 = vld [vmem:[#allocation111_spill] sm:$0xff]  ;;  %v8929_v47 = vld [vmem:[%s18608_s1 + $0x218] sm:$0xff]  ;;  %vm958_vm7 = vcmp.ne.f32.partialorder %v444_v48, 0.0  ;;  %vm959_vm8 = vcmp.ne.f32.partialorder %v445_v1, 0.0 }
 0x148   :  { %19120 = vst [vmem:[#allocation63_spill] sm:$0xff] %v13277_v3  ;;  %v6501_v46 = vsel %vm5989_vm4, %v19121_v8, nan  ;;  %v19123_v36 = vld [vmem:[#allocation112_spill] sm:$0xff]  ;;  %v8928_v34 = vld [vmem:[%s18608_s1 + $0xa00] sm:$0xff]  ;;  %v13312_v22 = vmul.f32 %v8929_v47, %v10984_v15  ;;  %v8930_v53 = vld [vmem:[%s18608_s1 + $0xa18] sm:$0xff]  ;;  %v13352_v12 = vsel %vm958_vm7, 1.0, %v18761_v59 }
 0x149   :  { %v19125_v56 = vpack.c.bf16 %v19123_v36, %v19124_v16  ;;  %v13306_v6 = vmul.f32 %v8928_v34, %v10984_v15  ;;  %v13318_v8 = vmul.f32 %v8930_v53, %v10984_v15  ;;  %7013 = vst.msk [vmem:[%s18610_s3 + $0x8e8] sm:$0xff] %vm2337_vm1, %v6501_v46  ;;  %v19129_v14 = vld [vmem:[#allocation114_spill] sm:$0xff]  ;;  %v19130_v36 = vld [vmem:[#allocation113_spill] sm:$0xff]  ;;  %v8932_v47 = vld [vmem:[%s18608_s1 + $0xa08] sm:$0xff]  ;;  %v8310_v46 = vpop.f32.mrb[32].mxu0 }
 0x14a   :  { %19127 = vst [vmem:[#allocation66_spill] sm:$0xff] %v13312_v22  ;;  %v19131_v16 = vpack.c.bf16 %v19129_v14, %v19130_v36  ;;  %v13338_v53 = vmul.f32 %v8932_v47, %v10984_v15  ;;  %v13341_v14 = vsel %vm702_vm5, 1.0, %v18761_v59  ;;  %v13344_v36 = vsel %vm703_vm6, 1.0, %v18761_v59  ;;  %v191_v48 = vld [vmem:[%s18608_s1 + $0x578] sm:$0xff]  ;;  %v19134_v1 = vld [vmem:[#allocation104_spill] sm:$0xff]  ;;  %v446_v61 = vld [vmem:[%s18608_s1 + $0xd70] sm:$0xff] }
 0x14b   :  { %8416 = vmatprep.mubr.msk.bf16.mxu0 %vm2337_vm1, %v19125_v56  ;;  %19126 = vst [vmem:[#allocation65_spill] sm:$0xff] %v13306_v6  ;;  %19128 = vst [vmem:[#allocation67_spill] sm:$0xff] %v13318_v8  ;;  %v8931_v56 = vld [vmem:[%s18608_s1 + $0x208] sm:$0xff]  ;;  %vm5738_vm9 = vcmp.gt.f32.partialorder %v8310_v46, 0.0  ;;  %v13355_v47 = vsel %vm959_vm8, 1.0, %v18761_v59  ;;  %v19135_v6 = vld [vmem:[#allocation105_spill] sm:$0xff] }
 0x14c   :  { %8672 = vmatprep.mubr.msk.bf16.mxu1 %vm2337_vm1, %v19131_v16  ;;  %v13332_v34 = vmul.f32 %v8931_v56, %v10984_v15  ;;  %19133 = vst [vmem:[#allocation69_spill] sm:$0xff] %v13338_v53  ;;  %v190_v16 = vld [vmem:[%s18608_s1 + $0x570] sm:$0xff]  ;;  %v8566_v56 = vpop.f32.mrb[32].mxu1  ;;  %v6250_v53 = vsel %vm5738_vm9, %v19134_v1, nan  ;;  %v19136_v23 = vld [vmem:[#allocation106_spill] sm:$0xff]  ;;  %v19137_v22 = vld [vmem:[#allocation107_spill] sm:$0xff] }
 0x14d   :  { %vm5994_vm10 = vcmp.gt.f32.partialorder %v8566_v56, 0.0  ;;  %v4296_v46 = vpop.f32.mrb[33].mxu1  ;;  %6762 = vst.msk [vmem:[%s18610_s3 + $0x110] sm:$0xff] %vm2337_vm1, %v6250_v53  ;;  %v19138_v25 = vld [vmem:[#allocation108_spill] sm:$0xff]  ;;  %vm704_vm2 = vcmp.ne.f32.partialorder %v190_v16, 0.0  ;;  %v19146_v16 = vpack.c.bf16 %v12141_v32, %v12138_v39  ;;  %vm705_vm3 = vcmp.ne.f32.partialorder %v191_v48, 0.0 }
 0x14e   :  { %19132 = vst [vmem:[#allocation68_spill] sm:$0xff] %v13332_v34  ;;  %v3272_v34 = vpop.f32.mrb[33].mxu0  ;;  %v6506_v3 = vsel %vm5994_vm10, %v19135_v6, nan  ;;  %vm5992_vm12 = vcmp.gt.f32.partialorder %v4296_v46, 0.0  ;;  %vm960_vm4 = vcmp.ne.f32.partialorder %v446_v61, 0.0  ;;  %v8933_v32 = vld [vmem:[%s18608_s1 + $0x230] sm:$0xff] }
 0x14f   :  { %vm5736_vm11 = vcmp.gt.f32.partialorder %v3272_v34, 0.0  ;;  %v8311_v8 = vpop.f32.mrb[34].mxu0  ;;  %v8567_v34 = vpop.f32.mrb[34].mxu1  ;;  %7018 = vst.msk [vmem:[%s18610_s3 + $0x910] sm:$0xff] %vm2337_vm1, %v6506_v3  ;;  %v6504_v53 = vsel %vm5992_vm12, %v19137_v22, nan  ;;  %v19139_v3 = vld [vmem:[#allocation24_spill] sm:$0xff]  ;;  %v13437_v61 = vmul.f32 %v8933_v32, %v10984_v15 }
 0x150   :  { %v6248_v1 = vsel %vm5736_vm11, %v19136_v23, nan  ;;  %vm5739_vm13 = vcmp.gt.f32.partialorder %v8311_v8, 0.0  ;;  %v3275_v56 = vpop.f32.mrb[35].mxu0  ;;  %vm5995_vm14 = vcmp.gt.f32.partialorder %v8567_v34, 0.0  ;;  %v4299_v23 = vpop.f32.mrb[35].mxu1  ;;  %v447_v8 = vld [vmem:[%s18608_s1 + $0xd78] sm:$0xff] }
 0x151   :  { %6760 = vst.msk [vmem:[%s18610_s3 + $0x100] sm:$0xff] %vm2337_vm1, %v6248_v1  ;;  %v6251_v6 = vsel %vm5739_vm13, %v19138_v25, nan  ;;  %vm5737_vm15 = vcmp.gt.f32.partialorder %v3275_v56, 0.0  ;;  %7016 = vst.msk [vmem:[%s18610_s3 + $0x900] sm:$0xff] %vm2337_vm1, %v6504_v53  ;;  %v6507_v22 = vsel %vm5995_vm14, %v19139_v3, nan  ;;  %v19140_v25 = vld [vmem:[#allocation109_spill] sm:$0xff] }
 0x152   :  { %6763 = vst.msk [vmem:[%s18610_s3 + $0x118] sm:$0xff] %vm2337_vm1, %v6251_v6  ;;  %v6249_v46 = vsel %vm5737_vm15, %v19140_v25, nan  ;;  %vm5993_vm0 = vcmp.gt.f32.partialorder %v4299_v23, 0.0  ;;  %v19141_v1 = vld [vmem:[#allocation116_spill] sm:$0xff]  ;;  %v19142_v34 = vld [vmem:[#allocation115_spill] sm:$0xff]  ;;  %7019 = vst.msk [vmem:[%s18610_s3 + $0x918] sm:$0xff] %vm2337_vm1, %v6507_v22  ;;  %v19145_v23 = vpack.c.bf16 %v12060_v5, %v12043_v49  ;;  %v19147_v5 = vpack.c.bf16 %v12152_v20, %v12149_v35 }
 0x153   :  { %v19143_v56 = vpack.c.bf16 %v19141_v1, %v19142_v34  ;;  %6761 = vst.msk [vmem:[%s18610_s3 + $0x108] sm:$0xff] %vm2337_vm1, %v6249_v46  ;;  %v19144_v53 = vld [vmem:[#allocation110_spill] sm:$0xff]  ;;  %v13417_v3 = vsel %vm704_vm2, 1.0, %v18761_v59  ;;  %v13428_v49 = vsel %vm705_vm3, 1.0, %v18761_v59  ;;  %vm961_vm5 = vcmp.ne.f32.partialorder %v447_v8, 0.0  ;;  %v8314_v48 = vpop.f32.mrb[36].mxu0 }
 0x154   :  { %v6505_v6 = vsel %vm5993_vm0, %v19144_v53, nan  ;;  %8673 = vmatmul.mubr.msk.bf16.gmra.mrb[140].mxu1 %vm2337_vm1, %v19145_v23  ;;  %v13431_v39 = vsel %vm960_vm4, 1.0, %v18761_v59  ;;  %v13442_v20 = vsel %vm961_vm5, 1.0, %v18761_v59  ;;  %v8934_v8 = vld [vmem:[%s18608_s1 + $0xa30] sm:$0xff]  ;;  %v8935_v25 = vld [vmem:[%s18608_s1 + $0x220] sm:$0xff]  ;;  %vm5742_vm6 = vcmp.gt.f32.partialorder %v8314_v48, 0.0 }
 0x155   :  { %8417 = vmatmul.mubr.msk.bf16.gmra.mrb[140].mxu0 %vm2337_vm1, %v19143_v56  ;;  %7017 = vst.msk [vmem:[%s18610_s3 + $0x908] sm:$0xff] %vm2337_vm1, %v6505_v6  ;;  %8676 = vmatprep.mubr.msk.bf16.mxu1 %vm2337_vm1, %v19147_v5  ;;  %v13448_v22 = vmul.f32 %v8934_v8, %v10984_v15  ;;  %v13454_v46 = vmul.f32 %v8935_v25, %v10984_v15  ;;  %v8570_v1 = vpop.f32.mrb[36].mxu1  ;;  %v3288_v34 = vpop.f32.mrb[37].mxu0  ;;  %v8936_v53 = vld [vmem:[%s18608_s1 + $0xa20] sm:$0xff]  ;;  %v8937_v23 = vld [vmem:[%s18608_s1 + $0x238] sm:$0xff]  ;;  %v193_v32 = vld [vmem:[%s18608_s1 + $0x588] sm:$0xff] }
 0x156   :  { %8420 = vmatprep.mubr.msk.bf16.mxu0 %vm2337_vm1, %v19146_v16  ;;  %v13462_v6 = vmul.f32 %v8936_v53, %v10984_v15  ;;  %v13468_v16 = vmul.f32 %v8937_v23, %v10984_v15  ;;  %v192_v5 = vld [vmem:[%s18608_s1 + $0x580] sm:$0xff]  ;;  %v19152_v48 = vld [vmem:[#allocation117_spill] sm:$0xff]  ;;  %vm5998_vm7 = vcmp.gt.f32.partialorder %v8570_v1, 0.0  ;;  %vm5740_vm8 = vcmp.gt.f32.partialorder %v3288_v34, 0.0  ;;  %v4312_v25 = vpop.f32.mrb[37].mxu1  ;;  %v8315_v53 = vpop.f32.mrb[38].mxu0 }
 0x157   :  { %19148 = vst [vmem:[#allocation70_spill] sm:$0xff] %v13448_v22  ;;  %19149 = vst [vmem:[#allocation10_spill] sm:$0xff] %v13454_v46  ;;  %v6254_v8 = vsel %vm5742_vm6, %v19152_v48, nan  ;;  %v8938_v56 = vld [vmem:[%s18608_s1 + $0xa38] sm:$0xff]  ;;  %v448_v35 = vld [vmem:[%s18608_s1 + $0xd80] sm:$0xff]  ;;  %vm5996_vm9 = vcmp.gt.f32.partialorder %v4312_v25, 0.0 }
 0x158   :  { %19150 = vst [vmem:[#allocation71_spill] sm:$0xff] %v13462_v6  ;;  %19151 = vst [vmem:[#allocation11_spill] sm:$0xff] %v13468_v16  ;;  %v13481_v23 = vmul.f32 %v8938_v56, %v10984_v15  ;;  %v19154_v1 = vld [vmem:[#allocation118_spill] sm:$0xff]  ;;  %v19155_v48 = vld [vmem:[#allocation119_spill] sm:$0xff]  ;;  %vm5743_vm10 = vcmp.gt.f32.partialorder %v8315_v53, 0.0  ;;  %v8571_v6 = vpop.f32.mrb[38].mxu1 }
 0x159   :  { %6766 = vst.msk [vmem:[%s18610_s3 + $0x130] sm:$0xff] %vm2337_vm1, %v6254_v8  ;;  %v6510_v34 = vsel %vm5998_vm7, %v19154_v1, nan  ;;  %v6252_v16 = vsel %vm5740_vm8, %v19155_v48, nan  ;;  %v3291_v46 = vpop.f32.mrb[39].mxu0  ;;  %v19156_v56 = vld [vmem:[#allocation26_spill] sm:$0xff]  ;;  %vm5999_vm11 = vcmp.gt.f32.partialorder %v8571_v6, 0.0 }
 0x15a   :  { %19153 = vst [vmem:[#allocation9_spill] sm:$0xff] %v13481_v23  ;;  %7022 = vst.msk [vmem:[%s18610_s3 + $0x930] sm:$0xff] %vm2337_vm1, %v6510_v34  ;;  %v6508_v8 = vsel %vm5996_vm9, %v19156_v56, nan  ;;  %v19157_v23 = vld [vmem:[#allocation25_spill] sm:$0xff]  ;;  %vm5741_vm12 = vcmp.gt.f32.partialorder %v3291_v46, 0.0  ;;  %v4315_v25 = vpop.f32.mrb[39].mxu1 }
 0x15b   :  { %6764 = vst.msk [vmem:[%s18610_s3 + $0x120] sm:$0xff] %vm2337_vm1, %v6252_v16  ;;  %v6255_v1 = vsel %vm5743_vm10, %v19157_v23, nan  ;;  %v449_v53 = vld [vmem:[%s18608_s1 + $0xd88] sm:$0xff]  ;;  %7020 = vst.msk [vmem:[%s18610_s3 + $0x920] sm:$0xff] %vm2337_vm1, %v6508_v8  ;;  %vm5997_vm13 = vcmp.gt.f32.partialorder %v4315_v25, 0.0  ;;  %v19160_v46 = vld [vmem:[#allocation122_spill] sm:$0xff] }
 0x15c   :  { %6767 = vst.msk [vmem:[%s18610_s3 + $0x138] sm:$0xff] %vm2337_vm1, %v6255_v1  ;;  %v19158_v16 = vld [vmem:[#allocation120_spill] sm:$0xff]  ;;  %v19161_v48 = vld [vmem:[#allocation121_spill] sm:$0xff]  ;;  %v19163_v25 = vld [vmem:[#allocation27_spill] sm:$0xff]  ;;  %vm706_vm14 = vcmp.ne.f32.partialorder %v192_v5, 0.0  ;;  %vm707_vm15 = vcmp.ne.f32.partialorder %v193_v32, 0.0 }
 0x15d   :  { %v6511_v34 = vsel %vm5999_vm11, %v19158_v16, nan  ;;  %v19159_v23 = vld [vmem:[#allocation28_spill] sm:$0xff]  ;;  %v19162_v56 = vpack.c.bf16 %v19160_v46, %v19161_v48  ;;  %v194_v1 = vld [vmem:[%s18608_s1 + $0x590] sm:$0xff]  ;;  %v6509_v16 = vsel %vm5997_vm13, %v19163_v25, nan  ;;  %v19166_v46 = vpack.c.bf16 %v12257_v38, %v12254_v55  ;;  %v8318_v32 = vpop.f32.mrb[40].mxu0 }
 0x15e   :  { %v6253_v6 = vsel %vm5741_vm12, %v19159_v23, nan  ;;  %v8939_v22 = vld [vmem:[%s18608_s1 + $0x228] sm:$0xff]  ;;  %7023 = vst.msk [vmem:[%s18610_s3 + $0x938] sm:$0xff] %vm2337_vm1, %v6511_v34  ;;  %v19164_v23 = vld [vmem:[#allocation123_spill] sm:$0xff]  ;;  %7021 = vst.msk [vmem:[%s18610_s3 + $0x928] sm:$0xff] %vm2337_vm1, %v6509_v16  ;;  %v19168_v55 = vpack.c.bf16 %v12272_v17, %v12269_v7  ;;  %v13563_v38 = vsel %vm706_vm14, 1.0, %v18761_v59 }
 0x15f   :  { %8421 = vmatmul.mubr.msk.bf16.gmra.mrb[144].mxu0 %vm2337_vm1, %v19162_v56  ;;  %v13523_v8 = vmul.f32 %v8939_v22, %v10984_v15  ;;  %6765 = vst.msk [vmem:[%s18610_s3 + $0x128] sm:$0xff] %vm2337_vm1, %v6253_v6  ;;  %v19165_v22 = vpack.c.bf16 %v12180_v45, %v19164_v23  ;;  %v8940_v34 = vld [vmem:[%s18608_s1 + $0xa28] sm:$0xff]  ;;  %v195_v45 = vld [vmem:[%s18608_s1 + $0x598] sm:$0xff]  ;;  %v13566_v5 = vsel %vm707_vm15, 1.0, %v18761_v59  ;;  %vm962_vm0 = vcmp.ne.f32.partialorder %v448_v35, 0.0  ;;  %v8574_v7 = vpop.f32.mrb[40].mxu1 }
 0x160   :  { %8424 = vmatprep.mubr.msk.bf16.mxu0 %vm2337_vm1, %v19166_v46  ;;  %v13549_v48 = vmul.f32 %v8940_v34, %v10984_v15  ;;  %vm963_vm2 = vcmp.ne.f32.partialorder %v449_v53, 0.0  ;;  %v13571_v56 = vsel %vm962_vm0, 1.0, %v18761_v59  ;;  %vm708_vm3 = vcmp.ne.f32.partialorder %v194_v1, 0.0  ;;  %v3304_v17 = vpop.f32.mrb[41].mxu0  ;;  %v450_v53 = vld [vmem:[%s18608_s1 + $0xd90] sm:$0xff]  ;;  %v451_v23 = vld [vmem:[%s18608_s1 + $0xd98] sm:$0xff] }
 0x161   :  { %8677 = vmatmul.mubr.msk.bf16.gmra.mrb[144].mxu1 %vm2337_vm1, %v19165_v22  ;;  %v13574_v25 = vsel %vm963_vm2, 1.0, %v18761_v59  ;;  %vm5746_vm4 = vcmp.gt.f32.partialorder %v8318_v32, 0.0  ;;  %vm709_vm5 = vcmp.ne.f32.partialorder %v195_v45, 0.0  ;;  %v13579_v35 = vsel %vm708_vm3, 1.0, %v18761_v59  ;;  %v19169_v22 = vld [vmem:[#allocation124_spill] sm:$0xff]  ;;  %v4328_v46 = vpop.f32.mrb[41].mxu1 }
 0x162   :  { %19167 = vst [vmem:[#allocation12_spill] sm:$0xff] %v13549_v48  ;;  %8680 = vmatprep.mubr.msk.bf16.mxu1 %vm2337_vm1, %v19168_v55  ;;  %v6258_v1 = vsel %vm5746_vm4, %v19169_v22, nan  ;;  %vm6002_vm6 = vcmp.gt.f32.partialorder %v8574_v7, 0.0  ;;  %vm5744_vm7 = vcmp.gt.f32.partialorder %v3304_v17, 0.0  ;;  %v8319_v34 = vpop.f32.mrb[42].mxu0  ;;  %v13589_v55 = vsel %vm709_vm5, 1.0, %v18761_v59 }
 0x163   :  { %6770 = vst.msk [vmem:[%s18610_s3 + $0x150] sm:$0xff] %vm2337_vm1, %v6258_v1  ;;  %v19170_v45 = vld [vmem:[#allocation125_spill] sm:$0xff]  ;;  %v19171_v16 = vld [vmem:[#allocation126_spill] sm:$0xff]  ;;  %vm6000_vm8 = vcmp.gt.f32.partialorder %v4328_v46, 0.0  ;;  %vm5747_vm9 = vcmp.gt.f32.partialorder %v8319_v34, 0.0  ;;  %v8575_v48 = vpop.f32.mrb[42].mxu1 }
 0x164   :  { %v6514_v32 = vsel %vm6002_vm6, %v19170_v45, nan  ;;  %v6256_v6 = vsel %vm5744_vm7, %v19171_v16, nan  ;;  %v3307_v22 = vpop.f32.mrb[43].mxu0  ;;  %v19172_v7 = vld [vmem:[#allocation127_spill] sm:$0xff]  ;;  %v19173_v1 = vld [vmem:[#allocation128_spill] sm:$0xff]  ;;  %vm6003_vm10 = vcmp.gt.f32.partialorder %v8575_v48, 0.0 }
 0x165   :  { %7026 = vst.msk [vmem:[%s18610_s3 + $0x950] sm:$0xff] %vm2337_vm1, %v6514_v32  ;;  %6768 = vst.msk [vmem:[%s18610_s3 + $0x140] sm:$0xff] %vm2337_vm1, %v6256_v6  ;;  %v6512_v17 = vsel %vm6000_vm8, %v19172_v7, nan  ;;  %v6259_v45 = vsel %vm5747_vm9, %v19173_v1, nan  ;;  %vm5745_vm11 = vcmp.gt.f32.partialorder %v3307_v22, 0.0  ;;  %v4331_v16 = vpop.f32.mrb[43].mxu1 }
 0x166   :  { %7024 = vst.msk [vmem:[%s18610_s3 + $0x940] sm:$0xff] %vm2337_vm1, %v6512_v17  ;;  %6771 = vst.msk [vmem:[%s18610_s3 + $0x158] sm:$0xff] %vm2337_vm1, %v6259_v45  ;;  %v19174_v46 = vld [vmem:[#allocation129_spill] sm:$0xff]  ;;  %v19175_v6 = vld [vmem:[#allocation130_spill] sm:$0xff]  ;;  %vm6001_vm12 = vcmp.gt.f32.partialorder %v4331_v16, 0.0  ;;  %vm964_vm13 = vcmp.ne.f32.partialorder %v450_v53, 0.0 }
 0x167   :  { %v6515_v34 = vsel %vm6003_vm10, %v19174_v46, nan  ;;  %v6257_v32 = vsel %vm5745_vm11, %v19175_v6, nan  ;;  %v19176_v7 = vld [vmem:[#allocation29_spill] sm:$0xff]  ;;  %v19177_v1 = vld [vmem:[#allocation30_spill] sm:$0xff]  ;;  %v19179_v17 = vld [vmem:[#allocation131_spill] sm:$0xff]  ;;  %vm965_vm14 = vcmp.ne.f32.partialorder %v451_v23, 0.0 }
 0x168   :  { %v19178_v48 = vpack.c.bf16 %v19176_v7, %v19177_v1  ;;  %7027 = vst.msk [vmem:[%s18610_s3 + $0x958] sm:$0xff] %vm2337_vm1, %v6515_v34  ;;  %6769 = vst.msk [vmem:[%s18610_s3 + $0x148] sm:$0xff] %vm2337_vm1, %v6257_v32  ;;  %v6513_v45 = vsel %vm6001_vm12, %v19179_v17, nan  ;;  %v19180_v16 = vld [vmem:[#allocation134_spill] sm:$0xff]  ;;  %v19181_v46 = vld [vmem:[#allocation132_spill] sm:$0xff]  ;;  %v19183_v7 = vpack.c.bf16 %v12369_v31, %v12366_v42  ;;  %v13658_v53 = vsel %vm964_vm13, 1.0, %v18761_v59 }
 0x169   :  { %v19182_v6 = vpack.c.bf16 %v19180_v16, %v19181_v46  ;;  %v8941_v34 = vld [vmem:[%s18608_s1 + $0x250] sm:$0xff]  ;;  %v196_v1 = vld [vmem:[%s18608_s1 + $0x5a0] sm:$0xff]  ;;  %7025 = vst.msk [vmem:[%s18610_s3 + $0x948] sm:$0xff] %vm2337_vm1, %v6513_v45  ;;  %v19185_v42 = vld [vmem:[#allocation32_spill] sm:$0xff]  ;;  %v13661_v23 = vsel %vm965_vm14, 1.0, %v18761_v59  ;;  %v8322_v46 = vpop.f32.mrb[44].mxu0 }
 0x16a   :  { %8425 = vmatmul.mubr.msk.bf16.gmra.mrb[148].mxu0 %vm2337_vm1, %v19178_v48  ;;  %v13644_v32 = vmul.f32 %v8941_v34, %v10984_v15  ;;  %v19186_v31 = vpack.c.bf16 %v12388_v24, %v19185_v42  ;;  %19187 = vst [vmem:[#allocation13_spill] sm:$0xff] %v13658_v53  ;;  %19188 = vst [vmem:[#allocation72_spill] sm:$0xff] %v13661_v23  ;;  %v8942_v48 = vld [vmem:[%s18608_s1 + $0xa50] sm:$0xff]  ;;  %v8943_v45 = vld [vmem:[%s18608_s1 + $0x240] sm:$0xff]  ;;  %vm5750_vm15 = vcmp.gt.f32.partialorder %v8322_v46, 0.0  ;;  %v3320_v22 = vpop.f32.mrb[45].mxu0 }
 0x16b   :  { %8681 = vmatmul.mubr.msk.bf16.gmra.mrb[148].mxu1 %vm2337_vm1, %v19182_v6  ;;  %8428 = vmatprep.mubr.msk.bf16.mxu0 %vm2337_vm1, %v19183_v7  ;;  %v13667_v17 = vmul.f32 %v8942_v48, %v10984_v15  ;;  %v13673_v24 = vmul.f32 %v8943_v45, %v10984_v15  ;;  %v197_v16 = vld [vmem:[%s18608_s1 + $0x5a8] sm:$0xff]  ;;  %v8944_v7 = vld [vmem:[%s18608_s1 + $0xa40] sm:$0xff]  ;;  %v8945_v42 = vld [vmem:[%s18608_s1 + $0x258] sm:$0xff]  ;;  %v8578_v6 = vpop.f32.mrb[44].mxu1  ;;  %vm710_vm0 = vcmp.ne.f32.partialorder %v196_v1, 0.0  ;;  %vm5748_vm3 = vcmp.gt.f32.partialorder %v3320_v22, 0.0 }
 0x16c   :  { %19184 = vst [vmem:[#allocation14_spill] sm:$0xff] %v13644_v32  ;;  %8684 = vmatprep.mubr.msk.bf16.mxu1 %vm2337_vm1, %v19186_v31  ;;  %v13684_v34 = vmul.f32 %v8944_v7, %v10984_v15  ;;  %v13690_v31 = vmul.f32 %v8945_v42, %v10984_v15  ;;  %v8946_v48 = vld [vmem:[%s18608_s1 + $0xa58] sm:$0xff]  ;;  %v8947_v7 = vld [vmem:[%s18608_s1 + $0x248] sm:$0xff]  ;;  %v452_v46 = vld [vmem:[%s18608_s1 + $0xda0] sm:$0xff]  ;;  %vm6006_vm2 = vcmp.gt.f32.partialorder %v8578_v6, 0.0  ;;  %vm711_vm4 = vcmp.ne.f32.partialorder %v197_v16, 0.0 }
 0x16d   :  { %19189 = vst [vmem:[#allocation73_spill] sm:$0xff] %v13667_v17  ;;  %19190 = vst [vmem:[#allocation74_spill] sm:$0xff] %v13673_v24  ;;  %v13696_v45 = vmul.f32 %v8946_v48, %v10984_v15  ;;  %v8948_v42 = vld [vmem:[%s18608_s1 + $0xa48] sm:$0xff]  ;;  %v19199_v22 = vld [vmem:[#allocation137_spill] sm:$0xff]  ;;  %vm966_vm10 = vcmp.ne.f32.partialorder %v452_v46, 0.0 }
 0x16e   :  { %19191 = vst [vmem:[#allocation75_spill] sm:$0xff] %v13684_v34  ;;  %19192 = vst [vmem:[#allocation77_spill] sm:$0xff] %v13690_v31  ;;  %v13702_v34 = vmul.f32 %v8947_v7, %v10984_v15  ;;  %v13708_v31 = vmul.f32 %v8948_v42, %v10984_v15  ;;  %v453_v48 = vld [vmem:[%s18608_s1 + $0xda8] sm:$0xff]  ;;  %v4344_v7 = vpop.f32.mrb[45].mxu1  ;;  %v19197_v42 = vld [vmem:[#allocation135_spill] sm:$0xff]  ;;  %v13795_v16 = vsel %vm966_vm10, 1.0, %v18761_v59 }
 0x16f   :  { %19193 = vst [vmem:[#allocation76_spill] sm:$0xff] %v13696_v45  ;;  %v19196_v45 = vld [vmem:[#allocation133_spill] sm:$0xff]  ;;  %v19198_v17 = vld [vmem:[#allocation136_spill] sm:$0xff]  ;;  %vm6004_vm5 = vcmp.gt.f32.partialorder %v4344_v7, 0.0  ;;  %v8579_v53 = vpop.f32.mrb[46].mxu1  ;;  %v19200_v6 = vld [vmem:[#allocation138_spill] sm:$0xff] }
 0x170   :  { %19194 = vst [vmem:[#allocation78_spill] sm:$0xff] %v13702_v34  ;;  %19195 = vst [vmem:[#allocation16_spill] sm:$0xff] %v13708_v31  ;;  %v6262_v24 = vsel %vm5750_vm15, %v19196_v45, nan  ;;  %v8323_v34 = vpop.f32.mrb[46].mxu0  ;;  %v6518_v31 = vsel %vm6006_vm2, %v19197_v42, nan  ;;  %v6260_v32 = vsel %vm5748_vm3, %v19198_v17, nan }
 0x171   :  { %6774 = vst.msk [vmem:[%s18610_s3 + $0x170] sm:$0xff] %vm2337_vm1, %v6262_v24  ;;  %vm5751_vm6 = vcmp.gt.f32.partialorder %v8323_v34, 0.0  ;;  %v3323_v23 = vpop.f32.mrb[47].mxu0  ;;  %7030 = vst.msk [vmem:[%s18610_s3 + $0x970] sm:$0xff] %vm2337_vm1, %v6518_v31  ;;  %v6516_v24 = vsel %vm6004_vm5, %v19199_v22, nan  ;;  %vm6007_vm7 = vcmp.gt.f32.partialorder %v8579_v53, 0.0 }
 0x172   :  { %6772 = vst.msk [vmem:[%s18610_s3 + $0x160] sm:$0xff] %vm2337_vm1, %v6260_v32  ;;  %v6263_v45 = vsel %vm5751_vm6, %v19200_v6, nan  ;;  %vm5749_vm8 = vcmp.gt.f32.partialorder %v3323_v23, 0.0  ;;  %v4347_v17 = vpop.f32.mrb[47].mxu1  ;;  %v198_v34 = vld [vmem:[%s18608_s1 + $0x5b0] sm:$0xff]  ;;  %7028 = vst.msk [vmem:[%s18610_s3 + $0x960] sm:$0xff] %vm2337_vm1, %v6516_v24 }
 0x173   :  { %6775 = vst.msk [vmem:[%s18610_s3 + $0x178] sm:$0xff] %vm2337_vm1, %v6263_v45  ;;  %v19201_v32 = vld [vmem:[#allocation139_spill] sm:$0xff]  ;;  %v19202_v7 = vld [vmem:[#allocation140_spill] sm:$0xff]  ;;  %vm6005_vm9 = vcmp.gt.f32.partialorder %v4347_v17, 0.0  ;;  %v13752_v22 = vsel %vm710_vm0, 1.0, %v18761_v59  ;;  %v199_v24 = vld [vmem:[%s18608_s1 + $0x5b8] sm:$0xff] }
 0x174   :  { %v6519_v31 = vsel %vm6007_vm7, %v19201_v32, nan  ;;  %v6261_v53 = vsel %vm5749_vm8, %v19202_v7, nan  ;;  %v19203_v23 = vld [vmem:[#allocation31_spill] sm:$0xff]  ;;  %v454_v6 = vld [vmem:[%s18608_s1 + $0xdb0] sm:$0xff]  ;;  %v19206_v45 = vld [vmem:[#allocation142_spill] sm:$0xff]  ;;  %v19209_v7 = vpack.c.bf16 %v12532_v52, %v12529_v57  ;;  %vm967_vm11 = vcmp.ne.f32.partialorder %v453_v48, 0.0 }
 0x175   :  { %v19204_v42 = vpack.c.bf16 %v12400_v33, %v19203_v23  ;;  %7031 = vst.msk [vmem:[%s18610_s3 + $0x978] sm:$0xff] %vm2337_vm1, %v6519_v31  ;;  %6773 = vst.msk [vmem:[%s18610_s3 + $0x168] sm:$0xff] %vm2337_vm1, %v6261_v53  ;;  %v19205_v33 = vld [vmem:[#allocation141_spill] sm:$0xff]  ;;  %v19207_v17 = vld [vmem:[#allocation40_spill] sm:$0xff]  ;;  %v13779_v31 = vsel %vm711_vm4, 1.0, %v18761_v59  ;;  %v19210_v57 = vpack.c.bf16 %v12543_v11, %v12540_v28  ;;  %v13798_v46 = vsel %vm967_vm11, 1.0, %v18761_v59 }
 0x176   :  { %v6517_v1 = vsel %vm6005_vm9, %v19205_v33, nan  ;;  %v19208_v32 = vpack.c.bf16 %v19206_v45, %v19207_v17  ;;  %v455_v53 = vld [vmem:[%s18608_s1 + $0xdb8] sm:$0xff]  ;;  %vm712_vm12 = vcmp.ne.f32.partialorder %v198_v34, 0.0  ;;  %v8326_v48 = vpop.f32.mrb[48].mxu0  ;;  %vm713_vm13 = vcmp.ne.f32.partialorder %v199_v24, 0.0  ;;  %v8582_v28 = vpop.f32.mrb[48].mxu1 }
 0x177   :  { %8429 = vmatmul.mubr.msk.bf16.gmra.mrb[152].mxu0 %vm2337_vm1, %v19204_v42  ;;  %7029 = vst.msk [vmem:[%s18610_s3 + $0x968] sm:$0xff] %vm2337_vm1, %v6517_v1  ;;  %v13803_v42 = vsel %vm712_vm12, 1.0, %v18761_v59  ;;  %vm968_vm14 = vcmp.ne.f32.partialorder %v454_v6, 0.0  ;;  %vm5754_vm15 = vcmp.gt.f32.partialorder %v8326_v48, 0.0  ;;  %v3336_v11 = vpop.f32.mrb[49].mxu0  ;;  %v13806_v33 = vsel %vm713_vm13, 1.0, %v18761_v59 }
 0x178   :  { %8685 = vmatmul.mubr.msk.bf16.gmra.mrb[152].mxu1 %vm2337_vm1, %v19208_v32  ;;  %8432 = vmatprep.mubr.msk.bf16.mxu0 %vm2337_vm1, %v19209_v7  ;;  %vm969_vm0 = vcmp.ne.f32.partialorder %v455_v53, 0.0  ;;  %v13809_v1 = vsel %vm968_vm14, 1.0, %v18761_v59  ;;  %v19211_v34 = vld [vmem:[#allocation39_spill] sm:$0xff]  ;;  %vm6010_vm2 = vcmp.gt.f32.partialorder %v8582_v28, 0.0  ;;  %vm5752_vm3 = vcmp.gt.f32.partialorder %v3336_v11, 0.0  ;;  %v4360_v17 = vpop.f32.mrb[49].mxu1 }
 0x179   :  { %8688 = vmatprep.mubr.msk.bf16.mxu1 %vm2337_vm1, %v19210_v57  ;;  %v6266_v45 = vsel %vm5754_vm15, %v19211_v34, nan  ;;  %v8327_v24 = vpop.f32.mrb[50].mxu0  ;;  %v19212_v6 = vld [vmem:[#allocation143_spill] sm:$0xff]  ;;  %v19213_v57 = vld [vmem:[#allocation33_spill] sm:$0xff]  ;;  %vm6008_vm4 = vcmp.gt.f32.partialorder %v4360_v17, 0.0  ;;  %v8583_v23 = vpop.f32.mrb[50].mxu1 }
 0x17a   :  { %6778 = vst.msk [vmem:[%s18610_s3 + $0x190] sm:$0xff] %vm2337_vm1, %v6266_v45  ;;  %v6522_v7 = vsel %vm6010_vm2, %v19212_v6, nan  ;;  %v6264_v48 = vsel %vm5752_vm3, %v19213_v57, nan  ;;  %vm5755_vm5 = vcmp.gt.f32.partialorder %v8327_v24, 0.0  ;;  %v3339_v34 = vpop.f32.mrb[51].mxu0  ;;  %v19214_v28 = vld [vmem:[#allocation34_spill] sm:$0xff] }
 0x17b   :  { %7034 = vst.msk [vmem:[%s18610_s3 + $0x990] sm:$0xff] %vm2337_vm1, %v6522_v7  ;;  %6776 = vst.msk [vmem:[%s18610_s3 + $0x180] sm:$0xff] %vm2337_vm1, %v6264_v48  ;;  %v6520_v11 = vsel %vm6008_vm4, %v19214_v28, nan  ;;  %v19215_v45 = vld [vmem:[#allocation35_spill] sm:$0xff]  ;;  %vm6011_vm6 = vcmp.gt.f32.partialorder %v8583_v23, 0.0  ;;  %vm5753_vm7 = vcmp.gt.f32.partialorder %v3339_v34, 0.0  ;;  %v19218_v23 = vpack.c.bf16 %v12616_v26, %v12605_v10 }
 0x17c   :  { %v6267_v6 = vsel %vm5755_vm5, %v19215_v45, nan  ;;  %v4363_v17 = vpop.f32.mrb[51].mxu1  ;;  %7032 = vst.msk [vmem:[%s18610_s3 + $0x980] sm:$0xff] %vm2337_vm1, %v6520_v11  ;;  %v19216_v24 = vld [vmem:[#allocation4_spill] sm:$0xff]  ;;  %v19217_v57 = vld [vmem:[#allocation3_spill] sm:$0xff]  ;;  %v13846_v34 = vsel %vm969_vm0, 1.0, %v18761_v59 }
 0x17d   :  { %6779 = vst.msk [vmem:[%s18610_s3 + $0x198] sm:$0xff] %vm2337_vm1, %v6267_v6  ;;  %v6523_v7 = vsel %vm6011_vm6, %v19216_v24, nan  ;;  %v6265_v48 = vsel %vm5753_vm7, %v19217_v57, nan  ;;  %vm6009_vm8 = vcmp.gt.f32.partialorder %v4363_v17, 0.0  ;;  %v200_v28 = vld [vmem:[%s18608_s1 + $0x5c0] sm:$0xff]  ;;  %v201_v11 = vld [vmem:[%s18608_s1 + $0x5c8] sm:$0xff]  ;;  %v19222_v6 = vpack.c.bf16 %v12754_v13, %v12751_v60 }
 0x17e   :  { %7035 = vst.msk [vmem:[%s18610_s3 + $0x998] sm:$0xff] %vm2337_vm1, %v6523_v7  ;;  %6777 = vst.msk [vmem:[%s18610_s3 + $0x188] sm:$0xff] %vm2337_vm1, %v6265_v48  ;;  %v19219_v10 = vld [vmem:[#allocation36_spill] sm:$0xff]  ;;  %v19220_v53 = vld [vmem:[#allocation37_spill] sm:$0xff]  ;;  %v19223_v13 = vpack.c.bf16 %v12762_v41, %v12759_v54  ;;  %vm714_vm9 = vcmp.ne.f32.partialorder %v200_v28, 0.0  ;;  %vm715_vm10 = vcmp.ne.f32.partialorder %v201_v11, 0.0 }
 0x17f   :  { %8433 = vmatmul.mubr.msk.bf16.gmra.mrb[156].mxu0 %vm2337_vm1, %v19218_v23  ;;  %v6521_v26 = vsel %vm6009_vm8, %v19219_v10, nan  ;;  %v19221_v45 = vpack.c.bf16 %v12630_v40, %v19220_v53  ;;  %v8949_v24 = vld [vmem:[%s18608_s1 + $0x270] sm:$0xff]  ;;  %v456_v60 = vld [vmem:[%s18608_s1 + $0xdc0] sm:$0xff]  ;;  %v8953_v54 = vld [vmem:[%s18608_s1 + $0x278] sm:$0xff]  ;;  %v13936_v17 = vsel %vm714_vm9, 1.0, %v18761_v59 }
 0x180   :  { %8436 = vmatprep.mubr.msk.bf16.mxu0 %vm2337_vm1, %v19222_v6  ;;  %v13877_v7 = vmul.f32 %v8949_v24, %v10984_v15  ;;  %v8950_v40 = vld [vmem:[%s18608_s1 + $0xa70] sm:$0xff]  ;;  %7033 = vst.msk [vmem:[%s18610_s3 + $0x988] sm:$0xff] %vm2337_vm1, %v6521_v26  ;;  %v8951_v48 = vld [vmem:[%s18608_s1 + $0x260] sm:$0xff]  ;;  %v13912_v41 = vmul.f32 %v8953_v54, %v10984_v15  ;;  %v8954_v26 = vld [vmem:[%s18608_s1 + $0xa78] sm:$0xff]  ;;  %v8330_v6 = vpop.f32.mrb[52].mxu0  ;;  %v8586_v54 = vpop.f32.mrb[52].mxu1 }
 0x181   :  { %8689 = vmatmul.mubr.msk.bf16.gmra.mrb[156].mxu1 %vm2337_vm1, %v19221_v45  ;;  %v13883_v57 = vmul.f32 %v8950_v40, %v10984_v15  ;;  %v13900_v23 = vmul.f32 %v8951_v48, %v10984_v15  ;;  %v8952_v10 = vld [vmem:[%s18608_s1 + $0xa60] sm:$0xff]  ;;  %v13918_v45 = vmul.f32 %v8954_v26, %v10984_v15  ;;  %v8955_v24 = vld [vmem:[%s18608_s1 + $0x268] sm:$0xff]  ;;  %vm5758_vm11 = vcmp.gt.f32.partialorder %v8330_v6, 0.0  ;;  %v3352_v26 = vpop.f32.mrb[53].mxu0  ;;  %v19229_v28 = vld [vmem:[#allocation42_spill] sm:$0xff]  ;;  %v4376_v32 = vpop.f32.mrb[53].mxu1 }
 0x182   :  { %8692 = vmatprep.mubr.msk.bf16.mxu1 %vm2337_vm1, %v19223_v13  ;;  %v13906_v53 = vmul.f32 %v8952_v10, %v10984_v15  ;;  %19225 = vst [vmem:[#allocation15_spill] sm:$0xff] %v13912_v41  ;;  %v13924_v40 = vmul.f32 %v8955_v24, %v10984_v15  ;;  %v8956_v13 = vld [vmem:[%s18608_s1 + $0xa68] sm:$0xff]  ;;  %v13939_v24 = vsel %vm715_vm10, 1.0, %v18761_v59  ;;  %vm970_vm12 = vcmp.ne.f32.partialorder %v456_v60, 0.0  ;;  %v8331_v52 = vpop.f32.mrb[54].mxu0  ;;  %v19231_v41 = vld [vmem:[#allocation38_spill] sm:$0xff] }
 0x183   :  { %19226 = vst [vmem:[#allocation79_spill] sm:$0xff] %v13918_v45  ;;  %v13930_v48 = vmul.f32 %v8956_v13, %v10984_v15  ;;  %v457_v10 = vld [vmem:[%s18608_s1 + $0xdc8] sm:$0xff]  ;;  %v202_v13 = vld [vmem:[%s18608_s1 + $0x5d0] sm:$0xff]  ;;  %v6270_v11 = vsel %vm5758_vm11, %v19229_v28, nan  ;;  %vm6014_vm13 = vcmp.gt.f32.partialorder %v8586_v54, 0.0  ;;  %vm5756_vm14 = vcmp.gt.f32.partialorder %v3352_v26, 0.0 }
 0x184   :  { %19224 = vst [vmem:[#allocation86_spill] sm:$0xff] %v13906_v53  ;;  %19227 = vst [vmem:[#allocation80_spill] sm:$0xff] %v13924_v40  ;;  %v19230_v40 = vld [vmem:[#allocation41_spill] sm:$0xff]  ;;  %v6268_v28 = vsel %vm5756_vm14, %v19231_v41, nan  ;;  %vm6012_vm15 = vcmp.gt.f32.partialorder %v4376_v32, 0.0  ;;  %vm5759_vm0 = vcmp.gt.f32.partialorder %v8331_v52, 0.0 }
 0x185   :  { %19228 = vst [vmem:[#allocation81_spill] sm:$0xff] %v13930_v48  ;;  %v203_v48 = vld [vmem:[%s18608_s1 + $0x5d8] sm:$0xff]  ;;  %6782 = vst.msk [vmem:[%s18610_s3 + $0x1b0] sm:$0xff] %vm2337_vm1, %v6270_v11  ;;  %v6526_v45 = vsel %vm6014_vm13, %v19230_v40, nan  ;;  %v8587_v54 = vpop.f32.mrb[54].mxu1  ;;  %v3355_v26 = vpop.f32.mrb[55].mxu0 }
 0x186   :  { %7038 = vst.msk [vmem:[%s18610_s3 + $0x9b0] sm:$0xff] %vm2337_vm1, %v6526_v45  ;;  %6780 = vst.msk [vmem:[%s18610_s3 + $0x1a0] sm:$0xff] %vm2337_vm1, %v6268_v28  ;;  %v19232_v6 = vld [vmem:[#allocation7_spill] sm:$0xff]  ;;  %vm6015_vm2 = vcmp.gt.f32.partialorder %v8587_v54, 0.0  ;;  %vm5757_vm3 = vcmp.gt.f32.partialorder %v3355_v26, 0.0  ;;  %v4379_v32 = vpop.f32.mrb[55].mxu1  ;;  %v19236_v28 = vpack.c.bf16 %v12777_v43, %v12767_v21  ;;  %v19238_v21 = vpack.c.bf16 %v12849_v62, %v12846_v18 }
 0x187   :  { %v6524_v11 = vsel %vm6012_vm15, %v19232_v6, nan  ;;  %v19233_v53 = vld [vmem:[#allocation43_spill] sm:$0xff]  ;;  %v458_v52 = vld [vmem:[%s18608_s1 + $0xdd0] sm:$0xff]  ;;  %v19234_v41 = vld [vmem:[#allocation44_spill] sm:$0xff]  ;;  %vm6013_vm4 = vcmp.gt.f32.partialorder %v4379_v32, 0.0  ;;  %vm971_vm5 = vcmp.ne.f32.partialorder %v457_v10, 0.0  ;;  %v19239_v43 = vpack.c.bf16 %v12967_v51, %v12940_v0 }
 0x188   :  { %v6271_v40 = vsel %vm5759_vm0, %v19233_v53, nan  ;;  %7036 = vst.msk [vmem:[%s18610_s3 + $0x9a0] sm:$0xff] %vm2337_vm1, %v6524_v11  ;;  %v6527_v45 = vsel %vm6015_vm2, %v19234_v41, nan  ;;  %v19235_v53 = vld [vmem:[#allocation45_spill] sm:$0xff]  ;;  %8437 = vmatmul.mubr.msk.bf16.gmra.mrb[160].mxu0 %vm2337_vm1, %v19236_v28  ;;  %v459_v54 = vld [vmem:[%s18608_s1 + $0xdd8] sm:$0xff]  ;;  %v14005_v10 = vsel %vm970_vm12, 1.0, %v18761_v59  ;;  %v19240_v18 = vpack.c.bf16 %v12986_v27, %v12983_v30 }
 0x189   :  { %6783 = vst.msk [vmem:[%s18610_s3 + $0x1b8] sm:$0xff] %vm2337_vm1, %v6271_v40  ;;  %v6269_v6 = vsel %vm5757_vm3, %v19235_v53, nan  ;;  %7039 = vst.msk [vmem:[%s18610_s3 + $0x9b8] sm:$0xff] %vm2337_vm1, %v6527_v45  ;;  %v19237_v26 = vld [vmem:[#allocation46_spill] sm:$0xff]  ;;  %8693 = vmatmul.mubr.msk.bf16.gmra.mrb[160].mxu1 %vm2337_vm1, %v19238_v21  ;;  %8440 = vmatprep.mubr.msk.bf16.mxu0 %vm2337_vm1, %v19239_v43  ;;  %v14008_v40 = vsel %vm971_vm5, 1.0, %v18761_v59  ;;  %vm716_vm6 = vcmp.ne.f32.partialorder %v202_v13, 0.0 }
 0x18a   :  { %6781 = vst.msk [vmem:[%s18610_s3 + $0x1a8] sm:$0xff] %vm2337_vm1, %v6269_v6  ;;  %v6525_v11 = vsel %vm6013_vm4, %v19237_v26, nan  ;;  %8696 = vmatprep.mubr.msk.bf16.mxu1 %vm2337_vm1, %v19240_v18  ;;  %vm717_vm7 = vcmp.ne.f32.partialorder %v203_v48, 0.0  ;;  %v14021_v0 = vsel %vm716_vm6, 1.0, %v18761_v59  ;;  %vm972_vm8 = vcmp.ne.f32.partialorder %v458_v52, 0.0  ;;  %v8334_v51 = vpop.f32.mrb[56].mxu0 }
 0x18b   :  { %7037 = vst.msk [vmem:[%s18610_s3 + $0x9a8] sm:$0xff] %vm2337_vm1, %v6525_v11  ;;  %v14024_v60 = vsel %vm717_vm7, 1.0, %v18761_v59  ;;  %vm973_vm9 = vcmp.ne.f32.partialorder %v459_v54, 0.0  ;;  %v14027_v13 = vsel %vm972_vm8, 1.0, %v18761_v59  ;;  %v8957_v30 = vld [vmem:[%s18608_s1 + $0x290] sm:$0xff]  ;;  %vm5762_vm10 = vcmp.gt.f32.partialorder %v8334_v51, 0.0 }
 0x18c   :  { %v14033_v27 = vmul.f32 %v8957_v30, %v10984_v15  ;;  %v8590_v48 = vpop.f32.mrb[56].mxu1  ;;  %v3368_v32 = vpop.f32.mrb[57].mxu0  ;;  %v14038_v41 = vsel %vm973_vm9, 1.0, %v18761_v59  ;;  %v8958_v45 = vld [vmem:[%s18608_s1 + $0xa90] sm:$0xff]  ;;  %v19241_v6 = vld [vmem:[#allocation47_spill] sm:$0xff]  ;;  %v19242_v43 = vld [vmem:[#allocation48_spill] sm:$0xff] }
 0x18d   :  { %v14044_v53 = vmul.f32 %v8958_v45, %v10984_v15  ;;  %v6274_v28 = vsel %vm5762_vm10, %v19241_v6, nan  ;;  %vm6018_vm11 = vcmp.gt.f32.partialorder %v8590_v48, 0.0  ;;  %vm5760_vm12 = vcmp.gt.f32.partialorder %v3368_v32, 0.0  ;;  %v4392_v54 = vpop.f32.mrb[57].mxu1  ;;  %v8335_v26 = vpop.f32.mrb[58].mxu0  ;;  %v204_v21 = vld [vmem:[%s18608_s1 + $0x5e0] sm:$0xff] }
 0x18e   :  { %6786 = vst.msk [vmem:[%s18610_s3 + $0x1d0] sm:$0xff] %vm2337_vm1, %v6274_v28  ;;  %v6530_v18 = vsel %vm6018_vm11, %v19242_v43, nan  ;;  %v19243_v51 = vld [vmem:[#allocation5_spill] sm:$0xff]  ;;  %vm6016_vm13 = vcmp.gt.f32.partialorder %v4392_v54, 0.0  ;;  %vm5763_vm14 = vcmp.gt.f32.partialorder %v8335_v26, 0.0  ;;  %v8591_v48 = vpop.f32.mrb[58].mxu1 }
 0x18f   :  { %v6272_v30 = vsel %vm5760_vm12, %v19243_v51, nan  ;;  %v3371_v32 = vpop.f32.mrb[59].mxu0  ;;  %7042 = vst.msk [vmem:[%s18610_s3 + $0x9d0] sm:$0xff] %vm2337_vm1, %v6530_v18  ;;  %v19244_v45 = vld [vmem:[#allocation50_spill] sm:$0xff]  ;;  %v19245_v28 = vld [vmem:[#allocation49_spill] sm:$0xff]  ;;  %vm6019_vm15 = vcmp.gt.f32.partialorder %v8591_v48, 0.0 }
 0x190   :  { %6784 = vst.msk [vmem:[%s18610_s3 + $0x1c0] sm:$0xff] %vm2337_vm1, %v6272_v30  ;;  %v6528_v6 = vsel %vm6016_vm13, %v19244_v45, nan  ;;  %v6275_v43 = vsel %vm5763_vm14, %v19245_v28, nan  ;;  %vm5761_vm0 = vcmp.gt.f32.partialorder %v3371_v32, 0.0  ;;  %v4395_v54 = vpop.f32.mrb[59].mxu1  ;;  %v205_v26 = vld [vmem:[%s18608_s1 + $0x5e8] sm:$0xff]  ;;  %v19248_v32 = vpack.c.bf16 %v12994_v63, %v12991_v58 }
 0x191   :  { %7040 = vst.msk [vmem:[%s18610_s3 + $0x9c0] sm:$0xff] %vm2337_vm1, %v6528_v6  ;;  %6787 = vst.msk [vmem:[%s18610_s3 + $0x1d8] sm:$0xff] %vm2337_vm1, %v6275_v43  ;;  %v19246_v18 = vld [vmem:[#allocation6_spill] sm:$0xff]  ;;  %v19247_v30 = vld [vmem:[#allocation51_spill] sm:$0xff]  ;;  %vm6017_vm2 = vcmp.gt.f32.partialorder %v4395_v54, 0.0  ;;  %vm718_vm3 = vcmp.ne.f32.partialorder %v204_v21, 0.0 }
 0x192   :  { %v6531_v51 = vsel %vm6019_vm15, %v19246_v18, nan  ;;  %v6273_v48 = vsel %vm5761_vm0, %v19247_v30, nan  ;;  %8441 = vmatmul.mubr.msk.bf16.gmra.mrb[164].mxu0 %vm2337_vm1, %v19248_v32  ;;  %v8959_v45 = vld [vmem:[%s18608_s1 + $0x280] sm:$0xff]  ;;  %v461_v43 = vld [vmem:[%s18608_s1 + $0xde8] sm:$0xff]  ;;  %v19252_v30 = vld [vmem:[#allocation58_spill] sm:$0xff]  ;;  %vm719_vm4 = vcmp.ne.f32.partialorder %v205_v26, 0.0 }
 0x193   :  { %v14089_v6 = vmul.f32 %v8959_v45, %v10984_v15  ;;  %v460_v28 = vld [vmem:[%s18608_s1 + $0xde0] sm:$0xff]  ;;  %7043 = vst.msk [vmem:[%s18610_s3 + $0x9d8] sm:$0xff] %vm2337_vm1, %v6531_v51  ;;  %6785 = vst.msk [vmem:[%s18610_s3 + $0x1c8] sm:$0xff] %vm2337_vm1, %v6273_v48  ;;  %v19250_v54 = vld [vmem:[#allocation52_spill] sm:$0xff]  ;;  %v19253_v32 = vpack.c.bf16 %v13127_v19, %v19252_v30  ;;  %vm975_vm6 = vcmp.ne.f32.partialorder %v461_v43, 0.0 }
 0x194   :  { %v19249_v58 = vld [vmem:[#allocation59_spill] sm:$0xff]  ;;  %v19251_v18 = vpack.c.bf16 %v13034_v44, %v19250_v54  ;;  %v8961_v48 = vld [vmem:[%s18608_s1 + $0x298] sm:$0xff]  ;;  %v19255_v54 = vpack.c.bf16 %v13196_v2, %v13193_v4  ;;  %v14153_v4 = vsel %vm718_vm3, 1.0, %v18761_v59  ;;  %v14156_v2 = vsel %vm719_vm4, 1.0, %v18761_v59  ;;  %v19258_v43 = vld [vmem:[#allocation53_spill] sm:$0xff] }
 0x195   :  { %v6529_v63 = vsel %vm6017_vm2, %v19249_v58, nan  ;;  %8444 = vmatprep.mubr.msk.bf16.mxu0 %vm2337_vm1, %v19253_v32  ;;  %v8960_v51 = vld [vmem:[%s18608_s1 + $0xa80] sm:$0xff]  ;;  %v14124_v44 = vmul.f32 %v8961_v48, %v10984_v15  ;;  %v8962_v19 = vld [vmem:[%s18608_s1 + $0xa98] sm:$0xff]  ;;  %v8964_v32 = vld [vmem:[%s18608_s1 + $0xa88] sm:$0xff]  ;;  %vm974_vm5 = vcmp.ne.f32.partialorder %v460_v28, 0.0 }
 0x196   :  { %8697 = vmatmul.mubr.msk.bf16.gmra.mrb[164].mxu1 %vm2337_vm1, %v19251_v18  ;;  %v14118_v45 = vmul.f32 %v8960_v51, %v10984_v15  ;;  %v14130_v58 = vmul.f32 %v8962_v19, %v10984_v15  ;;  %7041 = vst.msk [vmem:[%s18610_s3 + $0x9c8] sm:$0xff] %vm2337_vm1, %v6529_v63  ;;  %v8963_v18 = vld [vmem:[%s18608_s1 + $0x288] sm:$0xff]  ;;  %v14150_v51 = vmul.f32 %v8964_v32, %v10984_v15  ;;  %v8338_v63 = vpop.f32.mrb[60].mxu0  ;;  %v206_v48 = vld [vmem:[%s18608_s1 + $0x5f0] sm:$0xff]  ;;  %v8594_v19 = vpop.f32.mrb[60].mxu1  ;;  %v14164_v26 = vsel %vm974_vm5, 1.0, %v18761_v59 }
 0x197   :  { %8700 = vmatprep.mubr.msk.bf16.mxu1 %vm2337_vm1, %v19255_v54  ;;  %v14144_v30 = vmul.f32 %v8963_v18, %v10984_v15  ;;  %vm5766_vm7 = vcmp.gt.f32.partialorder %v8338_v63, 0.0  ;;  %v3384_v54 = vpop.f32.mrb[61].mxu0  ;;  %v14167_v18 = vsel %vm975_vm6, 1.0, %v18761_v59  ;;  %v207_v28 = vld [vmem:[%s18608_s1 + $0x5f8] sm:$0xff]  ;;  %vm6022_vm8 = vcmp.gt.f32.partialorder %v8594_v19, 0.0  ;;  %v4408_v63 = vpop.f32.mrb[61].mxu1 }
 0x198   :  { %19254 = vst [vmem:[#allocation82_spill] sm:$0xff] %v14130_v58  ;;  %19257 = vst [vmem:[#allocation84_spill] sm:$0xff] %v14150_v51  ;;  %v6278_v32 = vsel %vm5766_vm7, %v19258_v43, nan  ;;  %vm5764_vm9 = vcmp.gt.f32.partialorder %v3384_v54, 0.0  ;;  %v8339_v11 = vpop.f32.mrb[62].mxu0  ;;  %v462_v21 = vld [vmem:[%s18608_s1 + $0xdf0] sm:$0xff] }
 0x199   :  { %19256 = vst [vmem:[#allocation83_spill] sm:$0xff] %v14144_v30  ;;  %6790 = vst.msk [vmem:[%s18610_s3 + $0x1f0] sm:$0xff] %vm2337_vm1, %v6278_v32  ;;  %v19259_v62 = vld [vmem:[#allocation54_spill] sm:$0xff]  ;;  %v19260_v30 = vld [vmem:[#allocation55_spill] sm:$0xff]  ;;  %vm6020_vm10 = vcmp.gt.f32.partialorder %v4408_v63, 0.0  ;;  %vm5767_vm11 = vcmp.gt.f32.partialorder %v8339_v11, 0.0 }
 0x19a   :  { %v6534_v51 = vsel %vm6022_vm8, %v19259_v62, nan  ;;  %v6276_v43 = vsel %vm5764_vm9, %v19260_v30, nan  ;;  %v8595_v19 = vpop.f32.mrb[62].mxu1  ;;  %v3387_v54 = vpop.f32.mrb[63].mxu0  ;;  %v19261_v52 = vld [vmem:[#allocation56_spill] sm:$0xff]  ;;  %v19262_v58 = vld [vmem:[#allocation57_spill] sm:$0xff] }
 0x19b   :  { %7046 = vst.msk [vmem:[%s18610_s3 + $0x9f0] sm:$0xff] %vm2337_vm1, %v6534_v51  ;;  %6788 = vst.msk [vmem:[%s18610_s3 + $0x1e0] sm:$0xff] %vm2337_vm1, %v6276_v43  ;;  %v6532_v32 = vsel %vm6020_vm10, %v19261_v52, nan  ;;  %v6279_v62 = vsel %vm5767_vm11, %v19262_v58, nan  ;;  %vm6023_vm12 = vcmp.gt.f32.partialorder %v8595_v19, 0.0  ;;  %vm5765_vm13 = vcmp.gt.f32.partialorder %v3387_v54, 0.0 }
 0x19c   :  { %v4411_v30 = vpop.f32.mrb[63].mxu1  ;;  %v463_v11 = vld [vmem:[%s18608_s1 + $0xdf8] sm:$0xff]  ;;  %7044 = vst.msk [vmem:[%s18610_s3 + $0x9e0] sm:$0xff] %vm2337_vm1, %v6532_v32  ;;  %6791 = vst.msk [vmem:[%s18610_s3 + $0x1f8] sm:$0xff] %vm2337_vm1, %v6279_v62  ;;  %v19263_v52 = vld [vmem:[#allocation8_spill] sm:$0xff]  ;;  %v19265_v43 = vpack.c.bf16 %v13212_v37, %v13209_v50  ;;  %vm720_vm15 = vcmp.ne.f32.partialorder %v206_v48, 0.0  ;;  %v19267_v32 = vpack.c.bf16 %v13226_v9, %v13215_v29  ;;  %v19268_v50 = vpack.c.bf16 %v13344_v36, %v13341_v14 }
 0x19d   :  { %v6535_v51 = vsel %vm6023_vm12, %v19263_v52, nan  ;;  %v19264_v58 = vld [vmem:[#allocation61_spill] sm:$0xff]  ;;  %vm6021_vm14 = vcmp.gt.f32.partialorder %v4411_v30, 0.0  ;;  %v19266_v19 = vld [vmem:[#allocation60_spill] sm:$0xff]  ;;  %vm721_vm0 = vcmp.ne.f32.partialorder %v207_v28, 0.0  ;;  %v14229_v37 = vsel %vm720_vm15, 1.0, %v18761_v59 }
 0x19e   :  { %v6277_v63 = vsel %vm5765_vm13, %v19264_v58, nan  ;;  %8445 = vmatmul.mubr.msk.bf16.gmra.mrb[168].mxu0 %vm2337_vm1, %v19265_v43  ;;  %7047 = vst.msk [vmem:[%s18610_s3 + $0x9f8] sm:$0xff] %vm2337_vm1, %v6535_v51  ;;  %v6533_v54 = vsel %vm6021_vm14, %v19266_v19, nan  ;;  %8701 = vmatmul.mubr.msk.bf16.gmra.mrb[168].mxu1 %vm2337_vm1, %v19267_v32  ;;  %vm976_vm2 = vcmp.ne.f32.partialorder %v462_v21, 0.0  ;;  %v19269_v29 = vpack.c.bf16 %v13355_v47, %v13352_v12  ;;  %v8965_v36 = vld [vmem:[%s18608_s1 + $0x2b0] sm:$0xff]  ;;  %v8342_v21 = vpop.f32.mrb[64].mxu0 }
 0x19f   :  { %6789 = vst.msk [vmem:[%s18610_s3 + $0x1e8] sm:$0xff] %vm2337_vm1, %v6277_v63  ;;  %8448 = vmatprep.mubr.msk.bf16.mxu0 %vm2337_vm1, %v19268_v50  ;;  %7045 = vst.msk [vmem:[%s18610_s3 + $0x9e8] sm:$0xff] %vm2337_vm1, %v6533_v54  ;;  %v14240_v9 = vsel %vm721_vm0, 1.0, %v18761_v59  ;;  %vm977_vm3 = vcmp.ne.f32.partialorder %v463_v11, 0.0  ;;  %v14243_v14 = vsel %vm976_vm2, 1.0, %v18761_v59  ;;  %v14249_v48 = vmul.f32 %v8965_v36, %v10984_v15  ;;  %v8966_v28 = vld [vmem:[%s18608_s1 + $0xab0] sm:$0xff] }
 0x1a0   :  { %8704 = vmatprep.mubr.msk.bf16.mxu1 %vm2337_vm1, %v19269_v29  ;;  %v14254_v47 = vsel %vm977_vm3, 1.0, %v18761_v59  ;;  %v14260_v62 = vmul.f32 %v8966_v28, %v10984_v15  ;;  %v8967_v30 = vld [vmem:[%s18608_s1 + $0x2a0] sm:$0xff]  ;;  %vm5770_vm4 = vcmp.gt.f32.partialorder %v8342_v21, 0.0  ;;  %v8598_v52 = vpop.f32.mrb[64].mxu1  ;;  %v3400_v51 = vpop.f32.mrb[65].mxu0  ;;  %v8969_v19 = vld [vmem:[%s18608_s1 + $0x2b8] sm:$0xff] }
 0x1a1   :  { %v14266_v11 = vmul.f32 %v8967_v30, %v10984_v15  ;;  %v8968_v63 = vld [vmem:[%s18608_s1 + $0xaa0] sm:$0xff]  ;;  %v14280_v54 = vmul.f32 %v8969_v19, %v10984_v15  ;;  %v209_v50 = vld [vmem:[%s18608_s1 + $0x608] sm:$0xff]  ;;  %vm6026_vm5 = vcmp.gt.f32.partialorder %v8598_v52, 0.0  ;;  %vm5768_vm6 = vcmp.gt.f32.partialorder %v3400_v51, 0.0  ;;  %v4424_v21 = vpop.f32.mrb[65].mxu1  ;;  %v8343_v28 = vpop.f32.mrb[66].mxu0 }
 0x1a2   :  { %v14274_v43 = vmul.f32 %v8968_v63, %v10984_v15  ;;  %v208_v32 = vld [vmem:[%s18608_s1 + $0x600] sm:$0xff]  ;;  %v19271_v29 = vld [vmem:[#allocation64_spill] sm:$0xff]  ;;  %v8970_v30 = vld [vmem:[%s18608_s1 + $0xab8] sm:$0xff]  ;;  %vm6024_vm7 = vcmp.gt.f32.partialorder %v4424_v21, 0.0  ;;  %vm5771_vm8 = vcmp.gt.f32.partialorder %v8343_v28, 0.0  ;;  %v8599_v12 = vpop.f32.mrb[66].mxu1 }
 0x1a3   :  { %19270 = vst [vmem:[#allocation85_spill] sm:$0xff] %v14280_v54  ;;  %v6282_v36 = vsel %vm5770_vm4, %v19271_v29, nan  ;;  %v14293_v63 = vmul.f32 %v8970_v30, %v10984_v15  ;;  %v464_v19 = vld [vmem:[%s18608_s1 + $0xe00] sm:$0xff]  ;;  %v19273_v52 = vld [vmem:[#allocation62_spill] sm:$0xff]  ;;  %v3403_v54 = vpop.f32.mrb[67].mxu0  ;;  %v19275_v30 = vld [vmem:[#allocation65_spill] sm:$0xff] }
 0x1a4   :  { %6794 = vst.msk [vmem:[%s18610_s3 + $0x210] sm:$0xff] %vm2337_vm1, %v6282_v36  ;;  %v6538_v51 = vsel %vm6026_vm5, %v19273_v52, nan  ;;  %v19274_v29 = vld [vmem:[#allocation63_spill] sm:$0xff]  ;;  %v6536_v36 = vsel %vm6024_vm7, %v19275_v30, nan  ;;  %vm6027_vm9 = vcmp.gt.f32.partialorder %v8599_v12, 0.0  ;;  %vm5769_vm10 = vcmp.gt.f32.partialorder %v3403_v54, 0.0 }
 0x1a5   :  { %19272 = vst [vmem:[#allocation17_spill] sm:$0xff] %v14293_v63  ;;  %v6280_v58 = vsel %vm5768_vm6, %v19274_v29, nan  ;;  %7050 = vst.msk [vmem:[%s18610_s3 + $0xa10] sm:$0xff] %vm2337_vm1, %v6538_v51  ;;  %v19276_v63 = vld [vmem:[#allocation66_spill] sm:$0xff]  ;;  %v4427_v21 = vpop.f32.mrb[67].mxu1  ;;  %v465_v28 = vld [vmem:[%s18608_s1 + $0xe08] sm:$0xff]  ;;  %v19279_v54 = vpack.c.bf16 %v13428_v49, %v13417_v3 }
 0x1a6   :  { %6792 = vst.msk [vmem:[%s18610_s3 + $0x200] sm:$0xff] %vm2337_vm1, %v6280_v58  ;;  %v6283_v52 = vsel %vm5771_vm8, %v19276_v63, nan  ;;  %7048 = vst.msk [vmem:[%s18610_s3 + $0xa00] sm:$0xff] %vm2337_vm1, %v6536_v36  ;;  %v19277_v58 = vld [vmem:[#allocation67_spill] sm:$0xff]  ;;  %v19278_v63 = vld [vmem:[#allocation68_spill] sm:$0xff]  ;;  %vm6025_vm11 = vcmp.gt.f32.partialorder %v4427_v21, 0.0  ;;  %v19282_v21 = vpack.c.bf16 %v13566_v5, %v13563_v38 }
 0x1a7   :  { %6795 = vst.msk [vmem:[%s18610_s3 + $0x218] sm:$0xff] %vm2337_vm1, %v6283_v52  ;;  %v6539_v51 = vsel %vm6027_vm9, %v19277_v58, nan  ;;  %v6281_v12 = vsel %vm5769_vm10, %v19278_v63, nan  ;;  %8449 = vmatmul.mubr.msk.bf16.gmra.mrb[172].mxu0 %vm2337_vm1, %v19279_v54  ;;  %v8971_v29 = vld [vmem:[%s18608_s1 + $0x2a8] sm:$0xff]  ;;  %v210_v36 = vld [vmem:[%s18608_s1 + $0x610] sm:$0xff]  ;;  %v19281_v52 = vpack.c.bf16 %v13442_v20, %v13431_v39  ;;  %vm722_vm12 = vcmp.ne.f32.partialorder %v208_v32, 0.0 }
 0x1a8   :  { %v14335_v30 = vmul.f32 %v8971_v29, %v10984_v15  ;;  %7051 = vst.msk [vmem:[%s18610_s3 + $0xa18] sm:$0xff] %vm2337_vm1, %v6539_v51  ;;  %6793 = vst.msk [vmem:[%s18610_s3 + $0x208] sm:$0xff] %vm2337_vm1, %v6281_v12  ;;  %v19280_v3 = vld [vmem:[#allocation69_spill] sm:$0xff]  ;;  %8452 = vmatprep.mubr.msk.bf16.mxu0 %vm2337_vm1, %v19282_v21  ;;  %v8972_v58 = vld [vmem:[%s18608_s1 + $0xaa8] sm:$0xff]  ;;  %vm723_vm13 = vcmp.ne.f32.partialorder %v209_v50, 0.0  ;;  %v19283_v20 = vpack.c.bf16 %v13574_v25, %v13571_v56  ;;  %v14375_v38 = vsel %vm722_vm12, 1.0, %v18761_v59 }
 0x1a9   :  { %v6537_v49 = vsel %vm6025_vm11, %v19280_v3, nan  ;;  %8705 = vmatmul.mubr.msk.bf16.gmra.mrb[172].mxu1 %vm2337_vm1, %v19281_v52  ;;  %v14361_v51 = vmul.f32 %v8972_v58, %v10984_v15  ;;  %v211_v39 = vld [vmem:[%s18608_s1 + $0x618] sm:$0xff]  ;;  %v14378_v5 = vsel %vm723_vm13, 1.0, %v18761_v59  ;;  %vm978_vm14 = vcmp.ne.f32.partialorder %v464_v19, 0.0  ;;  %v8346_v32 = vpop.f32.mrb[68].mxu0  ;;  %v8602_v56 = vpop.f32.mrb[68].mxu1 }
 0x1aa   :  { %7049 = vst.msk [vmem:[%s18610_s3 + $0xa08] sm:$0xff] %vm2337_vm1, %v6537_v49  ;;  %8708 = vmatprep.mubr.msk.bf16.mxu1 %vm2337_vm1, %v19283_v20  ;;  %vm979_vm15 = vcmp.ne.f32.partialorder %v465_v28, 0.0  ;;  %v14383_v63 = vsel %vm978_vm14, 1.0, %v18761_v59  ;;  %vm724_vm0 = vcmp.ne.f32.partialorder %v210_v36, 0.0  ;;  %vm5774_vm2 = vcmp.gt.f32.partialorder %v8346_v32, 0.0  ;;  %v3416_v25 = vpop.f32.mrb[69].mxu0 }
 0x1ab   :  { %v14386_v12 = vsel %vm979_vm15, 1.0, %v18761_v59  ;;  %vm725_vm3 = vcmp.ne.f32.partialorder %v211_v39, 0.0  ;;  %v14391_v19 = vsel %vm724_vm0, 1.0, %v18761_v59  ;;  %v466_v28 = vld [vmem:[%s18608_s1 + $0xe10] sm:$0xff]  ;;  %v467_v29 = vld [vmem:[%s18608_s1 + $0xe18] sm:$0xff]  ;;  %v6286_v36 = vsel %vm5774_vm2, %v13437_v61, nan }
 0x1ac   :  { %vm6030_vm4 = vcmp.gt.f32.partialorder %v8602_v56, 0.0  ;;  %vm5772_vm5 = vcmp.gt.f32.partialorder %v3416_v25, 0.0  ;;  %v4440_v3 = vpop.f32.mrb[69].mxu1  ;;  %v8347_v49 = vpop.f32.mrb[70].mxu0  ;;  %v14401_v52 = vsel %vm725_vm3, 1.0, %v18761_v59  ;;  %6798 = vst.msk [vmem:[%s18610_s3 + $0x230] sm:$0xff] %vm2337_vm1, %v6286_v36 }
 0x1ad   :  { %v19284_v21 = vld [vmem:[#allocation70_spill] sm:$0xff]  ;;  %vm6028_vm6 = vcmp.gt.f32.partialorder %v4440_v3, 0.0  ;;  %vm5775_vm7 = vcmp.gt.f32.partialorder %v8347_v49, 0.0  ;;  %v8603_v32 = vpop.f32.mrb[70].mxu1  ;;  %v3419_v61 = vpop.f32.mrb[71].mxu0  ;;  %v19286_v56 = vld [vmem:[#allocation71_spill] sm:$0xff] }
 0x1ae   :  { %v6542_v58 = vsel %vm6030_vm4, %v19284_v21, nan  ;;  %v19285_v39 = vld [vmem:[#allocation10_spill] sm:$0xff]  ;;  %v6540_v25 = vsel %vm6028_vm6, %v19286_v56, nan  ;;  %v19287_v36 = vld [vmem:[#allocation11_spill] sm:$0xff]  ;;  %vm6031_vm8 = vcmp.gt.f32.partialorder %v8603_v32, 0.0  ;;  %vm5773_vm9 = vcmp.gt.f32.partialorder %v3419_v61, 0.0 }
 0x1af   :  { %v6284_v20 = vsel %vm5772_vm5, %v19285_v39, nan  ;;  %7054 = vst.msk [vmem:[%s18610_s3 + $0xa30] sm:$0xff] %vm2337_vm1, %v6542_v58  ;;  %v6287_v21 = vsel %vm5775_vm7, %v19287_v36, nan  ;;  %v4443_v3 = vpop.f32.mrb[71].mxu1  ;;  %7052 = vst.msk [vmem:[%s18610_s3 + $0xa20] sm:$0xff] %vm2337_vm1, %v6540_v25  ;;  %v19288_v49 = vld [vmem:[#allocation9_spill] sm:$0xff] }
 0x1b0   :  { %6796 = vst.msk [vmem:[%s18610_s3 + $0x220] sm:$0xff] %vm2337_vm1, %v6284_v20  ;;  %6799 = vst.msk [vmem:[%s18610_s3 + $0x238] sm:$0xff] %vm2337_vm1, %v6287_v21  ;;  %v6543_v58 = vsel %vm6031_vm8, %v19288_v49, nan  ;;  %v6285_v39 = vsel %vm5773_vm9, %v13523_v8, nan  ;;  %vm6029_vm10 = vcmp.gt.f32.partialorder %v4443_v3, 0.0  ;;  %v19289_v20 = vpack.c.bf16 %v13589_v55, %v13579_v35  ;;  %v19290_v8 = vld [vmem:[#allocation12_spill] sm:$0xff] }
 0x1b1   :  { %7055 = vst.msk [vmem:[%s18610_s3 + $0xa38] sm:$0xff] %vm2337_vm1, %v6543_v58  ;;  %6797 = vst.msk [vmem:[%s18610_s3 + $0x228] sm:$0xff] %vm2337_vm1, %v6285_v39  ;;  %v6541_v61 = vsel %vm6029_vm10, %v19290_v8, nan  ;;  %v19291_v56 = vld [vmem:[#allocation72_spill] sm:$0xff]  ;;  %v19292_v25 = vld [vmem:[#allocation13_spill] sm:$0xff]  ;;  %v19294_v55 = vpack.c.bf16 %v13779_v31, %v13752_v22  ;;  %vm980_vm11 = vcmp.ne.f32.partialorder %v466_v28, 0.0  ;;  %v19295_v22 = vpack.c.bf16 %v13798_v46, %v13795_v16 }
 0x1b2   :  { %8453 = vmatmul.mubr.msk.bf16.gmra.mrb[176].mxu0 %vm2337_vm1, %v19289_v20  ;;  %v19293_v35 = vpack.c.bf16 %v19291_v56, %v19292_v25  ;;  %vm981_vm12 = vcmp.ne.f32.partialorder %v467_v29, 0.0  ;;  %v8973_v36 = vld [vmem:[%s18608_s1 + $0x2d0] sm:$0xff]  ;;  %v212_v3 = vld [vmem:[%s18608_s1 + $0x620] sm:$0xff]  ;;  %7053 = vst.msk [vmem:[%s18610_s3 + $0xa28] sm:$0xff] %vm2337_vm1, %v6541_v61  ;;  %v14470_v31 = vsel %vm980_vm11, 1.0, %v18761_v59  ;;  %v213_v46 = vld [vmem:[%s18608_s1 + $0x628] sm:$0xff] }
 0x1b3   :  { %8456 = vmatprep.mubr.msk.bf16.mxu0 %vm2337_vm1, %v19294_v55  ;;  %v14456_v21 = vmul.f32 %v8973_v36, %v10984_v15  ;;  %v14473_v28 = vsel %vm981_vm12, 1.0, %v18761_v59  ;;  %v8974_v29 = vld [vmem:[%s18608_s1 + $0xad0] sm:$0xff]  ;;  %v8975_v58 = vld [vmem:[%s18608_s1 + $0x2c0] sm:$0xff]  ;;  %v8350_v39 = vpop.f32.mrb[72].mxu0  ;;  %v8977_v56 = vld [vmem:[%s18608_s1 + $0x2d8] sm:$0xff]  ;;  %v8606_v36 = vpop.f32.mrb[72].mxu1 }
 0x1b4   :  { %8709 = vmatmul.mubr.msk.bf16.gmra.mrb[176].mxu1 %vm2337_vm1, %v19293_v35  ;;  %v14479_v49 = vmul.f32 %v8974_v29, %v10984_v15  ;;  %v14485_v16 = vmul.f32 %v8975_v58, %v10984_v15  ;;  %v8976_v8 = vld [vmem:[%s18608_s1 + $0xac0] sm:$0xff]  ;;  %v14502_v25 = vmul.f32 %v8977_v56, %v10984_v15  ;;  %v8978_v35 = vld [vmem:[%s18608_s1 + $0xad8] sm:$0xff]  ;;  %vm5778_vm13 = vcmp.gt.f32.partialorder %v8350_v39, 0.0  ;;  %v8979_v29 = vld [vmem:[%s18608_s1 + $0x2c8] sm:$0xff] }
 0x1b5   :  { %8712 = vmatprep.mubr.msk.bf16.mxu1 %vm2337_vm1, %v19295_v22  ;;  %v14496_v61 = vmul.f32 %v8976_v8, %v10984_v15  ;;  %v14508_v55 = vmul.f32 %v8978_v35, %v10984_v15  ;;  %v3432_v22 = vpop.f32.mrb[73].mxu0  ;;  %v14514_v58 = vmul.f32 %v8979_v29, %v10984_v15  ;;  %v8980_v8 = vld [vmem:[%s18608_s1 + $0xac8] sm:$0xff]  ;;  %vm726_vm14 = vcmp.ne.f32.partialorder %v212_v3, 0.0  ;;  %v468_v39 = vld [vmem:[%s18608_s1 + $0xe20] sm:$0xff]  ;;  %v19300_v20 = vld [vmem:[#allocation14_spill] sm:$0xff]  ;;  %v4456_v29 = vpop.f32.mrb[73].mxu1 }
 0x1b6   :  { %19296 = vst [vmem:[#allocation95_spill] sm:$0xff] %v14502_v25  ;;  %v14520_v56 = vmul.f32 %v8980_v8, %v10984_v15  ;;  %v469_v35 = vld [vmem:[%s18608_s1 + $0xe28] sm:$0xff]  ;;  %v6290_v32 = vsel %vm5778_vm13, %v19300_v20, nan  ;;  %vm6034_vm15 = vcmp.gt.f32.partialorder %v8606_v36, 0.0  ;;  %vm5776_vm0 = vcmp.gt.f32.partialorder %v3432_v22, 0.0  ;;  %v8351_v54 = vpop.f32.mrb[74].mxu0 }
 0x1b7   :  { %19297 = vst [vmem:[#allocation94_spill] sm:$0xff] %v14508_v55  ;;  %19298 = vst [vmem:[#allocation97_spill] sm:$0xff] %v14514_v58  ;;  %vm727_vm2 = vcmp.ne.f32.partialorder %v213_v46, 0.0  ;;  %v19301_v8 = vld [vmem:[#allocation73_spill] sm:$0xff]  ;;  %vm6032_vm3 = vcmp.gt.f32.partialorder %v4456_v29, 0.0  ;;  %vm5779_vm4 = vcmp.gt.f32.partialorder %v8351_v54, 0.0  ;;  %v19309_v3 = vpack.c.bf16 %v13846_v34, %v13809_v1 }
 0x1b8   :  { %19299 = vst [vmem:[#allocation96_spill] sm:$0xff] %v14520_v56  ;;  %6802 = vst.msk [vmem:[%s18610_s3 + $0x250] sm:$0xff] %vm2337_vm1, %v6290_v32  ;;  %v6546_v50 = vsel %vm6034_vm15, %v19301_v8, nan  ;;  %v19302_v56 = vld [vmem:[#allocation74_spill] sm:$0xff]  ;;  %v8607_v55 = vpop.f32.mrb[74].mxu1  ;;  %v3435_v25 = vpop.f32.mrb[75].mxu0  ;;  %v19311_v1 = vpack.c.bf16 %v14008_v40, %v14005_v10 }
 0x1b9   :  { %v6288_v58 = vsel %vm5776_vm0, %v19302_v56, nan  ;;  %7058 = vst.msk [vmem:[%s18610_s3 + $0xa50] sm:$0xff] %vm2337_vm1, %v6546_v50  ;;  %v19303_v20 = vld [vmem:[#allocation75_spill] sm:$0xff]  ;;  %v19304_v36 = vld [vmem:[#allocation77_spill] sm:$0xff]  ;;  %vm6035_vm5 = vcmp.gt.f32.partialorder %v8607_v55, 0.0  ;;  %vm5777_vm6 = vcmp.gt.f32.partialorder %v3435_v25, 0.0  ;;  %v19307_v25 = vpack.c.bf16 %v13806_v33, %v13803_v42 }
 0x1ba   :  { %6800 = vst.msk [vmem:[%s18610_s3 + $0x240] sm:$0xff] %vm2337_vm1, %v6288_v58  ;;  %v6544_v32 = vsel %vm6032_vm3, %v19303_v20, nan  ;;  %v6291_v22 = vsel %vm5779_vm4, %v19304_v36, nan  ;;  %v4459_v56 = vpop.f32.mrb[75].mxu1  ;;  %v214_v54 = vld [vmem:[%s18608_s1 + $0x630] sm:$0xff]  ;;  %v19305_v50 = vld [vmem:[#allocation76_spill] sm:$0xff]  ;;  %v19310_v36 = vpack.c.bf16 %v13939_v24, %v13936_v17 }
 0x1bb   :  { %7056 = vst.msk [vmem:[%s18610_s3 + $0xa40] sm:$0xff] %vm2337_vm1, %v6544_v32  ;;  %6803 = vst.msk [vmem:[%s18610_s3 + $0x258] sm:$0xff] %vm2337_vm1, %v6291_v22  ;;  %v6547_v58 = vsel %vm6035_vm5, %v19305_v50, nan  ;;  %v19306_v29 = vld [vmem:[#allocation78_spill] sm:$0xff]  ;;  %vm6033_vm7 = vcmp.gt.f32.partialorder %v4459_v56, 0.0  ;;  %8457 = vmatmul.mubr.msk.bf16.gmra.mrb[180].mxu0 %vm2337_vm1, %v19307_v25  ;;  %v14564_v8 = vsel %vm726_vm14, 1.0, %v18761_v59 }
 0x1bc   :  { %v6289_v55 = vsel %vm5777_vm6, %v19306_v29, nan  ;;  %v215_v20 = vld [vmem:[%s18608_s1 + $0x638] sm:$0xff]  ;;  %v470_v32 = vld [vmem:[%s18608_s1 + $0xe30] sm:$0xff]  ;;  %7059 = vst.msk [vmem:[%s18610_s3 + $0xa58] sm:$0xff] %vm2337_vm1, %v6547_v58  ;;  %v19308_v42 = vld [vmem:[#allocation16_spill] sm:$0xff]  ;;  %8713 = vmatmul.mubr.msk.bf16.gmra.mrb[180].mxu1 %vm2337_vm1, %v19309_v3  ;;  %8460 = vmatprep.mubr.msk.bf16.mxu0 %vm2337_vm1, %v19310_v36  ;;  %v14591_v22 = vsel %vm727_vm2, 1.0, %v18761_v59 }
 0x1bd   :  { %6801 = vst.msk [vmem:[%s18610_s3 + $0x248] sm:$0xff] %vm2337_vm1, %v6289_v55  ;;  %v6545_v33 = vsel %vm6033_vm7, %v19308_v42, nan  ;;  %vm982_vm8 = vcmp.ne.f32.partialorder %v468_v39, 0.0  ;;  %vm983_vm9 = vcmp.ne.f32.partialorder %v469_v35, 0.0  ;;  %v471_v56 = vld [vmem:[%s18608_s1 + $0xe38] sm:$0xff]  ;;  %8716 = vmatprep.mubr.msk.bf16.mxu1 %vm2337_vm1, %v19311_v1  ;;  %v2164_v34 = vpack.c.bf16 %v14591_v22, %v14564_v8  ;;  %v8354_v46 = vpop.f32.mrb[76].mxu0 }
 0x1be   :  { %7057 = vst.msk [vmem:[%s18610_s3 + $0xa48] sm:$0xff] %vm2337_vm1, %v6545_v33  ;;  %v14607_v17 = vsel %vm982_vm8, 1.0, %v18761_v59  ;;  %v14610_v24 = vsel %vm983_vm9, 1.0, %v18761_v59  ;;  %vm728_vm10 = vcmp.ne.f32.partialorder %v214_v54, 0.0  ;;  %vm729_vm11 = vcmp.ne.f32.partialorder %v215_v20, 0.0  ;;  %v8610_v10 = vpop.f32.mrb[76].mxu1 }
 0x1bf   :  { %v2292_v39 = vpack.c.bf16 %v14610_v24, %v14607_v17  ;;  %v14615_v35 = vsel %vm728_vm10, 1.0, %v18761_v59  ;;  %vm984_vm12 = vcmp.ne.f32.partialorder %v470_v32, 0.0  ;;  %vm5782_vm13 = vcmp.gt.f32.partialorder %v8354_v46, 0.0  ;;  %v3448_v40 = vpop.f32.mrb[77].mxu0  ;;  %v4472_v29 = vpop.f32.mrb[77].mxu1  ;;  %v19312_v33 = vld [vmem:[#allocation86_spill] sm:$0xff] }
 0x1c0   :  { %v14618_v50 = vsel %vm729_vm11, 1.0, %v18761_v59  ;;  %vm985_vm14 = vcmp.ne.f32.partialorder %v471_v56, 0.0  ;;  %v14621_v58 = vsel %vm984_vm12, 1.0, %v18761_v59  ;;  %v6294_v54 = vsel %vm5782_vm13, %v13877_v7, nan  ;;  %v8355_v55 = vpop.f32.mrb[78].mxu0  ;;  %v8611_v42 = vpop.f32.mrb[78].mxu1 }
 0x1c1   :  { %vm6038_vm15 = vcmp.gt.f32.partialorder %v8610_v10, 0.0  ;;  %vm5780_vm0 = vcmp.gt.f32.partialorder %v3448_v40, 0.0  ;;  %v2165_v25 = vpack.c.bf16 %v14618_v50, %v14615_v35  ;;  %6806 = vst.msk [vmem:[%s18610_s3 + $0x270] sm:$0xff] %vm2337_vm1, %v6294_v54  ;;  %vm6036_vm2 = vcmp.gt.f32.partialorder %v4472_v29, 0.0  ;;  %v3451_v7 = vpop.f32.mrb[79].mxu0  ;;  %v19313_v36 = vld [vmem:[#allocation15_spill] sm:$0xff] }
 0x1c2   :  { %v6550_v20 = vsel %vm6038_vm15, %v13883_v57, nan  ;;  %v6292_v32 = vsel %vm5780_vm0, %v13900_v23, nan  ;;  %vm5783_vm3 = vcmp.gt.f32.partialorder %v8355_v55, 0.0  ;;  %v6548_v3 = vsel %vm6036_vm2, %v19312_v33, nan  ;;  %v4475_v23 = vpop.f32.mrb[79].mxu1  ;;  %v19314_v1 = vld [vmem:[#allocation79_spill] sm:$0xff] }
 0x1c3   :  { %7062 = vst.msk [vmem:[%s18610_s3 + $0xa70] sm:$0xff] %vm2337_vm1, %v6550_v20  ;;  %6804 = vst.msk [vmem:[%s18610_s3 + $0x260] sm:$0xff] %vm2337_vm1, %v6292_v32  ;;  %v6295_v57 = vsel %vm5783_vm3, %v19313_v36, nan  ;;  %vm6039_vm4 = vcmp.gt.f32.partialorder %v8611_v42, 0.0  ;;  %vm5781_vm5 = vcmp.gt.f32.partialorder %v3451_v7, 0.0  ;;  %v19315_v10 = vld [vmem:[#allocation80_spill] sm:$0xff]  ;;  %v19316_v54 = vpack.c.bf16 %v14024_v60, %v14021_v0 }
 0x1c4   :  { %7060 = vst.msk [vmem:[%s18610_s3 + $0xa60] sm:$0xff] %vm2337_vm1, %v6548_v3  ;;  %6807 = vst.msk [vmem:[%s18610_s3 + $0x278] sm:$0xff] %vm2337_vm1, %v6295_v57  ;;  %v6551_v46 = vsel %vm6039_vm4, %v19314_v1, nan  ;;  %v6293_v40 = vsel %vm5781_vm5, %v19315_v10, nan  ;;  %vm6037_vm6 = vcmp.gt.f32.partialorder %v4475_v23, 0.0  ;;  %v14658_v29 = vsel %vm985_vm14, 1.0, %v18761_v59 }
 0x1c5   :  { %8461 = vmatmul.mubr.msk.bf16.gmra.mrb[184].mxu0 %vm2337_vm1, %v19316_v54  ;;  %v216_v55 = vld [vmem:[%s18608_s1 + $0x640] sm:$0xff]  ;;  %v217_v20 = vld [vmem:[%s18608_s1 + $0x648] sm:$0xff]  ;;  %7063 = vst.msk [vmem:[%s18610_s3 + $0xa78] sm:$0xff] %vm2337_vm1, %v6551_v46  ;;  %6805 = vst.msk [vmem:[%s18610_s3 + $0x268] sm:$0xff] %vm2337_vm1, %v6293_v40  ;;  %v19318_v56 = vpack.c.bf16 %v14038_v41, %v14027_v13  ;;  %v19319_v32 = vpack.c.bf16 %v14156_v2, %v14153_v4  ;;  %v2293_v42 = vpack.c.bf16 %v14658_v29, %v14621_v58  ;;  %v8358_v10 = vpop.f32.mrb[80].mxu0 }
 0x1c6   :  { %v19317_v0 = vld [vmem:[#allocation81_spill] sm:$0xff]  ;;  %v472_v4 = vld [vmem:[%s18608_s1 + $0xe40] sm:$0xff]  ;;  %v19320_v2 = vpack.c.bf16 %v14167_v18, %v14164_v26  ;;  %v8985_v26 = vld [vmem:[%s18608_s1 + $0x2f8] sm:$0xff]  ;;  %vm730_vm7 = vcmp.ne.f32.partialorder %v216_v55, 0.0  ;;  %vm731_vm8 = vcmp.ne.f32.partialorder %v217_v20, 0.0  ;;  %vm5786_vm9 = vcmp.gt.f32.partialorder %v8358_v10, 0.0 }
 0x1c7   :  { %v6549_v60 = vsel %vm6037_vm6, %v19317_v0, nan  ;;  %8717 = vmatmul.mubr.msk.bf16.gmra.mrb[184].mxu1 %vm2337_vm1, %v19318_v56  ;;  %8464 = vmatprep.mubr.msk.bf16.mxu0 %vm2337_vm1, %v19319_v32  ;;  %v8981_v7 = vld [vmem:[%s18608_s1 + $0x2f0] sm:$0xff]  ;;  %v8983_v3 = vld [vmem:[%s18608_s1 + $0x2e0] sm:$0xff]  ;;  %v14724_v18 = vmul.f32 %v8985_v26, %v10984_v15  ;;  %v8986_v1 = vld [vmem:[%s18608_s1 + $0xaf8] sm:$0xff]  ;;  %v8614_v32 = vpop.f32.mrb[80].mxu1  ;;  %vm986_vm10 = vcmp.ne.f32.partialorder %v472_v4, 0.0 }
 0x1c8   :  { %v14689_v33 = vmul.f32 %v8981_v7, %v10984_v15  ;;  %v8982_v13 = vld [vmem:[%s18608_s1 + $0xaf0] sm:$0xff]  ;;  %7061 = vst.msk [vmem:[%s18610_s3 + $0xa68] sm:$0xff] %vm2337_vm1, %v6549_v60  ;;  %8720 = vmatprep.mubr.msk.bf16.mxu1 %vm2337_vm1, %v19320_v2  ;;  %v14712_v36 = vmul.f32 %v8983_v3, %v10984_v15  ;;  %v8984_v57 = vld [vmem:[%s18608_s1 + $0xae0] sm:$0xff]  ;;  %v14730_v46 = vmul.f32 %v8986_v1, %v10984_v15  ;;  %v8987_v40 = vld [vmem:[%s18608_s1 + $0x2e8] sm:$0xff]  ;;  %v3464_v7 = vpop.f32.mrb[81].mxu0  ;;  %v14751_v2 = vsel %vm731_vm8, 1.0, %v18761_v59 }
 0x1c9   :  { %v14695_v41 = vmul.f32 %v8982_v13, %v10984_v15  ;;  %v14718_v23 = vmul.f32 %v8984_v57, %v10984_v15  ;;  %v14736_v54 = vmul.f32 %v8987_v40, %v10984_v15  ;;  %v8988_v0 = vld [vmem:[%s18608_s1 + $0xae8] sm:$0xff]  ;;  %v14748_v13 = vsel %vm730_vm7, 1.0, %v18761_v59  ;;  %v218_v3 = vld [vmem:[%s18608_s1 + $0x650] sm:$0xff]  ;;  %v4488_v20 = vpop.f32.mrb[81].mxu1  ;;  %v8359_v57 = vpop.f32.mrb[82].mxu0  ;;  %v219_v1 = vld [vmem:[%s18608_s1 + $0x658] sm:$0xff] }
 0x1ca   :  { %v14742_v60 = vmul.f32 %v8988_v0, %v10984_v15  ;;  %v473_v56 = vld [vmem:[%s18608_s1 + $0xe48] sm:$0xff]  ;;  %v6298_v55 = vsel %vm5786_vm9, %v14033_v27, nan  ;;  %vm6042_vm11 = vcmp.gt.f32.partialorder %v8614_v32, 0.0  ;;  %vm5784_vm12 = vcmp.gt.f32.partialorder %v3464_v7, 0.0  ;;  %v8615_v40 = vpop.f32.mrb[82].mxu1  ;;  %v3467_v0 = vpop.f32.mrb[83].mxu0 }
 0x1cb   :  { %v2166_v26 = vpack.c.bf16 %v14751_v2, %v14748_v13  ;;  %6810 = vst.msk [vmem:[%s18610_s3 + $0x290] sm:$0xff] %vm2337_vm1, %v6298_v55  ;;  %v6554_v10 = vsel %vm6042_vm11, %v14044_v53, nan  ;;  %v6296_v27 = vsel %vm5784_vm12, %v14089_v6, nan  ;;  %vm6040_vm13 = vcmp.gt.f32.partialorder %v4488_v20, 0.0  ;;  %v4491_v6 = vpop.f32.mrb[83].mxu1  ;;  %v474_v7 = vld [vmem:[%s18608_s1 + $0xe50] sm:$0xff] }
 0x1cc   :  { %vm5787_vm14 = vcmp.gt.f32.partialorder %v8359_v57, 0.0  ;;  %7066 = vst.msk [vmem:[%s18610_s3 + $0xa90] sm:$0xff] %vm2337_vm1, %v6554_v10  ;;  %6808 = vst.msk [vmem:[%s18610_s3 + $0x280] sm:$0xff] %vm2337_vm1, %v6296_v27  ;;  %v6552_v32 = vsel %vm6040_vm13, %v14118_v45, nan  ;;  %vm6043_vm15 = vcmp.gt.f32.partialorder %v8615_v40, 0.0  ;;  %vm5785_vm0 = vcmp.gt.f32.partialorder %v3467_v0, 0.0 }
 0x1cd   :  { %v6299_v53 = vsel %vm5787_vm14, %v14124_v44, nan  ;;  %7064 = vst.msk [vmem:[%s18610_s3 + $0xa80] sm:$0xff] %vm2337_vm1, %v6552_v32  ;;  %v19321_v45 = vld [vmem:[#allocation82_spill] sm:$0xff]  ;;  %v19322_v44 = vld [vmem:[#allocation83_spill] sm:$0xff]  ;;  %vm6041_vm2 = vcmp.gt.f32.partialorder %v4491_v6, 0.0  ;;  %v19323_v57 = vpack.c.bf16 %v14240_v9, %v14229_v37  ;;  %vm987_vm3 = vcmp.ne.f32.partialorder %v473_v56, 0.0 }
 0x1ce   :  { %6811 = vst.msk [vmem:[%s18610_s3 + $0x298] sm:$0xff] %vm2337_vm1, %v6299_v53  ;;  %v6555_v55 = vsel %vm6043_vm15, %v19321_v45, nan  ;;  %v6297_v20 = vsel %vm5785_vm0, %v19322_v44, nan  ;;  %v475_v10 = vld [vmem:[%s18608_s1 + $0xe58] sm:$0xff]  ;;  %v19324_v27 = vld [vmem:[#allocation84_spill] sm:$0xff]  ;;  %v19325_v37 = vpack.c.bf16 %v14254_v47, %v14243_v14  ;;  %v19326_v9 = vpack.c.bf16 %v14378_v5, %v14375_v38  ;;  %v8362_v5 = vpop.f32.mrb[84].mxu0 }
 0x1cf   :  { %8465 = vmatmul.mubr.msk.bf16.gmra.mrb[188].mxu0 %vm2337_vm1, %v19323_v57  ;;  %7067 = vst.msk [vmem:[%s18610_s3 + $0xa98] sm:$0xff] %vm2337_vm1, %v6555_v55  ;;  %6809 = vst.msk [vmem:[%s18610_s3 + $0x288] sm:$0xff] %vm2337_vm1, %v6297_v20  ;;  %v6553_v40 = vsel %vm6041_vm2, %v19324_v27, nan  ;;  %v14817_v56 = vsel %vm986_vm10, 1.0, %v18761_v59  ;;  %v14820_v0 = vsel %vm987_vm3, 1.0, %v18761_v59  ;;  %vm732_vm4 = vcmp.ne.f32.partialorder %v218_v3, 0.0 }
 0x1d0   :  { %8721 = vmatmul.mubr.msk.bf16.gmra.mrb[188].mxu1 %vm2337_vm1, %v19325_v37  ;;  %8468 = vmatprep.mubr.msk.bf16.mxu0 %vm2337_vm1, %v19326_v9  ;;  %7065 = vst.msk [vmem:[%s18610_s3 + $0xa88] sm:$0xff] %vm2337_vm1, %v6553_v40  ;;  %v19327_v14 = vpack.c.bf16 %v14386_v12, %v14383_v63  ;;  %v2294_v47 = vpack.c.bf16 %v14820_v0, %v14817_v56  ;;  %vm733_vm5 = vcmp.ne.f32.partialorder %v219_v1, 0.0  ;;  %v14833_v38 = vsel %vm732_vm4, 1.0, %v18761_v59  ;;  %v8989_v63 = vld [vmem:[%s18608_s1 + $0x310] sm:$0xff]  ;;  %v8618_v1 = vpop.f32.mrb[84].mxu1  ;;  %v3480_v32 = vpop.f32.mrb[85].mxu0 }
 0x1d1   :  { %vm988_vm6 = vcmp.ne.f32.partialorder %v474_v7, 0.0  ;;  %v14836_v4 = vsel %vm733_vm5, 1.0, %v18761_v59  ;;  %vm989_vm7 = vcmp.ne.f32.partialorder %v475_v10, 0.0  ;;  %v14845_v12 = vmul.f32 %v8989_v63, %v10984_v15  ;;  %v8990_v7 = vld [vmem:[%s18608_s1 + $0xb10] sm:$0xff]  ;;  %v4504_v44 = vpop.f32.mrb[85].mxu1  ;;  %v8363_v20 = vpop.f32.mrb[86].mxu0 }
 0x1d2   :  { %8724 = vmatprep.mubr.msk.bf16.mxu1 %vm2337_vm1, %v19327_v14  ;;  %v14839_v3 = vsel %vm988_vm6, 1.0, %v18761_v59  ;;  %vm5790_vm8 = vcmp.gt.f32.partialorder %v8362_v5, 0.0  ;;  %v2167_v53 = vpack.c.bf16 %v14836_v4, %v14833_v38  ;;  %v14850_v6 = vsel %vm989_vm7, 1.0, %v18761_v59  ;;  %v220_v10 = vld [vmem:[%s18608_s1 + $0x660] sm:$0xff]  ;;  %v8619_v40 = vpop.f32.mrb[86].mxu1  ;;  %v3483_v37 = vpop.f32.mrb[87].mxu0 }
 0x1d3   :  { %v14856_v45 = vmul.f32 %v8990_v7, %v10984_v15  ;;  %v6302_v55 = vsel %vm5790_vm8, %v14249_v48, nan  ;;  %vm6046_vm9 = vcmp.gt.f32.partialorder %v8618_v1, 0.0  ;;  %vm5788_vm10 = vcmp.gt.f32.partialorder %v3480_v32, 0.0  ;;  %v19328_v14 = vld [vmem:[#allocation85_spill] sm:$0xff]  ;;  %v221_v5 = vld [vmem:[%s18608_s1 + $0x668] sm:$0xff]  ;;  %v8991_v7 = vld [vmem:[%s18608_s1 + $0x300] sm:$0xff] }
 0x1d4   :  { %v2295_v57 = vpack.c.bf16 %v14850_v6, %v14839_v3  ;;  %6814 = vst.msk [vmem:[%s18610_s3 + $0x2b0] sm:$0xff] %vm2337_vm1, %v6302_v55  ;;  %v6558_v27 = vsel %vm6046_vm9, %v14260_v62, nan  ;;  %v6300_v48 = vsel %vm5788_vm10, %v14266_v11, nan  ;;  %vm6044_vm11 = vcmp.gt.f32.partialorder %v4504_v44, 0.0  ;;  %v4507_v11 = vpop.f32.mrb[87].mxu1  ;;  %v476_v44 = vld [vmem:[%s18608_s1 + $0xe60] sm:$0xff] }
 0x1d5   :  { %vm5791_vm12 = vcmp.gt.f32.partialorder %v8363_v20, 0.0  ;;  %7070 = vst.msk [vmem:[%s18610_s3 + $0xab0] sm:$0xff] %vm2337_vm1, %v6558_v27  ;;  %6812 = vst.msk [vmem:[%s18610_s3 + $0x2a0] sm:$0xff] %vm2337_vm1, %v6300_v48  ;;  %v6556_v9 = vsel %vm6044_vm11, %v14274_v43, nan  ;;  %vm6047_vm13 = vcmp.gt.f32.partialorder %v8619_v40, 0.0  ;;  %vm5789_vm14 = vcmp.gt.f32.partialorder %v3483_v37, 0.0 }
 0x1d6   :  { %v6303_v62 = vsel %vm5791_vm12, %v19328_v14, nan  ;;  %7068 = vst.msk [vmem:[%s18610_s3 + $0xaa0] sm:$0xff] %vm2337_vm1, %v6556_v9  ;;  %v19329_v43 = vld [vmem:[#allocation17_spill] sm:$0xff]  ;;  %v6301_v1 = vsel %vm5789_vm14, %v14335_v30, nan  ;;  %vm6045_vm15 = vcmp.gt.f32.partialorder %v4507_v11, 0.0  ;;  %v19330_v32 = vpack.c.bf16 %v14401_v52, %v14391_v19  ;;  %v477_v30 = vld [vmem:[%s18608_s1 + $0xe68] sm:$0xff] }
 0x1d7   :  { %6815 = vst.msk [vmem:[%s18610_s3 + $0x2b8] sm:$0xff] %vm2337_vm1, %v6303_v62  ;;  %v6559_v63 = vsel %vm6047_vm13, %v19329_v43, nan  ;;  %v14901_v55 = vmul.f32 %v8991_v7, %v10984_v15  ;;  %6813 = vst.msk [vmem:[%s18610_s3 + $0x2a8] sm:$0xff] %vm2337_vm1, %v6301_v1  ;;  %v6557_v19 = vsel %vm6045_vm15, %v14361_v51, nan  ;;  %v19331_v52 = vpack.c.bf16 %v14473_v28, %v14470_v31  ;;  %v8992_v20 = vld [vmem:[%s18608_s1 + $0xb00] sm:$0xff]  ;;  %v8993_v51 = vld [vmem:[%s18608_s1 + $0x318] sm:$0xff] }
 0x1d8   :  { %8469 = vmatmul.mubr.msk.bf16.gmra.mrb[192].mxu0 %vm2337_vm1, %v19330_v32  ;;  %7071 = vst.msk [vmem:[%s18610_s3 + $0xab8] sm:$0xff] %vm2337_vm1, %v6559_v63  ;;  %v14930_v27 = vmul.f32 %v8992_v20, %v10984_v15  ;;  %v14936_v31 = vmul.f32 %v8993_v51, %v10984_v15  ;;  %v8994_v28 = vld [vmem:[%s18608_s1 + $0xb18] sm:$0xff]  ;;  %7069 = vst.msk [vmem:[%s18610_s3 + $0xaa8] sm:$0xff] %vm2337_vm1, %v6557_v19  ;;  %v8995_v22 = vld [vmem:[%s18608_s1 + $0x308] sm:$0xff]  ;;  %vm734_vm0 = vcmp.ne.f32.partialorder %v220_v10, 0.0  ;;  %vm735_vm2 = vcmp.ne.f32.partialorder %v221_v5, 0.0 }
 0x1d9   :  { %8725 = vmatmul.mubr.msk.bf16.gmra.mrb[192].mxu1 %vm2337_vm1, %v19331_v52  ;;  %8472 = vmatprep.mubr.msk.bf16.mxu0 %vm2337_vm1, %v2164_v34  ;;  %v14942_v8 = vmul.f32 %v8994_v28, %v10984_v15  ;;  %v14956_v34 = vmul.f32 %v8995_v22, %v10984_v15  ;;  %v8996_v48 = vld [vmem:[%s18608_s1 + $0xb08] sm:$0xff]  ;;  %v8366_v37 = vpop.f32.mrb[88].mxu0  ;;  %v14965_v17 = vsel %vm734_vm0, 1.0, %v18761_v59  ;;  %v14968_v24 = vsel %vm735_vm2, 1.0, %v18761_v59  ;;  %v8622_v9 = vpop.f32.mrb[88].mxu1  ;;  %v223_v5 = vld [vmem:[%s18608_s1 + $0x678] sm:$0xff] }
 0x1da   :  { %8728 = vmatprep.mubr.msk.bf16.mxu1 %vm2337_vm1, %v2292_v39  ;;  %v14962_v40 = vmul.f32 %v8996_v48, %v10984_v15  ;;  %vm990_vm3 = vcmp.ne.f32.partialorder %v476_v44, 0.0  ;;  %vm991_vm4 = vcmp.ne.f32.partialorder %v477_v30, 0.0  ;;  %v222_v39 = vld [vmem:[%s18608_s1 + $0x670] sm:$0xff]  ;;  %vm5794_vm5 = vcmp.gt.f32.partialorder %v8366_v37, 0.0  ;;  %v3496_v14 = vpop.f32.mrb[89].mxu0  ;;  %v4520_v63 = vpop.f32.mrb[89].mxu1 }
 0x1db   :  { %v2168_v10 = vpack.c.bf16 %v14968_v24, %v14965_v17  ;;  %v14976_v62 = vsel %vm990_vm3, 1.0, %v18761_v59  ;;  %v14979_v11 = vsel %vm991_vm4, 1.0, %v18761_v59  ;;  %v6306_v43 = vsel %vm5794_vm5, %v14456_v21, nan  ;;  %v8367_v1 = vpop.f32.mrb[90].mxu0  ;;  %v478_v7 = vld [vmem:[%s18608_s1 + $0xe70] sm:$0xff]  ;;  %v8623_v30 = vpop.f32.mrb[90].mxu1 }
 0x1dc   :  { %vm6050_vm6 = vcmp.gt.f32.partialorder %v8622_v9, 0.0  ;;  %vm5792_vm7 = vcmp.gt.f32.partialorder %v3496_v14, 0.0  ;;  %v2296_v32 = vpack.c.bf16 %v14979_v11, %v14976_v62  ;;  %6818 = vst.msk [vmem:[%s18610_s3 + $0x2d0] sm:$0xff] %vm2337_vm1, %v6306_v43  ;;  %vm6048_vm8 = vcmp.gt.f32.partialorder %v4520_v63, 0.0  ;;  %v3499_v19 = vpop.f32.mrb[91].mxu0  ;;  %v19332_v20 = vld [vmem:[#allocation95_spill] sm:$0xff] }
 0x1dd   :  { %v6562_v44 = vsel %vm6050_vm6, %v14479_v49, nan  ;;  %v6304_v21 = vsel %vm5792_vm7, %v14485_v16, nan  ;;  %vm5795_vm9 = vcmp.gt.f32.partialorder %v8367_v1, 0.0  ;;  %v6560_v52 = vsel %vm6048_vm8, %v14496_v61, nan  ;;  %v4523_v16 = vpop.f32.mrb[91].mxu1  ;;  %v479_v51 = vld [vmem:[%s18608_s1 + $0xe78] sm:$0xff] }
 0x1de   :  { %7074 = vst.msk [vmem:[%s18610_s3 + $0xad0] sm:$0xff] %vm2337_vm1, %v6562_v44  ;;  %6816 = vst.msk [vmem:[%s18610_s3 + $0x2c0] sm:$0xff] %vm2337_vm1, %v6304_v21  ;;  %v6307_v49 = vsel %vm5795_vm9, %v19332_v20, nan  ;;  %vm6051_vm10 = vcmp.gt.f32.partialorder %v8623_v30, 0.0  ;;  %vm5793_vm11 = vcmp.gt.f32.partialorder %v3499_v19, 0.0  ;;  %v19333_v61 = vld [vmem:[#allocation94_spill] sm:$0xff] }
 0x1df   :  { %7072 = vst.msk [vmem:[%s18610_s3 + $0xac0] sm:$0xff] %vm2337_vm1, %v6560_v52  ;;  %6819 = vst.msk [vmem:[%s18610_s3 + $0x2d8] sm:$0xff] %vm2337_vm1, %v6307_v49  ;;  %v6563_v28 = vsel %vm6051_vm10, %v19333_v61, nan  ;;  %v19334_v22 = vld [vmem:[#allocation97_spill] sm:$0xff]  ;;  %vm6049_vm12 = vcmp.gt.f32.partialorder %v4523_v16, 0.0  ;;  %vm736_vm13 = vcmp.ne.f32.partialorder %v222_v39, 0.0 }
 0x1e0   :  { %v6305_v48 = vsel %vm5793_vm11, %v19334_v22, nan  ;;  %8473 = vmatmul.mubr.msk.bf16.gmra.mrb[196].mxu0 %vm2337_vm1, %v2165_v25  ;;  %7075 = vst.msk [vmem:[%s18610_s3 + $0xad8] sm:$0xff] %vm2337_vm1, %v6563_v28  ;;  %v19335_v37 = vld [vmem:[#allocation96_spill] sm:$0xff]  ;;  %vm737_vm14 = vcmp.ne.f32.partialorder %v223_v5, 0.0  ;;  %v15041_v35 = vsel %vm736_vm13, 1.0, %v18761_v59  ;;  %vm992_vm15 = vcmp.ne.f32.partialorder %v478_v7, 0.0 }
 0x1e1   :  { %6817 = vst.msk [vmem:[%s18610_s3 + $0x2c8] sm:$0xff] %vm2337_vm1, %v6305_v48  ;;  %v6561_v9 = vsel %vm6049_vm12, %v19335_v37, nan  ;;  %8729 = vmatmul.mubr.msk.bf16.gmra.mrb[196].mxu1 %vm2337_vm1, %v2293_v42  ;;  %8476 = vmatprep.mubr.msk.bf16.mxu0 %vm2337_vm1, %v2166_v26  ;;  %v15052_v50 = vsel %vm737_vm14, 1.0, %v18761_v59  ;;  %vm993_vm0 = vcmp.ne.f32.partialorder %v479_v51, 0.0  ;;  %v15055_v58 = vsel %vm992_vm15, 1.0, %v18761_v59  ;;  %v8997_v25 = vld [vmem:[%s18608_s1 + $0x330] sm:$0xff] }
 0x1e2   :  { %7073 = vst.msk [vmem:[%s18610_s3 + $0xac8] sm:$0xff] %vm2337_vm1, %v6561_v9  ;;  %8732 = vmatprep.mubr.msk.bf16.mxu1 %vm2337_vm1, %v2294_v47  ;;  %v15061_v29 = vmul.f32 %v8997_v25, %v10984_v15  ;;  %v8370_v42 = vpop.f32.mrb[92].mxu0  ;;  %v2169_v13 = vpack.c.bf16 %v15052_v50, %v15041_v35  ;;  %v15066_v2 = vsel %vm993_vm0, 1.0, %v18761_v59  ;;  %v8998_v26 = vld [vmem:[%s18608_s1 + $0xb30] sm:$0xff]  ;;  %v8999_v0 = vld [vmem:[%s18608_s1 + $0x320] sm:$0xff]  ;;  %v8626_v39 = vpop.f32.mrb[92].mxu1 }
 0x1e3   :  { %v15072_v56 = vmul.f32 %v8998_v26, %v10984_v15  ;;  %v15078_v47 = vmul.f32 %v8999_v0, %v10984_v15  ;;  %vm5798_vm2 = vcmp.gt.f32.partialorder %v8370_v42, 0.0  ;;  %v3512_v14 = vpop.f32.mrb[93].mxu0  ;;  %v2297_v5 = vpack.c.bf16 %v15066_v2, %v15055_v58  ;;  %v9000_v43 = vld [vmem:[%s18608_s1 + $0xb20] sm:$0xff]  ;;  %v9001_v1 = vld [vmem:[%s18608_s1 + $0x338] sm:$0xff]  ;;  %v225_v21 = vld [vmem:[%s18608_s1 + $0x688] sm:$0xff]  ;;  %v4536_v19 = vpop.f32.mrb[93].mxu1 }
 0x1e4   :  { %v15086_v63 = vmul.f32 %v9000_v43, %v10984_v15  ;;  %v15092_v7 = vmul.f32 %v9001_v1, %v10984_v15  ;;  %v224_v44 = vld [vmem:[%s18608_s1 + $0x680] sm:$0xff]  ;;  %v6310_v30 = vsel %vm5798_vm2, %v14689_v33, nan  ;;  %vm6054_vm3 = vcmp.gt.f32.partialorder %v8626_v39, 0.0  ;;  %v8371_v52 = vpop.f32.mrb[94].mxu0  ;;  %v9002_v20 = vld [vmem:[%s18608_s1 + $0xb38] sm:$0xff]  ;;  %v8627_v61 = vpop.f32.mrb[94].mxu1 }
 0x1e5   :  { %vm5796_vm4 = vcmp.gt.f32.partialorder %v3512_v14, 0.0  ;;  %v15105_v49 = vmul.f32 %v9002_v20, %v10984_v15  ;;  %v480_v16 = vld [vmem:[%s18608_s1 + $0xe80] sm:$0xff]  ;;  %6822 = vst.msk [vmem:[%s18610_s3 + $0x2f0] sm:$0xff] %vm2337_vm1, %v6310_v30  ;;  %v6566_v33 = vsel %vm6054_vm3, %v14695_v41, nan  ;;  %vm6052_vm5 = vcmp.gt.f32.partialorder %v4536_v19, 0.0  ;;  %v3515_v28 = vpop.f32.mrb[95].mxu0 }
 0x1e6   :  { %v6308_v51 = vsel %vm5796_vm4, %v14712_v36, nan  ;;  %vm5799_vm6 = vcmp.gt.f32.partialorder %v8371_v52, 0.0  ;;  %7078 = vst.msk [vmem:[%s18610_s3 + $0xaf0] sm:$0xff] %vm2337_vm1, %v6566_v33  ;;  %v6564_v22 = vsel %vm6052_vm5, %v14718_v23, nan  ;;  %vm6055_vm7 = vcmp.gt.f32.partialorder %v8627_v61, 0.0  ;;  %v4539_v36 = vpop.f32.mrb[95].mxu1 }
 0x1e7   :  { %6820 = vst.msk [vmem:[%s18610_s3 + $0x2e0] sm:$0xff] %vm2337_vm1, %v6308_v51  ;;  %v6311_v41 = vsel %vm5799_vm6, %v14724_v18, nan  ;;  %vm5797_vm8 = vcmp.gt.f32.partialorder %v3515_v28, 0.0  ;;  %v481_v48 = vld [vmem:[%s18608_s1 + $0xe88] sm:$0xff]  ;;  %7076 = vst.msk [vmem:[%s18610_s3 + $0xae0] sm:$0xff] %vm2337_vm1, %v6564_v22  ;;  %v6567_v23 = vsel %vm6055_vm7, %v14730_v46, nan }
 0x1e8   :  { %6823 = vst.msk [vmem:[%s18610_s3 + $0x2f8] sm:$0xff] %vm2337_vm1, %v6311_v41  ;;  %v6309_v18 = vsel %vm5797_vm8, %v14736_v54, nan  ;;  %vm6053_vm9 = vcmp.gt.f32.partialorder %v4539_v36, 0.0  ;;  %8477 = vmatmul.mubr.msk.bf16.gmra.mrb[200].mxu0 %vm2337_vm1, %v2167_v53  ;;  %v9003_v37 = vld [vmem:[%s18608_s1 + $0x328] sm:$0xff]  ;;  %v226_v25 = vld [vmem:[%s18608_s1 + $0x690] sm:$0xff]  ;;  %7079 = vst.msk [vmem:[%s18610_s3 + $0xaf8] sm:$0xff] %vm2337_vm1, %v6567_v23 }
 0x1e9   :  { %v15147_v9 = vmul.f32 %v9003_v37, %v10984_v15  ;;  %6821 = vst.msk [vmem:[%s18610_s3 + $0x2e8] sm:$0xff] %vm2337_vm1, %v6309_v18  ;;  %v6565_v46 = vsel %vm6053_vm9, %v14742_v60, nan  ;;  %8733 = vmatmul.mubr.msk.bf16.gmra.mrb[200].mxu1 %vm2337_vm1, %v2295_v57  ;;  %8480 = vmatprep.mubr.msk.bf16.mxu0 %vm2337_vm1, %v2168_v10  ;;  %v9004_v54 = vld [vmem:[%s18608_s1 + $0xb28] sm:$0xff]  ;;  %vm738_vm10 = vcmp.ne.f32.partialorder %v224_v44, 0.0  ;;  %vm739_vm11 = vcmp.ne.f32.partialorder %v225_v21, 0.0  ;;  %v227_v60 = vld [vmem:[%s18608_s1 + $0x698] sm:$0xff] }
 0x1ea   :  { %v15173_v38 = vmul.f32 %v9004_v54, %v10984_v15  ;;  %7077 = vst.msk [vmem:[%s18610_s3 + $0xae8] sm:$0xff] %vm2337_vm1, %v6565_v46  ;;  %8736 = vmatprep.mubr.msk.bf16.mxu1 %vm2337_vm1, %v2296_v32  ;;  %v7452_v4 = vsel %vm738_vm10, 1.0, %v18761_v59  ;;  %v7453_v3 = vsel %vm739_vm11, 1.0, %v18761_v59  ;;  %vm994_vm12 = vcmp.ne.f32.partialorder %v480_v16, 0.0  ;;  %v8374_v53 = vpop.f32.mrb[96].mxu0  ;;  %v8630_v24 = vpop.f32.mrb[96].mxu1 }
 0x1eb   :  { %vm995_vm13 = vcmp.ne.f32.partialorder %v481_v48, 0.0  ;;  %v2170_v6 = vpack.c.bf16 %v7453_v3, %v7452_v4  ;;  %v7708_v57 = vsel %vm994_vm12, 1.0, %v18761_v59  ;;  %vm740_vm14 = vcmp.ne.f32.partialorder %v226_v25, 0.0  ;;  %v3528_v10 = vpop.f32.mrb[97].mxu0  ;;  %v482_v11 = vld [vmem:[%s18608_s1 + $0xe90] sm:$0xff]  ;;  %v483_v32 = vld [vmem:[%s18608_s1 + $0xe98] sm:$0xff] }
 0x1ec   :  { %v7709_v17 = vsel %vm995_vm13, 1.0, %v18761_v59  ;;  %vm5802_vm15 = vcmp.gt.f32.partialorder %v8374_v53, 0.0  ;;  %vm741_vm0 = vcmp.ne.f32.partialorder %v227_v60, 0.0  ;;  %v15191_v62 = vsel %vm740_vm14, 1.0, %v18761_v59  ;;  %v4552_v0 = vpop.f32.mrb[97].mxu1  ;;  %v8375_v39 = vpop.f32.mrb[98].mxu0 }
 0x1ed   :  { %v2298_v42 = vpack.c.bf16 %v7709_v17, %v7708_v57  ;;  %v6314_v26 = vsel %vm5802_vm15, %v14845_v12, nan  ;;  %vm6058_vm2 = vcmp.gt.f32.partialorder %v8630_v24, 0.0  ;;  %vm5800_vm3 = vcmp.gt.f32.partialorder %v3528_v10, 0.0  ;;  %v8631_v44 = vpop.f32.mrb[98].mxu1  ;;  %v3531_v12 = vpop.f32.mrb[99].mxu0  ;;  %v9006_v58 = vld [vmem:[%s18608_s1 + $0xb50] sm:$0xff] }
 0x1ee   :  { %v15201_v14 = vsel %vm741_vm0, 1.0, %v18761_v59  ;;  %6826 = vst.msk [vmem:[%s18610_s3 + $0x310] sm:$0xff] %vm2337_vm1, %v6314_v26  ;;  %v6570_v43 = vsel %vm6058_vm2, %v14856_v45, nan  ;;  %v6312_v1 = vsel %vm5800_vm3, %v14901_v55, nan  ;;  %vm6056_vm4 = vcmp.gt.f32.partialorder %v4552_v0, 0.0  ;;  %v4555_v55 = vpop.f32.mrb[99].mxu1 }
 0x1ef   :  { %vm5803_vm5 = vcmp.gt.f32.partialorder %v8375_v39, 0.0  ;;  %7082 = vst.msk [vmem:[%s18610_s3 + $0xb10] sm:$0xff] %vm2337_vm1, %v6570_v43  ;;  %6824 = vst.msk [vmem:[%s18610_s3 + $0x300] sm:$0xff] %vm2337_vm1, %v6312_v1  ;;  %v6568_v21 = vsel %vm6056_vm4, %v14930_v27, nan  ;;  %vm6059_vm6 = vcmp.gt.f32.partialorder %v8631_v44, 0.0  ;;  %vm5801_vm7 = vcmp.gt.f32.partialorder %v3531_v12, 0.0 }
 0x1f0   :  { %v6315_v45 = vsel %vm5803_vm5, %v14936_v31, nan  ;;  %7080 = vst.msk [vmem:[%s18610_s3 + $0xb00] sm:$0xff] %vm2337_vm1, %v6568_v21  ;;  %v6571_v30 = vsel %vm6059_vm6, %v14942_v8, nan  ;;  %v6313_v19 = vsel %vm5801_vm7, %v14956_v34, nan  ;;  %vm6057_vm8 = vcmp.gt.f32.partialorder %v4555_v55, 0.0  ;;  %8481 = vmatmul.mubr.msk.bf16.gmra.mrb[204].mxu0 %vm2337_vm1, %v2169_v13  ;;  %v9005_v8 = vld [vmem:[%s18608_s1 + $0x350] sm:$0xff] }
 0x1f1   :  { %6827 = vst.msk [vmem:[%s18610_s3 + $0x318] sm:$0xff] %vm2337_vm1, %v6315_v45  ;;  %v2171_v27 = vpack.c.bf16 %v15201_v14, %v15191_v62  ;;  %7083 = vst.msk [vmem:[%s18610_s3 + $0xb18] sm:$0xff] %vm2337_vm1, %v6571_v30  ;;  %v6569_v31 = vsel %vm6057_vm8, %v14962_v40, nan  ;;  %8737 = vmatmul.mubr.msk.bf16.gmra.mrb[204].mxu1 %vm2337_vm1, %v2297_v5  ;;  %8484 = vmatprep.mubr.msk.bf16.mxu0 %vm2337_vm1, %v2170_v6  ;;  %vm996_vm9 = vcmp.ne.f32.partialorder %v482_v11, 0.0  ;;  %vm997_vm10 = vcmp.ne.f32.partialorder %v483_v32, 0.0  ;;  %v228_v40 = vld [vmem:[%s18608_s1 + $0x6a0] sm:$0xff] }
 0x1f2   :  { %6825 = vst.msk [vmem:[%s18610_s3 + $0x308] sm:$0xff] %vm2337_vm1, %v6313_v19  ;;  %v15253_v34 = vmul.f32 %v9005_v8, %v10984_v15  ;;  %7081 = vst.msk [vmem:[%s18610_s3 + $0xb08] sm:$0xff] %vm2337_vm1, %v6569_v31  ;;  %8740 = vmatprep.mubr.msk.bf16.mxu1 %vm2337_vm1, %v2298_v42  ;;  %v7710_v35 = vsel %vm996_vm9, 1.0, %v18761_v59  ;;  %v7711_v50 = vsel %vm997_vm10, 1.0, %v18761_v59  ;;  %v15269_v13 = vmul.f32 %v9006_v58, %v10984_v15  ;;  %v9007_v2 = vld [vmem:[%s18608_s1 + $0x340] sm:$0xff]  ;;  %v229_v52 = vld [vmem:[%s18608_s1 + $0x6a8] sm:$0xff] }
 0x1f3   :  { %v15275_v5 = vmul.f32 %v9007_v2, %v10984_v15  ;;  %v8378_v20 = vpop.f32.mrb[100].mxu0  ;;  %v2299_v16 = vpack.c.bf16 %v7711_v50, %v7710_v35  ;;  %v9008_v33 = vld [vmem:[%s18608_s1 + $0xb40] sm:$0xff]  ;;  %v9009_v61 = vld [vmem:[%s18608_s1 + $0x358] sm:$0xff]  ;;  %v8634_v36 = vpop.f32.mrb[100].mxu1  ;;  %v9011_v23 = vld [vmem:[%s18608_s1 + $0x348] sm:$0xff]  ;;  %vm742_vm12 = vcmp.ne.f32.partialorder %v228_v40, 0.0 }
 0x1f4   :  { %v15284_v51 = vmul.f32 %v9008_v33, %v10984_v15  ;;  %v15290_v28 = vmul.f32 %v9009_v61, %v10984_v15  ;;  %v9010_v22 = vld [vmem:[%s18608_s1 + $0xb58] sm:$0xff]  ;;  %vm5806_vm11 = vcmp.gt.f32.partialorder %v8378_v20, 0.0  ;;  %v3544_v48 = vpop.f32.mrb[101].mxu0  ;;  %v15302_v18 = vmul.f32 %v9011_v23, %v10984_v15  ;;  %v9012_v37 = vld [vmem:[%s18608_s1 + $0xb48] sm:$0xff]  ;;  %v484_v46 = vld [vmem:[%s18608_s1 + $0xea0] sm:$0xff]  ;;  %v4568_v4 = vpop.f32.mrb[101].mxu1 }
 0x1f5   :  { %v15296_v41 = vmul.f32 %v9010_v22, %v10984_v15  ;;  %v15308_v25 = vmul.f32 %v9012_v37, %v10984_v15  ;;  %v485_v54 = vld [vmem:[%s18608_s1 + $0xea8] sm:$0xff]  ;;  %v6318_v60 = vsel %vm5806_vm11, %v15061_v29, nan  ;;  %vm6062_vm13 = vcmp.gt.f32.partialorder %v8634_v36, 0.0  ;;  %v8379_v3 = vpop.f32.mrb[102].mxu0  ;;  %v8635_v57 = vpop.f32.mrb[102].mxu1  ;;  %v230_v24 = vld [vmem:[%s18608_s1 + $0x6b0] sm:$0xff] }
 0x1f6   :  { %vm5804_vm14 = vcmp.gt.f32.partialorder %v3544_v48, 0.0  ;;  %vm743_vm15 = vcmp.ne.f32.partialorder %v229_v52, 0.0  ;;  %6830 = vst.msk [vmem:[%s18610_s3 + $0x330] sm:$0xff] %vm2337_vm1, %v6318_v60  ;;  %v6574_v53 = vsel %vm6062_vm13, %v15072_v56, nan  ;;  %vm6060_vm0 = vcmp.gt.f32.partialorder %v4568_v4, 0.0  ;;  %v3547_v17 = vpop.f32.mrb[103].mxu0 }
 0x1f7   :  { %v6316_v6 = vsel %vm5804_vm14, %v15078_v47, nan  ;;  %vm5807_vm2 = vcmp.gt.f32.partialorder %v8379_v3, 0.0  ;;  %7086 = vst.msk [vmem:[%s18610_s3 + $0xb30] sm:$0xff] %vm2337_vm1, %v6574_v53  ;;  %v6572_v29 = vsel %vm6060_vm0, %v15086_v63, nan  ;;  %vm6063_vm3 = vcmp.gt.f32.partialorder %v8635_v57, 0.0  ;;  %v4571_v47 = vpop.f32.mrb[103].mxu1 }
 0x1f8   :  { %6828 = vst.msk [vmem:[%s18610_s3 + $0x320] sm:$0xff] %vm2337_vm1, %v6316_v6  ;;  %v6319_v56 = vsel %vm5807_vm2, %v15092_v7, nan  ;;  %vm5805_vm4 = vcmp.gt.f32.partialorder %v3547_v17, 0.0  ;;  %7084 = vst.msk [vmem:[%s18610_s3 + $0xb20] sm:$0xff] %vm2337_vm1, %v6572_v29  ;;  %v6575_v63 = vsel %vm6063_vm3, %v15105_v49, nan  ;;  %vm6061_vm5 = vcmp.gt.f32.partialorder %v4571_v47, 0.0  ;;  %8485 = vmatmul.mubr.msk.bf16.gmra.mrb[208].mxu0 %vm2337_vm1, %v2171_v27 }
 0x1f9   :  { %6831 = vst.msk [vmem:[%s18610_s3 + $0x338] sm:$0xff] %vm2337_vm1, %v6319_v56  ;;  %v6317_v7 = vsel %vm5805_vm4, %v15147_v9, nan  ;;  %v7456_v10 = vsel %vm742_vm12, 1.0, %v18761_v59  ;;  %v231_v42 = vld [vmem:[%s18608_s1 + $0x6b8] sm:$0xff]  ;;  %v486_v11 = vld [vmem:[%s18608_s1 + $0xeb0] sm:$0xff]  ;;  %7087 = vst.msk [vmem:[%s18610_s3 + $0xb38] sm:$0xff] %vm2337_vm1, %v6575_v63  ;;  %8741 = vmatmul.mubr.msk.bf16.gmra.mrb[208].mxu1 %vm2337_vm1, %v2299_v16 }
 0x1fa   :  { %6829 = vst.msk [vmem:[%s18610_s3 + $0x328] sm:$0xff] %vm2337_vm1, %v6317_v7  ;;  %v6573_v49 = vsel %vm6061_vm5, %v15173_v38, nan  ;;  %v7457_v9 = vsel %vm743_vm15, 1.0, %v18761_v59  ;;  %vm998_vm6 = vcmp.ne.f32.partialorder %v484_v46, 0.0  ;;  %vm999_vm7 = vcmp.ne.f32.partialorder %v485_v54, 0.0  ;;  %v487_v62 = vld [vmem:[%s18608_s1 + $0xeb8] sm:$0xff] }
 0x1fb   :  { %7085 = vst.msk [vmem:[%s18610_s3 + $0xb28] sm:$0xff] %vm2337_vm1, %v6573_v49  ;;  %v2172_v32 = vpack.c.bf16 %v7457_v9, %v7456_v10  ;;  %v7712_v26 = vsel %vm998_vm6, 1.0, %v18761_v59  ;;  %v7713_v38 = vsel %vm999_vm7, 1.0, %v18761_v59  ;;  %vm744_vm8 = vcmp.ne.f32.partialorder %v230_v24, 0.0  ;;  %v8382_v0 = vpop.f32.mrb[104].mxu0  ;;  %v8638_v43 = vpop.f32.mrb[104].mxu1 }
 0x1fc   :  { %v2300_v39 = vpack.c.bf16 %v7713_v38, %v7712_v26  ;;  %vm745_vm9 = vcmp.ne.f32.partialorder %v231_v42, 0.0  ;;  %v7458_v14 = vsel %vm744_vm8, 1.0, %v18761_v59  ;;  %vm1000_vm10 = vcmp.ne.f32.partialorder %v486_v11, 0.0  ;;  %v3560_v1 = vpop.f32.mrb[105].mxu0  ;;  %v4584_v45 = vpop.f32.mrb[105].mxu1  ;;  %v232_v2 = vld [vmem:[%s18608_s1 + $0x6c0] sm:$0xff] }
 0x1fd   :  { %vm5810_vm11 = vcmp.gt.f32.partialorder %v8382_v0, 0.0  ;;  %8488 = vmatprep.mubr.msk.bf16.mxu0 %vm2337_vm1, %v2172_v32  ;;  %v7459_v44 = vsel %vm745_vm9, 1.0, %v18761_v59  ;;  %vm1001_vm12 = vcmp.ne.f32.partialorder %v487_v62, 0.0  ;;  %v7714_v12 = vsel %vm1000_vm10, 1.0, %v18761_v59  ;;  %v8383_v55 = vpop.f32.mrb[106].mxu0  ;;  %v8639_v31 = vpop.f32.mrb[106].mxu1 }
 0x1fe   :  { %v6322_v21 = vsel %vm5810_vm11, %v15253_v34, nan  ;;  %vm6066_vm13 = vcmp.gt.f32.partialorder %v8638_v43, 0.0  ;;  %vm5808_vm14 = vcmp.gt.f32.partialorder %v3560_v1, 0.0  ;;  %8744 = vmatprep.mubr.msk.bf16.mxu1 %vm2337_vm1, %v2300_v39  ;;  %v2173_v30 = vpack.c.bf16 %v7459_v44, %v7458_v14  ;;  %v3563_v8 = vpop.f32.mrb[107].mxu0  ;;  %v4587_v35 = vpop.f32.mrb[107].mxu1  ;;  %v9013_v16 = vld [vmem:[%s18608_s1 + $0x370] sm:$0xff] }
 0x1ff   :  { %6834 = vst.msk [vmem:[%s18610_s3 + $0x350] sm:$0xff] %vm2337_vm1, %v6322_v21  ;;  %v6578_v19 = vsel %vm6066_vm13, %v15269_v13, nan  ;;  %v6320_v27 = vsel %vm5808_vm14, %v15275_v5, nan  ;;  %vm6064_vm15 = vcmp.gt.f32.partialorder %v4584_v45, 0.0  ;;  %vm5811_vm0 = vcmp.gt.f32.partialorder %v8383_v55, 0.0  ;;  %v233_v5 = vld [vmem:[%s18608_s1 + $0x6c8] sm:$0xff] }
 0x200   :  { %7090 = vst.msk [vmem:[%s18610_s3 + $0xb50] sm:$0xff] %vm2337_vm1, %v6578_v19  ;;  %6832 = vst.msk [vmem:[%s18610_s3 + $0x340] sm:$0xff] %vm2337_vm1, %v6320_v27  ;;  %v6576_v34 = vsel %vm6064_vm15, %v15284_v51, nan  ;;  %v6323_v40 = vsel %vm5811_vm0, %v15290_v28, nan  ;;  %vm6067_vm2 = vcmp.gt.f32.partialorder %v8639_v31, 0.0  ;;  %vm5809_vm3 = vcmp.gt.f32.partialorder %v3563_v8, 0.0  ;;  %8489 = vmatmul.mubr.msk.bf16.gmra.mrb[212].mxu0 %vm2337_vm1, %v2173_v30 }
 0x201   :  { %7088 = vst.msk [vmem:[%s18610_s3 + $0xb40] sm:$0xff] %vm2337_vm1, %v6576_v34  ;;  %6835 = vst.msk [vmem:[%s18610_s3 + $0x358] sm:$0xff] %vm2337_vm1, %v6323_v40  ;;  %v6579_v50 = vsel %vm6067_vm2, %v15296_v41, nan  ;;  %v6321_v58 = vsel %vm5809_vm3, %v15302_v18, nan  ;;  %vm6065_vm4 = vcmp.gt.f32.partialorder %v4587_v35, 0.0  ;;  %v7715_v13 = vsel %vm1001_vm12, 1.0, %v18761_v59 }
 0x202   :  { %7091 = vst.msk [vmem:[%s18610_s3 + $0xb58] sm:$0xff] %vm2337_vm1, %v6579_v50  ;;  %6833 = vst.msk [vmem:[%s18610_s3 + $0x348] sm:$0xff] %vm2337_vm1, %v6321_v58  ;;  %v6577_v52 = vsel %vm6065_vm4, %v15308_v25, nan  ;;  %v2301_v20 = vpack.c.bf16 %v7715_v13, %v7714_v12  ;;  %v5302_v33 = vmul.f32 %v9013_v16, %v10984_v15  ;;  %v9014_v51 = vld [vmem:[%s18608_s1 + $0xb70] sm:$0xff]  ;;  %v488_v28 = vld [vmem:[%s18608_s1 + $0xec0] sm:$0xff]  ;;  %v8386_v46 = vpop.f32.mrb[108].mxu0 }
 0x203   :  { %v5558_v61 = vmul.f32 %v9014_v51, %v10984_v15  ;;  %7089 = vst.msk [vmem:[%s18610_s3 + $0xb48] sm:$0xff] %vm2337_vm1, %v6577_v52  ;;  %v9015_v22 = vld [vmem:[%s18608_s1 + $0x360] sm:$0xff]  ;;  %v9017_v23 = vld [vmem:[%s18608_s1 + $0x378] sm:$0xff]  ;;  %v9019_v54 = vld [vmem:[%s18608_s1 + $0x368] sm:$0xff]  ;;  %vm746_vm5 = vcmp.ne.f32.partialorder %v232_v2, 0.0  ;;  %vm747_vm6 = vcmp.ne.f32.partialorder %v233_v5, 0.0 }
 0x204   :  { %v5300_v41 = vmul.f32 %v9015_v22, %v10984_v15  ;;  %v9016_v36 = vld [vmem:[%s18608_s1 + $0xb60] sm:$0xff]  ;;  %v5303_v18 = vmul.f32 %v9017_v23, %v10984_v15  ;;  %v9018_v37 = vld [vmem:[%s18608_s1 + $0xb78] sm:$0xff]  ;;  %8745 = vmatmul.mubr.msk.bf16.gmra.mrb[212].mxu1 %vm2337_vm1, %v2301_v20  ;;  %v5301_v60 = vmul.f32 %v9019_v54, %v10984_v15  ;;  %v9020_v4 = vld [vmem:[%s18608_s1 + $0xb68] sm:$0xff]  ;;  %vm5814_vm7 = vcmp.gt.f32.partialorder %v8386_v46, 0.0  ;;  %v8642_v6 = vpop.f32.mrb[108].mxu1  ;;  %v3576_v57 = vpop.f32.mrb[109].mxu0 }
 0x205   :  { %v5556_v48 = vmul.f32 %v9016_v36, %v10984_v15  ;;  %v5559_v25 = vmul.f32 %v9018_v37, %v10984_v15  ;;  %v5557_v3 = vmul.f32 %v9020_v4, %v10984_v15  ;;  %v489_v53 = vld [vmem:[%s18608_s1 + $0xec8] sm:$0xff]  ;;  %v7460_v17 = vsel %vm746_vm5, 1.0, %v18761_v59  ;;  %v234_v56 = vld [vmem:[%s18608_s1 + $0x6d0] sm:$0xff]  ;;  %v4600_v24 = vpop.f32.mrb[109].mxu1  ;;  %v8387_v63 = vpop.f32.mrb[110].mxu0  ;;  %v235_v10 = vld [vmem:[%s18608_s1 + $0x6d8] sm:$0xff] }
 0x206   :  { %v7461_v29 = vsel %vm747_vm6, 1.0, %v18761_v59  ;;  %vm1002_vm8 = vcmp.ne.f32.partialorder %v488_v28, 0.0  ;;  %v6326_v47 = vsel %vm5814_vm7, %v5302_v33, nan  ;;  %vm6070_vm9 = vcmp.gt.f32.partialorder %v8642_v6, 0.0  ;;  %v8643_v49 = vpop.f32.mrb[110].mxu1  ;;  %v3579_v9 = vpop.f32.mrb[111].mxu0 }
 0x207   :  { %vm5812_vm10 = vcmp.gt.f32.partialorder %v3576_v57, 0.0  ;;  %v2174_v7 = vpack.c.bf16 %v7461_v29, %v7460_v17  ;;  %6838 = vst.msk [vmem:[%s18610_s3 + $0x370] sm:$0xff] %vm2337_vm1, %v6326_v47  ;;  %v6582_v42 = vsel %vm6070_vm9, %v5558_v61, nan  ;;  %vm6068_vm11 = vcmp.gt.f32.partialorder %v4600_v24, 0.0  ;;  %v4603_v26 = vpop.f32.mrb[111].mxu1  ;;  %v490_v38 = vld [vmem:[%s18608_s1 + $0xed0] sm:$0xff] }
 0x208   :  { %v6324_v11 = vsel %vm5812_vm10, %v5300_v41, nan  ;;  %vm5815_vm12 = vcmp.gt.f32.partialorder %v8387_v63, 0.0  ;;  %7094 = vst.msk [vmem:[%s18610_s3 + $0xb70] sm:$0xff] %vm2337_vm1, %v6582_v42  ;;  %v6580_v62 = vsel %vm6068_vm11, %v5556_v48, nan  ;;  %vm6071_vm13 = vcmp.gt.f32.partialorder %v8643_v49, 0.0  ;;  %v491_v14 = vld [vmem:[%s18608_s1 + $0xed8] sm:$0xff] }
 0x209   :  { %6836 = vst.msk [vmem:[%s18610_s3 + $0x360] sm:$0xff] %vm2337_vm1, %v6324_v11  ;;  %v6327_v32 = vsel %vm5815_vm12, %v5303_v18, nan  ;;  %vm5813_vm14 = vcmp.gt.f32.partialorder %v3579_v9, 0.0  ;;  %8492 = vmatprep.mubr.msk.bf16.mxu0 %vm2337_vm1, %v2174_v7  ;;  %7092 = vst.msk [vmem:[%s18610_s3 + $0xb60] sm:$0xff] %vm2337_vm1, %v6580_v62  ;;  %v6583_v0 = vsel %vm6071_vm13, %v5559_v25, nan  ;;  %vm6069_vm15 = vcmp.gt.f32.partialorder %v4603_v26, 0.0 }
 0x20a   :  { %6839 = vst.msk [vmem:[%s18610_s3 + $0x378] sm:$0xff] %vm2337_vm1, %v6327_v32  ;;  %v6325_v39 = vsel %vm5813_vm14, %v5301_v60, nan  ;;  %vm1003_vm0 = vcmp.ne.f32.partialorder %v489_v53, 0.0  ;;  %7095 = vst.msk [vmem:[%s18610_s3 + $0xb78] sm:$0xff] %vm2337_vm1, %v6583_v0  ;;  %v6581_v43 = vsel %vm6069_vm15, %v5557_v3, nan  ;;  %v7716_v1 = vsel %vm1002_vm8, 1.0, %v18761_v59 }
 0x20b   :  { %6837 = vst.msk [vmem:[%s18610_s3 + $0x368] sm:$0xff] %vm2337_vm1, %v6325_v39  ;;  %v7717_v44 = vsel %vm1003_vm0, 1.0, %v18761_v59  ;;  %vm748_vm2 = vcmp.ne.f32.partialorder %v234_v56, 0.0  ;;  %7093 = vst.msk [vmem:[%s18610_s3 + $0xb68] sm:$0xff] %vm2337_vm1, %v6581_v43  ;;  %vm749_vm3 = vcmp.ne.f32.partialorder %v235_v10, 0.0  ;;  %vm1004_vm4 = vcmp.ne.f32.partialorder %v490_v38, 0.0 }
 0x20c   :  { %v2302_v12 = vpack.c.bf16 %v7717_v44, %v7716_v1  ;;  %v7462_v21 = vsel %vm748_vm2, 1.0, %v18761_v59  ;;  %v7463_v45 = vsel %vm749_vm3, 1.0, %v18761_v59  ;;  %vm1005_vm5 = vcmp.ne.f32.partialorder %v491_v14, 0.0  ;;  %v8390_v30 = vpop.f32.mrb[112].mxu0  ;;  %v9021_v19 = vld [vmem:[%s18608_s1 + $0x390] sm:$0xff]  ;;  %v8646_v34 = vpop.f32.mrb[112].mxu1 }
 0x20d   :  { %v7718_v55 = vsel %vm1004_vm4, 1.0, %v18761_v59  ;;  %v5306_v27 = vmul.f32 %v9021_v19, %v10984_v15  ;;  %v2175_v31 = vpack.c.bf16 %v7463_v45, %v7462_v21  ;;  %v7719_v8 = vsel %vm1005_vm5, 1.0, %v18761_v59  ;;  %v9022_v40 = vld [vmem:[%s18608_s1 + $0xb90] sm:$0xff]  ;;  %v3592_v50 = vpop.f32.mrb[113].mxu0  ;;  %v9023_v2 = vld [vmem:[%s18608_s1 + $0x380] sm:$0xff]  ;;  %v4616_v52 = vpop.f32.mrb[113].mxu1 }
 0x20e   :  { %8748 = vmatprep.mubr.msk.bf16.mxu1 %vm2337_vm1, %v2302_v12  ;;  %vm5818_vm6 = vcmp.gt.f32.partialorder %v8390_v30, 0.0  ;;  %v5562_v35 = vmul.f32 %v9022_v40, %v10984_v15  ;;  %v2303_v58 = vpack.c.bf16 %v7719_v8, %v7718_v55  ;;  %vm6074_vm7 = vcmp.gt.f32.partialorder %v8646_v34, 0.0  ;;  %v8391_v20 = vpop.f32.mrb[114].mxu0  ;;  %v9024_v33 = vld [vmem:[%s18608_s1 + $0xb80] sm:$0xff]  ;;  %v8647_v61 = vpop.f32.mrb[114].mxu1  ;;  %v9025_v41 = vld [vmem:[%s18608_s1 + $0x398] sm:$0xff] }
 0x20f   :  { %v6330_v13 = vsel %vm5818_vm6, %v5306_v27, nan  ;;  %v5304_v5 = vmul.f32 %v9023_v2, %v10984_v15  ;;  %8493 = vmatmul.mubr.msk.bf16.gmra.mrb[216].mxu0 %vm2337_vm1, %v2175_v31  ;;  %vm5816_vm8 = vcmp.gt.f32.partialorder %v3592_v50, 0.0  ;;  %v5560_v51 = vmul.f32 %v9024_v33, %v10984_v15  ;;  %v3595_v28 = vpop.f32.mrb[115].mxu0  ;;  %v9026_v48 = vld [vmem:[%s18608_s1 + $0xb98] sm:$0xff]  ;;  %v4619_v18 = vpop.f32.mrb[115].mxu1  ;;  %v236_v37 = vld [vmem:[%s18608_s1 + $0x6e0] sm:$0xff] }
 0x210   :  { %6842 = vst.msk [vmem:[%s18610_s3 + $0x390] sm:$0xff] %vm2337_vm1, %v6330_v13  ;;  %v6586_v16 = vsel %vm6074_vm7, %v5562_v35, nan  ;;  %vm6072_vm9 = vcmp.gt.f32.partialorder %v4616_v52, 0.0  ;;  %8749 = vmatmul.mubr.msk.bf16.gmra.mrb[216].mxu1 %vm2337_vm1, %v2303_v58  ;;  %v5307_v36 = vmul.f32 %v9025_v41, %v10984_v15  ;;  %vm5819_vm10 = vcmp.gt.f32.partialorder %v8391_v20, 0.0  ;;  %v237_v25 = vld [vmem:[%s18608_s1 + $0x6e8] sm:$0xff]  ;;  %v492_v46 = vld [vmem:[%s18608_s1 + $0xee0] sm:$0xff] }
 0x211   :  { %7098 = vst.msk [vmem:[%s18610_s3 + $0xb90] sm:$0xff] %vm2337_vm1, %v6586_v16  ;;  %v6328_v22 = vsel %vm5816_vm8, %v5304_v5, nan  ;;  %v5563_v23 = vmul.f32 %v9026_v48, %v10984_v15  ;;  %v6584_v54 = vsel %vm6072_vm9, %v5560_v51, nan  ;;  %vm6075_vm11 = vcmp.gt.f32.partialorder %v8647_v61, 0.0  ;;  %v9027_v60 = vld [vmem:[%s18608_s1 + $0x388] sm:$0xff]  ;;  %v238_v29 = vld [vmem:[%s18608_s1 + $0x6f0] sm:$0xff] }
 0x212   :  { %6840 = vst.msk [vmem:[%s18610_s3 + $0x380] sm:$0xff] %vm2337_vm1, %v6328_v22  ;;  %v5305_v4 = vmul.f32 %v9027_v60, %v10984_v15  ;;  %vm5817_vm12 = vcmp.gt.f32.partialorder %v3595_v28, 0.0  ;;  %v493_v3 = vld [vmem:[%s18608_s1 + $0xee8] sm:$0xff]  ;;  %7096 = vst.msk [vmem:[%s18610_s3 + $0xb80] sm:$0xff] %vm2337_vm1, %v6584_v54  ;;  %v6331_v53 = vsel %vm5819_vm10, %v5307_v36, nan  ;;  %vm6073_vm13 = vcmp.gt.f32.partialorder %v4619_v18, 0.0 }
 0x213   :  { %v6587_v6 = vsel %vm6075_vm11, %v5563_v23, nan  ;;  %v9028_v57 = vld [vmem:[%s18608_s1 + $0xb88] sm:$0xff]  ;;  %6843 = vst.msk [vmem:[%s18610_s3 + $0x398] sm:$0xff] %vm2337_vm1, %v6331_v53  ;;  %vm750_vm14 = vcmp.ne.f32.partialorder %v236_v37, 0.0  ;;  %vm751_vm15 = vcmp.ne.f32.partialorder %v237_v25, 0.0  ;;  %vm1006_vm0 = vcmp.ne.f32.partialorder %v492_v46, 0.0 }
 0x214   :  { %v5561_v17 = vmul.f32 %v9028_v57, %v10984_v15  ;;  %7099 = vst.msk [vmem:[%s18610_s3 + $0xb98] sm:$0xff] %vm2337_vm1, %v6587_v6  ;;  %v6329_v56 = vsel %vm5817_vm12, %v5305_v4, nan  ;;  %v239_v47 = vld [vmem:[%s18608_s1 + $0x6f8] sm:$0xff]  ;;  %v494_v24 = vld [vmem:[%s18608_s1 + $0xef0] sm:$0xff]  ;;  %v7464_v7 = vsel %vm750_vm14, 1.0, %v18761_v59  ;;  %v7465_v10 = vsel %vm751_vm15, 1.0, %v18761_v59 }
 0x215   :  { %6841 = vst.msk [vmem:[%s18610_s3 + $0x388] sm:$0xff] %vm2337_vm1, %v6329_v56  ;;  %vm1007_vm2 = vcmp.ne.f32.partialorder %v493_v3, 0.0  ;;  %v495_v42 = vld [vmem:[%s18608_s1 + $0xef8] sm:$0xff]  ;;  %v8394_v11 = vpop.f32.mrb[116].mxu0  ;;  %v2176_v49 = vpack.c.bf16 %v7465_v10, %v7464_v7  ;;  %v7720_v9 = vsel %vm1006_vm0, 1.0, %v18761_v59  ;;  %vm752_vm3 = vcmp.ne.f32.partialorder %v238_v29, 0.0 }
 0x216   :  { %v6585_v63 = vsel %vm6073_vm13, %v5561_v17, nan  ;;  %v7721_v62 = vsel %vm1007_vm2, 1.0, %v18761_v59  ;;  %v8650_v32 = vpop.f32.mrb[116].mxu1  ;;  %v3608_v26 = vpop.f32.mrb[117].mxu0  ;;  %vm753_vm4 = vcmp.ne.f32.partialorder %v239_v47, 0.0  ;;  %v7466_v0 = vsel %vm752_vm3, 1.0, %v18761_v59 }
 0x217   :  { %7097 = vst.msk [vmem:[%s18610_s3 + $0xb88] sm:$0xff] %vm2337_vm1, %v6585_v63  ;;  %v2304_v38 = vpack.c.bf16 %v7721_v62, %v7720_v9  ;;  %vm1008_vm5 = vcmp.ne.f32.partialorder %v494_v24, 0.0  ;;  %v4632_v39 = vpop.f32.mrb[117].mxu1  ;;  %v8395_v14 = vpop.f32.mrb[118].mxu0  ;;  %8496 = vmatprep.mubr.msk.bf16.mxu0 %vm2337_vm1, %v2176_v49  ;;  %v7467_v43 = vsel %vm753_vm4, 1.0, %v18761_v59  ;;  %vm1009_vm6 = vcmp.ne.f32.partialorder %v495_v42, 0.0 }
 0x218   :  { %v7722_v1 = vsel %vm1008_vm5, 1.0, %v18761_v59  ;;  %v9029_v44 = vld [vmem:[%s18608_s1 + $0x3b0] sm:$0xff]  ;;  %v8651_v21 = vpop.f32.mrb[118].mxu1  ;;  %v3611_v45 = vpop.f32.mrb[119].mxu0  ;;  %v2177_v55 = vpack.c.bf16 %v7467_v43, %v7466_v0  ;;  %v7723_v30 = vsel %vm1009_vm6, 1.0, %v18761_v59  ;;  %vm5822_vm7 = vcmp.gt.f32.partialorder %v8394_v11, 0.0 }
 0x219   :  { %v5310_v12 = vmul.f32 %v9029_v44, %v10984_v15  ;;  %8752 = vmatprep.mubr.msk.bf16.mxu1 %vm2337_vm1, %v2304_v38  ;;  %v9030_v19 = vld [vmem:[%s18608_s1 + $0xbb0] sm:$0xff]  ;;  %v4635_v31 = vpop.f32.mrb[119].mxu1  ;;  %v2305_v8 = vpack.c.bf16 %v7723_v30, %v7722_v1  ;;  %vm6078_vm8 = vcmp.gt.f32.partialorder %v8650_v32, 0.0  ;;  %v9031_v40 = vld [vmem:[%s18608_s1 + $0x3a0] sm:$0xff]  ;;  %vm5820_vm9 = vcmp.gt.f32.partialorder %v3608_v26, 0.0  ;;  %v241_v5 = vld [vmem:[%s18608_s1 + $0x708] sm:$0xff] }
 0x21a   :  { %v5566_v27 = vmul.f32 %v9030_v19, %v10984_v15  ;;  %v5308_v35 = vmul.f32 %v9031_v40, %v10984_v15  ;;  %8497 = vmatmul.mubr.msk.bf16.gmra.mrb[220].mxu0 %vm2337_vm1, %v2177_v55  ;;  %v9032_v58 = vld [vmem:[%s18608_s1 + $0xba0] sm:$0xff]  ;;  %vm6076_vm10 = vcmp.gt.f32.partialorder %v4632_v39, 0.0  ;;  %v9033_v20 = vld [vmem:[%s18608_s1 + $0x3b8] sm:$0xff]  ;;  %vm5823_vm11 = vcmp.gt.f32.partialorder %v8395_v14, 0.0  ;;  %v497_v28 = vld [vmem:[%s18608_s1 + $0xf08] sm:$0xff]  ;;  %v8398_v37 = vpop.f32.mrb[120].mxu0 }
 0x21b   :  { %v6334_v34 = vsel %vm5822_vm7, %v5310_v12, nan  ;;  %v5564_v13 = vmul.f32 %v9032_v58, %v10984_v15  ;;  %v240_v2 = vld [vmem:[%s18608_s1 + $0x700] sm:$0xff]  ;;  %8753 = vmatmul.mubr.msk.bf16.gmra.mrb[220].mxu1 %vm2337_vm1, %v2305_v8  ;;  %v5311_v16 = vmul.f32 %v9033_v20, %v10984_v15  ;;  %v9034_v33 = vld [vmem:[%s18608_s1 + $0xbb8] sm:$0xff]  ;;  %v242_v22 = vld [vmem:[%s18608_s1 + $0x710] sm:$0xff]  ;;  %vm6079_vm12 = vcmp.gt.f32.partialorder %v8651_v21, 0.0  ;;  %v8654_v3 = vpop.f32.mrb[120].mxu1 }
 0x21c   :  { %6846 = vst.msk [vmem:[%s18610_s3 + $0x3b0] sm:$0xff] %vm2337_vm1, %v6334_v34  ;;  %v6590_v50 = vsel %vm6078_vm8, %v5566_v27, nan  ;;  %v6332_v52 = vsel %vm5820_vm9, %v5308_v35, nan  ;;  %v5567_v51 = vmul.f32 %v9034_v33, %v10984_v15  ;;  %v496_v61 = vld [vmem:[%s18608_s1 + $0xf00] sm:$0xff]  ;;  %v9035_v36 = vld [vmem:[%s18608_s1 + $0x3a8] sm:$0xff]  ;;  %vm5821_vm13 = vcmp.gt.f32.partialorder %v3611_v45, 0.0 }
 0x21d   :  { %7102 = vst.msk [vmem:[%s18610_s3 + $0xbb0] sm:$0xff] %vm2337_vm1, %v6590_v50  ;;  %6844 = vst.msk [vmem:[%s18610_s3 + $0x3a0] sm:$0xff] %vm2337_vm1, %v6332_v52  ;;  %v6588_v41 = vsel %vm6076_vm10, %v5564_v13, nan  ;;  %v5309_v48 = vmul.f32 %v9035_v36, %v10984_v15  ;;  %v243_v23 = vld [vmem:[%s18608_s1 + $0x718] sm:$0xff]  ;;  %v498_v18 = vld [vmem:[%s18608_s1 + $0xf10] sm:$0xff]  ;;  %v6335_v25 = vsel %vm5823_vm11, %v5311_v16, nan }
 0x21e   :  { %7100 = vst.msk [vmem:[%s18610_s3 + $0xba0] sm:$0xff] %vm2337_vm1, %v6588_v41  ;;  %v6591_v46 = vsel %vm6079_vm12, %v5567_v51, nan  ;;  %v9036_v54 = vld [vmem:[%s18608_s1 + $0xba8] sm:$0xff]  ;;  %vm6077_vm14 = vcmp.gt.f32.partialorder %v4635_v31, 0.0  ;;  %v499_v4 = vld [vmem:[%s18608_s1 + $0xf18] sm:$0xff]  ;;  %v3624_v53 = vpop.f32.mrb[121].mxu0 }
 0x21f   :  { %v5565_v60 = vmul.f32 %v9036_v54, %v10984_v15  ;;  %6847 = vst.msk [vmem:[%s18610_s3 + $0x3b8] sm:$0xff] %vm2337_vm1, %v6335_v25  ;;  %7103 = vst.msk [vmem:[%s18610_s3 + $0xbb8] sm:$0xff] %vm2337_vm1, %v6591_v46  ;;  %v6333_v6 = vsel %vm5821_vm13, %v5309_v48, nan  ;;  %vm754_vm15 = vcmp.ne.f32.partialorder %v240_v2, 0.0  ;;  %vm755_vm0 = vcmp.ne.f32.partialorder %v241_v5, 0.0  ;;  %v4648_v57 = vpop.f32.mrb[121].mxu1 }
 0x220   :  { %vm1010_vm2 = vcmp.ne.f32.partialorder %v496_v61, 0.0  ;;  %v15711_v17 = vpop.f32.mrb[122].mxu0  ;;  %6845 = vst.msk [vmem:[%s18610_s3 + $0x3a8] sm:$0xff] %vm2337_vm1, %v6333_v6  ;;  %v7468_v56 = vsel %vm754_vm15, 1.0, %v18761_v59  ;;  %v7469_v47 = vsel %vm755_vm0, 1.0, %v18761_v59  ;;  %vm1011_vm3 = vcmp.ne.f32.partialorder %v497_v28, 0.0 }
 0x221   :  { %v6589_v29 = vsel %vm6077_vm14, %v5565_v60, nan  ;;  %v15719_v24 = vpop.f32.mrb[122].mxu1  ;;  %v15721_v63 = vpop.f32.mrb[123].mxu0  ;;  %v2178_v7 = vpack.c.bf16 %v7469_v47, %v7468_v56  ;;  %v7724_v10 = vsel %vm1010_vm2, 1.0, %v18761_v59  ;;  %v7725_v42 = vsel %vm1011_vm3, 1.0, %v18761_v59  ;;  %v9037_v26 = vld [vmem:[%s18608_s1 + $0x3d0] sm:$0xff] }
 0x222   :  { %7101 = vst.msk [vmem:[%s18610_s3 + $0xba8] sm:$0xff] %vm2337_vm1, %v6589_v29  ;;  %vm756_vm4 = vcmp.ne.f32.partialorder %v242_v22, 0.0  ;;  %v15729_v11 = vpop.f32.mrb[123].mxu1  ;;  %v2306_v49 = vpack.c.bf16 %v7725_v42, %v7724_v10  ;;  %vm757_vm5 = vcmp.ne.f32.partialorder %v243_v23, 0.0  ;;  %vm1012_vm6 = vcmp.ne.f32.partialorder %v498_v18, 0.0  ;;  %v9038_v14 = vld [vmem:[%s18608_s1 + $0xbd0] sm:$0xff] }
 0x223   :  { %v7470_v9 = vsel %vm756_vm4, 1.0, %v18761_v59  ;;  %8500 = vmatprep.mubr.msk.bf16.mxu0 %vm2337_vm1, %v2178_v7  ;;  %v7471_v62 = vsel %vm757_vm5, 1.0, %v18761_v59  ;;  %vm1013_vm7 = vcmp.ne.f32.partialorder %v499_v4, 0.0  ;;  %v7726_v32 = vsel %vm1012_vm6, 1.0, %v18761_v59  ;;  %v9039_v12 = vld [vmem:[%s18608_s1 + $0x3c0] sm:$0xff]  ;;  %v15749_v45 = vpop.f32.mrb[124].mxu0 }
 0x224   :  { %v5314_v38 = vmul.f32 %v9037_v26, %v10984_v15  ;;  %8756 = vmatprep.mubr.msk.bf16.mxu1 %vm2337_vm1, %v2306_v49  ;;  %v2179_v0 = vpack.c.bf16 %v7471_v62, %v7470_v9  ;;  %v7727_v39 = vsel %vm1013_vm7, 1.0, %v18761_v59  ;;  %vm5826_vm8 = vcmp.gt.f32.partialorder %v8398_v37, 0.0  ;;  %v9040_v30 = vld [vmem:[%s18608_s1 + $0xbc0] sm:$0xff]  ;;  %v15763_v31 = vpop.f32.mrb[124].mxu1  ;;  %v15765_v8 = vpop.f32.mrb[125].mxu0  ;;  %v9041_v40 = vld [vmem:[%s18608_s1 + $0x3d8] sm:$0xff] }
 0x225   :  { %v5570_v43 = vmul.f32 %v9038_v14, %v10984_v15  ;;  %v2307_v1 = vpack.c.bf16 %v7727_v39, %v7726_v32  ;;  %vm6082_vm9 = vcmp.gt.f32.partialorder %v8654_v3, 0.0  ;;  %v5312_v21 = vmul.f32 %v9039_v12, %v10984_v15  ;;  %v244_v27 = vld [vmem:[%s18608_s1 + $0x720] sm:$0xff]  ;;  %v9042_v50 = vld [vmem:[%s18608_s1 + $0xbd8] sm:$0xff]  ;;  %v245_v13 = vld [vmem:[%s18608_s1 + $0x728] sm:$0xff]  ;;  %v15787_v5 = vpop.f32.mrb[125].mxu1  ;;  %v15789_v52 = vpop.f32.mrb[126].mxu0 }
 0x226   :  { %v6338_v44 = vsel %vm5826_vm8, %v5314_v38, nan  ;;  %8501 = vmatmul.mubr.msk.bf16.gmra.mrb[224].mxu0 %vm2337_vm1, %v2179_v0  ;;  %vm5824_vm10 = vcmp.gt.f32.partialorder %v3624_v53, 0.0  ;;  %v5568_v19 = vmul.f32 %v9040_v30, %v10984_v15  ;;  %vm6080_vm11 = vcmp.gt.f32.partialorder %v4648_v57, 0.0  ;;  %v500_v2 = vld [vmem:[%s18608_s1 + $0xf20] sm:$0xff]  ;;  %v9043_v16 = vld [vmem:[%s18608_s1 + $0x3c8] sm:$0xff]  ;;  %v15805_v61 = vpop.f32.mrb[126].mxu1 }
 0x227   :  { %6850 = vst.msk [vmem:[%s18610_s3 + $0x3d0] sm:$0xff] %vm2337_vm1, %v6338_v44  ;;  %v6594_v55 = vsel %vm6082_vm9, %v5570_v43, nan  ;;  %8757 = vmatmul.mubr.msk.bf16.gmra.mrb[224].mxu1 %vm2337_vm1, %v2307_v1  ;;  %v6336_v34 = vsel %vm5824_vm10, %v5312_v21, nan  ;;  %v5315_v35 = vmul.f32 %v9041_v40, %v10984_v15  ;;  %vm5827_vm12 = vcmp.gt.f32.partialorder %v15711_v17, 0.0  ;;  %v501_v51 = vld [vmem:[%s18608_s1 + $0xf28] sm:$0xff]  ;;  %v15807_v28 = vpop.f32.mrb[127].mxu0 }
 0x228   :  { %7106 = vst.msk [vmem:[%s18610_s3 + $0xbd0] sm:$0xff] %vm2337_vm1, %v6594_v55  ;;  %v5571_v58 = vmul.f32 %v9042_v50, %v10984_v15  ;;  %6848 = vst.msk [vmem:[%s18610_s3 + $0x3c0] sm:$0xff] %vm2337_vm1, %v6336_v34  ;;  %v6592_v20 = vsel %vm6080_vm11, %v5568_v19, nan  ;;  %vm6083_vm13 = vcmp.gt.f32.partialorder %v15719_v24, 0.0  ;;  %v5313_v33 = vmul.f32 %v9043_v16, %v10984_v15  ;;  %v9044_v36 = vld [vmem:[%s18608_s1 + $0xbc8] sm:$0xff]  ;;  %v246_v23 = vld [vmem:[%s18608_s1 + $0x730] sm:$0xff] }
 0x229   :  { %vm5825_vm14 = vcmp.gt.f32.partialorder %v15721_v63, 0.0  ;;  %7104 = vst.msk [vmem:[%s18610_s3 + $0xbc0] sm:$0xff] %vm2337_vm1, %v6592_v20  ;;  %v6339_v22 = vsel %vm5827_vm12, %v5315_v35, nan  ;;  %v5569_v48 = vmul.f32 %v9044_v36, %v10984_v15  ;;  %vm6081_vm15 = vcmp.gt.f32.partialorder %v15729_v11, 0.0  ;;  %v15823_v18 = vpop.f32.mrb[127].mxu1  ;;  %v247_v25 = vld [vmem:[%s18608_s1 + $0x738] sm:$0xff] }
 0x22a   :  { %v6595_v41 = vsel %vm6083_vm13, %v5571_v58, nan  ;;  %6851 = vst.msk [vmem:[%s18610_s3 + $0x3d8] sm:$0xff] %vm2337_vm1, %v6339_v22  ;;  %v6337_v37 = vsel %vm5825_vm14, %v5313_v33, nan  ;;  %vm758_vm0 = vcmp.ne.f32.partialorder %v244_v27, 0.0  ;;  %vm759_vm2 = vcmp.ne.f32.partialorder %v245_v13, 0.0  ;;  %v502_v46 = vld [vmem:[%s18608_s1 + $0xf30] sm:$0xff] }
 0x22b   :  { %7107 = vst.msk [vmem:[%s18610_s3 + $0xbd8] sm:$0xff] %vm2337_vm1, %v6595_v41  ;;  %vm1014_vm3 = vcmp.ne.f32.partialorder %v500_v2, 0.0  ;;  %6849 = vst.msk [vmem:[%s18610_s3 + $0x3c8] sm:$0xff] %vm2337_vm1, %v6337_v37  ;;  %v6593_v54 = vsel %vm6081_vm15, %v5569_v48, nan  ;;  %v7472_v60 = vsel %vm758_vm0, 1.0, %v18761_v59  ;;  %v7473_v4 = vsel %vm759_vm2, 1.0, %v18761_v59 }
 0x22c   :  { %vm1015_vm4 = vcmp.ne.f32.partialorder %v501_v51, 0.0  ;;  %v503_v3 = vld [vmem:[%s18608_s1 + $0xf38] sm:$0xff]  ;;  %7105 = vst.msk [vmem:[%s18610_s3 + $0xbc8] sm:$0xff] %vm2337_vm1, %v6593_v54  ;;  %v2180_v53 = vpack.c.bf16 %v7473_v4, %v7472_v60  ;;  %v7728_v6 = vsel %vm1014_vm3, 1.0, %v18761_v59  ;;  %vm760_vm5 = vcmp.ne.f32.partialorder %v246_v23, 0.0  ;;  %v15855_v56 = vpop.f32.mrb[128].mxu0 }
 0x22d   :  { %v7729_v57 = vsel %vm1015_vm4, 1.0, %v18761_v59  ;;  %vm761_vm6 = vcmp.ne.f32.partialorder %v247_v25, 0.0  ;;  %v7474_v29 = vsel %vm760_vm5, 1.0, %v18761_v59  ;;  %vm1016_vm7 = vcmp.ne.f32.partialorder %v502_v46, 0.0  ;;  %v9045_v63 = vld [vmem:[%s18608_s1 + $0x3f0] sm:$0xff]  ;;  %v15864_v10 = vpop.f32.mrb[128].mxu1 }
 0x22e   :  { %v2308_v17 = vpack.c.bf16 %v7729_v57, %v7728_v6  ;;  %8504 = vmatprep.mubr.msk.bf16.mxu0 %vm2337_vm1, %v2180_v53  ;;  %v7475_v47 = vsel %vm761_vm6, 1.0, %v18761_v59  ;;  %vm1017_vm8 = vcmp.ne.f32.partialorder %v503_v3, 0.0  ;;  %v7730_v24 = vsel %vm1016_vm7, 1.0, %v18761_v59  ;;  %v15866_v42 = vpop.f32.mrb[129].mxu0  ;;  %v9046_v9 = vld [vmem:[%s18608_s1 + $0xbf0] sm:$0xff]  ;;  %v15875_v32 = vpop.f32.mrb[129].mxu1 }
 0x22f   :  { %v5318_v7 = vmul.f32 %v9045_v63, %v10984_v15  ;;  %v2181_v11 = vpack.c.bf16 %v7475_v47, %v7474_v29  ;;  %v7731_v49 = vsel %vm1017_vm8, 1.0, %v18761_v59  ;;  %vm5830_vm9 = vcmp.gt.f32.partialorder %v15749_v45, 0.0  ;;  %v15877_v26 = vpop.f32.mrb[130].mxu0  ;;  %v9047_v39 = vld [vmem:[%s18608_s1 + $0x3e0] sm:$0xff]  ;;  %v15884_v43 = vpop.f32.mrb[130].mxu1  ;;  %v9049_v30 = vld [vmem:[%s18608_s1 + $0x3f8] sm:$0xff] }
 0x230   :  { %8760 = vmatprep.mubr.msk.bf16.mxu1 %vm2337_vm1, %v2308_v17  ;;  %v5574_v62 = vmul.f32 %v9046_v9, %v10984_v15  ;;  %v2309_v38 = vpack.c.bf16 %v7731_v49, %v7730_v24  ;;  %vm6086_vm10 = vcmp.gt.f32.partialorder %v15763_v31, 0.0  ;;  %v5316_v14 = vmul.f32 %v9047_v39, %v10984_v15  ;;  %v15886_v1 = vpop.f32.mrb[131].mxu0  ;;  %v9048_v12 = vld [vmem:[%s18608_s1 + $0xbe0] sm:$0xff]  ;;  %v15899_v45 = vpop.f32.mrb[131].mxu1  ;;  %v9050_v27 = vld [vmem:[%s18608_s1 + $0xbf8] sm:$0xff]  ;;  %v249_v34 = vld [vmem:[%s18608_s1 + $0x748] sm:$0xff] }
 0x231   :  { %v6342_v0 = vsel %vm5830_vm9, %v5318_v7, nan  ;;  %8505 = vmatmul.mubr.msk.bf16.gmra.mrb[228].mxu0 %vm2337_vm1, %v2181_v11  ;;  %vm5828_vm11 = vcmp.gt.f32.partialorder %v15765_v8, 0.0  ;;  %v5572_v21 = vmul.f32 %v9048_v12, %v10984_v15  ;;  %vm6084_vm12 = vcmp.gt.f32.partialorder %v15787_v5, 0.0  ;;  %v248_v8 = vld [vmem:[%s18608_s1 + $0x740] sm:$0xff]  ;;  %v9051_v50 = vld [vmem:[%s18608_s1 + $0x3e8] sm:$0xff]  ;;  %v250_v16 = vld [vmem:[%s18608_s1 + $0x750] sm:$0xff] }
 0x232   :  { %6854 = vst.msk [vmem:[%s18610_s3 + $0x3f0] sm:$0xff] %vm2337_vm1, %v6342_v0  ;;  %v6598_v44 = vsel %vm6086_vm10, %v5574_v62, nan  ;;  %8761 = vmatmul.mubr.msk.bf16.gmra.mrb[228].mxu1 %vm2337_vm1, %v2309_v38  ;;  %v6340_v55 = vsel %vm5828_vm11, %v5316_v14, nan  ;;  %v5319_v19 = vmul.f32 %v9049_v30, %v10984_v15  ;;  %vm5831_vm13 = vcmp.gt.f32.partialorder %v15789_v52, 0.0  ;;  %v504_v40 = vld [vmem:[%s18608_s1 + $0xf40] sm:$0xff]  ;;  %v505_v13 = vld [vmem:[%s18608_s1 + $0xf48] sm:$0xff] }
 0x233   :  { %7110 = vst.msk [vmem:[%s18610_s3 + $0xbf0] sm:$0xff] %vm2337_vm1, %v6598_v44  ;;  %v5575_v31 = vmul.f32 %v9050_v27, %v10984_v15  ;;  %6852 = vst.msk [vmem:[%s18610_s3 + $0x3e0] sm:$0xff] %vm2337_vm1, %v6340_v55  ;;  %v6596_v35 = vsel %vm6084_vm12, %v5572_v21, nan  ;;  %vm6087_vm14 = vcmp.gt.f32.partialorder %v15805_v61, 0.0  ;;  %v5317_v58 = vmul.f32 %v9051_v50, %v10984_v15  ;;  %v9052_v52 = vld [vmem:[%s18608_s1 + $0xbe8] sm:$0xff]  ;;  %v251_v33 = vld [vmem:[%s18608_s1 + $0x758] sm:$0xff] }
 0x234   :  { %vm5829_vm15 = vcmp.gt.f32.partialorder %v15807_v28, 0.0  ;;  %7108 = vst.msk [vmem:[%s18610_s3 + $0xbe0] sm:$0xff] %vm2337_vm1, %v6596_v35  ;;  %v6343_v2 = vsel %vm5831_vm13, %v5319_v19, nan  ;;  %v5573_v20 = vmul.f32 %v9052_v52, %v10984_v15  ;;  %vm6085_vm0 = vcmp.gt.f32.partialorder %v15823_v18, 0.0  ;;  %v506_v51 = vld [vmem:[%s18608_s1 + $0xf50] sm:$0xff]  ;;  %v507_v28 = vld [vmem:[%s18608_s1 + $0xf58] sm:$0xff] }
 0x235   :  { %v6599_v5 = vsel %vm6087_vm14, %v5575_v31, nan  ;;  %6855 = vst.msk [vmem:[%s18610_s3 + $0x3f8] sm:$0xff] %vm2337_vm1, %v6343_v2  ;;  %v6341_v61 = vsel %vm5829_vm15, %v5317_v58, nan  ;;  %vm762_vm2 = vcmp.ne.f32.partialorder %v248_v8, 0.0  ;;  %vm763_vm3 = vcmp.ne.f32.partialorder %v249_v34, 0.0  ;;  %v15966_v22 = vpop.f32.mrb[132].mxu0 }
 0x236   :  { %7111 = vst.msk [vmem:[%s18610_s3 + $0xbf8] sm:$0xff] %vm2337_vm1, %v6599_v5  ;;  %vm1018_vm4 = vcmp.ne.f32.partialorder %v504_v40, 0.0  ;;  %6853 = vst.msk [vmem:[%s18610_s3 + $0x3e8] sm:$0xff] %vm2337_vm1, %v6341_v61  ;;  %v6597_v41 = vsel %vm6085_vm0, %v5573_v20, nan  ;;  %v7476_v36 = vsel %vm762_vm2, 1.0, %v18761_v59  ;;  %v7477_v48 = vsel %vm763_vm3, 1.0, %v18761_v59 }
 0x237   :  { %vm1019_vm5 = vcmp.ne.f32.partialorder %v505_v13, 0.0  ;;  %v15974_v23 = vpop.f32.mrb[132].mxu1  ;;  %v15976_v18 = vpop.f32.mrb[133].mxu0  ;;  %7109 = vst.msk [vmem:[%s18610_s3 + $0xbe8] sm:$0xff] %vm2337_vm1, %v6597_v41  ;;  %v2182_v37 = vpack.c.bf16 %v7477_v48, %v7476_v36  ;;  %v7732_v25 = vsel %vm1018_vm4, 1.0, %v18761_v59  ;;  %vm764_vm6 = vcmp.ne.f32.partialorder %v250_v16, 0.0 }
 0x238   :  { %v7733_v46 = vsel %vm1019_vm5, 1.0, %v18761_v59  ;;  %v15984_v54 = vpop.f32.mrb[133].mxu1  ;;  %v15986_v60 = vpop.f32.mrb[134].mxu0  ;;  %vm765_vm7 = vcmp.ne.f32.partialorder %v251_v33, 0.0  ;;  %v7478_v3 = vsel %vm764_vm6, 1.0, %v18761_v59  ;;  %vm1020_vm8 = vcmp.ne.f32.partialorder %v506_v51, 0.0 }
 0x239   :  { %v2310_v4 = vpack.c.bf16 %v7733_v46, %v7732_v25  ;;  %v15989_v53 = vpop.f32.mrb[134].mxu1  ;;  %v15991_v6 = vpop.f32.mrb[135].mxu0  ;;  %8508 = vmatprep.mubr.msk.bf16.mxu0 %vm2337_vm1, %v2182_v37  ;;  %v7479_v57 = vsel %vm765_vm7, 1.0, %v18761_v59  ;;  %vm1021_vm9 = vcmp.ne.f32.partialorder %v507_v28, 0.0  ;;  %v7734_v17 = vsel %vm1020_vm8, 1.0, %v18761_v59  ;;  %v9053_v29 = vld [vmem:[%s18608_s1 + $0x410] sm:$0xff] }
 0x23a   :  { %v5322_v47 = vmul.f32 %v9053_v29, %v10984_v15  ;;  %v16000_v24 = vpop.f32.mrb[135].mxu1  ;;  %v2183_v63 = vpack.c.bf16 %v7479_v57, %v7478_v3  ;;  %v7735_v7 = vsel %vm1021_vm9, 1.0, %v18761_v59  ;;  %vm5834_vm10 = vcmp.gt.f32.partialorder %v15855_v56, 0.0  ;;  %v9054_v11 = vld [vmem:[%s18608_s1 + $0xc10] sm:$0xff]  ;;  %v9055_v38 = vld [vmem:[%s18608_s1 + $0x400] sm:$0xff]  ;;  %v253_v44 = vld [vmem:[%s18608_s1 + $0x768] sm:$0xff] }
 0x23b   :  { %8764 = vmatprep.mubr.msk.bf16.mxu1 %vm2337_vm1, %v2310_v4  ;;  %v5578_v49 = vmul.f32 %v9054_v11, %v10984_v15  ;;  %v2311_v9 = vpack.c.bf16 %v7735_v7, %v7734_v17  ;;  %vm6090_vm11 = vcmp.gt.f32.partialorder %v15864_v10, 0.0  ;;  %v5320_v0 = vmul.f32 %v9055_v38, %v10984_v15  ;;  %v9056_v10 = vld [vmem:[%s18608_s1 + $0xc00] sm:$0xff]  ;;  %v9057_v12 = vld [vmem:[%s18608_s1 + $0x418] sm:$0xff]  ;;  %v509_v27 = vld [vmem:[%s18608_s1 + $0xf68] sm:$0xff]  ;;  %v16054_v8 = vpop.f32.mrb[136].mxu0  ;;  %v16071_v58 = vpop.f32.mrb[136].mxu1 }
 0x23c   :  { %v6346_v62 = vsel %vm5834_vm10, %v5322_v47, nan  ;;  %8509 = vmatmul.mubr.msk.bf16.gmra.mrb[232].mxu0 %vm2337_vm1, %v2183_v63  ;;  %vm5832_vm12 = vcmp.gt.f32.partialorder %v15866_v42, 0.0  ;;  %v5576_v39 = vmul.f32 %v9056_v10, %v10984_v15  ;;  %vm6088_vm13 = vcmp.gt.f32.partialorder %v15875_v32, 0.0  ;;  %v252_v14 = vld [vmem:[%s18608_s1 + $0x760] sm:$0xff]  ;;  %v9058_v55 = vld [vmem:[%s18608_s1 + $0xc18] sm:$0xff]  ;;  %v254_v31 = vld [vmem:[%s18608_s1 + $0x770] sm:$0xff] }
 0x23d   :  { %6858 = vst.msk [vmem:[%s18610_s3 + $0x410] sm:$0xff] %vm2337_vm1, %v6346_v62  ;;  %v6602_v56 = vsel %vm6090_vm11, %v5578_v49, nan  ;;  %8765 = vmatmul.mubr.msk.bf16.gmra.mrb[232].mxu1 %vm2337_vm1, %v2311_v9  ;;  %v6344_v42 = vsel %vm5832_vm12, %v5320_v0, nan  ;;  %v5323_v21 = vmul.f32 %v9057_v12, %v10984_v15  ;;  %vm5835_vm14 = vcmp.gt.f32.partialorder %v15877_v26, 0.0  ;;  %v508_v19 = vld [vmem:[%s18608_s1 + $0xf60] sm:$0xff]  ;;  %v9059_v40 = vld [vmem:[%s18608_s1 + $0x408] sm:$0xff] }
 0x23e   :  { %7114 = vst.msk [vmem:[%s18610_s3 + $0xc10] sm:$0xff] %vm2337_vm1, %v6602_v56  ;;  %v5579_v30 = vmul.f32 %v9058_v55, %v10984_v15  ;;  %6856 = vst.msk [vmem:[%s18610_s3 + $0x400] sm:$0xff] %vm2337_vm1, %v6344_v42  ;;  %v6600_v34 = vsel %vm6088_vm13, %v5576_v39, nan  ;;  %vm6091_vm15 = vcmp.gt.f32.partialorder %v15884_v43, 0.0  ;;  %v5321_v35 = vmul.f32 %v9059_v40, %v10984_v15  ;;  %v255_v50 = vld [vmem:[%s18608_s1 + $0x778] sm:$0xff]  ;;  %v16073_v13 = vpop.f32.mrb[137].mxu0 }
 0x23f   :  { %vm5833_vm0 = vcmp.gt.f32.partialorder %v15886_v1, 0.0  ;;  %7112 = vst.msk [vmem:[%s18610_s3 + $0xc00] sm:$0xff] %vm2337_vm1, %v6600_v34  ;;  %v6347_v32 = vsel %vm5835_vm14, %v5323_v21, nan  ;;  %v9060_v1 = vld [vmem:[%s18608_s1 + $0xc08] sm:$0xff]  ;;  %vm6089_vm2 = vcmp.gt.f32.partialorder %v15899_v45, 0.0  ;;  %v510_v5 = vld [vmem:[%s18608_s1 + $0xf70] sm:$0xff] }
 0x240   :  { %v6603_v43 = vsel %vm6091_vm15, %v5579_v30, nan  ;;  %v5577_v2 = vmul.f32 %v9060_v1, %v10984_v15  ;;  %v16089_v52 = vpop.f32.mrb[137].mxu1  ;;  %v16091_v20 = vpop.f32.mrb[138].mxu0  ;;  %6859 = vst.msk [vmem:[%s18610_s3 + $0x418] sm:$0xff] %vm2337_vm1, %v6347_v32  ;;  %v6345_v26 = vsel %vm5833_vm0, %v5321_v35, nan  ;;  %vm766_vm3 = vcmp.ne.f32.partialorder %v252_v14, 0.0 }
 0x241   :  { %7115 = vst.msk [vmem:[%s18610_s3 + $0xc18] sm:$0xff] %vm2337_vm1, %v6603_v43  ;;  %vm767_vm4 = vcmp.ne.f32.partialorder %v253_v44, 0.0  ;;  %vm1022_vm5 = vcmp.ne.f32.partialorder %v508_v19, 0.0  ;;  %v16101_v45 = vpop.f32.mrb[138].mxu1  ;;  %v16103_v16 = vpop.f32.mrb[139].mxu0  ;;  %6857 = vst.msk [vmem:[%s18610_s3 + $0x408] sm:$0xff] %vm2337_vm1, %v6345_v26 }
 0x242   :  { %v6601_v33 = vsel %vm6089_vm2, %v5577_v2, nan  ;;  %v7480_v51 = vsel %vm766_vm3, 1.0, %v18761_v59  ;;  %v7481_v61 = vsel %vm767_vm4, 1.0, %v18761_v59  ;;  %vm1023_vm6 = vcmp.ne.f32.partialorder %v509_v27, 0.0  ;;  %v511_v28 = vld [vmem:[%s18608_s1 + $0xf78] sm:$0xff]  ;;  %v16114_v41 = vpop.f32.mrb[139].mxu1 }
 0x243   :  { %7113 = vst.msk [vmem:[%s18610_s3 + $0xc08] sm:$0xff] %vm2337_vm1, %v6601_v33  ;;  %v2184_v36 = vpack.c.bf16 %v7481_v61, %v7480_v51  ;;  %v7736_v48 = vsel %vm1022_vm5, 1.0, %v18761_v59  ;;  %v7737_v37 = vsel %vm1023_vm6, 1.0, %v18761_v59  ;;  %vm768_vm7 = vcmp.ne.f32.partialorder %v254_v31, 0.0  ;;  %v9061_v57 = vld [vmem:[%s18608_s1 + $0x430] sm:$0xff]  ;;  %v16137_v11 = vpop.f32.mrb[140].mxu0 }
 0x244   :  { %v2312_v25 = vpack.c.bf16 %v7737_v37, %v7736_v48  ;;  %vm769_vm8 = vcmp.ne.f32.partialorder %v255_v50, 0.0  ;;  %v7482_v46 = vsel %vm768_vm7, 1.0, %v18761_v59  ;;  %vm1024_vm9 = vcmp.ne.f32.partialorder %v510_v5, 0.0  ;;  %v9062_v63 = vld [vmem:[%s18608_s1 + $0xc30] sm:$0xff]  ;;  %v9063_v62 = vld [vmem:[%s18608_s1 + $0x420] sm:$0xff]  ;;  %v16144_v0 = vpop.f32.mrb[140].mxu1 }
 0x245   :  { %8512 = vmatprep.mubr.msk.bf16.mxu0 %vm2337_vm1, %v2184_v36  ;;  %v7483_v4 = vsel %vm769_vm8, 1.0, %v18761_v59  ;;  %vm1025_vm10 = vcmp.ne.f32.partialorder %v511_v28, 0.0  ;;  %v7738_v3 = vsel %vm1024_vm9, 1.0, %v18761_v59  ;;  %v5326_v17 = vmul.f32 %v9061_v57, %v10984_v15  ;;  %v256_v39 = vld [vmem:[%s18608_s1 + $0x780] sm:$0xff]  ;;  %v16162_v14 = vpop.f32.mrb[141].mxu1  ;;  %v9065_v42 = vld [vmem:[%s18608_s1 + $0x438] sm:$0xff] }
 0x246   :  { %8768 = vmatprep.mubr.msk.bf16.mxu1 %vm2337_vm1, %v2312_v25  ;;  %v2185_v29 = vpack.c.bf16 %v7483_v4, %v7482_v46  ;;  %v7739_v47 = vsel %vm1025_vm10, 1.0, %v18761_v59  ;;  %vm5838_vm11 = vcmp.gt.f32.partialorder %v15966_v22, 0.0  ;;  %v5582_v7 = vmul.f32 %v9062_v63, %v10984_v15  ;;  %v16146_v22 = vpop.f32.mrb[141].mxu0  ;;  %v9066_v21 = vld [vmem:[%s18608_s1 + $0xc38] sm:$0xff]  ;;  %v257_v30 = vld [vmem:[%s18608_s1 + $0x788] sm:$0xff]  ;;  %v512_v19 = vld [vmem:[%s18608_s1 + $0xf80] sm:$0xff] }
 0x247   :  { %v2313_v49 = vpack.c.bf16 %v7739_v47, %v7738_v3  ;;  %v6350_v9 = vsel %vm5838_vm11, %v5326_v17, nan  ;;  %vm6094_vm12 = vcmp.gt.f32.partialorder %v15974_v23, 0.0  ;;  %v5324_v38 = vmul.f32 %v9063_v62, %v10984_v15  ;;  %v9064_v23 = vld [vmem:[%s18608_s1 + $0xc20] sm:$0xff]  ;;  %v16164_v44 = vpop.f32.mrb[142].mxu0  ;;  %v16186_v27 = vpop.f32.mrb[142].mxu1  ;;  %v9067_v40 = vld [vmem:[%s18608_s1 + $0x428] sm:$0xff] }
 0x248   :  { %8513 = vmatmul.mubr.msk.bf16.gmra.mrb[236].mxu0 %vm2337_vm1, %v2185_v29  ;;  %6862 = vst.msk [vmem:[%s18610_s3 + $0x430] sm:$0xff] %vm2337_vm1, %v6350_v9  ;;  %v6606_v56 = vsel %vm6094_vm12, %v5582_v7, nan  ;;  %vm5836_vm13 = vcmp.gt.f32.partialorder %v15976_v18, 0.0  ;;  %v5580_v10 = vmul.f32 %v9064_v23, %v10984_v15  ;;  %vm6092_vm14 = vcmp.gt.f32.partialorder %v15984_v54, 0.0  ;;  %v16188_v31 = vpop.f32.mrb[143].mxu0  ;;  %v513_v50 = vld [vmem:[%s18608_s1 + $0xf88] sm:$0xff] }
 0x249   :  { %8769 = vmatmul.mubr.msk.bf16.gmra.mrb[236].mxu1 %vm2337_vm1, %v2313_v49  ;;  %7118 = vst.msk [vmem:[%s18610_s3 + $0xc30] sm:$0xff] %vm2337_vm1, %v6606_v56  ;;  %v6348_v18 = vsel %vm5836_vm13, %v5324_v38, nan  ;;  %v5327_v12 = vmul.f32 %v9065_v42, %v10984_v15  ;;  %vm5839_vm15 = vcmp.gt.f32.partialorder %v15986_v60, 0.0  ;;  %v5583_v55 = vmul.f32 %v9066_v21, %v10984_v15  ;;  %v16205_v32 = vpop.f32.mrb[143].mxu1  ;;  %v9068_v43 = vld [vmem:[%s18608_s1 + $0xc28] sm:$0xff]  ;;  %v258_v1 = vld [vmem:[%s18608_s1 + $0x790] sm:$0xff] }
 0x24a   :  { %6860 = vst.msk [vmem:[%s18610_s3 + $0x420] sm:$0xff] %vm2337_vm1, %v6348_v18  ;;  %v6604_v34 = vsel %vm6092_vm14, %v5580_v10, nan  ;;  %vm6095_vm0 = vcmp.gt.f32.partialorder %v15989_v53, 0.0  ;;  %v5325_v35 = vmul.f32 %v9067_v40, %v10984_v15  ;;  %vm5837_vm2 = vcmp.gt.f32.partialorder %v15991_v6, 0.0  ;;  %v514_v2 = vld [vmem:[%s18608_s1 + $0xf90] sm:$0xff]  ;;  %v515_v51 = vld [vmem:[%s18608_s1 + $0xf98] sm:$0xff] }
 0x24b   :  { %7116 = vst.msk [vmem:[%s18610_s3 + $0xc20] sm:$0xff] %vm2337_vm1, %v6604_v34  ;;  %v6351_v54 = vsel %vm5839_vm15, %v5327_v12, nan  ;;  %v6607_v53 = vsel %vm6095_vm0, %v5583_v55, nan  ;;  %v5581_v6 = vmul.f32 %v9068_v43, %v10984_v15  ;;  %vm6093_vm3 = vcmp.gt.f32.partialorder %v16000_v24, 0.0  ;;  %v259_v24 = vld [vmem:[%s18608_s1 + $0x798] sm:$0xff]  ;;  %v16250_v48 = vpop.f32.mrb[144].mxu0 }
 0x24c   :  { %6863 = vst.msk [vmem:[%s18610_s3 + $0x438] sm:$0xff] %vm2337_vm1, %v6351_v54  ;;  %7119 = vst.msk [vmem:[%s18610_s3 + $0xc38] sm:$0xff] %vm2337_vm1, %v6607_v53  ;;  %v6349_v60 = vsel %vm5837_vm2, %v5325_v35, nan  ;;  %vm770_vm4 = vcmp.ne.f32.partialorder %v256_v39, 0.0  ;;  %vm771_vm5 = vcmp.ne.f32.partialorder %v257_v30, 0.0  ;;  %vm1026_vm6 = vcmp.ne.f32.partialorder %v512_v19, 0.0 }
 0x24d   :  { %6861 = vst.msk [vmem:[%s18610_s3 + $0x428] sm:$0xff] %vm2337_vm1, %v6349_v60  ;;  %v6605_v5 = vsel %vm6093_vm3, %v5581_v6, nan  ;;  %v7484_v26 = vsel %vm770_vm4, 1.0, %v18761_v59  ;;  %v7485_v33 = vsel %vm771_vm5, 1.0, %v18761_v59  ;;  %vm1027_vm7 = vcmp.ne.f32.partialorder %v513_v50, 0.0  ;;  %v16253_v46 = vpop.f32.mrb[144].mxu1 }
 0x24e   :  { %7117 = vst.msk [vmem:[%s18610_s3 + $0xc28] sm:$0xff] %vm2337_vm1, %v6605_v5  ;;  %v2186_v61 = vpack.c.bf16 %v7485_v33, %v7484_v26  ;;  %v7740_v28 = vsel %vm1026_vm6, 1.0, %v18761_v59  ;;  %v7741_v36 = vsel %vm1027_vm7, 1.0, %v18761_v59  ;;  %vm772_vm8 = vcmp.ne.f32.partialorder %v258_v1, 0.0  ;;  %v16255_v4 = vpop.f32.mrb[145].mxu0  ;;  %v9069_v17 = vld [vmem:[%s18608_s1 + $0x450] sm:$0xff] }
 0x24f   :  { %v2314_v37 = vpack.c.bf16 %v7741_v36, %v7740_v28  ;;  %vm773_vm9 = vcmp.ne.f32.partialorder %v259_v24, 0.0  ;;  %v7486_v25 = vsel %vm772_vm8, 1.0, %v18761_v59  ;;  %vm1028_vm10 = vcmp.ne.f32.partialorder %v514_v2, 0.0  ;;  %v16264_v47 = vpop.f32.mrb[145].mxu1  ;;  %v16266_v63 = vpop.f32.mrb[146].mxu0  ;;  %v9070_v9 = vld [vmem:[%s18608_s1 + $0xc50] sm:$0xff] }
 0x250   :  { %8516 = vmatprep.mubr.msk.bf16.mxu0 %vm2337_vm1, %v2186_v61  ;;  %v7487_v3 = vsel %vm773_vm9, 1.0, %v18761_v59  ;;  %vm1029_vm11 = vcmp.ne.f32.partialorder %v515_v51, 0.0  ;;  %v7742_v57 = vsel %vm1028_vm10, 1.0, %v18761_v59  ;;  %v5330_v29 = vmul.f32 %v9069_v17, %v10984_v15  ;;  %v16275_v38 = vpop.f32.mrb[146].mxu1  ;;  %v16277_v56 = vpop.f32.mrb[147].mxu0  ;;  %v9071_v39 = vld [vmem:[%s18608_s1 + $0x440] sm:$0xff] }
 0x251   :  { %8772 = vmatprep.mubr.msk.bf16.mxu1 %vm2337_vm1, %v2314_v37  ;;  %v2187_v7 = vpack.c.bf16 %v7487_v3, %v7486_v25  ;;  %v7743_v49 = vsel %vm1029_vm11, 1.0, %v18761_v59  ;;  %vm5842_vm12 = vcmp.gt.f32.partialorder %v16054_v8, 0.0  ;;  %v5586_v62 = vmul.f32 %v9070_v9, %v10984_v15  ;;  %v16284_v18 = vpop.f32.mrb[147].mxu1  ;;  %v260_v19 = vld [vmem:[%s18608_s1 + $0x7a0] sm:$0xff]  ;;  %v261_v34 = vld [vmem:[%s18608_s1 + $0x7a8] sm:$0xff]  ;;  %v262_v43 = vld [vmem:[%s18608_s1 + $0x7b0] sm:$0xff] }
 0x252   :  { %v2315_v23 = vpack.c.bf16 %v7743_v49, %v7742_v57  ;;  %v6354_v10 = vsel %vm5842_vm12, %v5330_v29, nan  ;;  %vm6098_vm13 = vcmp.gt.f32.partialorder %v16071_v58, 0.0  ;;  %v5328_v8 = vmul.f32 %v9071_v39, %v10984_v15  ;;  %v9072_v58 = vld [vmem:[%s18608_s1 + $0xc40] sm:$0xff]  ;;  %v9075_v50 = vld [vmem:[%s18608_s1 + $0x448] sm:$0xff]  ;;  %v518_v24 = vld [vmem:[%s18608_s1 + $0xfb0] sm:$0xff]  ;;  %v16356_v5 = vpop.f32.mrb[148].mxu0 }
 0x253   :  { %8517 = vmatmul.mubr.msk.bf16.gmra.mrb[240].mxu0 %vm2337_vm1, %v2187_v7  ;;  %6866 = vst.msk [vmem:[%s18610_s3 + $0x450] sm:$0xff] %vm2337_vm1, %v6354_v10  ;;  %v6610_v42 = vsel %vm6098_vm13, %v5586_v62, nan  ;;  %vm5840_vm14 = vcmp.gt.f32.partialorder %v16073_v13, 0.0  ;;  %v5584_v12 = vmul.f32 %v9072_v58, %v10984_v15  ;;  %vm6096_vm15 = vcmp.gt.f32.partialorder %v16089_v52, 0.0  ;;  %v9073_v13 = vld [vmem:[%s18608_s1 + $0x458] sm:$0xff]  ;;  %v516_v40 = vld [vmem:[%s18608_s1 + $0xfa0] sm:$0xff] }
 0x254   :  { %8773 = vmatmul.mubr.msk.bf16.gmra.mrb[240].mxu1 %vm2337_vm1, %v2315_v23  ;;  %7122 = vst.msk [vmem:[%s18610_s3 + $0xc50] sm:$0xff] %vm2337_vm1, %v6610_v42  ;;  %v6352_v21 = vsel %vm5840_vm14, %v5328_v8, nan  ;;  %v5331_v55 = vmul.f32 %v9073_v13, %v10984_v15  ;;  %vm5843_vm0 = vcmp.gt.f32.partialorder %v16091_v20, 0.0  ;;  %v9074_v52 = vld [vmem:[%s18608_s1 + $0xc58] sm:$0xff]  ;;  %vm6099_vm2 = vcmp.gt.f32.partialorder %v16101_v45, 0.0  ;;  %v517_v53 = vld [vmem:[%s18608_s1 + $0xfa8] sm:$0xff] }
 0x255   :  { %v5587_v30 = vmul.f32 %v9074_v52, %v10984_v15  ;;  %6864 = vst.msk [vmem:[%s18610_s3 + $0x440] sm:$0xff] %vm2337_vm1, %v6352_v21  ;;  %v6608_v35 = vsel %vm6096_vm15, %v5584_v12, nan  ;;  %v5329_v54 = vmul.f32 %v9075_v50, %v10984_v15  ;;  %vm5841_vm3 = vcmp.gt.f32.partialorder %v16103_v16, 0.0  ;;  %v263_v45 = vld [vmem:[%s18608_s1 + $0x7b8] sm:$0xff]  ;;  %v9076_v1 = vld [vmem:[%s18608_s1 + $0xc48] sm:$0xff]  ;;  %v16368_v26 = vpop.f32.mrb[149].mxu0 }
 0x256   :  { %7120 = vst.msk [vmem:[%s18610_s3 + $0xc40] sm:$0xff] %vm2337_vm1, %v6608_v35  ;;  %v6355_v16 = vsel %vm5843_vm0, %v5331_v55, nan  ;;  %v5585_v60 = vmul.f32 %v9076_v1, %v10984_v15  ;;  %vm6097_vm4 = vcmp.gt.f32.partialorder %v16114_v41, 0.0  ;;  %v519_v2 = vld [vmem:[%s18608_s1 + $0xfb8] sm:$0xff]  ;;  %vm774_vm5 = vcmp.ne.f32.partialorder %v260_v19, 0.0  ;;  %v16366_v41 = vpop.f32.mrb[148].mxu1 }
 0x257   :  { %v6611_v6 = vsel %vm6099_vm2, %v5587_v30, nan  ;;  %6867 = vst.msk [vmem:[%s18610_s3 + $0x458] sm:$0xff] %vm2337_vm1, %v6355_v16  ;;  %v6353_v20 = vsel %vm5841_vm3, %v5329_v54, nan  ;;  %vm775_vm6 = vcmp.ne.f32.partialorder %v261_v34, 0.0  ;;  %vm1030_vm7 = vcmp.ne.f32.partialorder %v516_v40, 0.0  ;;  %v16376_v28 = vpop.f32.mrb[149].mxu1 }
 0x258   :  { %7123 = vst.msk [vmem:[%s18610_s3 + $0xc58] sm:$0xff] %vm2337_vm1, %v6611_v6  ;;  %6865 = vst.msk [vmem:[%s18610_s3 + $0x448] sm:$0xff] %vm2337_vm1, %v6353_v20  ;;  %v6609_v33 = vsel %vm6097_vm4, %v5585_v60, nan  ;;  %v7488_v51 = vsel %vm774_vm5, 1.0, %v18761_v59  ;;  %v7489_v61 = vsel %vm775_vm6, 1.0, %v18761_v59  ;;  %vm1031_vm8 = vcmp.ne.f32.partialorder %v517_v53, 0.0 }
 0x259   :  { %v16378_v36 = vpop.f32.mrb[150].mxu0  ;;  %7121 = vst.msk [vmem:[%s18610_s3 + $0xc48] sm:$0xff] %vm2337_vm1, %v6609_v33  ;;  %v2188_v37 = vpack.c.bf16 %v7489_v61, %v7488_v51  ;;  %v7744_v25 = vsel %vm1030_vm7, 1.0, %v18761_v59  ;;  %v7745_v3 = vsel %vm1031_vm8, 1.0, %v18761_v59  ;;  %vm776_vm9 = vcmp.ne.f32.partialorder %v262_v43, 0.0  ;;  %v16386_v57 = vpop.f32.mrb[150].mxu1 }
 0x25a   :  { %v16388_v17 = vpop.f32.mrb[151].mxu0  ;;  %v2316_v29 = vpack.c.bf16 %v7745_v3, %v7744_v25  ;;  %vm777_vm10 = vcmp.ne.f32.partialorder %v263_v45, 0.0  ;;  %v7490_v7 = vsel %vm776_vm9, 1.0, %v18761_v59  ;;  %vm1032_vm11 = vcmp.ne.f32.partialorder %v518_v24, 0.0  ;;  %v16391_v49 = vpop.f32.mrb[151].mxu1  ;;  %v9077_v23 = vld [vmem:[%s18608_s1 + $0x470] sm:$0xff] }
 0x25b   :  { %8520 = vmatprep.mubr.msk.bf16.mxu0 %vm2337_vm1, %v2188_v37  ;;  %v7491_v9 = vsel %vm777_vm10, 1.0, %v18761_v59  ;;  %vm1033_vm12 = vcmp.ne.f32.partialorder %v519_v2, 0.0  ;;  %v7746_v62 = vsel %vm1032_vm11, 1.0, %v18761_v59  ;;  %v5334_v10 = vmul.f32 %v9077_v23, %v10984_v15  ;;  %v9078_v42 = vld [vmem:[%s18608_s1 + $0xc70] sm:$0xff]  ;;  %v9079_v13 = vld [vmem:[%s18608_s1 + $0x460] sm:$0xff]  ;;  %v265_v19 = vld [vmem:[%s18608_s1 + $0x7c8] sm:$0xff] }
 0x25c   :  { %8776 = vmatprep.mubr.msk.bf16.mxu1 %vm2337_vm1, %v2316_v29  ;;  %v2189_v39 = vpack.c.bf16 %v7491_v9, %v7490_v7  ;;  %v7747_v8 = vsel %vm1033_vm12, 1.0, %v18761_v59  ;;  %vm5846_vm13 = vcmp.gt.f32.partialorder %v16137_v11, 0.0  ;;  %v5590_v58 = vmul.f32 %v9078_v42, %v10984_v15  ;;  %v264_v30 = vld [vmem:[%s18608_s1 + $0x7c0] sm:$0xff]  ;;  %v16429_v34 = vpop.f32.mrb[152].mxu0  ;;  %v9081_v40 = vld [vmem:[%s18608_s1 + $0x478] sm:$0xff]  ;;  %v521_v43 = vld [vmem:[%s18608_s1 + $0xfc8] sm:$0xff] }
 0x25d   :  { %v2317_v12 = vpack.c.bf16 %v7747_v8, %v7746_v62  ;;  %v6358_v21 = vsel %vm5846_vm13, %v5334_v10, nan  ;;  %vm6102_vm14 = vcmp.gt.f32.partialorder %v16144_v0, 0.0  ;;  %v5332_v55 = vmul.f32 %v9079_v13, %v10984_v15  ;;  %v9080_v0 = vld [vmem:[%s18608_s1 + $0xc60] sm:$0xff]  ;;  %v9082_v50 = vld [vmem:[%s18608_s1 + $0xc78] sm:$0xff]  ;;  %v16451_v45 = vpop.f32.mrb[152].mxu1  ;;  %v16453_v16 = vpop.f32.mrb[153].mxu0 }
 0x25e   :  { %8521 = vmatmul.mubr.msk.bf16.gmra.mrb[244].mxu0 %vm2337_vm1, %v2189_v39  ;;  %6870 = vst.msk [vmem:[%s18610_s3 + $0x470] sm:$0xff] %vm2337_vm1, %v6358_v21  ;;  %v6614_v11 = vsel %vm6102_vm14, %v5590_v58, nan  ;;  %vm5844_vm15 = vcmp.gt.f32.partialorder %v16146_v22, 0.0  ;;  %v5588_v52 = vmul.f32 %v9080_v0, %v10984_v15  ;;  %vm6100_vm0 = vcmp.gt.f32.partialorder %v16162_v14, 0.0  ;;  %v520_v53 = vld [vmem:[%s18608_s1 + $0xfc0] sm:$0xff]  ;;  %v9083_v1 = vld [vmem:[%s18608_s1 + $0x468] sm:$0xff] }
 0x25f   :  { %8777 = vmatmul.mubr.msk.bf16.gmra.mrb[244].mxu1 %vm2337_vm1, %v2317_v12  ;;  %7126 = vst.msk [vmem:[%s18610_s3 + $0xc70] sm:$0xff] %vm2337_vm1, %v6614_v11  ;;  %v6356_v22 = vsel %vm5844_vm15, %v5332_v55, nan  ;;  %v5335_v35 = vmul.f32 %v9081_v40, %v10984_v15  ;;  %vm5847_vm2 = vcmp.gt.f32.partialorder %v16164_v44, 0.0  ;;  %v5591_v54 = vmul.f32 %v9082_v50, %v10984_v15  ;;  %v266_v24 = vld [vmem:[%s18608_s1 + $0x7d0] sm:$0xff]  ;;  %v16470_v2 = vpop.f32.mrb[153].mxu1  ;;  %v16472_v20 = vpop.f32.mrb[154].mxu0 }
 0x260   :  { %6868 = vst.msk [vmem:[%s18610_s3 + $0x460] sm:$0xff] %vm2337_vm1, %v6356_v22  ;;  %v6612_v6 = vsel %vm6100_vm0, %v5588_v52, nan  ;;  %vm6103_vm3 = vcmp.gt.f32.partialorder %v16186_v27, 0.0  ;;  %v5333_v60 = vmul.f32 %v9083_v1, %v10984_v15  ;;  %vm5845_vm4 = vcmp.gt.f32.partialorder %v16188_v31, 0.0  ;;  %v9084_v31 = vld [vmem:[%s18608_s1 + $0xc68] sm:$0xff]  ;;  %v267_v51 = vld [vmem:[%s18608_s1 + $0x7d8] sm:$0xff] }
 0x261   :  { %7124 = vst.msk [vmem:[%s18610_s3 + $0xc60] sm:$0xff] %vm2337_vm1, %v6612_v6  ;;  %v6359_v14 = vsel %vm5847_vm2, %v5335_v35, nan  ;;  %v6615_v27 = vsel %vm6103_vm3, %v5591_v54, nan  ;;  %v5589_v33 = vmul.f32 %v9084_v31, %v10984_v15  ;;  %vm6101_vm5 = vcmp.gt.f32.partialorder %v16205_v32, 0.0  ;;  %v16488_v61 = vpop.f32.mrb[154].mxu1  ;;  %v16490_v37 = vpop.f32.mrb[155].mxu0 }
 0x262   :  { %6871 = vst.msk [vmem:[%s18610_s3 + $0x478] sm:$0xff] %vm2337_vm1, %v6359_v14  ;;  %7127 = vst.msk [vmem:[%s18610_s3 + $0xc78] sm:$0xff] %vm2337_vm1, %v6615_v27  ;;  %v6357_v44 = vsel %vm5845_vm4, %v5333_v60, nan  ;;  %vm778_vm6 = vcmp.ne.f32.partialorder %v264_v30, 0.0  ;;  %vm779_vm7 = vcmp.ne.f32.partialorder %v265_v19, 0.0  ;;  %vm1034_vm8 = vcmp.ne.f32.partialorder %v520_v53, 0.0 }
 0x263   :  { %v522_v32 = vld [vmem:[%s18608_s1 + $0xfd0] sm:$0xff]  ;;  %v16503_v25 = vpop.f32.mrb[155].mxu1  ;;  %6869 = vst.msk [vmem:[%s18610_s3 + $0x468] sm:$0xff] %vm2337_vm1, %v6357_v44  ;;  %v6613_v3 = vsel %vm6101_vm5, %v5589_v33, nan  ;;  %v7492_v29 = vsel %vm778_vm6, 1.0, %v18761_v59  ;;  %v7493_v7 = vsel %vm779_vm7, 1.0, %v18761_v59 }
 0x264   :  { %vm1035_vm9 = vcmp.ne.f32.partialorder %v521_v43, 0.0  ;;  %v523_v9 = vld [vmem:[%s18608_s1 + $0xfd8] sm:$0xff]  ;;  %7125 = vst.msk [vmem:[%s18610_s3 + $0xc68] sm:$0xff] %vm2337_vm1, %v6613_v3  ;;  %v2190_v62 = vpack.c.bf16 %v7493_v7, %v7492_v29  ;;  %v7748_v23 = vsel %vm1034_vm8, 1.0, %v18761_v59  ;;  %vm780_vm10 = vcmp.ne.f32.partialorder %v266_v24, 0.0  ;;  %v9085_v12 = vld [vmem:[%s18608_s1 + $0x490] sm:$0xff] }
 0x265   :  { %v7749_v10 = vsel %vm1035_vm9, 1.0, %v18761_v59  ;;  %vm781_vm11 = vcmp.ne.f32.partialorder %v267_v51, 0.0  ;;  %v7494_v8 = vsel %vm780_vm10, 1.0, %v18761_v59  ;;  %vm1036_vm12 = vcmp.ne.f32.partialorder %v522_v32, 0.0  ;;  %v16528_v13 = vpop.f32.mrb[156].mxu0  ;;  %v9086_v0 = vld [vmem:[%s18608_s1 + $0xc90] sm:$0xff] }
 0x266   :  { %v2318_v39 = vpack.c.bf16 %v7749_v10, %v7748_v23  ;;  %8524 = vmatprep.mubr.msk.bf16.mxu0 %vm2337_vm1, %v2190_v62  ;;  %v7495_v42 = vsel %vm781_vm11, 1.0, %v18761_v59  ;;  %vm1037_vm13 = vcmp.ne.f32.partialorder %v523_v9, 0.0  ;;  %v7750_v58 = vsel %vm1036_vm12, 1.0, %v18761_v59  ;;  %v16537_v30 = vpop.f32.mrb[156].mxu1  ;;  %v16539_v19 = vpop.f32.mrb[157].mxu0  ;;  %v9087_v35 = vld [vmem:[%s18608_s1 + $0x480] sm:$0xff] }
 0x267   :  { %v5338_v21 = vmul.f32 %v9085_v12, %v10984_v15  ;;  %v2191_v55 = vpack.c.bf16 %v7495_v42, %v7494_v8  ;;  %v7751_v11 = vsel %vm1037_vm13, 1.0, %v18761_v59  ;;  %vm5850_vm14 = vcmp.gt.f32.partialorder %v16250_v48, 0.0  ;;  %v16546_v50 = vpop.f32.mrb[157].mxu1  ;;  %v16548_v54 = vpop.f32.mrb[158].mxu0  ;;  %v9089_v60 = vld [vmem:[%s18608_s1 + $0x498] sm:$0xff]  ;;  %v268_v31 = vld [vmem:[%s18608_s1 + $0x7e0] sm:$0xff] }
 0x268   :  { %8780 = vmatprep.mubr.msk.bf16.mxu1 %vm2337_vm1, %v2318_v39  ;;  %v5594_v52 = vmul.f32 %v9086_v0, %v10984_v15  ;;  %v2319_v22 = vpack.c.bf16 %v7751_v11, %v7750_v58  ;;  %vm6106_vm15 = vcmp.gt.f32.partialorder %v16253_v46, 0.0  ;;  %v5336_v48 = vmul.f32 %v9087_v35, %v10984_v15  ;;  %v9088_v46 = vld [vmem:[%s18608_s1 + $0xc80] sm:$0xff]  ;;  %v16561_v6 = vpop.f32.mrb[158].mxu1  ;;  %v16563_v1 = vpop.f32.mrb[159].mxu0  ;;  %v9090_v14 = vld [vmem:[%s18608_s1 + $0xc98] sm:$0xff]  ;;  %v269_v33 = vld [vmem:[%s18608_s1 + $0x7e8] sm:$0xff] }
 0x269   :  { %v6362_v40 = vsel %vm5850_vm14, %v5338_v21, nan  ;;  %8525 = vmatmul.mubr.msk.bf16.gmra.mrb[248].mxu0 %vm2337_vm1, %v2191_v55  ;;  %vm5848_vm0 = vcmp.gt.f32.partialorder %v16255_v4, 0.0  ;;  %v5592_v43 = vmul.f32 %v9088_v46, %v10984_v15  ;;  %vm6104_vm2 = vcmp.gt.f32.partialorder %v16264_v47, 0.0  ;;  %v524_v51 = vld [vmem:[%s18608_s1 + $0xfe0] sm:$0xff]  ;;  %v16588_v44 = vpop.f32.mrb[159].mxu1  ;;  %v9091_v32 = vld [vmem:[%s18608_s1 + $0x488] sm:$0xff] }
 0x26a   :  { %6874 = vst.msk [vmem:[%s18610_s3 + $0x490] sm:$0xff] %vm2337_vm1, %v6362_v40  ;;  %v6618_v53 = vsel %vm6106_vm15, %v5594_v52, nan  ;;  %8781 = vmatmul.mubr.msk.bf16.gmra.mrb[248].mxu1 %vm2337_vm1, %v2319_v22  ;;  %v6360_v4 = vsel %vm5848_vm0, %v5336_v48, nan  ;;  %v5339_v24 = vmul.f32 %v9089_v60, %v10984_v15  ;;  %vm5851_vm3 = vcmp.gt.f32.partialorder %v16266_v63, 0.0  ;;  %v525_v29 = vld [vmem:[%s18608_s1 + $0xfe8] sm:$0xff]  ;;  %v526_v23 = vld [vmem:[%s18608_s1 + $0xff0] sm:$0xff] }
 0x26b   :  { %7130 = vst.msk [vmem:[%s18610_s3 + $0xc90] sm:$0xff] %vm2337_vm1, %v6618_v53  ;;  %v5595_v27 = vmul.f32 %v9090_v14, %v10984_v15  ;;  %6872 = vst.msk [vmem:[%s18610_s3 + $0x480] sm:$0xff] %vm2337_vm1, %v6360_v4  ;;  %v6616_v63 = vsel %vm6104_vm2, %v5592_v43, nan  ;;  %vm6107_vm4 = vcmp.gt.f32.partialorder %v16275_v38, 0.0  ;;  %v5337_v3 = vmul.f32 %v9091_v32, %v10984_v15  ;;  %v9092_v38 = vld [vmem:[%s18608_s1 + $0xc88] sm:$0xff]  ;;  %v527_v42 = vld [vmem:[%s18608_s1 + $0xff8] sm:$0xff] }
 0x26c   :  { %vm5849_vm5 = vcmp.gt.f32.partialorder %v16277_v56, 0.0  ;;  %7128 = vst.msk [vmem:[%s18610_s3 + $0xc80] sm:$0xff] %vm2337_vm1, %v6616_v63  ;;  %v6363_v47 = vsel %vm5851_vm3, %v5339_v24, nan  ;;  %v5593_v9 = vmul.f32 %v9092_v38, %v10984_v15  ;;  %vm6105_vm6 = vcmp.gt.f32.partialorder %v16284_v18, 0.0  ;;  %v270_v56 = vld [vmem:[%s18608_s1 + $0x7f0] sm:$0xff]  ;;  %v271_v18 = vld [vmem:[%s18608_s1 + $0x7f8] sm:$0xff] }
 0x26d   :  { %v6619_v7 = vsel %vm6107_vm4, %v5595_v27, nan  ;;  %6875 = vst.msk [vmem:[%s18610_s3 + $0x498] sm:$0xff] %vm2337_vm1, %v6363_v47  ;;  %v6361_v62 = vsel %vm5849_vm5, %v5337_v3, nan  ;;  %vm782_vm7 = vcmp.ne.f32.partialorder %v268_v31, 0.0  ;;  %vm783_vm8 = vcmp.ne.f32.partialorder %v269_v33, 0.0  ;;  %v16640_v58 = vpop.f32.mrb[160].mxu0 }
 0x26e   :  { %7131 = vst.msk [vmem:[%s18610_s3 + $0xc98] sm:$0xff] %vm2337_vm1, %v6619_v7  ;;  %vm1038_vm9 = vcmp.ne.f32.partialorder %v524_v51, 0.0  ;;  %6873 = vst.msk [vmem:[%s18610_s3 + $0x488] sm:$0xff] %vm2337_vm1, %v6361_v62  ;;  %v6617_v10 = vsel %vm6105_vm6, %v5593_v9, nan  ;;  %v7496_v39 = vsel %vm782_vm7, 1.0, %v18761_v59  ;;  %v7497_v8 = vsel %vm783_vm8, 1.0, %v18761_v59 }
 0x26f   :  { %vm1039_vm10 = vcmp.ne.f32.partialorder %v525_v29, 0.0  ;;  %7129 = vst.msk [vmem:[%s18610_s3 + $0xc88] sm:$0xff] %vm2337_vm1, %v6617_v10  ;;  %v2192_v12 = vpack.c.bf16 %v7497_v8, %v7496_v39  ;;  %v7752_v21 = vsel %vm1038_vm9, 1.0, %v18761_v59  ;;  %vm784_vm11 = vcmp.ne.f32.partialorder %v270_v56, 0.0  ;;  %v16648_v11 = vpop.f32.mrb[160].mxu1  ;;  %v16650_v0 = vpop.f32.mrb[161].mxu0 }
 0x270   :  { %v7753_v55 = vsel %vm1039_vm10, 1.0, %v18761_v59  ;;  %vm785_vm12 = vcmp.ne.f32.partialorder %v271_v18, 0.0  ;;  %v7498_v22 = vsel %vm784_vm11, 1.0, %v18761_v59  ;;  %vm1040_vm13 = vcmp.ne.f32.partialorder %v526_v23, 0.0  ;;  %v16653_v40 = vpop.f32.mrb[161].mxu1  ;;  %v16655_v35 = vpop.f32.mrb[162].mxu0 }
 0x271   :  { %v2320_v52 = vpack.c.bf16 %v7753_v55, %v7752_v21  ;;  %8528 = vmatprep.mubr.msk.bf16.mxu0 %vm2337_vm1, %v2192_v12  ;;  %v7499_v48 = vsel %vm785_vm12, 1.0, %v18761_v59  ;;  %vm1041_vm14 = vcmp.ne.f32.partialorder %v527_v42, 0.0  ;;  %v7754_v53 = vsel %vm1040_vm13, 1.0, %v18761_v59  ;;  %v9093_v46 = vld [vmem:[%s18608_s1 + $0x4b0] sm:$0xff]  ;;  %v16664_v4 = vpop.f32.mrb[162].mxu1  ;;  %v16666_v60 = vpop.f32.mrb[163].mxu0 }
 0x272   :  { %v5342_v43 = vmul.f32 %v9093_v46, %v10984_v15  ;;  %v2193_v24 = vpack.c.bf16 %v7499_v48, %v7498_v22  ;;  %v7755_v14 = vsel %vm1041_vm14, 1.0, %v18761_v59  ;;  %vm5854_vm15 = vcmp.gt.f32.partialorder %v16356_v5, 0.0  ;;  %v9094_v27 = vld [vmem:[%s18608_s1 + $0xcb0] sm:$0xff]  ;;  %v16675_v33 = vpop.f32.mrb[163].mxu1  ;;  %v9095_v32 = vld [vmem:[%s18608_s1 + $0x4a0] sm:$0xff]  ;;  %v9099_v9 = vld [vmem:[%s18608_s1 + $0x4a8] sm:$0xff] }
 0x273   :  { %8784 = vmatprep.mubr.msk.bf16.mxu1 %vm2337_vm1, %v2320_v52  ;;  %v5598_v31 = vmul.f32 %v9094_v27, %v10984_v15  ;;  %v2321_v51 = vpack.c.bf16 %v7755_v14, %v7754_v53  ;;  %vm6110_vm0 = vcmp.gt.f32.partialorder %v16366_v41, 0.0  ;;  %v5340_v59 = vmul.f32 %v9095_v32, %v10984_v15  ;;  %v9096_v41 = vld [vmem:[%s18608_s1 + $0xca0] sm:$0xff]  ;;  %v16717_v56 = vpop.f32.mrb[164].mxu0  ;;  %v16728_v10 = vpop.f32.mrb[164].mxu1  ;;  %v9101_v8 = vld [vmem:[%s18608_s1 + $0x4d0] sm:$0xff]  ;;  %v9105_v27 = vld [vmem:[%s18608_s1 + $0x4d8] sm:$0xff] }
 0x274   :  { %v6366_v63 = vsel %vm5854_vm15, %v5342_v43, nan  ;;  %8529 = vmatmul.mubr.msk.bf16.gmra.mrb[252].mxu0 %vm2337_vm1, %v2193_v24  ;;  %vm5852_vm2 = vcmp.gt.f32.partialorder %v16368_v26, 0.0  ;;  %v5596_v3 = vmul.f32 %v9096_v41, %v10984_v15  ;;  %vm6108_vm3 = vcmp.gt.f32.partialorder %v16376_v28, 0.0  ;;  %v9097_v26 = vld [vmem:[%s18608_s1 + $0x4b8] sm:$0xff]  ;;  %v9102_v42 = vld [vmem:[%s18608_s1 + $0xcd0] sm:$0xff]  ;;  %v16749_v21 = vpop.f32.mrb[165].mxu1 }
 0x275   :  { %6878 = vst.msk [vmem:[%s18610_s3 + $0x4b0] sm:$0xff] %vm2337_vm1, %v6366_v63  ;;  %v6622_v5 = vsel %vm6110_vm0, %v5598_v31, nan  ;;  %8785 = vmatmul.mubr.msk.bf16.gmra.mrb[252].mxu1 %vm2337_vm1, %v2321_v51  ;;  %v6364_v29 = vsel %vm5852_vm2, %v5340_v59, nan  ;;  %v5343_v47 = vmul.f32 %v9097_v26, %v10984_v15  ;;  %vm5855_vm4 = vcmp.gt.f32.partialorder %v16378_v36, 0.0  ;;  %v9098_v28 = vld [vmem:[%s18608_s1 + $0xcb8] sm:$0xff]  ;;  %v16763_v48 = vpop.f32.mrb[166].mxu1 }
 0x276   :  { %7134 = vst.msk [vmem:[%s18610_s3 + $0xcb0] sm:$0xff] %vm2337_vm1, %v6622_v5  ;;  %v5599_v7 = vmul.f32 %v9098_v28, %v10984_v15  ;;  %6876 = vst.msk [vmem:[%s18610_s3 + $0x4a0] sm:$0xff] %vm2337_vm1, %v6364_v29  ;;  %v6620_v38 = vsel %vm6108_vm3, %v5596_v3, nan  ;;  %vm6111_vm5 = vcmp.gt.f32.partialorder %v16386_v57, 0.0  ;;  %v5341_v36 = vmul.f32 %v9099_v9, %v10984_v15  ;;  %v9100_v57 = vld [vmem:[%s18608_s1 + $0xca8] sm:$0xff]  ;;  %v9109_v3 = vld [vmem:[%s18608_s1 + $0x4f0] sm:$0xff] }
 0x277   :  { %vm5853_vm6 = vcmp.gt.f32.partialorder %v16388_v17, 0.0  ;;  %7132 = vst.msk [vmem:[%s18610_s3 + $0xca0] sm:$0xff] %vm2337_vm1, %v6620_v38  ;;  %v6367_v62 = vsel %vm5855_vm4, %v5343_v47, nan  ;;  %v5597_v23 = vmul.f32 %v9100_v57, %v10984_v15  ;;  %vm6109_vm7 = vcmp.gt.f32.partialorder %v16391_v49, 0.0  ;;  %v16730_v17 = vpop.f32.mrb[165].mxu0  ;;  %v9107_v32 = vld [vmem:[%s18608_s1 + $0x4c8] sm:$0xff] }
 0x278   :  { %v6623_v18 = vsel %vm6111_vm5, %v5599_v7, nan  ;;  %6879 = vst.msk [vmem:[%s18610_s3 + $0x4b8] sm:$0xff] %vm2337_vm1, %v6367_v62  ;;  %v6365_v39 = vsel %vm5853_vm6, %v5341_v36, nan  ;;  %v5346_v49 = vmul.f32 %v9101_v8, %v10984_v15  ;;  %vm5858_vm8 = vcmp.gt.f32.partialorder %v16429_v34, 0.0  ;;  %v16751_v55 = vpop.f32.mrb[166].mxu0  ;;  %v9103_v34 = vld [vmem:[%s18608_s1 + $0x4c0] sm:$0xff] }
 0x279   :  { %7135 = vst.msk [vmem:[%s18610_s3 + $0xcb8] sm:$0xff] %vm2337_vm1, %v6623_v18  ;;  %v5602_v12 = vmul.f32 %v9102_v42, %v10984_v15  ;;  %6877 = vst.msk [vmem:[%s18610_s3 + $0x4a8] sm:$0xff] %vm2337_vm1, %v6365_v39  ;;  %v6621_v52 = vsel %vm6109_vm7, %v5597_v23, nan  ;;  %vm6114_vm9 = vcmp.gt.f32.partialorder %v16451_v45, 0.0  ;;  %v5344_v22 = vmul.f32 %v9103_v34, %v10984_v15  ;;  %v16765_v53 = vpop.f32.mrb[167].mxu0  ;;  %v9104_v45 = vld [vmem:[%s18608_s1 + $0xcc0] sm:$0xff] }
 0x27a   :  { %vm5856_vm10 = vcmp.gt.f32.partialorder %v16453_v16, 0.0  ;;  %7133 = vst.msk [vmem:[%s18610_s3 + $0xca8] sm:$0xff] %vm2337_vm1, %v6621_v52  ;;  %v6370_v46 = vsel %vm5858_vm8, %v5346_v49, nan  ;;  %v5600_v24 = vmul.f32 %v9104_v45, %v10984_v15  ;;  %vm6112_vm11 = vcmp.gt.f32.partialorder %v16470_v2, 0.0  ;;  %v16776_v16 = vpop.f32.mrb[167].mxu1  ;;  %v9106_v2 = vld [vmem:[%s18608_s1 + $0xcd8] sm:$0xff] }
 0x27b   :  { %v6626_v43 = vsel %vm6114_vm9, %v5602_v12, nan  ;;  %6882 = vst.msk [vmem:[%s18610_s3 + $0x4d0] sm:$0xff] %vm2337_vm1, %v6370_v46  ;;  %v6368_v14 = vsel %vm5856_vm10, %v5344_v22, nan  ;;  %v5347_v31 = vmul.f32 %v9105_v27, %v10984_v15  ;;  %vm5859_vm12 = vcmp.gt.f32.partialorder %v16472_v20, 0.0  ;;  %v9108_v41 = vld [vmem:[%s18608_s1 + $0xcc8] sm:$0xff]  ;;  %v16831_v47 = vpop.f32.mrb[168].mxu0 }
 0x27c   :  { %7138 = vst.msk [vmem:[%s18610_s3 + $0xcd0] sm:$0xff] %vm2337_vm1, %v6626_v43  ;;  %v5603_v51 = vmul.f32 %v9106_v2, %v10984_v15  ;;  %6880 = vst.msk [vmem:[%s18610_s3 + $0x4c0] sm:$0xff] %vm2337_vm1, %v6368_v14  ;;  %v6624_v63 = vsel %vm6112_vm11, %v5600_v24, nan  ;;  %vm6115_vm13 = vcmp.gt.f32.partialorder %v16488_v61, 0.0  ;;  %v5345_v20 = vmul.f32 %v9107_v32, %v10984_v15  ;;  %v16843_v38 = vpop.f32.mrb[168].mxu1  ;;  %v16845_v9 = vpop.f32.mrb[169].mxu0 }
 0x27d   :  { %vm5857_vm14 = vcmp.gt.f32.partialorder %v16490_v37, 0.0  ;;  %7136 = vst.msk [vmem:[%s18610_s3 + $0xcc0] sm:$0xff] %vm2337_vm1, %v6624_v63  ;;  %v6371_v59 = vsel %vm5859_vm12, %v5347_v31, nan  ;;  %v5601_v61 = vmul.f32 %v9108_v41, %v10984_v15  ;;  %vm6113_vm15 = vcmp.gt.f32.partialorder %v16503_v25, 0.0  ;;  %v9110_v25 = vld [vmem:[%s18608_s1 + $0xcf0] sm:$0xff]  ;;  %v16858_v57 = vpop.f32.mrb[170].mxu0 }
 0x27e   :  { %v6627_v5 = vsel %vm6115_vm13, %v5603_v51, nan  ;;  %6883 = vst.msk [vmem:[%s18610_s3 + $0x4d8] sm:$0xff] %vm2337_vm1, %v6371_v59  ;;  %v6369_v37 = vsel %vm5857_vm14, %v5345_v20, nan  ;;  %v5350_v29 = vmul.f32 %v9109_v3, %v10984_v15  ;;  %vm5862_vm0 = vcmp.gt.f32.partialorder %v16528_v13, 0.0  ;;  %v9111_v13 = vld [vmem:[%s18608_s1 + $0x4e0] sm:$0xff]  ;;  %v9113_v39 = vld [vmem:[%s18608_s1 + $0x4f8] sm:$0xff] }
 0x27f   :  { %7139 = vst.msk [vmem:[%s18610_s3 + $0xcd8] sm:$0xff] %vm2337_vm1, %v6627_v5  ;;  %v5606_v26 = vmul.f32 %v9110_v25, %v10984_v15  ;;  %6881 = vst.msk [vmem:[%s18610_s3 + $0x4c8] sm:$0xff] %vm2337_vm1, %v6369_v37  ;;  %v6625_v28 = vsel %vm6113_vm15, %v5601_v61, nan  ;;  %vm6118_vm2 = vcmp.gt.f32.partialorder %v16537_v30, 0.0  ;;  %v5348_v7 = vmul.f32 %v9111_v13, %v10984_v15  ;;  %v9112_v30 = vld [vmem:[%s18608_s1 + $0xce0] sm:$0xff]  ;;  %v9114_v8 = vld [vmem:[%s18608_s1 + $0xcf8] sm:$0xff] }
 0x280   :  { %vm5860_vm3 = vcmp.gt.f32.partialorder %v16539_v19, 0.0  ;;  %7137 = vst.msk [vmem:[%s18610_s3 + $0xcc8] sm:$0xff] %vm2337_vm1, %v6625_v28  ;;  %v6374_v36 = vsel %vm5862_vm0, %v5350_v29, nan  ;;  %v5604_v18 = vmul.f32 %v9112_v30, %v10984_v15  ;;  %vm6116_vm4 = vcmp.gt.f32.partialorder %v16546_v50, 0.0  ;;  %v16856_v19 = vpop.f32.mrb[169].mxu1  ;;  %v16879_v12 = vpop.f32.mrb[171].mxu0 }
 0x281   :  { %v6630_v62 = vsel %vm6118_vm2, %v5606_v26, nan  ;;  %6886 = vst.msk [vmem:[%s18610_s3 + $0x4f0] sm:$0xff] %vm2337_vm1, %v6374_v36  ;;  %v6372_v23 = vsel %vm5860_vm3, %v5348_v7, nan  ;;  %v5351_v50 = vmul.f32 %v9113_v39, %v10984_v15  ;;  %vm5863_vm5 = vcmp.gt.f32.partialorder %v16548_v54, 0.0  ;;  %v16877_v42 = vpop.f32.mrb[170].mxu1  ;;  %v9115_v54 = vld [vmem:[%s18608_s1 + $0x4e8] sm:$0xff] }
 0x282   :  { %7142 = vst.msk [vmem:[%s18610_s3 + $0xcf0] sm:$0xff] %vm2337_vm1, %v6630_v62  ;;  %v5607_v49 = vmul.f32 %v9114_v8, %v10984_v15  ;;  %6884 = vst.msk [vmem:[%s18610_s3 + $0x4e0] sm:$0xff] %vm2337_vm1, %v6372_v23  ;;  %v6628_v52 = vsel %vm6116_vm4, %v5604_v18, nan  ;;  %vm6119_vm6 = vcmp.gt.f32.partialorder %v16561_v6, 0.0  ;;  %v5349_v34 = vmul.f32 %v9115_v54, %v10984_v15  ;;  %v16891_v22 = vpop.f32.mrb[171].mxu1  ;;  %v9116_v6 = vld [vmem:[%s18608_s1 + $0xce8] sm:$0xff] }
 0x283   :  { %vm5861_vm7 = vcmp.gt.f32.partialorder %v16563_v1, 0.0  ;;  %7140 = vst.msk [vmem:[%s18610_s3 + $0xce0] sm:$0xff] %vm2337_vm1, %v6628_v52  ;;  %v6375_v46 = vsel %vm5863_vm5, %v5351_v50, nan  ;;  %v5605_v45 = vmul.f32 %v9116_v6, %v10984_v15  ;;  %vm6117_vm8 = vcmp.gt.f32.partialorder %v16588_v44, 0.0  ;;  %v9117_v24 = vld [vmem:[%s18608_s1 + $0x510] sm:$0xff]  ;;  %v9119_v2 = vld [vmem:[%s18608_s1 + $0x500] sm:$0xff] }
 0x284   :  { %v6631_v43 = vsel %vm6119_vm6, %v5607_v49, nan  ;;  %6887 = vst.msk [vmem:[%s18610_s3 + $0x4f8] sm:$0xff] %vm2337_vm1, %v6375_v46  ;;  %v6373_v1 = vsel %vm5861_vm7, %v5349_v34, nan  ;;  %v5354_v14 = vmul.f32 %v9117_v24, %v10984_v15  ;;  %vm5866_vm9 = vcmp.gt.f32.partialorder %v16640_v58, 0.0  ;;  %v9118_v44 = vld [vmem:[%s18608_s1 + $0xd10] sm:$0xff]  ;;  %v9120_v32 = vld [vmem:[%s18608_s1 + $0xd00] sm:$0xff] }
 0x285   :  { %7143 = vst.msk [vmem:[%s18610_s3 + $0xcf8] sm:$0xff] %vm2337_vm1, %v6631_v43  ;;  %v5610_v27 = vmul.f32 %v9118_v44, %v10984_v15  ;;  %6885 = vst.msk [vmem:[%s18610_s3 + $0x4e8] sm:$0xff] %vm2337_vm1, %v6373_v1  ;;  %v6629_v31 = vsel %vm6117_vm8, %v5605_v45, nan  ;;  %vm6122_vm10 = vcmp.gt.f32.partialorder %v16648_v11, 0.0  ;;  %v5352_v58 = vmul.f32 %v9119_v2, %v10984_v15  ;;  %v16938_v20 = vpop.f32.mrb[172].mxu0  ;;  %v9121_v59 = vld [vmem:[%s18608_s1 + $0x518] sm:$0xff] }
 0x286   :  { %vm5864_vm11 = vcmp.gt.f32.partialorder %v16650_v0, 0.0  ;;  %7141 = vst.msk [vmem:[%s18610_s3 + $0xce8] sm:$0xff] %vm2337_vm1, %v6629_v31  ;;  %v6378_v51 = vsel %vm5866_vm9, %v5354_v14, nan  ;;  %v5608_v11 = vmul.f32 %v9120_v32, %v10984_v15  ;;  %vm6120_vm12 = vcmp.gt.f32.partialorder %v16653_v40, 0.0  ;;  %v9122_v40 = vld [vmem:[%s18608_s1 + $0xd18] sm:$0xff]  ;;  %v16957_v61 = vpop.f32.mrb[172].mxu1 }
 0x287   :  { %v6634_v63 = vsel %vm6122_vm10, %v5610_v27, nan  ;;  %6890 = vst.msk [vmem:[%s18610_s3 + $0x510] sm:$0xff] %vm2337_vm1, %v6378_v51  ;;  %v6376_v0 = vsel %vm5864_vm11, %v5352_v58, nan  ;;  %v5355_v5 = vmul.f32 %v9121_v59, %v10984_v15  ;;  %vm5867_vm13 = vcmp.gt.f32.partialorder %v16655_v35, 0.0  ;;  %v16959_v37 = vpop.f32.mrb[173].mxu0  ;;  %v9123_v35 = vld [vmem:[%s18608_s1 + $0x508] sm:$0xff] }
 0x288   :  { %7146 = vst.msk [vmem:[%s18610_s3 + $0xd10] sm:$0xff] %vm2337_vm1, %v6634_v63  ;;  %v5611_v41 = vmul.f32 %v9122_v40, %v10984_v15  ;;  %6888 = vst.msk [vmem:[%s18610_s3 + $0x500] sm:$0xff] %vm2337_vm1, %v6376_v0  ;;  %v6632_v3 = vsel %vm6120_vm12, %v5608_v11, nan  ;;  %vm6123_vm14 = vcmp.gt.f32.partialorder %v16664_v4, 0.0  ;;  %v5353_v29 = vmul.f32 %v9123_v35, %v10984_v15  ;;  %v16971_v25 = vpop.f32.mrb[173].mxu1  ;;  %v16973_v26 = vpop.f32.mrb[174].mxu0 }
 0x289   :  { %vm5865_vm15 = vcmp.gt.f32.partialorder %v16666_v60, 0.0  ;;  %7144 = vst.msk [vmem:[%s18610_s3 + $0xd00] sm:$0xff] %vm2337_vm1, %v6632_v3  ;;  %v6379_v28 = vsel %vm5867_vm13, %v5355_v5, nan  ;;  %v9124_v4 = vld [vmem:[%s18608_s1 + $0xd08] sm:$0xff]  ;;  %vm6121_vm0 = vcmp.gt.f32.partialorder %v16675_v33, 0.0  ;;  %v16984_v60 = vpop.f32.mrb[174].mxu1 }
 0x28a   :  { %v6635_v13 = vsel %vm6123_vm14, %v5611_v41, nan  ;;  %v5609_v7 = vmul.f32 %v9124_v4, %v10984_v15  ;;  %v16986_v36 = vpop.f32.mrb[175].mxu0  ;;  %6891 = vst.msk [vmem:[%s18610_s3 + $0x518] sm:$0xff] %vm2337_vm1, %v6379_v28  ;;  %v6377_v62 = vsel %vm5865_vm15, %v5353_v29, nan  ;;  %v9125_v30 = vld [vmem:[%s18608_s1 + $0x530] sm:$0xff]  ;;  %vm5870_vm2 = vcmp.gt.f32.partialorder %v16717_v56, 0.0 }
 0x28b   :  { %7147 = vst.msk [vmem:[%s18610_s3 + $0xd18] sm:$0xff] %vm2337_vm1, %v6635_v13  ;;  %v5358_v33 = vmul.f32 %v9125_v30, %v10984_v15  ;;  %v9126_v18 = vld [vmem:[%s18608_s1 + $0xd30] sm:$0xff]  ;;  %v17005_v39 = vpop.f32.mrb[175].mxu1  ;;  %6889 = vst.msk [vmem:[%s18610_s3 + $0x508] sm:$0xff] %vm2337_vm1, %v6377_v62  ;;  %vm6126_vm3 = vcmp.gt.f32.partialorder %v16728_v10, 0.0  ;;  %v9127_v56 = vld [vmem:[%s18608_s1 + $0x520] sm:$0xff] }
 0x28c   :  { %v5614_v23 = vmul.f32 %v9126_v18, %v10984_v15  ;;  %v6633_v50 = vsel %vm6121_vm0, %v5609_v7, nan  ;;  %v5356_v8 = vmul.f32 %v9127_v56, %v10984_v15  ;;  %vm5868_vm4 = vcmp.gt.f32.partialorder %v16730_v17, 0.0  ;;  %v9128_v54 = vld [vmem:[%s18608_s1 + $0xd20] sm:$0xff]  ;;  %v9129_v34 = vld [vmem:[%s18608_s1 + $0x538] sm:$0xff]  ;;  %v9131_v45 = vld [vmem:[%s18608_s1 + $0x528] sm:$0xff]  ;;  %v17053_v1 = vpop.f32.mrb[176].mxu0 }
 0x28d   :  { %7145 = vst.msk [vmem:[%s18610_s3 + $0xd08] sm:$0xff] %vm2337_vm1, %v6633_v50  ;;  %v6382_v49 = vsel %vm5870_vm2, %v5358_v33, nan  ;;  %v5612_v10 = vmul.f32 %v9128_v54, %v10984_v15  ;;  %vm6124_vm5 = vcmp.gt.f32.partialorder %v16749_v21, 0.0  ;;  %v5359_v46 = vmul.f32 %v9129_v34, %v10984_v15  ;;  %v9130_v21 = vld [vmem:[%s18608_s1 + $0xd38] sm:$0xff]  ;;  %v17064_v27 = vpop.f32.mrb[176].mxu1  ;;  %v9133_v2 = vld [vmem:[%s18608_s1 + $0x550] sm:$0xff] }
 0x28e   :  { %v6638_v52 = vsel %vm6126_vm3, %v5614_v23, nan  ;;  %6894 = vst.msk [vmem:[%s18610_s3 + $0x530] sm:$0xff] %vm2337_vm1, %v6382_v49  ;;  %v6380_v17 = vsel %vm5868_vm4, %v5356_v8, nan  ;;  %vm5871_vm6 = vcmp.gt.f32.partialorder %v16751_v55, 0.0  ;;  %v5615_v43 = vmul.f32 %v9130_v21, %v10984_v15  ;;  %v9134_v58 = vld [vmem:[%s18608_s1 + $0xd50] sm:$0xff]  ;;  %v17085_v63 = vpop.f32.mrb[177].mxu1 }
 0x28f   :  { %7150 = vst.msk [vmem:[%s18610_s3 + $0xd30] sm:$0xff] %vm2337_vm1, %v6638_v52  ;;  %6892 = vst.msk [vmem:[%s18610_s3 + $0x520] sm:$0xff] %vm2337_vm1, %v6380_v17  ;;  %v6636_v6 = vsel %vm6124_vm5, %v5612_v10, nan  ;;  %vm6127_vm7 = vcmp.gt.f32.partialorder %v16763_v48, 0.0  ;;  %v5357_v55 = vmul.f32 %v9131_v45, %v10984_v15  ;;  %vm5869_vm8 = vcmp.gt.f32.partialorder %v16765_v53, 0.0  ;;  %v9132_v48 = vld [vmem:[%s18608_s1 + $0xd28] sm:$0xff] }
 0x290   :  { %7148 = vst.msk [vmem:[%s18610_s3 + $0xd20] sm:$0xff] %vm2337_vm1, %v6636_v6  ;;  %v6383_v24 = vsel %vm5871_vm6, %v5359_v46, nan  ;;  %v6639_v14 = vsel %vm6127_vm7, %v5615_v43, nan  ;;  %v5613_v44 = vmul.f32 %v9132_v48, %v10984_v15  ;;  %vm6125_vm9 = vcmp.gt.f32.partialorder %v16776_v16, 0.0  ;;  %v17066_v53 = vpop.f32.mrb[177].mxu0  ;;  %v17099_v59 = vpop.f32.mrb[178].mxu1 }
 0x291   :  { %6895 = vst.msk [vmem:[%s18610_s3 + $0x538] sm:$0xff] %vm2337_vm1, %v6383_v24  ;;  %7151 = vst.msk [vmem:[%s18610_s3 + $0xd38] sm:$0xff] %vm2337_vm1, %v6639_v14  ;;  %v6381_v31 = vsel %vm5869_vm8, %v5357_v55, nan  ;;  %v5362_v16 = vmul.f32 %v9133_v2, %v10984_v15  ;;  %vm5874_vm10 = vcmp.gt.f32.partialorder %v16831_v47, 0.0  ;;  %v5618_v51 = vmul.f32 %v9134_v58, %v10984_v15  ;;  %v17087_v32 = vpop.f32.mrb[178].mxu0  ;;  %v9135_v47 = vld [vmem:[%s18608_s1 + $0x540] sm:$0xff] }
 0x292   :  { %6893 = vst.msk [vmem:[%s18610_s3 + $0x528] sm:$0xff] %vm2337_vm1, %v6381_v31  ;;  %v6637_v11 = vsel %vm6125_vm9, %v5613_v44, nan  ;;  %vm6130_vm11 = vcmp.gt.f32.partialorder %v16843_v38, 0.0  ;;  %v5360_v0 = vmul.f32 %v9135_v47, %v10984_v15  ;;  %vm5872_vm12 = vcmp.gt.f32.partialorder %v16845_v9, 0.0  ;;  %v17101_v5 = vpop.f32.mrb[179].mxu0  ;;  %v9136_v38 = vld [vmem:[%s18608_s1 + $0xd40] sm:$0xff] }
 0x293   :  { %7149 = vst.msk [vmem:[%s18610_s3 + $0xd28] sm:$0xff] %vm2337_vm1, %v6637_v11  ;;  %v6386_v40 = vsel %vm5874_vm10, %v5362_v16, nan  ;;  %v6642_v41 = vsel %vm6130_vm11, %v5618_v51, nan  ;;  %v5616_v3 = vmul.f32 %v9136_v38, %v10984_v15  ;;  %vm6128_vm13 = vcmp.gt.f32.partialorder %v16856_v19, 0.0  ;;  %v17112_v9 = vpop.f32.mrb[179].mxu1  ;;  %v9137_v29 = vld [vmem:[%s18608_s1 + $0x558] sm:$0xff] }
 0x294   :  { %6898 = vst.msk [vmem:[%s18610_s3 + $0x550] sm:$0xff] %vm2337_vm1, %v6386_v40  ;;  %7154 = vst.msk [vmem:[%s18610_s3 + $0xd50] sm:$0xff] %vm2337_vm1, %v6642_v41  ;;  %v6384_v35 = vsel %vm5872_vm12, %v5360_v0, nan  ;;  %v5363_v28 = vmul.f32 %v9137_v29, %v10984_v15  ;;  %vm5875_vm14 = vcmp.gt.f32.partialorder %v16858_v57, 0.0  ;;  %v9138_v19 = vld [vmem:[%s18608_s1 + $0xd58] sm:$0xff]  ;;  %vm6131_vm15 = vcmp.gt.f32.partialorder %v16877_v42, 0.0 }
 0x295   :  { %v5619_v13 = vmul.f32 %v9138_v19, %v10984_v15  ;;  %6896 = vst.msk [vmem:[%s18610_s3 + $0x540] sm:$0xff] %vm2337_vm1, %v6384_v35  ;;  %v6640_v4 = vsel %vm6128_vm13, %v5616_v3, nan  ;;  %v9139_v7 = vld [vmem:[%s18608_s1 + $0x548] sm:$0xff]  ;;  %vm5873_vm0 = vcmp.gt.f32.partialorder %v16879_v12, 0.0  ;;  %vm6129_vm2 = vcmp.gt.f32.partialorder %v16891_v22, 0.0  ;;  %v9141_v18 = vld [vmem:[%s18608_s1 + $0x570] sm:$0xff] }
 0x296   :  { %v5361_v57 = vmul.f32 %v9139_v7, %v10984_v15  ;;  %7152 = vst.msk [vmem:[%s18610_s3 + $0xd40] sm:$0xff] %vm2337_vm1, %v6640_v4  ;;  %v6387_v62 = vsel %vm5875_vm14, %v5363_v28, nan  ;;  %v9140_v33 = vld [vmem:[%s18608_s1 + $0xd48] sm:$0xff]  ;;  %v5366_v23 = vmul.f32 %v9141_v18, %v10984_v15  ;;  %vm5878_vm3 = vcmp.gt.f32.partialorder %v16938_v20, 0.0  ;;  %v9142_v22 = vld [vmem:[%s18608_s1 + $0xd70] sm:$0xff]  ;;  %v17167_v56 = vpop.f32.mrb[180].mxu0 }
 0x297   :  { %v6643_v30 = vsel %vm6131_vm15, %v5619_v13, nan  ;;  %v5617_v42 = vmul.f32 %v9140_v33, %v10984_v15  ;;  %6899 = vst.msk [vmem:[%s18610_s3 + $0x558] sm:$0xff] %vm2337_vm1, %v6387_v62  ;;  %v5622_v50 = vmul.f32 %v9142_v22, %v10984_v15  ;;  %vm6134_vm4 = vcmp.gt.f32.partialorder %v16957_v61, 0.0  ;;  %v9143_v20 = vld [vmem:[%s18608_s1 + $0x560] sm:$0xff]  ;;  %v17179_v52 = vpop.f32.mrb[180].mxu1  ;;  %v17181_v54 = vpop.f32.mrb[181].mxu0 }
 0x298   :  { %7155 = vst.msk [vmem:[%s18610_s3 + $0xd58] sm:$0xff] %vm2337_vm1, %v6643_v30  ;;  %v6385_v12 = vsel %vm5873_vm0, %v5361_v57, nan  ;;  %v5364_v49 = vmul.f32 %v9143_v20, %v10984_v15  ;;  %vm5876_vm5 = vcmp.gt.f32.partialorder %v16959_v37, 0.0  ;;  %v6390_v10 = vsel %vm5878_vm3, %v5366_v23, nan  ;;  %v9144_v61 = vld [vmem:[%s18608_s1 + $0xd60] sm:$0xff]  ;;  %v17192_v37 = vpop.f32.mrb[181].mxu1 }
 0x299   :  { %6897 = vst.msk [vmem:[%s18610_s3 + $0x548] sm:$0xff] %vm2337_vm1, %v6385_v12  ;;  %v6641_v8 = vsel %vm6129_vm2, %v5617_v42, nan  ;;  %v6646_v17 = vsel %vm6134_vm4, %v5622_v50, nan  ;;  %v5620_v34 = vmul.f32 %v9144_v61, %v10984_v15  ;;  %vm6132_vm6 = vcmp.gt.f32.partialorder %v16971_v25, 0.0  ;;  %v17194_v46 = vpop.f32.mrb[182].mxu0  ;;  %6902 = vst.msk [vmem:[%s18610_s3 + $0x570] sm:$0xff] %vm2337_vm1, %v6390_v10 }
 0x29a   :  { %7153 = vst.msk [vmem:[%s18610_s3 + $0xd48] sm:$0xff] %vm2337_vm1, %v6641_v8  ;;  %7158 = vst.msk [vmem:[%s18610_s3 + $0xd70] sm:$0xff] %vm2337_vm1, %v6646_v17  ;;  %v6388_v21 = vsel %vm5876_vm5, %v5364_v49, nan  ;;  %v9145_v43 = vld [vmem:[%s18608_s1 + $0x578] sm:$0xff]  ;;  %vm5879_vm7 = vcmp.gt.f32.partialorder %v16973_v26, 0.0  ;;  %v17213_v55 = vpop.f32.mrb[182].mxu1 }
 0x29b   :  { %v5367_v25 = vmul.f32 %v9145_v43, %v10984_v15  ;;  %v9146_v6 = vld [vmem:[%s18608_s1 + $0xd78] sm:$0xff]  ;;  %v17215_v24 = vpop.f32.mrb[183].mxu0  ;;  %6900 = vst.msk [vmem:[%s18610_s3 + $0x560] sm:$0xff] %vm2337_vm1, %v6388_v21  ;;  %v6644_v14 = vsel %vm6132_vm6, %v5620_v34, nan  ;;  %vm6135_vm8 = vcmp.gt.f32.partialorder %v16984_v60, 0.0  ;;  %v9147_v26 = vld [vmem:[%s18608_s1 + $0x568] sm:$0xff] }
 0x29c   :  { %v5623_v45 = vmul.f32 %v9146_v6, %v10984_v15  ;;  %v5365_v48 = vmul.f32 %v9147_v26, %v10984_v15  ;;  %vm5877_vm9 = vcmp.gt.f32.partialorder %v16986_v36, 0.0  ;;  %v17227_v44 = vpop.f32.mrb[183].mxu1  ;;  %7156 = vst.msk [vmem:[%s18610_s3 + $0xd60] sm:$0xff] %vm2337_vm1, %v6644_v14  ;;  %v9148_v60 = vld [vmem:[%s18608_s1 + $0xd68] sm:$0xff]  ;;  %vm6133_vm10 = vcmp.gt.f32.partialorder %v17005_v39, 0.0  ;;  %v9149_v58 = vld [vmem:[%s18608_s1 + $0x590] sm:$0xff] }
 0x29d   :  { %v6391_v31 = vsel %vm5879_vm7, %v5367_v25, nan  ;;  %v5621_v16 = vmul.f32 %v9148_v60, %v10984_v15  ;;  %v5370_v51 = vmul.f32 %v9149_v58, %v10984_v15  ;;  %vm5882_vm11 = vcmp.gt.f32.partialorder %v17053_v1, 0.0  ;;  %v9150_v39 = vld [vmem:[%s18608_s1 + $0xd90] sm:$0xff]  ;;  %v9151_v0 = vld [vmem:[%s18608_s1 + $0x580] sm:$0xff]  ;;  %v17274_v3 = vpop.f32.mrb[184].mxu0  ;;  %v9153_v35 = vld [vmem:[%s18608_s1 + $0x598] sm:$0xff] }
 0x29e   :  { %v6647_v2 = vsel %vm6135_vm8, %v5623_v45, nan  ;;  %6903 = vst.msk [vmem:[%s18610_s3 + $0x578] sm:$0xff] %vm2337_vm1, %v6391_v31  ;;  %v6389_v36 = vsel %vm5877_vm9, %v5365_v48, nan  ;;  %v5626_v11 = vmul.f32 %v9150_v39, %v10984_v15  ;;  %vm6138_vm12 = vcmp.gt.f32.partialorder %v17064_v27, 0.0  ;;  %v9152_v38 = vld [vmem:[%s18608_s1 + $0xd80] sm:$0xff]  ;;  %v17293_v19 = vpop.f32.mrb[184].mxu1 }
 0x29f   :  { %7159 = vst.msk [vmem:[%s18610_s3 + $0xd78] sm:$0xff] %vm2337_vm1, %v6647_v2  ;;  %6901 = vst.msk [vmem:[%s18610_s3 + $0x568] sm:$0xff] %vm2337_vm1, %v6389_v36  ;;  %v6645_v47 = vsel %vm6133_vm10, %v5621_v16, nan  ;;  %v5368_v1 = vmul.f32 %v9151_v0, %v10984_v15  ;;  %vm5880_vm13 = vcmp.gt.f32.partialorder %v17066_v53, 0.0  ;;  %v6394_v40 = vsel %vm5882_vm11, %v5370_v51, nan  ;;  %v17295_v13 = vpop.f32.mrb[185].mxu0 }
 0x2a0   :  { %7157 = vst.msk [vmem:[%s18610_s3 + $0xd68] sm:$0xff] %vm2337_vm1, %v6645_v47  ;;  %v6650_v41 = vsel %vm6138_vm12, %v5626_v11, nan  ;;  %v5624_v27 = vmul.f32 %v9152_v38, %v10984_v15  ;;  %vm6136_vm14 = vcmp.gt.f32.partialorder %v17085_v63, 0.0  ;;  %6906 = vst.msk [vmem:[%s18610_s3 + $0x590] sm:$0xff] %vm2337_vm1, %v6394_v40  ;;  %v5371_v29 = vmul.f32 %v9153_v35, %v10984_v15  ;;  %v9154_v63 = vld [vmem:[%s18608_s1 + $0xd98] sm:$0xff]  ;;  %v17307_v57 = vpop.f32.mrb[185].mxu1 }
 0x2a1   :  { %7162 = vst.msk [vmem:[%s18610_s3 + $0xd90] sm:$0xff] %vm2337_vm1, %v6650_v41  ;;  %v6392_v53 = vsel %vm5880_vm13, %v5368_v1, nan  ;;  %vm5883_vm15 = vcmp.gt.f32.partialorder %v17087_v32, 0.0  ;;  %v5627_v28 = vmul.f32 %v9154_v63, %v10984_v15  ;;  %vm6139_vm0 = vcmp.gt.f32.partialorder %v17099_v59, 0.0  ;;  %v9155_v32 = vld [vmem:[%s18608_s1 + $0x588] sm:$0xff]  ;;  %v17309_v62 = vpop.f32.mrb[186].mxu0 }
 0x2a2   :  { %6904 = vst.msk [vmem:[%s18610_s3 + $0x580] sm:$0xff] %vm2337_vm1, %v6392_v53  ;;  %v6648_v4 = vsel %vm6136_vm14, %v5624_v27, nan  ;;  %v5369_v7 = vmul.f32 %v9155_v32, %v10984_v15  ;;  %vm5881_vm2 = vcmp.gt.f32.partialorder %v17101_v5, 0.0  ;;  %v6395_v30 = vsel %vm5883_vm15, %v5371_v29, nan  ;;  %v9156_v59 = vld [vmem:[%s18608_s1 + $0xd88] sm:$0xff]  ;;  %v17320_v5 = vpop.f32.mrb[186].mxu1 }
 0x2a3   :  { %7160 = vst.msk [vmem:[%s18610_s3 + $0xd80] sm:$0xff] %vm2337_vm1, %v6648_v4  ;;  %v6651_v33 = vsel %vm6139_vm0, %v5627_v28, nan  ;;  %v5625_v42 = vmul.f32 %v9156_v59, %v10984_v15  ;;  %vm6137_vm3 = vcmp.gt.f32.partialorder %v17112_v9, 0.0  ;;  %v17322_v12 = vpop.f32.mrb[187].mxu0  ;;  %6907 = vst.msk [vmem:[%s18610_s3 + $0x598] sm:$0xff] %vm2337_vm1, %v6395_v30  ;;  %v9157_v23 = vld [vmem:[%s18608_s1 + $0x5b0] sm:$0xff] }
 0x2a4   :  { %7163 = vst.msk [vmem:[%s18610_s3 + $0xd98] sm:$0xff] %vm2337_vm1, %v6651_v33  ;;  %v6393_v18 = vsel %vm5881_vm2, %v5369_v7, nan  ;;  %v5374_v9 = vmul.f32 %v9157_v23, %v10984_v15  ;;  %vm5886_vm4 = vcmp.gt.f32.partialorder %v17167_v56, 0.0  ;;  %v9158_v22 = vld [vmem:[%s18608_s1 + $0xdb0] sm:$0xff]  ;;  %v17341_v8 = vpop.f32.mrb[187].mxu1  ;;  %vm6142_vm5 = vcmp.gt.f32.partialorder %v17179_v52, 0.0 }
 0x2a5   :  { %v5630_v50 = vmul.f32 %v9158_v22, %v10984_v15  ;;  %6905 = vst.msk [vmem:[%s18610_s3 + $0x588] sm:$0xff] %vm2337_vm1, %v6393_v18  ;;  %v6649_v20 = vsel %vm6137_vm3, %v5625_v42, nan  ;;  %v9159_v56 = vld [vmem:[%s18608_s1 + $0x5a0] sm:$0xff]  ;;  %vm5884_vm6 = vcmp.gt.f32.partialorder %v17181_v54, 0.0  ;;  %vm6140_vm7 = vcmp.gt.f32.partialorder %v17192_v37, 0.0  ;;  %v9161_v34 = vld [vmem:[%s18608_s1 + $0x5b8] sm:$0xff] }
 0x2a6   :  { %v5372_v49 = vmul.f32 %v9159_v56, %v10984_v15  ;;  %7161 = vst.msk [vmem:[%s18610_s3 + $0xd88] sm:$0xff] %vm2337_vm1, %v6649_v20  ;;  %v6398_v10 = vsel %vm5886_vm4, %v5374_v9, nan  ;;  %v9160_v61 = vld [vmem:[%s18608_s1 + $0xda0] sm:$0xff]  ;;  %v5375_v21 = vmul.f32 %v9161_v34, %v10984_v15  ;;  %vm5887_vm8 = vcmp.gt.f32.partialorder %v17194_v46, 0.0  ;;  %v9162_v37 = vld [vmem:[%s18608_s1 + $0xdb8] sm:$0xff]  ;;  %v9163_v6 = vld [vmem:[%s18608_s1 + $0x5a8] sm:$0xff] }
 0x2a7   :  { %v6654_v17 = vsel %vm6142_vm5, %v5630_v50, nan  ;;  %v5628_v52 = vmul.f32 %v9160_v61, %v10984_v15  ;;  %6910 = vst.msk [vmem:[%s18610_s3 + $0x5b0] sm:$0xff] %vm2337_vm1, %v6398_v10  ;;  %v5631_v43 = vmul.f32 %v9162_v37, %v10984_v15  ;;  %vm6143_vm9 = vcmp.gt.f32.partialorder %v17213_v55, 0.0  ;;  %v17389_v45 = vpop.f32.mrb[188].mxu0  ;;  %v9164_v55 = vld [vmem:[%s18608_s1 + $0xda8] sm:$0xff]  ;;  %v17400_v31 = vpop.f32.mrb[188].mxu1 }
 0x2a8   :  { %7166 = vst.msk [vmem:[%s18610_s3 + $0xdb0] sm:$0xff] %vm2337_vm1, %v6654_v17  ;;  %v6396_v54 = vsel %vm5884_vm6, %v5372_v49, nan  ;;  %v5373_v46 = vmul.f32 %v9163_v6, %v10984_v15  ;;  %vm5885_vm10 = vcmp.gt.f32.partialorder %v17215_v24, 0.0  ;;  %v6399_v14 = vsel %vm5887_vm8, %v5375_v21, nan  ;;  %v17402_v24 = vpop.f32.mrb[189].mxu0  ;;  %v9165_v60 = vld [vmem:[%s18608_s1 + $0x5d0] sm:$0xff] }
 0x2a9   :  { %6908 = vst.msk [vmem:[%s18610_s3 + $0x5a0] sm:$0xff] %vm2337_vm1, %v6396_v54  ;;  %v6652_v25 = vsel %vm6140_vm7, %v5628_v52, nan  ;;  %v6655_v26 = vsel %vm6143_vm9, %v5631_v43, nan  ;;  %v5629_v48 = vmul.f32 %v9164_v55, %v10984_v15  ;;  %vm6141_vm11 = vcmp.gt.f32.partialorder %v17227_v44, 0.0  ;;  %6911 = vst.msk [vmem:[%s18610_s3 + $0x5b8] sm:$0xff] %vm2337_vm1, %v6399_v14  ;;  %v9166_v16 = vld [vmem:[%s18608_s1 + $0xdd0] sm:$0xff] }
 0x2aa   :  { %7164 = vst.msk [vmem:[%s18610_s3 + $0xda0] sm:$0xff] %vm2337_vm1, %v6652_v25  ;;  %7167 = vst.msk [vmem:[%s18610_s3 + $0xdb8] sm:$0xff] %vm2337_vm1, %v6655_v26  ;;  %v6397_v2 = vsel %vm5885_vm10, %v5373_v46, nan  ;;  %v5378_v44 = vmul.f32 %v9165_v60, %v10984_v15  ;;  %vm5890_vm12 = vcmp.gt.f32.partialorder %v17274_v3, 0.0  ;;  %v5634_v36 = vmul.f32 %v9166_v16, %v10984_v15  ;;  %v17421_v58 = vpop.f32.mrb[189].mxu1  ;;  %v17423_v51 = vpop.f32.mrb[190].mxu0 }
 0x2ab   :  { %6909 = vst.msk [vmem:[%s18610_s3 + $0x5a8] sm:$0xff] %vm2337_vm1, %v6397_v2  ;;  %v6653_v39 = vsel %vm6141_vm11, %v5629_v48, nan  ;;  %vm6146_vm13 = vcmp.gt.f32.partialorder %v17293_v19, 0.0  ;;  %v9167_v11 = vld [vmem:[%s18608_s1 + $0x5c0] sm:$0xff]  ;;  %vm5888_vm14 = vcmp.gt.f32.partialorder %v17295_v13, 0.0  ;;  %v17435_v0 = vpop.f32.mrb[190].mxu1 }
 0x2ac   :  { %v5376_v47 = vmul.f32 %v9167_v11, %v10984_v15  ;;  %v17437_v1 = vpop.f32.mrb[191].mxu0  ;;  %7165 = vst.msk [vmem:[%s18610_s3 + $0xda8] sm:$0xff] %vm2337_vm1, %v6653_v39  ;;  %v6402_v40 = vsel %vm5890_vm12, %v5378_v44, nan  ;;  %v6658_v41 = vsel %vm6146_vm13, %v5634_v36, nan  ;;  %v9168_v38 = vld [vmem:[%s18608_s1 + $0xdc0] sm:$0xff]  ;;  %vm6144_vm15 = vcmp.gt.f32.partialorder %v17307_v57, 0.0 }
 0x2ad   :  { %v5632_v27 = vmul.f32 %v9168_v38, %v10984_v15  ;;  %v17448_v3 = vpop.f32.mrb[191].mxu1  ;;  %6914 = vst.msk [vmem:[%s18610_s3 + $0x5d0] sm:$0xff] %vm2337_vm1, %v6402_v40  ;;  %7170 = vst.msk [vmem:[%s18610_s3 + $0xdd0] sm:$0xff] %vm2337_vm1, %v6658_v41  ;;  %v9169_v35 = vld [vmem:[%s18608_s1 + $0x5d8] sm:$0xff]  ;;  %vm5891_vm0 = vcmp.gt.f32.partialorder %v17309_v62, 0.0  ;;  %vm6147_vm2 = vcmp.gt.f32.partialorder %v17320_v5, 0.0 }
 0x2ae   :  { %v6400_v53 = vsel %vm5888_vm14, %v5376_v47, nan  ;;  %v5379_v29 = vmul.f32 %v9169_v35, %v10984_v15  ;;  %v9170_v63 = vld [vmem:[%s18608_s1 + $0xdd8] sm:$0xff]  ;;  %v9171_v13 = vld [vmem:[%s18608_s1 + $0x5c8] sm:$0xff]  ;;  %vm5889_vm3 = vcmp.gt.f32.partialorder %v17322_v12, 0.0  ;;  %vm6145_vm4 = vcmp.gt.f32.partialorder %v17341_v8, 0.0  ;;  %v9173_v33 = vld [vmem:[%s18608_s1 + $0x5f0] sm:$0xff] }
 0x2af   :  { %v5635_v28 = vmul.f32 %v9170_v63, %v10984_v15  ;;  %6912 = vst.msk [vmem:[%s18610_s3 + $0x5c0] sm:$0xff] %vm2337_vm1, %v6400_v53  ;;  %v6656_v19 = vsel %vm6144_vm15, %v5632_v27, nan  ;;  %v5377_v4 = vmul.f32 %v9171_v13, %v10984_v15  ;;  %v9172_v57 = vld [vmem:[%s18608_s1 + $0xdc8] sm:$0xff]  ;;  %v5382_v59 = vmul.f32 %v9173_v33, %v10984_v15  ;;  %v9174_v42 = vld [vmem:[%s18608_s1 + $0xdf0] sm:$0xff]  ;;  %v8470_v12 = vpop.f32.mrb[192].mxu0  ;;  %v9175_v23 = vld [vmem:[%s18608_s1 + $0x5e0] sm:$0xff] }
 0x2b0   :  { %7168 = vst.msk [vmem:[%s18610_s3 + $0xdc0] sm:$0xff] %vm2337_vm1, %v6656_v19  ;;  %v6403_v32 = vsel %vm5891_vm0, %v5379_v29, nan  ;;  %v5633_v62 = vmul.f32 %v9172_v57, %v10984_v15  ;;  %vm5894_vm5 = vcmp.gt.f32.partialorder %v17389_v45, 0.0  ;;  %v5638_v5 = vmul.f32 %v9174_v42, %v10984_v15  ;;  %v8726_v22 = vpop.f32.mrb[192].mxu1  ;;  %v3912_v50 = vpop.f32.mrb[193].mxu0  ;;  %v9176_v56 = vld [vmem:[%s18608_s1 + $0xde0] sm:$0xff] }
 0x2b1   :  { %v6659_v7 = vsel %vm6147_vm2, %v5635_v28, nan  ;;  %6915 = vst.msk [vmem:[%s18610_s3 + $0x5d8] sm:$0xff] %vm2337_vm1, %v6403_v32  ;;  %v6401_v30 = vsel %vm5889_vm3, %v5377_v4, nan  ;;  %vm6150_vm6 = vcmp.gt.f32.partialorder %v17400_v31, 0.0  ;;  %v5380_v9 = vmul.f32 %v9175_v23, %v10984_v15  ;;  %v4936_v10 = vpop.f32.mrb[193].mxu1  ;;  %v17522_v17 = vpop.f32.mrb[194].mxu0 }
 0x2b2   :  { %7171 = vst.msk [vmem:[%s18610_s3 + $0xdd8] sm:$0xff] %vm2337_vm1, %v6659_v7  ;;  %6913 = vst.msk [vmem:[%s18610_s3 + $0x5c8] sm:$0xff] %vm2337_vm1, %v6401_v30  ;;  %v6657_v18 = vsel %vm6145_vm4, %v5633_v62, nan  ;;  %vm5892_vm7 = vcmp.gt.f32.partialorder %v17402_v24, 0.0  ;;  %v6406_v8 = vsel %vm5894_vm5, %v5382_v59, nan  ;;  %v6662_v20 = vsel %vm6150_vm6, %v5638_v5, nan }
 0x2b3   :  { %7169 = vst.msk [vmem:[%s18610_s3 + $0xdc8] sm:$0xff] %vm2337_vm1, %v6657_v18  ;;  %v5636_v49 = vmul.f32 %v9176_v56, %v10984_v15  ;;  %vm6148_vm8 = vcmp.gt.f32.partialorder %v17421_v58, 0.0  ;;  %6918 = vst.msk [vmem:[%s18610_s3 + $0x5f0] sm:$0xff] %vm2337_vm1, %v6406_v8  ;;  %v6404_v61 = vsel %vm5892_vm7, %v5380_v9, nan  ;;  %v9177_v52 = vld [vmem:[%s18608_s1 + $0x5f8] sm:$0xff]  ;;  %vm5895_vm9 = vcmp.gt.f32.partialorder %v17423_v51, 0.0 }
 0x2b4   :  { %7174 = vst.msk [vmem:[%s18610_s3 + $0xdf0] sm:$0xff] %vm2337_vm1, %v6662_v20  ;;  %v5383_v54 = vmul.f32 %v9177_v52, %v10984_v15  ;;  %v9178_v34 = vld [vmem:[%s18608_s1 + $0xdf8] sm:$0xff]  ;;  %v8727_v37 = vpop.f32.mrb[194].mxu1  ;;  %v17541_v43 = vpop.f32.mrb[195].mxu0  ;;  %6916 = vst.msk [vmem:[%s18610_s3 + $0x5e0] sm:$0xff] %vm2337_vm1, %v6404_v61  ;;  %vm6151_vm10 = vcmp.gt.f32.partialorder %v17435_v0, 0.0 }
 0x2b5   :  { %v5639_v21 = vmul.f32 %v9178_v34, %v10984_v15  ;;  %v6660_v25 = vsel %vm6148_vm8, %v5636_v49, nan  ;;  %v9179_v6 = vld [vmem:[%s18608_s1 + $0x5e8] sm:$0xff]  ;;  %vm5893_vm11 = vcmp.gt.f32.partialorder %v17437_v1, 0.0  ;;  %v17553_v45 = vpop.f32.mrb[195].mxu1  ;;  %vm6149_vm12 = vcmp.gt.f32.partialorder %v17448_v3, 0.0  ;;  %v9181_v24 = vld [vmem:[%s18608_s1 + $0x610] sm:$0xff] }
 0x2b6   :  { %v5381_v46 = vmul.f32 %v9179_v6, %v10984_v15  ;;  %7172 = vst.msk [vmem:[%s18610_s3 + $0xde0] sm:$0xff] %vm2337_vm1, %v6660_v25  ;;  %v6407_v14 = vsel %vm5895_vm9, %v5383_v54, nan  ;;  %v9180_v55 = vld [vmem:[%s18608_s1 + $0xde8] sm:$0xff]  ;;  %v5386_v2 = vmul.f32 %v9181_v24, %v10984_v15  ;;  %vm5898_vm13 = vcmp.gt.f32.partialorder %v8470_v12, 0.0  ;;  %v9182_v60 = vld [vmem:[%s18608_s1 + $0xe10] sm:$0xff]  ;;  %v9183_v36 = vld [vmem:[%s18608_s1 + $0x600] sm:$0xff] }
 0x2b7   :  { %v6663_v26 = vsel %vm6151_vm10, %v5639_v21, nan  ;;  %v5637_v48 = vmul.f32 %v9180_v55, %v10984_v15  ;;  %6919 = vst.msk [vmem:[%s18610_s3 + $0x5f8] sm:$0xff] %vm2337_vm1, %v6407_v14  ;;  %v5642_v44 = vmul.f32 %v9182_v60, %v10984_v15  ;;  %vm6154_vm14 = vcmp.gt.f32.partialorder %v8726_v22, 0.0  ;;  %v9184_v11 = vld [vmem:[%s18608_s1 + $0xe00] sm:$0xff]  ;;  %v8474_v0 = vpop.f32.mrb[196].mxu0  ;;  %v9185_v40 = vld [vmem:[%s18608_s1 + $0x618] sm:$0xff] }
 0x2b8   :  { %7175 = vst.msk [vmem:[%s18610_s3 + $0xdf8] sm:$0xff] %vm2337_vm1, %v6663_v26  ;;  %v6405_v31 = vsel %vm5893_vm11, %v5381_v46, nan  ;;  %v5384_v58 = vmul.f32 %v9183_v36, %v10984_v15  ;;  %vm5896_vm15 = vcmp.gt.f32.partialorder %v3912_v50, 0.0  ;;  %v6410_v51 = vsel %vm5898_vm13, %v5386_v2, nan  ;;  %v9186_v38 = vld [vmem:[%s18608_s1 + $0xe18] sm:$0xff]  ;;  %v8730_v3 = vpop.f32.mrb[196].mxu1 }
 0x2b9   :  { %6917 = vst.msk [vmem:[%s18610_s3 + $0x5e8] sm:$0xff] %vm2337_vm1, %v6405_v31  ;;  %v6661_v16 = vsel %vm6149_vm12, %v5637_v48, nan  ;;  %v6666_v39 = vsel %vm6154_vm14, %v5642_v44, nan  ;;  %v5640_v47 = vmul.f32 %v9184_v11, %v10984_v15  ;;  %vm6152_vm0 = vcmp.gt.f32.partialorder %v4936_v10, 0.0  ;;  %6922 = vst.msk [vmem:[%s18610_s3 + $0x610] sm:$0xff] %vm2337_vm1, %v6410_v51  ;;  %v3928_v53 = vpop.f32.mrb[197].mxu0 }
 0x2ba   :  { %7173 = vst.msk [vmem:[%s18610_s3 + $0xde8] sm:$0xff] %vm2337_vm1, %v6661_v16  ;;  %7178 = vst.msk [vmem:[%s18610_s3 + $0xe10] sm:$0xff] %vm2337_vm1, %v6666_v39  ;;  %v6408_v1 = vsel %vm5896_vm15, %v5384_v58, nan  ;;  %v5387_v41 = vmul.f32 %v9185_v40, %v10984_v15  ;;  %vm5899_vm2 = vcmp.gt.f32.partialorder %v17522_v17, 0.0  ;;  %v5643_v27 = vmul.f32 %v9186_v38, %v10984_v15  ;;  %v9187_v29 = vld [vmem:[%s18608_s1 + $0x608] sm:$0xff]  ;;  %v4952_v28 = vpop.f32.mrb[197].mxu1 }
 0x2bb   :  { %6920 = vst.msk [vmem:[%s18610_s3 + $0x600] sm:$0xff] %vm2337_vm1, %v6408_v1  ;;  %v6664_v35 = vsel %vm6152_vm0, %v5640_v47, nan  ;;  %vm6155_vm3 = vcmp.gt.f32.partialorder %v8727_v37, 0.0  ;;  %v5385_v63 = vmul.f32 %v9187_v29, %v10984_v15  ;;  %vm5897_vm4 = vcmp.gt.f32.partialorder %v17541_v43, 0.0  ;;  %v8475_v19 = vpop.f32.mrb[198].mxu0  ;;  %v9188_v32 = vld [vmem:[%s18608_s1 + $0xe08] sm:$0xff] }
 0x2bc   :  { %7176 = vst.msk [vmem:[%s18610_s3 + $0xe00] sm:$0xff] %vm2337_vm1, %v6664_v35  ;;  %v6411_v13 = vsel %vm5899_vm2, %v5387_v41, nan  ;;  %v6667_v4 = vsel %vm6155_vm3, %v5643_v27, nan  ;;  %v5641_v7 = vmul.f32 %v9188_v32, %v10984_v15  ;;  %vm6153_vm5 = vcmp.gt.f32.partialorder %v17553_v45, 0.0  ;;  %v8731_v57 = vpop.f32.mrb[198].mxu1  ;;  %v3931_v62 = vpop.f32.mrb[199].mxu0 }
 0x2bd   :  { %6923 = vst.msk [vmem:[%s18610_s3 + $0x618] sm:$0xff] %vm2337_vm1, %v6411_v13  ;;  %7179 = vst.msk [vmem:[%s18610_s3 + $0xe18] sm:$0xff] %vm2337_vm1, %v6667_v4  ;;  %v6409_v30 = vsel %vm5897_vm4, %v5385_v63, nan  ;;  %v9189_v33 = vld [vmem:[%s18608_s1 + $0x630] sm:$0xff]  ;;  %vm5902_vm6 = vcmp.gt.f32.partialorder %v8474_v0, 0.0  ;;  %v4955_v12 = vpop.f32.mrb[199].mxu1 }
 0x2be   :  { %v5390_v59 = vmul.f32 %v9189_v33, %v10984_v15  ;;  %v9190_v42 = vld [vmem:[%s18608_s1 + $0xe30] sm:$0xff]  ;;  %6921 = vst.msk [vmem:[%s18610_s3 + $0x608] sm:$0xff] %vm2337_vm1, %v6409_v30  ;;  %v6665_v18 = vsel %vm6153_vm5, %v5641_v7, nan  ;;  %vm6158_vm7 = vcmp.gt.f32.partialorder %v8730_v3, 0.0  ;;  %v9191_v23 = vld [vmem:[%s18608_s1 + $0x620] sm:$0xff]  ;;  %vm5900_vm8 = vcmp.gt.f32.partialorder %v3928_v53, 0.0 }
 0x2bf   :  { %v5646_v5 = vmul.f32 %v9190_v42, %v10984_v15  ;;  %v5388_v9 = vmul.f32 %v9191_v23, %v10984_v15  ;;  %7177 = vst.msk [vmem:[%s18610_s3 + $0xe08] sm:$0xff] %vm2337_vm1, %v6665_v18  ;;  %v9192_v8 = vld [vmem:[%s18608_s1 + $0xe20] sm:$0xff]  ;;  %vm6156_vm9 = vcmp.gt.f32.partialorder %v4952_v28, 0.0  ;;  %v9193_v49 = vld [vmem:[%s18608_s1 + $0x638] sm:$0xff]  ;;  %vm5903_vm10 = vcmp.gt.f32.partialorder %v8475_v19, 0.0  ;;  %v9195_v54 = vld [vmem:[%s18608_s1 + $0x628] sm:$0xff] }
 0x2c0   :  { %v6414_v22 = vsel %vm5902_vm6, %v5390_v59, nan  ;;  %v5644_v20 = vmul.f32 %v9192_v8, %v10984_v15  ;;  %v5391_v10 = vmul.f32 %v9193_v49, %v10984_v15  ;;  %v9194_v17 = vld [vmem:[%s18608_s1 + $0xe38] sm:$0xff]  ;;  %vm6159_vm11 = vcmp.gt.f32.partialorder %v8731_v57, 0.0  ;;  %v8478_v21 = vpop.f32.mrb[200].mxu0  ;;  %v9196_v25 = vld [vmem:[%s18608_s1 + $0xe28] sm:$0xff]  ;;  %v8734_v46 = vpop.f32.mrb[200].mxu1 }
 0x2c1   :  { %v6670_v50 = vsel %vm6158_vm7, %v5646_v5, nan  ;;  %6926 = vst.msk [vmem:[%s18610_s3 + $0x630] sm:$0xff] %vm2337_vm1, %v6414_v22  ;;  %v6412_v56 = vsel %vm5900_vm8, %v5388_v9, nan  ;;  %v5647_v61 = vmul.f32 %v9194_v17, %v10984_v15  ;;  %v5389_v34 = vmul.f32 %v9195_v54, %v10984_v15  ;;  %v3944_v45 = vpop.f32.mrb[201].mxu0  ;;  %v9197_v26 = vld [vmem:[%s18608_s1 + $0x650] sm:$0xff]  ;;  %v4968_v24 = vpop.f32.mrb[201].mxu1 }
 0x2c2   :  { %7182 = vst.msk [vmem:[%s18610_s3 + $0xe30] sm:$0xff] %vm2337_vm1, %v6670_v50  ;;  %6924 = vst.msk [vmem:[%s18610_s3 + $0x620] sm:$0xff] %vm2337_vm1, %v6412_v56  ;;  %v6668_v52 = vsel %vm6156_vm9, %v5644_v20, nan  ;;  %vm5901_vm12 = vcmp.gt.f32.partialorder %v3931_v62, 0.0  ;;  %v6415_v37 = vsel %vm5903_vm10, %v5391_v10, nan  ;;  %v5645_v6 = vmul.f32 %v9196_v25, %v10984_v15  ;;  %v9198_v48 = vld [vmem:[%s18608_s1 + $0xe50] sm:$0xff] }
 0x2c3   :  { %7180 = vst.msk [vmem:[%s18610_s3 + $0xe20] sm:$0xff] %vm2337_vm1, %v6668_v52  ;;  %v6671_v43 = vsel %vm6159_vm11, %v5647_v61, nan  ;;  %vm6157_vm13 = vcmp.gt.f32.partialorder %v4955_v12, 0.0  ;;  %6927 = vst.msk [vmem:[%s18610_s3 + $0x638] sm:$0xff] %vm2337_vm1, %v6415_v37  ;;  %v6413_v14 = vsel %vm5901_vm12, %v5389_v34, nan  ;;  %v5394_v55 = vmul.f32 %v9197_v26, %v10984_v15  ;;  %v8479_v2 = vpop.f32.mrb[202].mxu0 }
 0x2c4   :  { %7183 = vst.msk [vmem:[%s18610_s3 + $0xe38] sm:$0xff] %vm2337_vm1, %v6671_v43  ;;  %vm5906_vm14 = vcmp.gt.f32.partialorder %v8478_v21, 0.0  ;;  %v5650_v31 = vmul.f32 %v9198_v48, %v10984_v15  ;;  %6925 = vst.msk [vmem:[%s18610_s3 + $0x628] sm:$0xff] %vm2337_vm1, %v6413_v14  ;;  %v6669_v60 = vsel %vm6157_vm13, %v5645_v6, nan  ;;  %vm6162_vm15 = vcmp.gt.f32.partialorder %v8734_v46, 0.0  ;;  %v9199_v44 = vld [vmem:[%s18608_s1 + $0x640] sm:$0xff] }
 0x2c5   :  { %v5392_v16 = vmul.f32 %v9199_v44, %v10984_v15  ;;  %vm5904_vm0 = vcmp.gt.f32.partialorder %v3944_v45, 0.0  ;;  %v8735_v36 = vpop.f32.mrb[202].mxu1  ;;  %v3947_v58 = vpop.f32.mrb[203].mxu0  ;;  %7181 = vst.msk [vmem:[%s18610_s3 + $0xe28] sm:$0xff] %vm2337_vm1, %v6669_v60  ;;  %v6418_v51 = vsel %vm5906_vm14, %v5394_v55, nan  ;;  %v9200_v11 = vld [vmem:[%s18608_s1 + $0xe40] sm:$0xff] }
 0x2c6   :  { %v6674_v39 = vsel %vm6162_vm15, %v5650_v31, nan  ;;  %v5648_v47 = vmul.f32 %v9200_v11, %v10984_v15  ;;  %vm6160_vm2 = vcmp.gt.f32.partialorder %v4968_v24, 0.0  ;;  %v4971_v0 = vpop.f32.mrb[203].mxu1  ;;  %6930 = vst.msk [vmem:[%s18610_s3 + $0x650] sm:$0xff] %vm2337_vm1, %v6418_v51  ;;  %v9201_v40 = vld [vmem:[%s18608_s1 + $0x658] sm:$0xff]  ;;  %vm5907_vm3 = vcmp.gt.f32.partialorder %v8479_v2, 0.0 }
 0x2c7   :  { %7186 = vst.msk [vmem:[%s18610_s3 + $0xe50] sm:$0xff] %vm2337_vm1, %v6674_v39  ;;  %v6416_v1 = vsel %vm5904_vm0, %v5392_v16, nan  ;;  %v5395_v41 = vmul.f32 %v9201_v40, %v10984_v15  ;;  %v9202_v38 = vld [vmem:[%s18608_s1 + $0xe58] sm:$0xff]  ;;  %vm6163_vm4 = vcmp.gt.f32.partialorder %v8735_v36, 0.0  ;;  %v9203_v53 = vld [vmem:[%s18608_s1 + $0x648] sm:$0xff]  ;;  %vm5905_vm5 = vcmp.gt.f32.partialorder %v3947_v58, 0.0 }
 0x2c8   :  { %v5651_v27 = vmul.f32 %v9202_v38, %v10984_v15  ;;  %6928 = vst.msk [vmem:[%s18610_s3 + $0x640] sm:$0xff] %vm2337_vm1, %v6416_v1  ;;  %v6672_v3 = vsel %vm6160_vm2, %v5648_v47, nan  ;;  %v5393_v35 = vmul.f32 %v9203_v53, %v10984_v15  ;;  %v9204_v28 = vld [vmem:[%s18608_s1 + $0xe48] sm:$0xff]  ;;  %vm6161_vm6 = vcmp.gt.f32.partialorder %v4971_v0, 0.0  ;;  %v8482_v4 = vpop.f32.mrb[204].mxu0  ;;  %v9205_v32 = vld [vmem:[%s18608_s1 + $0x670] sm:$0xff] }
 0x2c9   :  { %7184 = vst.msk [vmem:[%s18610_s3 + $0xe40] sm:$0xff] %vm2337_vm1, %v6672_v3  ;;  %v6419_v29 = vsel %vm5907_vm3, %v5395_v41, nan  ;;  %v5649_v19 = vmul.f32 %v9204_v28, %v10984_v15  ;;  %v5398_v7 = vmul.f32 %v9205_v32, %v10984_v15  ;;  %v9206_v57 = vld [vmem:[%s18608_s1 + $0xe70] sm:$0xff]  ;;  %v9207_v30 = vld [vmem:[%s18608_s1 + $0x660] sm:$0xff]  ;;  %vm5910_vm7 = vcmp.gt.f32.partialorder %v8482_v4, 0.0  ;;  %v8738_v42 = vpop.f32.mrb[204].mxu1 }
 0x2ca   :  { %v6675_v63 = vsel %vm6163_vm4, %v5651_v27, nan  ;;  %6931 = vst.msk [vmem:[%s18610_s3 + $0x658] sm:$0xff] %vm2337_vm1, %v6419_v29  ;;  %v6417_v13 = vsel %vm5905_vm5, %v5393_v35, nan  ;;  %v5654_v62 = vmul.f32 %v9206_v57, %v10984_v15  ;;  %v5396_v33 = vmul.f32 %v9207_v30, %v10984_v15  ;;  %v3960_v5 = vpop.f32.mrb[205].mxu0  ;;  %v9208_v12 = vld [vmem:[%s18608_s1 + $0xe60] sm:$0xff]  ;;  %v9209_v23 = vld [vmem:[%s18608_s1 + $0x678] sm:$0xff] }
 0x2cb   :  { %7187 = vst.msk [vmem:[%s18610_s3 + $0xe58] sm:$0xff] %vm2337_vm1, %v6675_v63  ;;  %6929 = vst.msk [vmem:[%s18610_s3 + $0x648] sm:$0xff] %vm2337_vm1, %v6417_v13  ;;  %v6673_v59 = vsel %vm6161_vm6, %v5649_v19, nan  ;;  %v5652_v18 = vmul.f32 %v9208_v12, %v10984_v15  ;;  %v5399_v9 = vmul.f32 %v9209_v23, %v10984_v15  ;;  %v6422_v22 = vsel %vm5910_vm7, %v5398_v7, nan  ;;  %v4984_v50 = vpop.f32.mrb[205].mxu1  ;;  %v8483_v8 = vpop.f32.mrb[206].mxu0 }
 0x2cc   :  { %7185 = vst.msk [vmem:[%s18610_s3 + $0xe48] sm:$0xff] %vm2337_vm1, %v6673_v59  ;;  %vm6166_vm8 = vcmp.gt.f32.partialorder %v8738_v42, 0.0  ;;  %vm5908_vm9 = vcmp.gt.f32.partialorder %v3960_v5, 0.0  ;;  %v9210_v20 = vld [vmem:[%s18608_s1 + $0xe78] sm:$0xff]  ;;  %6934 = vst.msk [vmem:[%s18610_s3 + $0x670] sm:$0xff] %vm2337_vm1, %v6422_v22  ;;  %vm6164_vm10 = vcmp.gt.f32.partialorder %v4984_v50, 0.0 }
 0x2cd   :  { %v5655_v56 = vmul.f32 %v9210_v20, %v10984_v15  ;;  %v6678_v49 = vsel %vm6166_vm8, %v5654_v62, nan  ;;  %v6420_v10 = vsel %vm5908_vm9, %v5396_v33, nan  ;;  %vm5911_vm11 = vcmp.gt.f32.partialorder %v8483_v8, 0.0  ;;  %v8739_v17 = vpop.f32.mrb[206].mxu1  ;;  %v3963_v61 = vpop.f32.mrb[207].mxu0  ;;  %v9211_v34 = vld [vmem:[%s18608_s1 + $0x668] sm:$0xff] }
 0x2ce   :  { %7190 = vst.msk [vmem:[%s18610_s3 + $0xe70] sm:$0xff] %vm2337_vm1, %v6678_v49  ;;  %6932 = vst.msk [vmem:[%s18610_s3 + $0x660] sm:$0xff] %vm2337_vm1, %v6420_v10  ;;  %v6676_v52 = vsel %vm6164_vm10, %v5652_v18, nan  ;;  %v6423_v54 = vsel %vm5911_vm11, %v5399_v9, nan  ;;  %vm6167_vm12 = vcmp.gt.f32.partialorder %v8739_v17, 0.0  ;;  %v5397_v21 = vmul.f32 %v9211_v34, %v10984_v15  ;;  %v4987_v37 = vpop.f32.mrb[207].mxu1 }
 0x2cf   :  { %7188 = vst.msk [vmem:[%s18610_s3 + $0xe60] sm:$0xff] %vm2337_vm1, %v6676_v52  ;;  %6935 = vst.msk [vmem:[%s18610_s3 + $0x678] sm:$0xff] %vm2337_vm1, %v6423_v54  ;;  %v6679_v43 = vsel %vm6167_vm12, %v5655_v56, nan  ;;  %vm5909_vm13 = vcmp.gt.f32.partialorder %v3963_v61, 0.0  ;;  %v9212_v25 = vld [vmem:[%s18608_s1 + $0xe68] sm:$0xff]  ;;  %vm6165_vm14 = vcmp.gt.f32.partialorder %v4987_v37, 0.0 }
 0x2d0   :  { %v5653_v6 = vmul.f32 %v9212_v25, %v10984_v15  ;;  %7191 = vst.msk [vmem:[%s18610_s3 + $0xe78] sm:$0xff] %vm2337_vm1, %v6679_v43  ;;  %v6421_v46 = vsel %vm5909_vm13, %v5397_v21, nan  ;;  %v9213_v45 = vld [vmem:[%s18608_s1 + $0x690] sm:$0xff]  ;;  %v9215_v31 = vld [vmem:[%s18608_s1 + $0x680] sm:$0xff]  ;;  %v8486_v2 = vpop.f32.mrb[208].mxu0  ;;  %v9217_v16 = vld [vmem:[%s18608_s1 + $0x698] sm:$0xff] }
 0x2d1   :  { %v5402_v14 = vmul.f32 %v9213_v45, %v10984_v15  ;;  %6933 = vst.msk [vmem:[%s18610_s3 + $0x668] sm:$0xff] %vm2337_vm1, %v6421_v46  ;;  %v9214_v55 = vld [vmem:[%s18608_s1 + $0xe90] sm:$0xff]  ;;  %v5400_v24 = vmul.f32 %v9215_v31, %v10984_v15  ;;  %v9216_v60 = vld [vmem:[%s18608_s1 + $0xe80] sm:$0xff]  ;;  %v5403_v36 = vmul.f32 %v9217_v16, %v10984_v15  ;;  %vm5914_vm15 = vcmp.gt.f32.partialorder %v8486_v2, 0.0  ;;  %v8742_v58 = vpop.f32.mrb[208].mxu1  ;;  %v3976_v51 = vpop.f32.mrb[209].mxu0 }
 0x2d2   :  { %v6677_v26 = vsel %vm6165_vm14, %v5653_v6, nan  ;;  %v5658_v48 = vmul.f32 %v9214_v55, %v10984_v15  ;;  %v5656_v44 = vmul.f32 %v9216_v60, %v10984_v15  ;;  %v9218_v39 = vld [vmem:[%s18608_s1 + $0xe98] sm:$0xff]  ;;  %v9219_v47 = vld [vmem:[%s18608_s1 + $0x688] sm:$0xff]  ;;  %vm6170_vm0 = vcmp.gt.f32.partialorder %v8742_v58, 0.0  ;;  %v5000_v40 = vpop.f32.mrb[209].mxu1  ;;  %v8487_v41 = vpop.f32.mrb[210].mxu0 }
 0x2d3   :  { %7189 = vst.msk [vmem:[%s18610_s3 + $0xe68] sm:$0xff] %vm2337_vm1, %v6677_v26  ;;  %v5659_v11 = vmul.f32 %v9218_v39, %v10984_v15  ;;  %v5401_v0 = vmul.f32 %v9219_v47, %v10984_v15  ;;  %v6426_v1 = vsel %vm5914_vm15, %v5402_v14, nan  ;;  %vm5912_vm2 = vcmp.gt.f32.partialorder %v3976_v51, 0.0  ;;  %v9220_v38 = vld [vmem:[%s18608_s1 + $0xe88] sm:$0xff]  ;;  %v8743_v35 = vpop.f32.mrb[210].mxu1  ;;  %v3979_v29 = vpop.f32.mrb[211].mxu0 }
 0x2d4   :  { %v5657_v27 = vmul.f32 %v9220_v38, %v10984_v15  ;;  %6938 = vst.msk [vmem:[%s18610_s3 + $0x690] sm:$0xff] %vm2337_vm1, %v6426_v1  ;;  %v6682_v3 = vsel %vm6170_vm0, %v5658_v48, nan  ;;  %v6424_v53 = vsel %vm5912_vm2, %v5400_v24, nan  ;;  %vm6168_vm3 = vcmp.gt.f32.partialorder %v5000_v40, 0.0  ;;  %v5003_v19 = vpop.f32.mrb[211].mxu1  ;;  %v9221_v7 = vld [vmem:[%s18608_s1 + $0x6b0] sm:$0xff] }
 0x2d5   :  { %vm5915_vm4 = vcmp.gt.f32.partialorder %v8487_v41, 0.0  ;;  %7194 = vst.msk [vmem:[%s18610_s3 + $0xe90] sm:$0xff] %vm2337_vm1, %v6682_v3  ;;  %6936 = vst.msk [vmem:[%s18610_s3 + $0x680] sm:$0xff] %vm2337_vm1, %v6424_v53  ;;  %v6680_v63 = vsel %vm6168_vm3, %v5656_v44, nan  ;;  %vm6171_vm5 = vcmp.gt.f32.partialorder %v8743_v35, 0.0  ;;  %vm5913_vm6 = vcmp.gt.f32.partialorder %v3979_v29, 0.0 }
 0x2d6   :  { %v6427_v28 = vsel %vm5915_vm4, %v5403_v36, nan  ;;  %7192 = vst.msk [vmem:[%s18610_s3 + $0xe80] sm:$0xff] %vm2337_vm1, %v6680_v63  ;;  %v6683_v13 = vsel %vm6171_vm5, %v5659_v11, nan  ;;  %v6425_v4 = vsel %vm5913_vm6, %v5401_v0, nan  ;;  %vm6169_vm7 = vcmp.gt.f32.partialorder %v5003_v19, 0.0  ;;  %v9222_v62 = vld [vmem:[%s18608_s1 + $0x6a0] sm:$0xff] }
 0x2d7   :  { %6939 = vst.msk [vmem:[%s18610_s3 + $0x698] sm:$0xff] %vm2337_vm1, %v6427_v28  ;;  %7195 = vst.msk [vmem:[%s18610_s3 + $0xe98] sm:$0xff] %vm2337_vm1, %v6683_v13  ;;  %v6681_v32 = vsel %vm6169_vm7, %v5657_v27, nan  ;;  %v5406_v57 = vmul.f32 %v9221_v7, %v10984_v15  ;;  %v5404_v30 = vmul.f32 %v9222_v62, %v10984_v15  ;;  %v8490_v33 = vpop.f32.mrb[212].mxu0  ;;  %v9223_v59 = vld [vmem:[%s18608_s1 + $0x6b8] sm:$0xff]  ;;  %v9224_v5 = vld [vmem:[%s18608_s1 + $0xeb0] sm:$0xff] }
 0x2d8   :  { %6937 = vst.msk [vmem:[%s18610_s3 + $0x688] sm:$0xff] %vm2337_vm1, %v6425_v4  ;;  %7193 = vst.msk [vmem:[%s18610_s3 + $0xe88] sm:$0xff] %vm2337_vm1, %v6681_v32  ;;  %v5407_v42 = vmul.f32 %v9223_v59, %v10984_v15  ;;  %vm5918_vm8 = vcmp.gt.f32.partialorder %v8490_v33, 0.0  ;;  %v5662_v12 = vmul.f32 %v9224_v5, %v10984_v15  ;;  %v3992_v18 = vpop.f32.mrb[213].mxu0  ;;  %v9225_v23 = vld [vmem:[%s18608_s1 + $0x6a8] sm:$0xff]  ;;  %v9226_v50 = vld [vmem:[%s18608_s1 + $0xea0] sm:$0xff] }
 0x2d9   :  { %v5405_v9 = vmul.f32 %v9225_v23, %v10984_v15  ;;  %v6430_v22 = vsel %vm5918_vm8, %v5406_v57, nan  ;;  %vm5916_vm9 = vcmp.gt.f32.partialorder %v3992_v18, 0.0  ;;  %v5660_v8 = vmul.f32 %v9226_v50, %v10984_v15  ;;  %v8491_v20 = vpop.f32.mrb[214].mxu0  ;;  %v8746_v56 = vpop.f32.mrb[212].mxu1  ;;  %v9227_v10 = vld [vmem:[%s18608_s1 + $0xeb8] sm:$0xff]  ;;  %v9228_v34 = vld [vmem:[%s18608_s1 + $0xea8] sm:$0xff] }
 0x2da   :  { %6942 = vst.msk [vmem:[%s18610_s3 + $0x6b0] sm:$0xff] %vm2337_vm1, %v6430_v22  ;;  %v6428_v49 = vsel %vm5916_vm9, %v5404_v30, nan  ;;  %vm5919_vm10 = vcmp.gt.f32.partialorder %v8491_v20, 0.0  ;;  %v5663_v17 = vmul.f32 %v9227_v10, %v10984_v15  ;;  %v3995_v61 = vpop.f32.mrb[215].mxu0  ;;  %vm6174_vm11 = vcmp.gt.f32.partialorder %v8746_v56, 0.0  ;;  %v5016_v52 = vpop.f32.mrb[213].mxu1 }
 0x2db   :  { %6940 = vst.msk [vmem:[%s18610_s3 + $0x6a0] sm:$0xff] %vm2337_vm1, %v6428_v49  ;;  %v6431_v54 = vsel %vm5919_vm10, %v5407_v42, nan  ;;  %vm5917_vm12 = vcmp.gt.f32.partialorder %v3995_v61, 0.0  ;;  %v5661_v21 = vmul.f32 %v9228_v34, %v10984_v15  ;;  %v6686_v37 = vsel %vm6174_vm11, %v5662_v12, nan  ;;  %v8747_v43 = vpop.f32.mrb[214].mxu1  ;;  %v9229_v26 = vld [vmem:[%s18608_s1 + $0x6d0] sm:$0xff] }
 0x2dc   :  { %vm6172_vm13 = vcmp.gt.f32.partialorder %v5016_v52, 0.0  ;;  %6943 = vst.msk [vmem:[%s18610_s3 + $0x6b8] sm:$0xff] %vm2337_vm1, %v6431_v54  ;;  %v6429_v25 = vsel %vm5917_vm12, %v5405_v9, nan  ;;  %7198 = vst.msk [vmem:[%s18610_s3 + $0xeb0] sm:$0xff] %vm2337_vm1, %v6686_v37  ;;  %vm6175_vm14 = vcmp.gt.f32.partialorder %v8747_v43, 0.0  ;;  %v5019_v46 = vpop.f32.mrb[215].mxu1  ;;  %v5410_v55 = vmul.f32 %v9229_v26, %v10984_v15 }
 0x2dd   :  { %v6684_v6 = vsel %vm6172_vm13, %v5660_v8, nan  ;;  %6941 = vst.msk [vmem:[%s18610_s3 + $0x6a8] sm:$0xff] %vm2337_vm1, %v6429_v25  ;;  %v6687_v45 = vsel %vm6175_vm14, %v5663_v17, nan  ;;  %vm6173_vm15 = vcmp.gt.f32.partialorder %v5019_v46, 0.0  ;;  %v9230_v48 = vld [vmem:[%s18608_s1 + $0xed0] sm:$0xff]  ;;  %v9231_v24 = vld [vmem:[%s18608_s1 + $0x6c0] sm:$0xff] }
 0x2de   :  { %7196 = vst.msk [vmem:[%s18610_s3 + $0xea0] sm:$0xff] %vm2337_vm1, %v6684_v6  ;;  %7199 = vst.msk [vmem:[%s18610_s3 + $0xeb8] sm:$0xff] %vm2337_vm1, %v6687_v45  ;;  %v6685_v14 = vsel %vm6173_vm15, %v5661_v21, nan  ;;  %v5666_v31 = vmul.f32 %v9230_v48, %v10984_v15  ;;  %v5408_v2 = vmul.f32 %v9231_v24, %v10984_v15  ;;  %v9232_v44 = vld [vmem:[%s18608_s1 + $0xec0] sm:$0xff]  ;;  %v9233_v36 = vld [vmem:[%s18608_s1 + $0x6d8] sm:$0xff] }
 0x2df   :  { %7197 = vst.msk [vmem:[%s18610_s3 + $0xea8] sm:$0xff] %vm2337_vm1, %v6685_v14  ;;  %v5664_v16 = vmul.f32 %v9232_v44, %v10984_v15  ;;  %v5411_v58 = vmul.f32 %v9233_v36, %v10984_v15  ;;  %v9234_v11 = vld [vmem:[%s18608_s1 + $0xed8] sm:$0xff]  ;;  %v9235_v0 = vld [vmem:[%s18608_s1 + $0x6c8] sm:$0xff]  ;;  %v9237_v57 = vld [vmem:[%s18608_s1 + $0x6f0] sm:$0xff] }
 0x2e0   :  { %v5667_v47 = vmul.f32 %v9234_v11, %v10984_v15  ;;  %v5409_v1 = vmul.f32 %v9235_v0, %v10984_v15  ;;  %v9236_v27 = vld [vmem:[%s18608_s1 + $0xec8] sm:$0xff]  ;;  %v5414_v62 = vmul.f32 %v9237_v57, %v10984_v15  ;;  %v9238_v30 = vld [vmem:[%s18608_s1 + $0xef0] sm:$0xff]  ;;  %v9239_v59 = vld [vmem:[%s18608_s1 + $0x6e0] sm:$0xff] }
 0x2e1   :  { %v5665_v3 = vmul.f32 %v9236_v27, %v10984_v15  ;;  %v5670_v33 = vmul.f32 %v9238_v30, %v10984_v15  ;;  %v5412_v42 = vmul.f32 %v9239_v59, %v10984_v15  ;;  %v9240_v12 = vld [vmem:[%s18608_s1 + $0xee0] sm:$0xff]  ;;  %v9241_v23 = vld [vmem:[%s18608_s1 + $0x6f8] sm:$0xff]  ;;  %v9243_v56 = vld [vmem:[%s18608_s1 + $0x6e8] sm:$0xff] }
 0x2e2   :  { %v8494_v60 = vpop.f32.mrb[216].mxu0  ;;  %v5668_v18 = vmul.f32 %v9240_v12, %v10984_v15  ;;  %v5415_v9 = vmul.f32 %v9241_v23, %v10984_v15  ;;  %v9242_v8 = vld [vmem:[%s18608_s1 + $0xef8] sm:$0xff]  ;;  %v5413_v49 = vmul.f32 %v9243_v56, %v10984_v15  ;;  %v9244_v52 = vld [vmem:[%s18608_s1 + $0xee8] sm:$0xff] }
 0x2e3   :  { %vm5922_vm0 = vcmp.gt.f32.partialorder %v8494_v60, 0.0  ;;  %v8750_v51 = vpop.f32.mrb[216].mxu1  ;;  %v4008_v39 = vpop.f32.mrb[217].mxu0  ;;  %v5671_v20 = vmul.f32 %v9242_v8, %v10984_v15  ;;  %v5669_v54 = vmul.f32 %v9244_v52, %v10984_v15 }
 0x2e4   :  { %v6434_v40 = vsel %vm5922_vm0, %v5410_v55, nan  ;;  %vm6178_vm2 = vcmp.gt.f32.partialorder %v8750_v51, 0.0  ;;  %vm5920_vm3 = vcmp.gt.f32.partialorder %v4008_v39, 0.0  ;;  %v5032_v41 = vpop.f32.mrb[217].mxu1  ;;  %v8495_v38 = vpop.f32.mrb[218].mxu0  ;;  %v9245_v55 = vld [vmem:[%s18608_s1 + $0x710] sm:$0xff] }
 0x2e5   :  { %6946 = vst.msk [vmem:[%s18610_s3 + $0x6d0] sm:$0xff] %vm2337_vm1, %v6434_v40  ;;  %v6690_v53 = vsel %vm6178_vm2, %v5666_v31, nan  ;;  %v6432_v35 = vsel %vm5920_vm3, %v5408_v2, nan  ;;  %vm6176_vm4 = vcmp.gt.f32.partialorder %v5032_v41, 0.0  ;;  %vm5923_vm5 = vcmp.gt.f32.partialorder %v8495_v38, 0.0  ;;  %v8751_v29 = vpop.f32.mrb[218].mxu1 }
 0x2e6   :  { %v4011_v63 = vpop.f32.mrb[219].mxu0  ;;  %7202 = vst.msk [vmem:[%s18610_s3 + $0xed0] sm:$0xff] %vm2337_vm1, %v6690_v53  ;;  %6944 = vst.msk [vmem:[%s18610_s3 + $0x6c0] sm:$0xff] %vm2337_vm1, %v6432_v35  ;;  %v6688_v28 = vsel %vm6176_vm4, %v5664_v16, nan  ;;  %v6435_v19 = vsel %vm5923_vm5, %v5411_v58, nan  ;;  %vm6179_vm6 = vcmp.gt.f32.partialorder %v8751_v29, 0.0  ;;  %v5418_v48 = vmul.f32 %v9245_v55, %v10984_v15 }
 0x2e7   :  { %vm5921_vm7 = vcmp.gt.f32.partialorder %v4011_v63, 0.0  ;;  %v5035_v13 = vpop.f32.mrb[219].mxu1  ;;  %7200 = vst.msk [vmem:[%s18610_s3 + $0xec0] sm:$0xff] %vm2337_vm1, %v6688_v28  ;;  %6947 = vst.msk [vmem:[%s18610_s3 + $0x6d8] sm:$0xff] %vm2337_vm1, %v6435_v19  ;;  %v6691_v4 = vsel %vm6179_vm6, %v5667_v47, nan  ;;  %v9246_v31 = vld [vmem:[%s18608_s1 + $0xf10] sm:$0xff] }
 0x2e8   :  { %v6433_v32 = vsel %vm5921_vm7, %v5409_v1, nan  ;;  %vm6177_vm8 = vcmp.gt.f32.partialorder %v5035_v13, 0.0  ;;  %7203 = vst.msk [vmem:[%s18610_s3 + $0xed8] sm:$0xff] %vm2337_vm1, %v6691_v4  ;;  %v5674_v24 = vmul.f32 %v9246_v31, %v10984_v15  ;;  %v9247_v2 = vld [vmem:[%s18608_s1 + $0x700] sm:$0xff]  ;;  %v9249_v58 = vld [vmem:[%s18608_s1 + $0x718] sm:$0xff]  ;;  %v9251_v1 = vld [vmem:[%s18608_s1 + $0x708] sm:$0xff] }
 0x2e9   :  { %6945 = vst.msk [vmem:[%s18610_s3 + $0x6c8] sm:$0xff] %vm2337_vm1, %v6433_v32  ;;  %v6689_v7 = vsel %vm6177_vm8, %v5665_v3, nan  ;;  %v5416_v60 = vmul.f32 %v9247_v2, %v10984_v15  ;;  %v9248_v16 = vld [vmem:[%s18608_s1 + $0xf00] sm:$0xff]  ;;  %v5419_v51 = vmul.f32 %v9249_v58, %v10984_v15  ;;  %v9250_v47 = vld [vmem:[%s18608_s1 + $0xf18] sm:$0xff]  ;;  %v5417_v40 = vmul.f32 %v9251_v1, %v10984_v15  ;;  %v9252_v3 = vld [vmem:[%s18608_s1 + $0xf08] sm:$0xff] }
 0x2ea   :  { %7201 = vst.msk [vmem:[%s18610_s3 + $0xec8] sm:$0xff] %vm2337_vm1, %v6689_v7  ;;  %v5672_v36 = vmul.f32 %v9248_v16, %v10984_v15  ;;  %v5675_v0 = vmul.f32 %v9250_v47, %v10984_v15  ;;  %v5673_v53 = vmul.f32 %v9252_v3, %v10984_v15 }
 0x2ed   :  { %v8498_v5 = vpop.f32.mrb[220].mxu0 }
 0x2ee   :  { %vm5926_vm9 = vcmp.gt.f32.partialorder %v8498_v5, 0.0  ;;  %v8754_v22 = vpop.f32.mrb[220].mxu1  ;;  %v4024_v50 = vpop.f32.mrb[221].mxu0 }
 0x2ef   :  { %v6438_v10 = vsel %vm5926_vm9, %v5414_v62, nan  ;;  %vm6182_vm10 = vcmp.gt.f32.partialorder %v8754_v22, 0.0  ;;  %vm5924_vm11 = vcmp.gt.f32.partialorder %v4024_v50, 0.0  ;;  %v5048_v17 = vpop.f32.mrb[221].mxu1  ;;  %v8499_v61 = vpop.f32.mrb[222].mxu0  ;;  %v9253_v62 = vld [vmem:[%s18608_s1 + $0x730] sm:$0xff] }
 0x2f0   :  { %6950 = vst.msk [vmem:[%s18610_s3 + $0x6f0] sm:$0xff] %vm2337_vm1, %v6438_v10  ;;  %v6694_v34 = vsel %vm6182_vm10, %v5670_v33, nan  ;;  %v6436_v21 = vsel %vm5924_vm11, %v5412_v42, nan  ;;  %vm6180_vm12 = vcmp.gt.f32.partialorder %v5048_v17, 0.0  ;;  %vm5927_vm13 = vcmp.gt.f32.partialorder %v8499_v61, 0.0  ;;  %v8755_v37 = vpop.f32.mrb[222].mxu1 }
 0x2f1   :  { %v4027_v43 = vpop.f32.mrb[223].mxu0  ;;  %7206 = vst.msk [vmem:[%s18610_s3 + $0xef0] sm:$0xff] %vm2337_vm1, %v6694_v34  ;;  %6948 = vst.msk [vmem:[%s18610_s3 + $0x6e0] sm:$0xff] %vm2337_vm1, %v6436_v21  ;;  %v6692_v25 = vsel %vm6180_vm12, %v5668_v18, nan  ;;  %v6439_v6 = vsel %vm5927_vm13, %v5415_v9, nan  ;;  %vm6183_vm14 = vcmp.gt.f32.partialorder %v8755_v37, 0.0  ;;  %v5422_v30 = vmul.f32 %v9253_v62, %v10984_v15 }
 0x2f2   :  { %vm5925_vm15 = vcmp.gt.f32.partialorder %v4027_v43, 0.0  ;;  %v5051_v46 = vpop.f32.mrb[223].mxu1  ;;  %7204 = vst.msk [vmem:[%s18610_s3 + $0xee0] sm:$0xff] %vm2337_vm1, %v6692_v25  ;;  %6951 = vst.msk [vmem:[%s18610_s3 + $0x6f8] sm:$0xff] %vm2337_vm1, %v6439_v6  ;;  %v6695_v45 = vsel %vm6183_vm14, %v5671_v20, nan  ;;  %v9254_v33 = vld [vmem:[%s18608_s1 + $0xf30] sm:$0xff] }
 0x2f3   :  { %v6437_v14 = vsel %vm5925_vm15, %v5413_v49, nan  ;;  %vm6181_vm0 = vcmp.gt.f32.partialorder %v5051_v46, 0.0  ;;  %7207 = vst.msk [vmem:[%s18610_s3 + $0xef8] sm:$0xff] %vm2337_vm1, %v6695_v45  ;;  %v5678_v59 = vmul.f32 %v9254_v33, %v10984_v15  ;;  %v9255_v42 = vld [vmem:[%s18608_s1 + $0x720] sm:$0xff]  ;;  %v9257_v9 = vld [vmem:[%s18608_s1 + $0x738] sm:$0xff]  ;;  %v9259_v49 = vld [vmem:[%s18608_s1 + $0x728] sm:$0xff] }
 0x2f4   :  { %6949 = vst.msk [vmem:[%s18610_s3 + $0x6e8] sm:$0xff] %vm2337_vm1, %v6437_v14  ;;  %v6693_v26 = vsel %vm6181_vm0, %v5669_v54, nan  ;;  %v5420_v5 = vmul.f32 %v9255_v42, %v10984_v15  ;;  %v9256_v18 = vld [vmem:[%s18608_s1 + $0xf20] sm:$0xff]  ;;  %v5423_v22 = vmul.f32 %v9257_v9, %v10984_v15  ;;  %v9258_v20 = vld [vmem:[%s18608_s1 + $0xf38] sm:$0xff]  ;;  %v5421_v10 = vmul.f32 %v9259_v49, %v10984_v15  ;;  %v9260_v54 = vld [vmem:[%s18608_s1 + $0xf28] sm:$0xff] }
 0x2f5   :  { %7205 = vst.msk [vmem:[%s18610_s3 + $0xee8] sm:$0xff] %vm2337_vm1, %v6693_v26  ;;  %v5676_v23 = vmul.f32 %v9256_v18, %v10984_v15  ;;  %v5679_v56 = vmul.f32 %v9258_v20, %v10984_v15  ;;  %v5677_v34 = vmul.f32 %v9260_v54, %v10984_v15 }
 0x2f9   :  { %v8502_v44 = vpop.f32.mrb[224].mxu0 }
 0x2fa   :  { %vm5930_vm2 = vcmp.gt.f32.partialorder %v8502_v44, 0.0  ;;  %v8758_v39 = vpop.f32.mrb[224].mxu1  ;;  %v4040_v11 = vpop.f32.mrb[225].mxu0 }
 0x2fb   :  { %v6442_v41 = vsel %vm5930_vm2, %v5418_v48, nan  ;;  %vm6186_vm3 = vcmp.gt.f32.partialorder %v8758_v39, 0.0  ;;  %vm5928_vm4 = vcmp.gt.f32.partialorder %v4040_v11, 0.0  ;;  %v5064_v38 = vpop.f32.mrb[225].mxu1  ;;  %v8503_v27 = vpop.f32.mrb[226].mxu0  ;;  %v9261_v48 = vld [vmem:[%s18608_s1 + $0x750] sm:$0xff] }
 0x2fc   :  { %6954 = vst.msk [vmem:[%s18610_s3 + $0x710] sm:$0xff] %vm2337_vm1, %v6442_v41  ;;  %v6698_v35 = vsel %vm6186_vm3, %v5674_v24, nan  ;;  %v6440_v29 = vsel %vm5928_vm4, %v5416_v60, nan  ;;  %vm6184_vm5 = vcmp.gt.f32.partialorder %v5064_v38, 0.0  ;;  %vm5931_vm6 = vcmp.gt.f32.partialorder %v8503_v27, 0.0  ;;  %v8759_v63 = vpop.f32.mrb[226].mxu1 }
 0x2fd   :  { %v4043_v28 = vpop.f32.mrb[227].mxu0  ;;  %7210 = vst.msk [vmem:[%s18610_s3 + $0xf10] sm:$0xff] %vm2337_vm1, %v6698_v35  ;;  %6952 = vst.msk [vmem:[%s18610_s3 + $0x700] sm:$0xff] %vm2337_vm1, %v6440_v29  ;;  %v6696_v19 = vsel %vm6184_vm5, %v5672_v36, nan  ;;  %v6443_v13 = vsel %vm5931_vm6, %v5419_v51, nan  ;;  %vm6187_vm7 = vcmp.gt.f32.partialorder %v8759_v63, 0.0  ;;  %v5426_v31 = vmul.f32 %v9261_v48, %v10984_v15 }
 0x2fe   :  { %vm5929_vm8 = vcmp.gt.f32.partialorder %v4043_v28, 0.0  ;;  %v5067_v4 = vpop.f32.mrb[227].mxu1  ;;  %7208 = vst.msk [vmem:[%s18610_s3 + $0xf00] sm:$0xff] %vm2337_vm1, %v6696_v19  ;;  %6955 = vst.msk [vmem:[%s18610_s3 + $0x718] sm:$0xff] %vm2337_vm1, %v6443_v13  ;;  %v6699_v32 = vsel %vm6187_vm7, %v5675_v0, nan  ;;  %v9262_v24 = vld [vmem:[%s18608_s1 + $0xf50] sm:$0xff] }
 0x2ff   :  { %v6441_v7 = vsel %vm5929_vm8, %v5417_v40, nan  ;;  %vm6185_vm9 = vcmp.gt.f32.partialorder %v5067_v4, 0.0  ;;  %7211 = vst.msk [vmem:[%s18610_s3 + $0xf18] sm:$0xff] %vm2337_vm1, %v6699_v32  ;;  %v5682_v2 = vmul.f32 %v9262_v24, %v10984_v15  ;;  %v9263_v60 = vld [vmem:[%s18608_s1 + $0x740] sm:$0xff]  ;;  %v9265_v51 = vld [vmem:[%s18608_s1 + $0x758] sm:$0xff]  ;;  %v9267_v40 = vld [vmem:[%s18608_s1 + $0x748] sm:$0xff] }
 0x300   :  { %6953 = vst.msk [vmem:[%s18610_s3 + $0x708] sm:$0xff] %vm2337_vm1, %v6441_v7  ;;  %v6697_v57 = vsel %vm6185_vm9, %v5673_v53, nan  ;;  %v5424_v44 = vmul.f32 %v9263_v60, %v10984_v15  ;;  %v9264_v36 = vld [vmem:[%s18608_s1 + $0xf40] sm:$0xff]  ;;  %v5427_v39 = vmul.f32 %v9265_v51, %v10984_v15  ;;  %v9266_v0 = vld [vmem:[%s18608_s1 + $0xf58] sm:$0xff]  ;;  %v5425_v41 = vmul.f32 %v9267_v40, %v10984_v15  ;;  %v9268_v53 = vld [vmem:[%s18608_s1 + $0xf48] sm:$0xff] }
 0x301   :  { %7209 = vst.msk [vmem:[%s18610_s3 + $0xf08] sm:$0xff] %vm2337_vm1, %v6697_v57  ;;  %v5680_v58 = vmul.f32 %v9264_v36, %v10984_v15  ;;  %v5683_v1 = vmul.f32 %v9266_v0, %v10984_v15  ;;  %v5681_v35 = vmul.f32 %v9268_v53, %v10984_v15 }
 0x304   :  { %v8506_v12 = vpop.f32.mrb[228].mxu0 }
 0x305   :  { %vm5934_vm10 = vcmp.gt.f32.partialorder %v8506_v12, 0.0  ;;  %v8762_v50 = vpop.f32.mrb[228].mxu1  ;;  %v4056_v8 = vpop.f32.mrb[229].mxu0 }
 0x306   :  { %v6446_v17 = vsel %vm5934_vm10, %v5422_v30, nan  ;;  %vm6190_vm11 = vcmp.gt.f32.partialorder %v8762_v50, 0.0  ;;  %vm5932_vm12 = vcmp.gt.f32.partialorder %v4056_v8, 0.0  ;;  %v5080_v61 = vpop.f32.mrb[229].mxu1  ;;  %v8507_v52 = vpop.f32.mrb[230].mxu0  ;;  %v9269_v30 = vld [vmem:[%s18608_s1 + $0x770] sm:$0xff] }
 0x307   :  { %6958 = vst.msk [vmem:[%s18610_s3 + $0x730] sm:$0xff] %vm2337_vm1, %v6446_v17  ;;  %v6702_v21 = vsel %vm6190_vm11, %v5678_v59, nan  ;;  %v6444_v37 = vsel %vm5932_vm12, %v5420_v5, nan  ;;  %vm6188_vm13 = vcmp.gt.f32.partialorder %v5080_v61, 0.0  ;;  %vm5935_vm14 = vcmp.gt.f32.partialorder %v8507_v52, 0.0  ;;  %v8763_v43 = vpop.f32.mrb[230].mxu1 }
 0x308   :  { %v4059_v25 = vpop.f32.mrb[231].mxu0  ;;  %7214 = vst.msk [vmem:[%s18610_s3 + $0xf30] sm:$0xff] %vm2337_vm1, %v6702_v21  ;;  %6956 = vst.msk [vmem:[%s18610_s3 + $0x720] sm:$0xff] %vm2337_vm1, %v6444_v37  ;;  %v6700_v6 = vsel %vm6188_vm13, %v5676_v23, nan  ;;  %v6447_v46 = vsel %vm5935_vm14, %v5423_v22, nan  ;;  %vm6191_vm15 = vcmp.gt.f32.partialorder %v8763_v43, 0.0  ;;  %v5430_v33 = vmul.f32 %v9269_v30, %v10984_v15 }
 0x309   :  { %vm5933_vm0 = vcmp.gt.f32.partialorder %v4059_v25, 0.0  ;;  %v5083_v45 = vpop.f32.mrb[231].mxu1  ;;  %7212 = vst.msk [vmem:[%s18610_s3 + $0xf20] sm:$0xff] %vm2337_vm1, %v6700_v6  ;;  %6959 = vst.msk [vmem:[%s18610_s3 + $0x738] sm:$0xff] %vm2337_vm1, %v6447_v46  ;;  %v6703_v14 = vsel %vm6191_vm15, %v5679_v56, nan  ;;  %v9270_v59 = vld [vmem:[%s18608_s1 + $0xf70] sm:$0xff] }
 0x30a   :  { %v6445_v26 = vsel %vm5933_vm0, %v5421_v10, nan  ;;  %vm6189_vm2 = vcmp.gt.f32.partialorder %v5083_v45, 0.0  ;;  %7215 = vst.msk [vmem:[%s18610_s3 + $0xf38] sm:$0xff] %vm2337_vm1, %v6703_v14  ;;  %v5686_v42 = vmul.f32 %v9270_v59, %v10984_v15  ;;  %v9271_v5 = vld [vmem:[%s18608_s1 + $0x760] sm:$0xff]  ;;  %v9273_v22 = vld [vmem:[%s18608_s1 + $0x778] sm:$0xff]  ;;  %v9275_v10 = vld [vmem:[%s18608_s1 + $0x768] sm:$0xff] }
 0x30b   :  { %6957 = vst.msk [vmem:[%s18610_s3 + $0x728] sm:$0xff] %vm2337_vm1, %v6445_v26  ;;  %v6701_v55 = vsel %vm6189_vm2, %v5677_v34, nan  ;;  %v5428_v12 = vmul.f32 %v9271_v5, %v10984_v15  ;;  %v9272_v23 = vld [vmem:[%s18608_s1 + $0xf60] sm:$0xff]  ;;  %v5431_v50 = vmul.f32 %v9273_v22, %v10984_v15  ;;  %v9274_v56 = vld [vmem:[%s18608_s1 + $0xf78] sm:$0xff]  ;;  %v5429_v17 = vmul.f32 %v9275_v10, %v10984_v15  ;;  %v9276_v34 = vld [vmem:[%s18608_s1 + $0xf68] sm:$0xff] }
 0x30c   :  { %7213 = vst.msk [vmem:[%s18610_s3 + $0xf28] sm:$0xff] %vm2337_vm1, %v6701_v55  ;;  %v5684_v9 = vmul.f32 %v9272_v23, %v10984_v15  ;;  %v5687_v49 = vmul.f32 %v9274_v56, %v10984_v15  ;;  %v5685_v21 = vmul.f32 %v9276_v34, %v10984_v15 }
 0x30f   :  { %v8510_v16 = vpop.f32.mrb[232].mxu0 }
 0x310   :  { %vm5938_vm3 = vcmp.gt.f32.partialorder %v8510_v16, 0.0  ;;  %v8766_v11 = vpop.f32.mrb[232].mxu1  ;;  %v4072_v47 = vpop.f32.mrb[233].mxu0 }
 0x311   :  { %v6450_v38 = vsel %vm5938_vm3, %v5426_v31, nan  ;;  %vm6194_vm4 = vcmp.gt.f32.partialorder %v8766_v11, 0.0  ;;  %vm5936_vm5 = vcmp.gt.f32.partialorder %v4072_v47, 0.0  ;;  %v5096_v27 = vpop.f32.mrb[233].mxu1  ;;  %v8511_v3 = vpop.f32.mrb[234].mxu0  ;;  %v9277_v31 = vld [vmem:[%s18608_s1 + $0x790] sm:$0xff] }
 0x312   :  { %6962 = vst.msk [vmem:[%s18610_s3 + $0x750] sm:$0xff] %vm2337_vm1, %v6450_v38  ;;  %v6706_v29 = vsel %vm6194_vm4, %v5682_v2, nan  ;;  %v6448_v63 = vsel %vm5936_vm5, %v5424_v44, nan  ;;  %vm6192_vm6 = vcmp.gt.f32.partialorder %v5096_v27, 0.0  ;;  %vm5939_vm7 = vcmp.gt.f32.partialorder %v8511_v3, 0.0  ;;  %v8767_v28 = vpop.f32.mrb[234].mxu1 }
 0x313   :  { %v4075_v19 = vpop.f32.mrb[235].mxu0  ;;  %7218 = vst.msk [vmem:[%s18610_s3 + $0xf50] sm:$0xff] %vm2337_vm1, %v6706_v29  ;;  %6960 = vst.msk [vmem:[%s18610_s3 + $0x740] sm:$0xff] %vm2337_vm1, %v6448_v63  ;;  %v6704_v13 = vsel %vm6192_vm6, %v5680_v58, nan  ;;  %v6451_v4 = vsel %vm5939_vm7, %v5427_v39, nan  ;;  %vm6195_vm8 = vcmp.gt.f32.partialorder %v8767_v28, 0.0  ;;  %v5434_v24 = vmul.f32 %v9277_v31, %v10984_v15 }
 0x314   :  { %vm5937_vm9 = vcmp.gt.f32.partialorder %v4075_v19, 0.0  ;;  %v5099_v32 = vpop.f32.mrb[235].mxu1  ;;  %7216 = vst.msk [vmem:[%s18610_s3 + $0xf40] sm:$0xff] %vm2337_vm1, %v6704_v13  ;;  %6963 = vst.msk [vmem:[%s18610_s3 + $0x758] sm:$0xff] %vm2337_vm1, %v6451_v4  ;;  %v6707_v7 = vsel %vm6195_vm8, %v5683_v1, nan  ;;  %v9278_v2 = vld [vmem:[%s18608_s1 + $0xf90] sm:$0xff] }
 0x315   :  { %v6449_v57 = vsel %vm5937_vm9, %v5425_v41, nan  ;;  %vm6193_vm10 = vcmp.gt.f32.partialorder %v5099_v32, 0.0  ;;  %7219 = vst.msk [vmem:[%s18610_s3 + $0xf58] sm:$0xff] %vm2337_vm1, %v6707_v7  ;;  %v5690_v60 = vmul.f32 %v9278_v2, %v10984_v15  ;;  %v9279_v44 = vld [vmem:[%s18608_s1 + $0x780] sm:$0xff]  ;;  %v9281_v39 = vld [vmem:[%s18608_s1 + $0x798] sm:$0xff]  ;;  %v9283_v41 = vld [vmem:[%s18608_s1 + $0x788] sm:$0xff] }
 0x316   :  { %6961 = vst.msk [vmem:[%s18610_s3 + $0x748] sm:$0xff] %vm2337_vm1, %v6449_v57  ;;  %v6705_v62 = vsel %vm6193_vm10, %v5681_v35, nan  ;;  %v5432_v16 = vmul.f32 %v9279_v44, %v10984_v15  ;;  %v9280_v58 = vld [vmem:[%s18608_s1 + $0xf80] sm:$0xff]  ;;  %v5435_v11 = vmul.f32 %v9281_v39, %v10984_v15  ;;  %v9282_v1 = vld [vmem:[%s18608_s1 + $0xf98] sm:$0xff]  ;;  %v5433_v38 = vmul.f32 %v9283_v41, %v10984_v15  ;;  %v9284_v35 = vld [vmem:[%s18608_s1 + $0xf88] sm:$0xff] }
 0x317   :  { %7217 = vst.msk [vmem:[%s18610_s3 + $0xf48] sm:$0xff] %vm2337_vm1, %v6705_v62  ;;  %v5688_v51 = vmul.f32 %v9280_v58, %v10984_v15  ;;  %v5691_v40 = vmul.f32 %v9282_v1, %v10984_v15  ;;  %v5689_v29 = vmul.f32 %v9284_v35, %v10984_v15 }
 0x31b   :  { %v8514_v18 = vpop.f32.mrb[236].mxu0 }
 0x31c   :  { %vm5942_vm11 = vcmp.gt.f32.partialorder %v8514_v18, 0.0  ;;  %v8770_v8 = vpop.f32.mrb[236].mxu1  ;;  %v4088_v20 = vpop.f32.mrb[237].mxu0 }
 0x31d   :  { %v6454_v61 = vsel %vm5942_vm11, %v5430_v33, nan  ;;  %vm6198_vm12 = vcmp.gt.f32.partialorder %v8770_v8, 0.0  ;;  %vm5940_vm13 = vcmp.gt.f32.partialorder %v4088_v20, 0.0  ;;  %v5112_v52 = vpop.f32.mrb[237].mxu1  ;;  %v8515_v54 = vpop.f32.mrb[238].mxu0  ;;  %v9285_v33 = vld [vmem:[%s18608_s1 + $0x7b0] sm:$0xff] }
 0x31e   :  { %6966 = vst.msk [vmem:[%s18610_s3 + $0x770] sm:$0xff] %vm2337_vm1, %v6454_v61  ;;  %v6710_v37 = vsel %vm6198_vm12, %v5686_v42, nan  ;;  %v6452_v43 = vsel %vm5940_vm13, %v5428_v12, nan  ;;  %vm6196_vm14 = vcmp.gt.f32.partialorder %v5112_v52, 0.0  ;;  %vm5943_vm15 = vcmp.gt.f32.partialorder %v8515_v54, 0.0  ;;  %v8771_v25 = vpop.f32.mrb[238].mxu1 }
 0x31f   :  { %v4091_v6 = vpop.f32.mrb[239].mxu0  ;;  %7222 = vst.msk [vmem:[%s18610_s3 + $0xf70] sm:$0xff] %vm2337_vm1, %v6710_v37  ;;  %6964 = vst.msk [vmem:[%s18610_s3 + $0x760] sm:$0xff] %vm2337_vm1, %v6452_v43  ;;  %v6708_v46 = vsel %vm6196_vm14, %v5684_v9, nan  ;;  %v6455_v45 = vsel %vm5943_vm15, %v5431_v50, nan  ;;  %vm6199_vm0 = vcmp.gt.f32.partialorder %v8771_v25, 0.0  ;;  %v5438_v59 = vmul.f32 %v9285_v33, %v10984_v15 }
 0x320   :  { %vm5941_vm2 = vcmp.gt.f32.partialorder %v4091_v6, 0.0  ;;  %v5115_v14 = vpop.f32.mrb[239].mxu1  ;;  %7220 = vst.msk [vmem:[%s18610_s3 + $0xf60] sm:$0xff] %vm2337_vm1, %v6708_v46  ;;  %6967 = vst.msk [vmem:[%s18610_s3 + $0x778] sm:$0xff] %vm2337_vm1, %v6455_v45  ;;  %v6711_v26 = vsel %vm6199_vm0, %v5687_v49, nan  ;;  %v9286_v42 = vld [vmem:[%s18608_s1 + $0xfb0] sm:$0xff] }
 0x321   :  { %v6453_v55 = vsel %vm5941_vm2, %v5429_v17, nan  ;;  %vm6197_vm3 = vcmp.gt.f32.partialorder %v5115_v14, 0.0  ;;  %7223 = vst.msk [vmem:[%s18610_s3 + $0xf78] sm:$0xff] %vm2337_vm1, %v6711_v26  ;;  %v5694_v5 = vmul.f32 %v9286_v42, %v10984_v15  ;;  %v9287_v12 = vld [vmem:[%s18608_s1 + $0x7a0] sm:$0xff]  ;;  %v9289_v50 = vld [vmem:[%s18608_s1 + $0x7b8] sm:$0xff]  ;;  %v9291_v17 = vld [vmem:[%s18608_s1 + $0x7a8] sm:$0xff] }
 0x322   :  { %6965 = vst.msk [vmem:[%s18610_s3 + $0x768] sm:$0xff] %vm2337_vm1, %v6453_v55  ;;  %v6709_v48 = vsel %vm6197_vm3, %v5685_v21, nan  ;;  %v5436_v18 = vmul.f32 %v9287_v12, %v10984_v15  ;;  %v9288_v9 = vld [vmem:[%s18608_s1 + $0xfa0] sm:$0xff]  ;;  %v5439_v8 = vmul.f32 %v9289_v50, %v10984_v15  ;;  %v9290_v49 = vld [vmem:[%s18608_s1 + $0xfb8] sm:$0xff]  ;;  %v5437_v61 = vmul.f32 %v9291_v17, %v10984_v15  ;;  %v9292_v21 = vld [vmem:[%s18608_s1 + $0xfa8] sm:$0xff] }
 0x323   :  { %7221 = vst.msk [vmem:[%s18610_s3 + $0xf68] sm:$0xff] %vm2337_vm1, %v6709_v48  ;;  %v5692_v22 = vmul.f32 %v9288_v9, %v10984_v15  ;;  %v5695_v10 = vmul.f32 %v9290_v49, %v10984_v15  ;;  %v5693_v37 = vmul.f32 %v9292_v21, %v10984_v15 }
 0x326   :  { %v8518_v36 = vpop.f32.mrb[240].mxu0 }
 0x327   :  { %vm5946_vm4 = vcmp.gt.f32.partialorder %v8518_v36, 0.0  ;;  %v8774_v47 = vpop.f32.mrb[240].mxu1  ;;  %v4104_v0 = vpop.f32.mrb[241].mxu0 }
 0x328   :  { %v6458_v27 = vsel %vm5946_vm4, %v5434_v24, nan  ;;  %vm6202_vm5 = vcmp.gt.f32.partialorder %v8774_v47, 0.0  ;;  %vm5944_vm6 = vcmp.gt.f32.partialorder %v4104_v0, 0.0  ;;  %v5128_v3 = vpop.f32.mrb[241].mxu1  ;;  %v8519_v53 = vpop.f32.mrb[242].mxu0  ;;  %v9293_v24 = vld [vmem:[%s18608_s1 + $0x7d0] sm:$0xff] }
 0x329   :  { %6970 = vst.msk [vmem:[%s18610_s3 + $0x790] sm:$0xff] %vm2337_vm1, %v6458_v27  ;;  %v6714_v63 = vsel %vm6202_vm5, %v5690_v60, nan  ;;  %v6456_v28 = vsel %vm5944_vm6, %v5432_v16, nan  ;;  %vm6200_vm7 = vcmp.gt.f32.partialorder %v5128_v3, 0.0  ;;  %vm5947_vm8 = vcmp.gt.f32.partialorder %v8519_v53, 0.0  ;;  %v8775_v19 = vpop.f32.mrb[242].mxu1 }
 0x32a   :  { %v4107_v13 = vpop.f32.mrb[243].mxu0  ;;  %7226 = vst.msk [vmem:[%s18610_s3 + $0xf90] sm:$0xff] %vm2337_vm1, %v6714_v63  ;;  %6968 = vst.msk [vmem:[%s18610_s3 + $0x780] sm:$0xff] %vm2337_vm1, %v6456_v28  ;;  %v6712_v4 = vsel %vm6200_vm7, %v5688_v51, nan  ;;  %v6459_v32 = vsel %vm5947_vm8, %v5435_v11, nan  ;;  %vm6203_vm9 = vcmp.gt.f32.partialorder %v8775_v19, 0.0  ;;  %v5442_v2 = vmul.f32 %v9293_v24, %v10984_v15 }
 0x32b   :  { %vm5945_vm10 = vcmp.gt.f32.partialorder %v4107_v13, 0.0  ;;  %v5131_v7 = vpop.f32.mrb[243].mxu1  ;;  %7224 = vst.msk [vmem:[%s18610_s3 + $0xf80] sm:$0xff] %vm2337_vm1, %v6712_v4  ;;  %6971 = vst.msk [vmem:[%s18610_s3 + $0x798] sm:$0xff] %vm2337_vm1, %v6459_v32  ;;  %v6715_v57 = vsel %vm6203_vm9, %v5691_v40, nan  ;;  %v9294_v60 = vld [vmem:[%s18608_s1 + $0xfd0] sm:$0xff] }
 0x32c   :  { %v6457_v62 = vsel %vm5945_vm10, %v5433_v38, nan  ;;  %vm6201_vm11 = vcmp.gt.f32.partialorder %v5131_v7, 0.0  ;;  %7227 = vst.msk [vmem:[%s18610_s3 + $0xf98] sm:$0xff] %vm2337_vm1, %v6715_v57  ;;  %v5698_v44 = vmul.f32 %v9294_v60, %v10984_v15  ;;  %v9295_v16 = vld [vmem:[%s18608_s1 + $0x7c0] sm:$0xff]  ;;  %v9297_v11 = vld [vmem:[%s18608_s1 + $0x7d8] sm:$0xff]  ;;  %v9299_v38 = vld [vmem:[%s18608_s1 + $0x7c8] sm:$0xff] }
 0x32d   :  { %6969 = vst.msk [vmem:[%s18610_s3 + $0x788] sm:$0xff] %vm2337_vm1, %v6457_v62  ;;  %v6713_v30 = vsel %vm6201_vm11, %v5689_v29, nan  ;;  %v5440_v36 = vmul.f32 %v9295_v16, %v10984_v15  ;;  %v9296_v51 = vld [vmem:[%s18608_s1 + $0xfc0] sm:$0xff]  ;;  %v5443_v47 = vmul.f32 %v9297_v11, %v10984_v15  ;;  %v9298_v40 = vld [vmem:[%s18608_s1 + $0xfd8] sm:$0xff]  ;;  %v5441_v27 = vmul.f32 %v9299_v38, %v10984_v15  ;;  %v9300_v29 = vld [vmem:[%s18608_s1 + $0xfc8] sm:$0xff] }
 0x32e   :  { %7225 = vst.msk [vmem:[%s18610_s3 + $0xf88] sm:$0xff] %vm2337_vm1, %v6713_v30  ;;  %v5696_v39 = vmul.f32 %v9296_v51, %v10984_v15  ;;  %v5699_v41 = vmul.f32 %v9298_v40, %v10984_v15  ;;  %v5697_v63 = vmul.f32 %v9300_v29, %v10984_v15 }
 0x331   :  { %v8522_v23 = vpop.f32.mrb[244].mxu0 }
 0x332   :  { %vm5950_vm12 = vcmp.gt.f32.partialorder %v8522_v23, 0.0  ;;  %v8778_v20 = vpop.f32.mrb[244].mxu1  ;;  %v4120_v56 = vpop.f32.mrb[245].mxu0 }
 0x333   :  { %v6462_v52 = vsel %vm5950_vm12, %v5438_v59, nan  ;;  %vm6206_vm13 = vcmp.gt.f32.partialorder %v8778_v20, 0.0  ;;  %vm5948_vm14 = vcmp.gt.f32.partialorder %v4120_v56, 0.0  ;;  %v5144_v54 = vpop.f32.mrb[245].mxu1  ;;  %v8523_v34 = vpop.f32.mrb[246].mxu0  ;;  %v9301_v59 = vld [vmem:[%s18608_s1 + $0x7f0] sm:$0xff] }
 0x334   :  { %6974 = vst.msk [vmem:[%s18610_s3 + $0x7b0] sm:$0xff] %vm2337_vm1, %v6462_v52  ;;  %v6718_v43 = vsel %vm6206_vm13, %v5694_v5, nan  ;;  %v6460_v25 = vsel %vm5948_vm14, %v5436_v18, nan  ;;  %vm6204_vm15 = vcmp.gt.f32.partialorder %v5144_v54, 0.0  ;;  %vm5951_vm0 = vcmp.gt.f32.partialorder %v8523_v34, 0.0  ;;  %v8779_v6 = vpop.f32.mrb[246].mxu1 }
 0x335   :  { %v4123_v46 = vpop.f32.mrb[247].mxu0  ;;  %7230 = vst.msk [vmem:[%s18610_s3 + $0xfb0] sm:$0xff] %vm2337_vm1, %v6718_v43  ;;  %6972 = vst.msk [vmem:[%s18610_s3 + $0x7a0] sm:$0xff] %vm2337_vm1, %v6460_v25  ;;  %v6716_v45 = vsel %vm6204_vm15, %v5692_v22, nan  ;;  %v6463_v14 = vsel %vm5951_vm0, %v5439_v8, nan  ;;  %vm6207_vm2 = vcmp.gt.f32.partialorder %v8779_v6, 0.0  ;;  %v5446_v42 = vmul.f32 %v9301_v59, %v10984_v15 }
 0x336   :  { %vm5949_vm3 = vcmp.gt.f32.partialorder %v4123_v46, 0.0  ;;  %v5147_v26 = vpop.f32.mrb[247].mxu1  ;;  %7228 = vst.msk [vmem:[%s18610_s3 + $0xfa0] sm:$0xff] %vm2337_vm1, %v6716_v45  ;;  %6975 = vst.msk [vmem:[%s18610_s3 + $0x7b8] sm:$0xff] %vm2337_vm1, %v6463_v14  ;;  %v6719_v55 = vsel %vm6207_vm2, %v5695_v10, nan  ;;  %v9302_v5 = vld [vmem:[%s18608_s1 + $0xff0] sm:$0xff] }
 0x337   :  { %v6461_v48 = vsel %vm5949_vm3, %v5437_v61, nan  ;;  %vm6205_vm4 = vcmp.gt.f32.partialorder %v5147_v26, 0.0  ;;  %7231 = vst.msk [vmem:[%s18610_s3 + $0xfb8] sm:$0xff] %vm2337_vm1, %v6719_v55  ;;  %v5702_v12 = vmul.f32 %v9302_v5, %v10984_v15  ;;  %v9303_v18 = vld [vmem:[%s18608_s1 + $0x7e0] sm:$0xff]  ;;  %v9305_v8 = vld [vmem:[%s18608_s1 + $0x7f8] sm:$0xff]  ;;  %v9307_v61 = vld [vmem:[%s18608_s1 + $0x7e8] sm:$0xff] }
 0x338   :  { %6973 = vst.msk [vmem:[%s18610_s3 + $0x7a8] sm:$0xff] %vm2337_vm1, %v6461_v48  ;;  %v6717_v31 = vsel %vm6205_vm4, %v5693_v37, nan  ;;  %v5444_v23 = vmul.f32 %v9303_v18, %v10984_v15  ;;  %v9304_v22 = vld [vmem:[%s18608_s1 + $0xfe0] sm:$0xff]  ;;  %v5447_v20 = vmul.f32 %v9305_v8, %v10984_v15  ;;  %v9306_v10 = vld [vmem:[%s18608_s1 + $0xff8] sm:$0xff]  ;;  %v5445_v52 = vmul.f32 %v9307_v61, %v10984_v15  ;;  %v9308_v37 = vld [vmem:[%s18608_s1 + $0xfe8] sm:$0xff] }
 0x339   :  { %7229 = vst.msk [vmem:[%s18610_s3 + $0xfa8] sm:$0xff] %vm2337_vm1, %v6717_v31  ;;  %v5700_v50 = vmul.f32 %v9304_v22, %v10984_v15  ;;  %v5703_v17 = vmul.f32 %v9306_v10, %v10984_v15  ;;  %v5701_v43 = vmul.f32 %v9308_v37, %v10984_v15 }
 0x33c   :  { %v8526_v58 = vpop.f32.mrb[248].mxu0 }
 0x33d   :  { %vm5954_vm5 = vcmp.gt.f32.partialorder %v8526_v58, 0.0  ;;  %v8782_v0 = vpop.f32.mrb[248].mxu1  ;;  %v4136_v1 = vpop.f32.mrb[249].mxu0 }
 0x33e   :  { %v6466_v3 = vsel %vm5954_vm5, %v5442_v2, nan  ;;  %vm6210_vm6 = vcmp.gt.f32.partialorder %v8782_v0, 0.0  ;;  %vm5952_vm7 = vcmp.gt.f32.partialorder %v4136_v1, 0.0  ;;  %v5160_v53 = vpop.f32.mrb[249].mxu1  ;;  %v8527_v35 = vpop.f32.mrb[250].mxu0 }
 0x33f   :  { %6978 = vst.msk [vmem:[%s18610_s3 + $0x7d0] sm:$0xff] %vm2337_vm1, %v6466_v3  ;;  %v6722_v28 = vsel %vm6210_vm6, %v5698_v44, nan  ;;  %v6464_v19 = vsel %vm5952_vm7, %v5440_v36, nan  ;;  %vm6208_vm8 = vcmp.gt.f32.partialorder %v5160_v53, 0.0  ;;  %vm5955_vm9 = vcmp.gt.f32.partialorder %v8527_v35, 0.0  ;;  %v8783_v13 = vpop.f32.mrb[250].mxu1 }
 0x340   :  { %v4139_v4 = vpop.f32.mrb[251].mxu0  ;;  %7234 = vst.msk [vmem:[%s18610_s3 + $0xfd0] sm:$0xff] %vm2337_vm1, %v6722_v28  ;;  %6976 = vst.msk [vmem:[%s18610_s3 + $0x7c0] sm:$0xff] %vm2337_vm1, %v6464_v19  ;;  %v6720_v32 = vsel %vm6208_vm8, %v5696_v39, nan  ;;  %v6467_v7 = vsel %vm5955_vm9, %v5443_v47, nan  ;;  %vm6211_vm10 = vcmp.gt.f32.partialorder %v8783_v13, 0.0 }
 0x341   :  { %vm5953_vm11 = vcmp.gt.f32.partialorder %v4139_v4, 0.0  ;;  %v5163_v57 = vpop.f32.mrb[251].mxu1  ;;  %7232 = vst.msk [vmem:[%s18610_s3 + $0xfc0] sm:$0xff] %vm2337_vm1, %v6720_v32  ;;  %6979 = vst.msk [vmem:[%s18610_s3 + $0x7d8] sm:$0xff] %vm2337_vm1, %v6467_v7  ;;  %v6723_v62 = vsel %vm6211_vm10, %v5699_v41, nan }
 0x342   :  { %v6465_v30 = vsel %vm5953_vm11, %v5441_v27, nan  ;;  %vm6209_vm12 = vcmp.gt.f32.partialorder %v5163_v57, 0.0  ;;  %7235 = vst.msk [vmem:[%s18610_s3 + $0xfd8] sm:$0xff] %vm2337_vm1, %v6723_v62 }
 0x343   :  { %6977 = vst.msk [vmem:[%s18610_s3 + $0x7c8] sm:$0xff] %vm2337_vm1, %v6465_v30  ;;  %v6721_v33 = vsel %vm6209_vm12, %v5697_v63, nan }
 0x344   :  { %7233 = vst.msk [vmem:[%s18610_s3 + $0xfc8] sm:$0xff] %vm2337_vm1, %v6721_v33 }
 0x347   :  { %v8530_v9 = vpop.f32.mrb[252].mxu0 }
 0x348   :  { %vm5958_vm13 = vcmp.gt.f32.partialorder %v8530_v9, 0.0  ;;  %v8786_v56 = vpop.f32.mrb[252].mxu1  ;;  %v4152_v49 = vpop.f32.mrb[253].mxu0 }
 0x349   :  { %v6470_v54 = vsel %vm5958_vm13, %v5446_v42, nan  ;;  %vm6214_vm14 = vcmp.gt.f32.partialorder %v8786_v56, 0.0  ;;  %vm5956_vm15 = vcmp.gt.f32.partialorder %v4152_v49, 0.0  ;;  %v5176_v34 = vpop.f32.mrb[253].mxu1  ;;  %v8531_v21 = vpop.f32.mrb[254].mxu0 }
 0x34a   :  { %6982 = vst.msk [vmem:[%s18610_s3 + $0x7f0] sm:$0xff] %vm2337_vm1, %v6470_v54  ;;  %v6726_v25 = vsel %vm6214_vm14, %v5702_v12, nan  ;;  %v6468_v6 = vsel %vm5956_vm15, %v5444_v23, nan  ;;  %vm6212_vm0 = vcmp.gt.f32.partialorder %v5176_v34, 0.0  ;;  %vm5959_vm2 = vcmp.gt.f32.partialorder %v8531_v21, 0.0  ;;  %v8787_v46 = vpop.f32.mrb[254].mxu1 }
 0x34b   :  { %v4155_v45 = vpop.f32.mrb[255].mxu0  ;;  %7238 = vst.msk [vmem:[%s18610_s3 + $0xff0] sm:$0xff] %vm2337_vm1, %v6726_v25  ;;  %6980 = vst.msk [vmem:[%s18610_s3 + $0x7e0] sm:$0xff] %vm2337_vm1, %v6468_v6  ;;  %v6724_v15 = vsel %vm6212_vm0, %v5700_v50, nan  ;;  %v6471_v14 = vsel %vm5959_vm2, %v5447_v20, nan  ;;  %vm6215_vm3 = vcmp.gt.f32.partialorder %v8787_v46, 0.0 }
 0x34c   :  { %vm5957_vm4 = vcmp.gt.f32.partialorder %v4155_v45, 0.0  ;;  %v5179_v26 = vpop.f32.mrb[255].mxu1  ;;  %7236 = vst.msk [vmem:[%s18610_s3 + $0xfe0] sm:$0xff] %vm2337_vm1, %v6724_v15  ;;  %6983 = vst.msk [vmem:[%s18610_s3 + $0x7f8] sm:$0xff] %vm2337_vm1, %v6471_v14  ;;  %v6727_v55 = vsel %vm6215_vm3, %v5703_v17, nan }
 0x34d   :  { %v6469_v48 = vsel %vm5957_vm4, %v5445_v52, nan  ;;  %vm6213_vm5 = vcmp.gt.f32.partialorder %v5179_v26, 0.0  ;;  %7239 = vst.msk [vmem:[%s18610_s3 + $0xff8] sm:$0xff] %vm2337_vm1, %v6727_v55 }
 0x34e   :  { %6981 = vst.msk [vmem:[%s18610_s3 + $0x7e8] sm:$0xff] %vm2337_vm1, %v6469_v48  ;;  %v6725_v31 = vsel %vm6213_vm5, %v5701_v43, nan }
 0x34f   :  { %7237 = vst.msk [vmem:[%s18610_s3 + $0xfe8] sm:$0xff] %vm2337_vm1, %v6725_v31 }

</bundles_post_ra>
